<compile_context>
chip_gen: v5e
topology: v5e:2x2
jax: 0.10.0
libtpu: 0.0.40
codegen_flags: <defaults>
</compile_context>

<pallas_src>
import functools

import jax
import jax.numpy as jnp
from jax import lax
from jax.experimental import pallas as pl
from jax.experimental.pallas import tpu as pltpu
import numpy as np


# -----------------------------------------------------------------------------
# Pallas kernel: fused bi-LSTM recurrence + max-pool over time + tanh + FC
#                + log_softmax
# -----------------------------------------------------------------------------
def textrcnn_kernel(emb_ref,            # [TB*S, E]   bf16  (batch-major, flattened)
                    wih_ref,            # [E, 8H]     bf16  (both dirs, gate-interleaved)
                    whh_ref,            # [2H, 8H]    bf16  (block-diagonal, interleaved)
                    b_ref,              # [1, 8H]     f32   (b_ih + b_hh, both dirs)
                    fcw_ref, fcb_ref,   # [2H+E, C] f32, [1, C] f32
                    out_ref,            # [TB, C]     f32
                    *, S, H):
    TBS, E = emb_ref.shape
    TB = TBS // S
    G8 = 8 * H

    emb = emb_ref[...]                                            # (TB*S, E) bf16

    # Embedding branch of the concat: max over time (tanh applied after pooling).
    max_e = jnp.max(emb.astype(jnp.float32).reshape(TB, S, E), axis=1)   # (TB, E)

    # ---- hoisted input projection (+bias) for BOTH directions: one bf16 MXU dot
    p = (jnp.dot(emb, wih_ref[...], preferred_element_type=jnp.float32)
         + b_ref[...])                                            # (TB*S, 8H) f32
    # Re-order (cheaply, in VMEM) to time-major so per-step slices are
    # contiguous (TB, 8H) slabs.
    xp = jnp.transpose(p.reshape(TB, S, G8), (1, 0, 2))           # (S, TB, 8H)

    whh = whh_ref[...]                                            # (2H, 8H) bf16

    # Lane masks over the interleaved gate layout [i_f,i_b,f_f,f_b,g_f,g_b,o_f,o_b].
    lane = lax.broadcasted_iota(jnp.int32, (TB, G8), 1)
    is_g = (lane >= 4 * H) & (lane < 6 * H)          # "g" gates (both directions)
    is_bwd = (lane % (2 * H)) >= H                   # backward-direction lanes

    h = jnp.zeros((TB, 2 * H), jnp.float32)          # [h_f | h_b]
    c = jnp.zeros((TB, 2 * H), jnp.float32)          # [c_f | c_b]
    m = jnp.full((TB, 2 * H), -jnp.inf, jnp.float32)  # running max over time

    # ---- fused fwd/bwd recurrence, fully unrolled (S small & static) ----
    for t in range(S):
        # Forward lanes read time t, backward lanes read time S-1-t.
        # (VPU select, independent of h -> off the serial critical path.)
        xp_t = jnp.where(is_bwd, xp[S - 1 - t], xp[t])            # (TB, 8H) f32
        gates = xp_t + jnp.dot(h.astype(jnp.bfloat16), whh,
                               preferred_element_type=jnp.float32)
        # One EUP pass for all gates: sigmoid(x) = 0.5*(1 + tanh(x/2)).
        z = jnp.tanh(jnp.where(is_g, gates, 0.5 * gates))
        act = jnp.where(is_g, z, 0.5 * (z + 1.0))
        i_g = act[:, 0 * 2 * H:1 * 2 * H]            # [i_f | i_b]
        f_g = act[:, 1 * 2 * H:2 * 2 * H]            # [f_f | f_b]
        g_g = act[:, 2 * 2 * H:3 * 2 * H]            # [g_f | g_b]
        o_g = act[:, 3 * 2 * H:4 * 2 * H]            # [o_f | o_b]
        c = f_g * c + i_g * g_g
        h = o_g * jnp.tanh(c)
        m = jnp.maximum(m, h)

    # ---- tanh(max-pool(cat)) then a single concatenated FC dot ----
    pooled = jnp.concatenate([m, max_e], axis=1)                  # (TB, 2H+E)
    feat = jnp.tanh(pooled)
    logits = (jnp.dot(feat, fcw_ref[...], preferred_element_type=jnp.float32)
              + fcb_ref[...])                                     # (TB, C)

    # ---- log_softmax over class dim ----
    # TODO(synk): C=8 -> masked (vst.msk) output stores; pad class dim to a
    # lane-friendly width only if the epilogue ever shows up in a trace.
    mx = jnp.max(logits, axis=1, keepdims=True)
    lse = jnp.log(jnp.sum(jnp.exp(logits - mx), axis=1, keepdims=True)) + mx
    out_ref[...] = logits - lse


# -----------------------------------------------------------------------------
# Wrapper: weight re-packing, batch tiling/padding, pallas_call
# -----------------------------------------------------------------------------
def _build_combined_lstm_weights(wih_f, whh_f, b_f, wih_b, whh_b, b_b, H):
    """Pack both directions into one gate-interleaved layout.

    Column order (width H each): [i_f, i_b, f_f, f_b, g_f, g_b, o_f, o_b].
    Returns:
      wih_cat : (E, 8H)  bf16   input projection for both directions
      whh_bd  : (2H, 8H) bf16   block-diagonal recurrent weights ([h_f|h_b] input)
      b_cat   : (1, 8H)  f32    summed biases
    """
    E = wih_f.shape[1]
    G8 = 8 * H
    wih_cat = jnp.zeros((E, G8), jnp.float32)
    whh_bd = jnp.zeros((2 * H, G8), jnp.float32)
    b_cat = jnp.zeros((G8,), jnp.float32)
    for gi in range(4):                                   # PyTorch gate order i,f,g,o
        rf = slice(gi * H, (gi + 1) * H)                  # torch gate rows
        cf = slice(gi * 2 * H, gi * 2 * H + H)            # fwd columns
        cb = slice(gi * 2 * H + H, (gi + 1) * 2 * H)      # bwd columns
        wih_cat = wih_cat.at[:, cf].set(wih_f[rf, :].T)
        wih_cat = wih_cat.at[:, cb].set(wih_b[rf, :].T)
        whh_bd = whh_bd.at[0:H, cf].set(whh_f[rf, :].T)
        whh_bd = whh_bd.at[H:2 * H, cb].set(whh_b[rf, :].T)
        b_cat = b_cat.at[cf].set(b_f[rf])
        b_cat = b_cat.at[cb].set(b_b[rf])
    return (wih_cat.astype(jnp.bfloat16),
            whh_bd.astype(jnp.bfloat16),
            b_cat.reshape(1, G8))


def textrcnn_forward(x_tokens, params):
    """x_tokens: int32 [B, S].  Returns log-probs [B, class_num] (f32)."""
    (embedding, wih_f, whh_f, b_f, wih_b, whh_b, b_b, fc_w, fc_b) = params
    B, S = x_tokens.shape
    E = embedding.shape[1]
    H = whh_f.shape[1]
    C = fc_w.shape[0]

    wih_cat, whh_bd, b_cat = _build_combined_lstm_weights(
        wih_f, whh_f, b_f, wih_b, whh_b, b_b, H)
    fcw_t = fc_w.T                       # (2H+E, C) f32 (tiny, once per block)
    fcb2 = fc_b.reshape(1, C)

    # Batch tile: multiple of 8, capped at 64 so the 6 live state slabs
    # (h/c/m in f32) stay within the 64-vreg file; batch padded so the grid
    # divides evenly (padded rows are independent; sliced off below).
    TB = min(64, ((B + 7) // 8) * 8)
    Bp = ((B + TB - 1) // TB) * TB
    grid = (Bp // TB,)

    x_pad = x_tokens
    if Bp != B:
        x_pad = jnp.concatenate(
            [x_tokens, jnp.zeros((Bp - B, S), x_tokens.dtype)], axis=0)

    # Embedding lookup (gather) is glue — plain JAX.  Feed the kernel a
    # pre-flattened, batch-major [Bp*S, E] bf16 slab (dense blocks, no
    # per-block retile, half the DMA bytes of f32).
    embed_x = embedding[x_pad].astype(jnp.bfloat16).reshape(Bp * S, E)

    kernel = functools.partial(textrcnn_kernel, S=S, H=H)

    def full(shape):
        # whole-array block, constant index -> stays VMEM-resident across grid
        return pl.BlockSpec(shape, lambda i, _n=len(shape): (0,) * _n)

    out = pl.pallas_call(
        kernel,
        out_shape=jax.ShapeDtypeStruct((Bp, C), jnp.float32),
        grid=grid,
        in_specs=[
            pl.BlockSpec((TB * S, E), lambda i: (i, 0)),   # embeddings, batch-tiled
            full((E, 8 * H)),                              # W_ih (both dirs)
            full((2 * H, 8 * H)),                          # W_hh block-diagonal
            full((1, 8 * H)),                              # biases
            full((2 * H + E, C)), full((1, C)),            # FC
        ],
        out_specs=pl.BlockSpec((TB, C), lambda i: (i, 0)),
        compiler_params=pltpu.CompilerParams(
            dimension_semantics=("parallel",),     # megacore / v7x 2nd TC
            vmem_limit_bytes=32 * 1024 * 1024,     # safe on v5e/v6e/v7x
        ),
    )(embed_x, wih_cat, whh_bd, b_cat, fcw_t, fcb2)
    return out[:B]


# -----------------------------------------------------------------------------
# Pure-JAX reference (same math, literal op ordering of the PyTorch module, f32)
# -----------------------------------------------------------------------------
def textrcnn_reference(x_tokens, params):
    (embedding, wih_f, whh_f, b_f, wih_b, whh_b, b_b, fc_w, fc_b) = params
    H = whh_f.shape[1]
    embed_x = embedding[x_tokens]                        # [B, S, E]
    xs = jnp.transpose(embed_x, (1, 0, 2))               # [S, B, E]
    B = xs.shape[1]

    def make_step(wih, whh, b):
        def step(carry, x_t):
            h, c = carry
            gates = x_t @ wih.T + h @ whh.T + b
            i = jax.nn.sigmoid(gates[:, 0:H])
            f = jax.nn.sigmoid(gates[:, H:2 * H])
            g = jnp.tanh(gates[:, 2 * H:3 * H])
            o = jax.nn.sigmoid(gates[:, 3 * H:4 * H])
            c = f * c + i * g
            h = o * jnp.tanh(c)
            return (h, c), h
        return step

    h0 = jnp.zeros((B, H), jnp.float32)
    c0 = jnp.zeros((B, H), jnp.float32)
    _, hf = lax.scan(make_step(wih_f, whh_f, b_f), (h0, c0), xs)
    _, hb = lax.scan(make_step(wih_b, whh_b, b_b), (h0, c0), xs[::-1])
    hb = hb[::-1]
    out = jnp.concatenate([hf, hb], axis=-1)             # [S, B, 2H]
    cat = jnp.concatenate([out, xs], axis=-1)            # [S, B, 2H+E]
    pooled = jnp.max(jnp.tanh(cat), axis=0)              # [B, 2H+E]
    logits = pooled @ fc_w.T + fc_b
    return jax.nn.log_softmax(logits, axis=1)


# -----------------------------------------------------------------------------
# Deterministic parameter init (matches PyTorch default init distributions)
# -----------------------------------------------------------------------------
def init_params(key, vocab_size, embed_size, hidden_size, class_num):
    E, H, C = embed_size, hidden_size, class_num
    ks = jax.random.split(key, 12)
    k_lstm = 1.0 / np.sqrt(H)
    k_fc = 1.0 / np.sqrt(2 * H + E)

    embedding = jax.random.normal(ks[0], (vocab_size, E), jnp.float32)
    wih_f = jax.random.uniform(ks[1], (4 * H, E), jnp.float32, -k_lstm, k_lstm)
    whh_f = jax.random.uniform(ks[2], (4 * H, H), jnp.float32, -k_lstm, k_lstm)
    b_f = (jax.random.uniform(ks[3], (4 * H,), jnp.float32, -k_lstm, k_lstm)
           + jax.random.uniform(ks[4], (4 * H,), jnp.float32, -k_lstm, k_lstm))
    wih_b = jax.random.uniform(ks[5], (4 * H, E), jnp.float32, -k_lstm, k_lstm)
    whh_b = jax.random.uniform(ks[6], (4 * H, H), jnp.float32, -k_lstm, k_lstm)
    b_b = (jax.random.uniform(ks[7], (4 * H,), jnp.float32, -k_lstm, k_lstm)
           + jax.random.uniform(ks[8], (4 * H,), jnp.float32, -k_lstm, k_lstm))
    fc_w = jax.random.uniform(ks[9], (C, 2 * H + E), jnp.float32, -k_fc, k_fc)
    fc_b = jax.random.uniform(ks[10], (C,), jnp.float32, -k_fc, k_fc)
    return (embedding, wih_f, whh_f, b_f, wih_b, whh_b, b_b, fc_w, fc_b)


if __name__ == "__main__":
    # Module hyper-parameters (bidirectional=True, num_layers=1, dropout unused)
    vocab_size, embed_size, hidden_size = 50, 32, 32
    class_num, seq_len = 8, 8
    batch = 256                       # TB=64 -> grid=(4,): blocks for both v7x TCs

    key = jax.random.PRNGKey(0)
    k_tok, k_param = jax.random.split(key)
    params = init_params(k_param, vocab_size, embed_size, hidden_size, class_num)
    x = jax.random.randint(k_tok, (batch, seq_len), 0, vocab_size, jnp.int32)

    logits = textrcnn_forward(x, params)
    jax.block_until_ready(logits)

    ref = textrcnn_reference(x, params)
    jax.block_until_ready(ref)
    # Relaxed tolerance: kernel uses bf16 embeddings / W_ih / W_hh / h operands
    # (f32 accumulation; c, gate elementwise math and softmax in f32);
    # reference is full f32.
    np.testing.assert_allclose(np.asarray(logits), np.asarray(ref),
                               rtol=2e-2, atol=5e-2)

    assert logits.shape == (batch, class_num)
    print("KERNEL_OK")
</pallas_src>

<mosaic_0001>
module attributes {stable_mosaic.version = 11 : i64} {
  func.func @textrcnn_kernel(%arg0: i32, %arg1: memref<512x32xbf16, #tpu.memory_space<vmem>>, %arg2: memref<32x256xbf16, #tpu.memory_space<vmem>>, %arg3: memref<64x256xbf16, #tpu.memory_space<vmem>>, %arg4: memref<1x256xf32, #tpu.memory_space<vmem>>, %arg5: memref<96x8xf32, #tpu.memory_space<vmem>>, %arg6: memref<1x8xf32, #tpu.memory_space<vmem>>, %arg7: memref<64x8xf32, #tpu.memory_space<vmem>>) attributes {dimension_semantics = [#tpu.dimension_semantics<parallel>], iteration_bounds = array<i64: 4>, scalar_prefetch = 0 : i64, scratch_operands = 0 : i64, tpu.core_type = #tpu.core_type<tc>, window_params = [{transform_indices = @transform_0, window_bounds = array<i64: 512, 32>}, {pipeline_mode = #tpu.pipeline_mode<synchronous>, transform_indices = @transform_1, window_bounds = array<i64: 32, 256>}, {pipeline_mode = #tpu.pipeline_mode<synchronous>, transform_indices = @transform_2, window_bounds = array<i64: 64, 256>}, {pipeline_mode = #tpu.pipeline_mode<synchronous>, transform_indices = @transform_3, window_bounds = array<i64: 1, 256>}, {pipeline_mode = #tpu.pipeline_mode<synchronous>, transform_indices = @transform_4, window_bounds = array<i64: 96, 8>}, {pipeline_mode = #tpu.pipeline_mode<synchronous>, transform_indices = @transform_5, window_bounds = array<i64: 1, 8>}, {transform_indices = @transform_6, window_bounds = array<i64: 64, 8>}]} {
    %c0 = arith.constant 0 : index
    %c0_0 = arith.constant 0 : index
    %0 = vector.load %arg1[%c0, %c0_0] : memref<512x32xbf16, #tpu.memory_space<vmem>>, vector<512x32xbf16>
    %1 = arith.extf %0 : vector<512x32xbf16> to vector<512x32xf32>
    %2 = vector.shape_cast %1 : vector<512x32xf32> to vector<64x8x32xf32>
    %cst = arith.constant dense<0xFF800000> : vector<64x32xf32>
    %3 = vector.multi_reduction <maximumf>, %2, %cst [1] : vector<64x8x32xf32> to vector<64x32xf32>
    %c0_1 = arith.constant 0 : index
    %c0_2 = arith.constant 0 : index
    %4 = vector.load %arg2[%c0_1, %c0_2] : memref<32x256xbf16, #tpu.memory_space<vmem>>, vector<32x256xbf16>
    %cst_3 = arith.constant dense<0.000000e+00> : vector<512x256xf32>
    %5 = tpu.matmul %0, %4, %cst_3 {dimension_numbers = #tpu.dot_dimension_numbers<[1], [0], [0], [1], [0, 0, 1, 1], [], []>} : vector<512x32xbf16>, vector<32x256xbf16>, vector<512x256xf32> -> vector<512x256xf32>
    %c0_4 = arith.constant 0 : index
    %c0_5 = arith.constant 0 : index
    %6 = vector.load %arg4[%c0_4, %c0_5] : memref<1x256xf32, #tpu.memory_space<vmem>>, vector<1x256xf32>
    %7 = vector.broadcast %6 : vector<1x256xf32> to vector<512x256xf32>
    %8 = arith.addf %5, %7 : vector<512x256xf32>
    %9 = vector.shape_cast %8 : vector<512x256xf32> to vector<64x8x256xf32>
    %10 = tpu.transpose %9, [1, 0, 2] : vector<64x8x256xf32> -> vector<8x64x256xf32>
    %c0_6 = arith.constant 0 : index
    %c0_7 = arith.constant 0 : index
    %11 = vector.load %arg3[%c0_6, %c0_7] : memref<64x256xbf16, #tpu.memory_space<vmem>>, vector<64x256xbf16>
    %12 = tpu.iota {dimensions = array<i32: 1>} : vector<64x256xi32>
    %c128_i32 = arith.constant 128 : i32
    %13 = vector.broadcast %c128_i32 : i32 to vector<64x256xi32>
    %14 = arith.cmpi sge, %12, %13 : vector<64x256xi32>
    %c192_i32 = arith.constant 192 : i32
    %15 = vector.broadcast %c192_i32 : i32 to vector<64x256xi32>
    %16 = arith.cmpi slt, %12, %15 : vector<64x256xi32>
    %17 = arith.andi %14, %16 : vector<64x256xi1>
    %c64_i32 = arith.constant 64 : i32
    %c0_i32 = arith.constant 0 : i32
    %18 = arith.cmpi eq, %c64_i32, %c0_i32 : i32
    %c1_i32 = arith.constant 1 : i32
    %19 = arith.select %18, %c1_i32, %c64_i32 : i32
    %20 = vector.broadcast %19 : i32 to vector<64x256xi32>
    %21 = arith.remsi %12, %20 : vector<64x256xi32>
    %c0_i32_8 = arith.constant 0 : i32
    %22 = vector.broadcast %c0_i32_8 : i32 to vector<64x256xi32>
    %23 = arith.cmpi ne, %21, %22 : vector<64x256xi32>
    %c0_i32_9 = arith.constant 0 : i32
    %24 = vector.broadcast %c0_i32_9 : i32 to vector<64x256xi32>
    %25 = arith.cmpi slt, %21, %24 : vector<64x256xi32>
    %c0_i32_10 = arith.constant 0 : i32
    %26 = arith.cmpi slt, %19, %c0_i32_10 : i32
    %27 = vector.broadcast %26 : i1 to vector<64x256xi1>
    %28 = vector.broadcast %27 : vector<64x256xi1> to vector<64x256xi1>
    %29 = arith.xori %25, %28 : vector<64x256xi1>
    %30 = arith.andi %29, %23 : vector<64x256xi1>
    %31 = vector.broadcast %19 : i32 to vector<64x256xi32>
    %32 = arith.addi %21, %31 : vector<64x256xi32>
    %33 = arith.select %30, %32, %21 : vector<64x256xi1>, vector<64x256xi32>
    %c32_i32 = arith.constant 32 : i32
    %34 = vector.broadcast %c32_i32 : i32 to vector<64x256xi32>
    %35 = arith.cmpi sge, %33, %34 : vector<64x256xi32>
    %cst_11 = arith.constant 0.000000e+00 : f32
    %36 = vector.broadcast %cst_11 : f32 to vector<64x64xf32>
    %cst_12 = arith.constant 0.000000e+00 : f32
    %37 = vector.broadcast %cst_12 : f32 to vector<64x64xf32>
    %cst_13 = arith.constant 0xFF800000 : f32
    %38 = vector.broadcast %cst_13 : f32 to vector<64x64xf32>
    %39 = vector.extract_strided_slice %10 {offsets = [7, 0, 0], sizes = [1, 64, 256], strides = [1, 1, 1]} : vector<8x64x256xf32> to vector<1x64x256xf32>
    %40 = vector.shape_cast %39 : vector<1x64x256xf32> to vector<64x256xf32>
    %41 = vector.extract_strided_slice %10 {offsets = [0, 0, 0], sizes = [1, 64, 256], strides = [1, 1, 1]} : vector<8x64x256xf32> to vector<1x64x256xf32>
    %42 = vector.shape_cast %41 : vector<1x64x256xf32> to vector<64x256xf32>
    %43 = arith.select %35, %40, %42 : vector<64x256xi1>, vector<64x256xf32>
    %44 = arith.truncf %36 : vector<64x64xf32> to vector<64x64xbf16>
    %cst_14 = arith.constant dense<0.000000e+00> : vector<64x256xf32>
    %45 = tpu.matmul %44, %11, %cst_14 {dimension_numbers = #tpu.dot_dimension_numbers<[1], [0], [0], [1], [0, 0, 1, 1], [], []>} : vector<64x64xbf16>, vector<64x256xbf16>, vector<64x256xf32> -> vector<64x256xf32>
    %46 = arith.addf %43, %45 : vector<64x256xf32>
    %cst_15 = arith.constant 5.000000e-01 : f32
    %47 = vector.broadcast %cst_15 : f32 to vector<64x256xf32>
    %48 = arith.mulf %47, %46 : vector<64x256xf32>
    %49 = arith.select %17, %46, %48 : vector<64x256xi1>, vector<64x256xf32>
    %50 = math.tanh %49 : vector<64x256xf32>
    %cst_16 = arith.constant 1.000000e+00 : f32
    %51 = vector.broadcast %cst_16 : f32 to vector<64x256xf32>
    %52 = arith.addf %50, %51 : vector<64x256xf32>
    %cst_17 = arith.constant 5.000000e-01 : f32
    %53 = vector.broadcast %cst_17 : f32 to vector<64x256xf32>
    %54 = arith.mulf %53, %52 : vector<64x256xf32>
    %55 = arith.select %17, %50, %54 : vector<64x256xi1>, vector<64x256xf32>
    %56 = vector.extract_strided_slice %55 {offsets = [0, 0], sizes = [64, 64], strides = [1, 1]} : vector<64x256xf32> to vector<64x64xf32>
    %57 = vector.extract_strided_slice %55 {offsets = [0, 64], sizes = [64, 64], strides = [1, 1]} : vector<64x256xf32> to vector<64x64xf32>
    %58 = vector.extract_strided_slice %55 {offsets = [0, 128], sizes = [64, 64], strides = [1, 1]} : vector<64x256xf32> to vector<64x64xf32>
    %59 = vector.extract_strided_slice %55 {offsets = [0, 192], sizes = [64, 64], strides = [1, 1]} : vector<64x256xf32> to vector<64x64xf32>
    %60 = arith.mulf %57, %37 : vector<64x64xf32>
    %61 = arith.mulf %56, %58 : vector<64x64xf32>
    %62 = arith.addf %60, %61 : vector<64x64xf32>
    %63 = math.tanh %62 : vector<64x64xf32>
    %64 = arith.mulf %59, %63 : vector<64x64xf32>
    %65 = arith.maximumf %38, %64 : vector<64x64xf32>
    %66 = vector.extract_strided_slice %10 {offsets = [6, 0, 0], sizes = [1, 64, 256], strides = [1, 1, 1]} : vector<8x64x256xf32> to vector<1x64x256xf32>
    %67 = vector.shape_cast %66 : vector<1x64x256xf32> to vector<64x256xf32>
    %68 = vector.extract_strided_slice %10 {offsets = [1, 0, 0], sizes = [1, 64, 256], strides = [1, 1, 1]} : vector<8x64x256xf32> to vector<1x64x256xf32>
    %69 = vector.shape_cast %68 : vector<1x64x256xf32> to vector<64x256xf32>
    %70 = arith.select %35, %67, %69 : vector<64x256xi1>, vector<64x256xf32>
    %71 = arith.truncf %64 : vector<64x64xf32> to vector<64x64xbf16>
    %cst_18 = arith.constant dense<0.000000e+00> : vector<64x256xf32>
    %72 = tpu.matmul %71, %11, %cst_18 {dimension_numbers = #tpu.dot_dimension_numbers<[1], [0], [0], [1], [0, 0, 1, 1], [], []>} : vector<64x64xbf16>, vector<64x256xbf16>, vector<64x256xf32> -> vector<64x256xf32>
    %73 = arith.addf %70, %72 : vector<64x256xf32>
    %cst_19 = arith.constant 5.000000e-01 : f32
    %74 = vector.broadcast %cst_19 : f32 to vector<64x256xf32>
    %75 = arith.mulf %74, %73 : vector<64x256xf32>
    %76 = arith.select %17, %73, %75 : vector<64x256xi1>, vector<64x256xf32>
    %77 = math.tanh %76 : vector<64x256xf32>
    %cst_20 = arith.constant 1.000000e+00 : f32
    %78 = vector.broadcast %cst_20 : f32 to vector<64x256xf32>
    %79 = arith.addf %77, %78 : vector<64x256xf32>
    %cst_21 = arith.constant 5.000000e-01 : f32
    %80 = vector.broadcast %cst_21 : f32 to vector<64x256xf32>
    %81 = arith.mulf %80, %79 : vector<64x256xf32>
    %82 = arith.select %17, %77, %81 : vector<64x256xi1>, vector<64x256xf32>
    %83 = vector.extract_strided_slice %82 {offsets = [0, 0], sizes = [64, 64], strides = [1, 1]} : vector<64x256xf32> to vector<64x64xf32>
    %84 = vector.extract_strided_slice %82 {offsets = [0, 64], sizes = [64, 64], strides = [1, 1]} : vector<64x256xf32> to vector<64x64xf32>
    %85 = vector.extract_strided_slice %82 {offsets = [0, 128], sizes = [64, 64], strides = [1, 1]} : vector<64x256xf32> to vector<64x64xf32>
    %86 = vector.extract_strided_slice %82 {offsets = [0, 192], sizes = [64, 64], strides = [1, 1]} : vector<64x256xf32> to vector<64x64xf32>
    %87 = arith.mulf %84, %62 : vector<64x64xf32>
    %88 = arith.mulf %83, %85 : vector<64x64xf32>
    %89 = arith.addf %87, %88 : vector<64x64xf32>
    %90 = math.tanh %89 : vector<64x64xf32>
    %91 = arith.mulf %86, %90 : vector<64x64xf32>
    %92 = arith.maximumf %65, %91 : vector<64x64xf32>
    %93 = vector.extract_strided_slice %10 {offsets = [5, 0, 0], sizes = [1, 64, 256], strides = [1, 1, 1]} : vector<8x64x256xf32> to vector<1x64x256xf32>
    %94 = vector.shape_cast %93 : vector<1x64x256xf32> to vector<64x256xf32>
    %95 = vector.extract_strided_slice %10 {offsets = [2, 0, 0], sizes = [1, 64, 256], strides = [1, 1, 1]} : vector<8x64x256xf32> to vector<1x64x256xf32>
    %96 = vector.shape_cast %95 : vector<1x64x256xf32> to vector<64x256xf32>
    %97 = arith.select %35, %94, %96 : vector<64x256xi1>, vector<64x256xf32>
    %98 = arith.truncf %91 : vector<64x64xf32> to vector<64x64xbf16>
    %cst_22 = arith.constant dense<0.000000e+00> : vector<64x256xf32>
    %99 = tpu.matmul %98, %11, %cst_22 {dimension_numbers = #tpu.dot_dimension_numbers<[1], [0], [0], [1], [0, 0, 1, 1], [], []>} : vector<64x64xbf16>, vector<64x256xbf16>, vector<64x256xf32> -> vector<64x256xf32>
    %100 = arith.addf %97, %99 : vector<64x256xf32>
    %cst_23 = arith.constant 5.000000e-01 : f32
    %101 = vector.broadcast %cst_23 : f32 to vector<64x256xf32>
    %102 = arith.mulf %101, %100 : vector<64x256xf32>
    %103 = arith.select %17, %100, %102 : vector<64x256xi1>, vector<64x256xf32>
    %104 = math.tanh %103 : vector<64x256xf32>
    %cst_24 = arith.constant 1.000000e+00 : f32
    %105 = vector.broadcast %cst_24 : f32 to vector<64x256xf32>
    %106 = arith.addf %104, %105 : vector<64x256xf32>
    %cst_25 = arith.constant 5.000000e-01 : f32
    %107 = vector.broadcast %cst_25 : f32 to vector<64x256xf32>
    %108 = arith.mulf %107, %106 : vector<64x256xf32>
    %109 = arith.select %17, %104, %108 : vector<64x256xi1>, vector<64x256xf32>
    %110 = vector.extract_strided_slice %109 {offsets = [0, 0], sizes = [64, 64], strides = [1, 1]} : vector<64x256xf32> to vector<64x64xf32>
    %111 = vector.extract_strided_slice %109 {offsets = [0, 64], sizes = [64, 64], strides = [1, 1]} : vector<64x256xf32> to vector<64x64xf32>
    %112 = vector.extract_strided_slice %109 {offsets = [0, 128], sizes = [64, 64], strides = [1, 1]} : vector<64x256xf32> to vector<64x64xf32>
    %113 = vector.extract_strided_slice %109 {offsets = [0, 192], sizes = [64, 64], strides = [1, 1]} : vector<64x256xf32> to vector<64x64xf32>
    %114 = arith.mulf %111, %89 : vector<64x64xf32>
    %115 = arith.mulf %110, %112 : vector<64x64xf32>
    %116 = arith.addf %114, %115 : vector<64x64xf32>
    %117 = math.tanh %116 : vector<64x64xf32>
    %118 = arith.mulf %113, %117 : vector<64x64xf32>
    %119 = arith.maximumf %92, %118 : vector<64x64xf32>
    %120 = vector.extract_strided_slice %10 {offsets = [4, 0, 0], sizes = [1, 64, 256], strides = [1, 1, 1]} : vector<8x64x256xf32> to vector<1x64x256xf32>
    %121 = vector.shape_cast %120 : vector<1x64x256xf32> to vector<64x256xf32>
    %122 = vector.extract_strided_slice %10 {offsets = [3, 0, 0], sizes = [1, 64, 256], strides = [1, 1, 1]} : vector<8x64x256xf32> to vector<1x64x256xf32>
    %123 = vector.shape_cast %122 : vector<1x64x256xf32> to vector<64x256xf32>
    %124 = arith.select %35, %121, %123 : vector<64x256xi1>, vector<64x256xf32>
    %125 = arith.truncf %118 : vector<64x64xf32> to vector<64x64xbf16>
    %cst_26 = arith.constant dense<0.000000e+00> : vector<64x256xf32>
    %126 = tpu.matmul %125, %11, %cst_26 {dimension_numbers = #tpu.dot_dimension_numbers<[1], [0], [0], [1], [0, 0, 1, 1], [], []>} : vector<64x64xbf16>, vector<64x256xbf16>, vector<64x256xf32> -> vector<64x256xf32>
    %127 = arith.addf %124, %126 : vector<64x256xf32>
    %cst_27 = arith.constant 5.000000e-01 : f32
    %128 = vector.broadcast %cst_27 : f32 to vector<64x256xf32>
    %129 = arith.mulf %128, %127 : vector<64x256xf32>
    %130 = arith.select %17, %127, %129 : vector<64x256xi1>, vector<64x256xf32>
    %131 = math.tanh %130 : vector<64x256xf32>
    %cst_28 = arith.constant 1.000000e+00 : f32
    %132 = vector.broadcast %cst_28 : f32 to vector<64x256xf32>
    %133 = arith.addf %131, %132 : vector<64x256xf32>
    %cst_29 = arith.constant 5.000000e-01 : f32
    %134 = vector.broadcast %cst_29 : f32 to vector<64x256xf32>
    %135 = arith.mulf %134, %133 : vector<64x256xf32>
    %136 = arith.select %17, %131, %135 : vector<64x256xi1>, vector<64x256xf32>
    %137 = vector.extract_strided_slice %136 {offsets = [0, 0], sizes = [64, 64], strides = [1, 1]} : vector<64x256xf32> to vector<64x64xf32>
    %138 = vector.extract_strided_slice %136 {offsets = [0, 64], sizes = [64, 64], strides = [1, 1]} : vector<64x256xf32> to vector<64x64xf32>
    %139 = vector.extract_strided_slice %136 {offsets = [0, 128], sizes = [64, 64], strides = [1, 1]} : vector<64x256xf32> to vector<64x64xf32>
    %140 = vector.extract_strided_slice %136 {offsets = [0, 192], sizes = [64, 64], strides = [1, 1]} : vector<64x256xf32> to vector<64x64xf32>
    %141 = arith.mulf %138, %116 : vector<64x64xf32>
    %142 = arith.mulf %137, %139 : vector<64x64xf32>
    %143 = arith.addf %141, %142 : vector<64x64xf32>
    %144 = math.tanh %143 : vector<64x64xf32>
    %145 = arith.mulf %140, %144 : vector<64x64xf32>
    %146 = arith.maximumf %119, %145 : vector<64x64xf32>
    %147 = vector.extract_strided_slice %10 {offsets = [3, 0, 0], sizes = [1, 64, 256], strides = [1, 1, 1]} : vector<8x64x256xf32> to vector<1x64x256xf32>
    %148 = vector.shape_cast %147 : vector<1x64x256xf32> to vector<64x256xf32>
    %149 = vector.extract_strided_slice %10 {offsets = [4, 0, 0], sizes = [1, 64, 256], strides = [1, 1, 1]} : vector<8x64x256xf32> to vector<1x64x256xf32>
    %150 = vector.shape_cast %149 : vector<1x64x256xf32> to vector<64x256xf32>
    %151 = arith.select %35, %148, %150 : vector<64x256xi1>, vector<64x256xf32>
    %152 = arith.truncf %145 : vector<64x64xf32> to vector<64x64xbf16>
    %cst_30 = arith.constant dense<0.000000e+00> : vector<64x256xf32>
    %153 = tpu.matmul %152, %11, %cst_30 {dimension_numbers = #tpu.dot_dimension_numbers<[1], [0], [0], [1], [0, 0, 1, 1], [], []>} : vector<64x64xbf16>, vector<64x256xbf16>, vector<64x256xf32> -> vector<64x256xf32>
    %154 = arith.addf %151, %153 : vector<64x256xf32>
    %cst_31 = arith.constant 5.000000e-01 : f32
    %155 = vector.broadcast %cst_31 : f32 to vector<64x256xf32>
    %156 = arith.mulf %155, %154 : vector<64x256xf32>
    %157 = arith.select %17, %154, %156 : vector<64x256xi1>, vector<64x256xf32>
    %158 = math.tanh %157 : vector<64x256xf32>
    %cst_32 = arith.constant 1.000000e+00 : f32
    %159 = vector.broadcast %cst_32 : f32 to vector<64x256xf32>
    %160 = arith.addf %158, %159 : vector<64x256xf32>
    %cst_33 = arith.constant 5.000000e-01 : f32
    %161 = vector.broadcast %cst_33 : f32 to vector<64x256xf32>
    %162 = arith.mulf %161, %160 : vector<64x256xf32>
    %163 = arith.select %17, %158, %162 : vector<64x256xi1>, vector<64x256xf32>
    %164 = vector.extract_strided_slice %163 {offsets = [0, 0], sizes = [64, 64], strides = [1, 1]} : vector<64x256xf32> to vector<64x64xf32>
    %165 = vector.extract_strided_slice %163 {offsets = [0, 64], sizes = [64, 64], strides = [1, 1]} : vector<64x256xf32> to vector<64x64xf32>
    %166 = vector.extract_strided_slice %163 {offsets = [0, 128], sizes = [64, 64], strides = [1, 1]} : vector<64x256xf32> to vector<64x64xf32>
    %167 = vector.extract_strided_slice %163 {offsets = [0, 192], sizes = [64, 64], strides = [1, 1]} : vector<64x256xf32> to vector<64x64xf32>
    %168 = arith.mulf %165, %143 : vector<64x64xf32>
    %169 = arith.mulf %164, %166 : vector<64x64xf32>
    %170 = arith.addf %168, %169 : vector<64x64xf32>
    %171 = math.tanh %170 : vector<64x64xf32>
    %172 = arith.mulf %167, %171 : vector<64x64xf32>
    %173 = arith.maximumf %146, %172 : vector<64x64xf32>
    %174 = vector.extract_strided_slice %10 {offsets = [2, 0, 0], sizes = [1, 64, 256], strides = [1, 1, 1]} : vector<8x64x256xf32> to vector<1x64x256xf32>
    %175 = vector.shape_cast %174 : vector<1x64x256xf32> to vector<64x256xf32>
    %176 = vector.extract_strided_slice %10 {offsets = [5, 0, 0], sizes = [1, 64, 256], strides = [1, 1, 1]} : vector<8x64x256xf32> to vector<1x64x256xf32>
    %177 = vector.shape_cast %176 : vector<1x64x256xf32> to vector<64x256xf32>
    %178 = arith.select %35, %175, %177 : vector<64x256xi1>, vector<64x256xf32>
    %179 = arith.truncf %172 : vector<64x64xf32> to vector<64x64xbf16>
    %cst_34 = arith.constant dense<0.000000e+00> : vector<64x256xf32>
    %180 = tpu.matmul %179, %11, %cst_34 {dimension_numbers = #tpu.dot_dimension_numbers<[1], [0], [0], [1], [0, 0, 1, 1], [], []>} : vector<64x64xbf16>, vector<64x256xbf16>, vector<64x256xf32> -> vector<64x256xf32>
    %181 = arith.addf %178, %180 : vector<64x256xf32>
    %cst_35 = arith.constant 5.000000e-01 : f32
    %182 = vector.broadcast %cst_35 : f32 to vector<64x256xf32>
    %183 = arith.mulf %182, %181 : vector<64x256xf32>
    %184 = arith.select %17, %181, %183 : vector<64x256xi1>, vector<64x256xf32>
    %185 = math.tanh %184 : vector<64x256xf32>
    %cst_36 = arith.constant 1.000000e+00 : f32
    %186 = vector.broadcast %cst_36 : f32 to vector<64x256xf32>
    %187 = arith.addf %185, %186 : vector<64x256xf32>
    %cst_37 = arith.constant 5.000000e-01 : f32
    %188 = vector.broadcast %cst_37 : f32 to vector<64x256xf32>
    %189 = arith.mulf %188, %187 : vector<64x256xf32>
    %190 = arith.select %17, %185, %189 : vector<64x256xi1>, vector<64x256xf32>
    %191 = vector.extract_strided_slice %190 {offsets = [0, 0], sizes = [64, 64], strides = [1, 1]} : vector<64x256xf32> to vector<64x64xf32>
    %192 = vector.extract_strided_slice %190 {offsets = [0, 64], sizes = [64, 64], strides = [1, 1]} : vector<64x256xf32> to vector<64x64xf32>
    %193 = vector.extract_strided_slice %190 {offsets = [0, 128], sizes = [64, 64], strides = [1, 1]} : vector<64x256xf32> to vector<64x64xf32>
    %194 = vector.extract_strided_slice %190 {offsets = [0, 192], sizes = [64, 64], strides = [1, 1]} : vector<64x256xf32> to vector<64x64xf32>
    %195 = arith.mulf %192, %170 : vector<64x64xf32>
    %196 = arith.mulf %191, %193 : vector<64x64xf32>
    %197 = arith.addf %195, %196 : vector<64x64xf32>
    %198 = math.tanh %197 : vector<64x64xf32>
    %199 = arith.mulf %194, %198 : vector<64x64xf32>
    %200 = arith.maximumf %173, %199 : vector<64x64xf32>
    %201 = vector.extract_strided_slice %10 {offsets = [1, 0, 0], sizes = [1, 64, 256], strides = [1, 1, 1]} : vector<8x64x256xf32> to vector<1x64x256xf32>
    %202 = vector.shape_cast %201 : vector<1x64x256xf32> to vector<64x256xf32>
    %203 = vector.extract_strided_slice %10 {offsets = [6, 0, 0], sizes = [1, 64, 256], strides = [1, 1, 1]} : vector<8x64x256xf32> to vector<1x64x256xf32>
    %204 = vector.shape_cast %203 : vector<1x64x256xf32> to vector<64x256xf32>
    %205 = arith.select %35, %202, %204 : vector<64x256xi1>, vector<64x256xf32>
    %206 = arith.truncf %199 : vector<64x64xf32> to vector<64x64xbf16>
    %cst_38 = arith.constant dense<0.000000e+00> : vector<64x256xf32>
    %207 = tpu.matmul %206, %11, %cst_38 {dimension_numbers = #tpu.dot_dimension_numbers<[1], [0], [0], [1], [0, 0, 1, 1], [], []>} : vector<64x64xbf16>, vector<64x256xbf16>, vector<64x256xf32> -> vector<64x256xf32>
    %208 = arith.addf %205, %207 : vector<64x256xf32>
    %cst_39 = arith.constant 5.000000e-01 : f32
    %209 = vector.broadcast %cst_39 : f32 to vector<64x256xf32>
    %210 = arith.mulf %209, %208 : vector<64x256xf32>
    %211 = arith.select %17, %208, %210 : vector<64x256xi1>, vector<64x256xf32>
    %212 = math.tanh %211 : vector<64x256xf32>
    %cst_40 = arith.constant 1.000000e+00 : f32
    %213 = vector.broadcast %cst_40 : f32 to vector<64x256xf32>
    %214 = arith.addf %212, %213 : vector<64x256xf32>
    %cst_41 = arith.constant 5.000000e-01 : f32
    %215 = vector.broadcast %cst_41 : f32 to vector<64x256xf32>
    %216 = arith.mulf %215, %214 : vector<64x256xf32>
    %217 = arith.select %17, %212, %216 : vector<64x256xi1>, vector<64x256xf32>
    %218 = vector.extract_strided_slice %217 {offsets = [0, 0], sizes = [64, 64], strides = [1, 1]} : vector<64x256xf32> to vector<64x64xf32>
    %219 = vector.extract_strided_slice %217 {offsets = [0, 64], sizes = [64, 64], strides = [1, 1]} : vector<64x256xf32> to vector<64x64xf32>
    %220 = vector.extract_strided_slice %217 {offsets = [0, 128], sizes = [64, 64], strides = [1, 1]} : vector<64x256xf32> to vector<64x64xf32>
    %221 = vector.extract_strided_slice %217 {offsets = [0, 192], sizes = [64, 64], strides = [1, 1]} : vector<64x256xf32> to vector<64x64xf32>
    %222 = arith.mulf %219, %197 : vector<64x64xf32>
    %223 = arith.mulf %218, %220 : vector<64x64xf32>
    %224 = arith.addf %222, %223 : vector<64x64xf32>
    %225 = math.tanh %224 : vector<64x64xf32>
    %226 = arith.mulf %221, %225 : vector<64x64xf32>
    %227 = arith.maximumf %200, %226 : vector<64x64xf32>
    %228 = vector.extract_strided_slice %10 {offsets = [0, 0, 0], sizes = [1, 64, 256], strides = [1, 1, 1]} : vector<8x64x256xf32> to vector<1x64x256xf32>
    %229 = vector.shape_cast %228 : vector<1x64x256xf32> to vector<64x256xf32>
    %230 = vector.extract_strided_slice %10 {offsets = [7, 0, 0], sizes = [1, 64, 256], strides = [1, 1, 1]} : vector<8x64x256xf32> to vector<1x64x256xf32>
    %231 = vector.shape_cast %230 : vector<1x64x256xf32> to vector<64x256xf32>
    %232 = arith.select %35, %229, %231 : vector<64x256xi1>, vector<64x256xf32>
    %233 = arith.truncf %226 : vector<64x64xf32> to vector<64x64xbf16>
    %cst_42 = arith.constant dense<0.000000e+00> : vector<64x256xf32>
    %234 = tpu.matmul %233, %11, %cst_42 {dimension_numbers = #tpu.dot_dimension_numbers<[1], [0], [0], [1], [0, 0, 1, 1], [], []>} : vector<64x64xbf16>, vector<64x256xbf16>, vector<64x256xf32> -> vector<64x256xf32>
    %235 = arith.addf %232, %234 : vector<64x256xf32>
    %cst_43 = arith.constant 5.000000e-01 : f32
    %236 = vector.broadcast %cst_43 : f32 to vector<64x256xf32>
    %237 = arith.mulf %236, %235 : vector<64x256xf32>
    %238 = arith.select %17, %235, %237 : vector<64x256xi1>, vector<64x256xf32>
    %239 = math.tanh %238 : vector<64x256xf32>
    %cst_44 = arith.constant 1.000000e+00 : f32
    %240 = vector.broadcast %cst_44 : f32 to vector<64x256xf32>
    %241 = arith.addf %239, %240 : vector<64x256xf32>
    %cst_45 = arith.constant 5.000000e-01 : f32
    %242 = vector.broadcast %cst_45 : f32 to vector<64x256xf32>
    %243 = arith.mulf %242, %241 : vector<64x256xf32>
    %244 = arith.select %17, %239, %243 : vector<64x256xi1>, vector<64x256xf32>
    %245 = vector.extract_strided_slice %244 {offsets = [0, 0], sizes = [64, 64], strides = [1, 1]} : vector<64x256xf32> to vector<64x64xf32>
    %246 = vector.extract_strided_slice %244 {offsets = [0, 64], sizes = [64, 64], strides = [1, 1]} : vector<64x256xf32> to vector<64x64xf32>
    %247 = vector.extract_strided_slice %244 {offsets = [0, 128], sizes = [64, 64], strides = [1, 1]} : vector<64x256xf32> to vector<64x64xf32>
    %248 = vector.extract_strided_slice %244 {offsets = [0, 192], sizes = [64, 64], strides = [1, 1]} : vector<64x256xf32> to vector<64x64xf32>
    %249 = arith.mulf %246, %224 : vector<64x64xf32>
    %250 = arith.mulf %245, %247 : vector<64x64xf32>
    %251 = arith.addf %249, %250 : vector<64x64xf32>
    %252 = math.tanh %251 : vector<64x64xf32>
    %253 = arith.mulf %248, %252 : vector<64x64xf32>
    %254 = arith.maximumf %227, %253 : vector<64x64xf32>
    %255 = tpu.concatenate %254, %3 in 1 : vector<64x64xf32>, vector<64x32xf32> -> vector<64x96xf32>
    %256 = math.tanh %255 : vector<64x96xf32>
    %c0_46 = arith.constant 0 : index
    %c0_47 = arith.constant 0 : index
    %257 = vector.load %arg5[%c0_46, %c0_47] : memref<96x8xf32, #tpu.memory_space<vmem>>, vector<96x8xf32>
    %cst_48 = arith.constant dense<0.000000e+00> : vector<64x8xf32>
    %258 = tpu.matmul %256, %257, %cst_48 {dimension_numbers = #tpu.dot_dimension_numbers<[1], [0], [0], [1], [0, 0, 1, 1], [], []>} : vector<64x96xf32>, vector<96x8xf32>, vector<64x8xf32> -> vector<64x8xf32>
    %c0_49 = arith.constant 0 : index
    %c0_50 = arith.constant 0 : index
    %259 = vector.load %arg6[%c0_49, %c0_50] : memref<1x8xf32, #tpu.memory_space<vmem>>, vector<1x8xf32>
    %260 = vector.broadcast %259 : vector<1x8xf32> to vector<64x8xf32>
    %261 = arith.addf %258, %260 : vector<64x8xf32>
    %cst_51 = arith.constant dense<0xFF800000> : vector<64xf32>
    %262 = vector.multi_reduction <maximumf>, %261, %cst_51 [1] : vector<64x8xf32> to vector<64xf32>
    %263 = vector.shape_cast %262 : vector<64xf32> to vector<64x1xf32>
    %264 = vector.broadcast %263 : vector<64x1xf32> to vector<64x8xf32>
    %265 = arith.subf %261, %264 : vector<64x8xf32>
    %266 = math.exp %265 : vector<64x8xf32>
    %cst_52 = arith.constant dense<0.000000e+00> : vector<64xf32>
    %267 = vector.multi_reduction <add>, %266, %cst_52 [1] : vector<64x8xf32> to vector<64xf32>
    %268 = vector.shape_cast %267 : vector<64xf32> to vector<64x1xf32>
    %269 = math.log %268 : vector<64x1xf32>
    %270 = arith.addf %269, %263 : vector<64x1xf32>
    %271 = vector.broadcast %270 : vector<64x1xf32> to vector<64x8xf32>
    %272 = arith.subf %261, %271 : vector<64x8xf32>
    %c0_53 = arith.constant 0 : index
    %c0_54 = arith.constant 0 : index
    %273 = vector.load %arg7[%c0_53, %c0_54] : memref<64x8xf32, #tpu.memory_space<vmem>>, vector<64x8xf32>
    tpu.vector_store %arg7[%c0_53, %c0_54], %272 {strides = array<i32>} : memref<64x8xf32, #tpu.memory_space<vmem>>, vector<64x8xf32>,
    return
  }
  func.func @transform_0(%arg0: i32) -> (i32, i32) {
    %c0_i32 = arith.constant 0 : i32
    %c0_i32_0 = arith.constant 0 : i32
    return %arg0, %c0_i32 : i32, i32
  }
  func.func @transform_1(%arg0: i32) -> (i32, i32) {
    %c0_i32 = arith.constant 0 : i32
    %c0_i32_0 = arith.constant 0 : i32
    %c0_i32_1 = arith.constant 0 : i32
    return %c0_i32, %c0_i32_0 : i32, i32
  }
  func.func @transform_2(%arg0: i32) -> (i32, i32) {
    %c0_i32 = arith.constant 0 : i32
    %c0_i32_0 = arith.constant 0 : i32
    %c0_i32_1 = arith.constant 0 : i32
    return %c0_i32, %c0_i32_0 : i32, i32
  }
  func.func @transform_3(%arg0: i32) -> (i32, i32) {
    %c0_i32 = arith.constant 0 : i32
    %c0_i32_0 = arith.constant 0 : i32
    %c0_i32_1 = arith.constant 0 : i32
    return %c0_i32, %c0_i32_0 : i32, i32
  }
  func.func @transform_4(%arg0: i32) -> (i32, i32) {
    %c0_i32 = arith.constant 0 : i32
    %c0_i32_0 = arith.constant 0 : i32
    %c0_i32_1 = arith.constant 0 : i32
    return %c0_i32, %c0_i32_0 : i32, i32
  }
  func.func @transform_5(%arg0: i32) -> (i32, i32) {
    %c0_i32 = arith.constant 0 : i32
    %c0_i32_0 = arith.constant 0 : i32
    %c0_i32_1 = arith.constant 0 : i32
    return %c0_i32, %c0_i32_0 : i32, i32
  }
  func.func @transform_6(%arg0: i32) -> (i32, i32) {
    %c0_i32 = arith.constant 0 : i32
    %c0_i32_0 = arith.constant 0 : i32
    return %arg0, %c0_i32 : i32, i32
  }
}

</mosaic_0001>

<bundles_post_ra>
// kernel: tpu_custom_call.1
= control target key start
LH: loop header
LB: loop body
LE: loop exit
PB: predicated region body
PF: predicated region fallthrough
CT: control target
= control target key end

     0   :  { %s6977_s21 = smov 0   ;;  %s11361_s0 = inlined_call_operand.vmem [shape: bf16[2048,32], index: 0, kind: input, shape index: {}]   ;;  %s11362_s1 = inlined_call_operand.vmem [shape: bf16[32,256], index: 1, kind: input, shape index: {}]   ;;  %s11363_s2 = inlined_call_operand.vmem [shape: bf16[64,256], index: 2, kind: input, shape index: {}]   ;;  %s11364_s3 = inlined_call_operand.vmem [shape: f32[1,256], index: 3, kind: input, shape index: {}]   ;;  %s11365_s4 = inlined_call_operand.vmem [shape: f32[96,8], index: 4, kind: input, shape index: {}]   ;;  %s11366_s5 = inlined_call_operand.vmem [shape: f32[1,8], index: 5, kind: input, shape index: {}]   ;;  %s11367_s6 = inlined_call_operand.vmem [shape: f32[256,8], index: 6, kind: output, shape index: {}]  }
   0x1 LB: > { %s6103_s22 = sadd.s32 4294967295, %s6936_s21   ;;  %p6107_p0 = scmp.ge.s32.totalorder %s6936_s21, 1  ;;  %s6936_s21 = sphi %s6977_s21, %s16_s21  }
   0x2   : > { %p213_p1 = scmp.lt.s32.totalorder %s6936_s21, 5 }
   0x4   : > { %p214_p2 = pnand %p6107_p0, %p213_p1 }
   0x6   : > { %217 = sbr.rel (%p214_p2) target bundleno = 4054 (0xfd6), region = 44 }
   0xb   : > { %v6250_v0 = vld [vmem:[%s11362_s1 + $0x10] sm:$0xf]  ;;  %v6453_v1 = vld [vmem:[%s11362_s1 + $0x14] sm:$0xf0]  ;;  %v6242_v2 = vld [vmem:[%s11362_s1] sm:$0xf] }
   0xc   : > { %v6251_v3 = vor.u32 %v6453_v1, %v6250_v0  ;;  %v6451_v4 = vld [vmem:[%s11362_s1 + $0x4] sm:$0xf0]  ;;  %s6108_s7 = sshll.u32 %s6103_s22, 6  ;;  %v6452_v5 = vld [vmem:[%s11362_s1 + $0x14] sm:$0xf]  ;;  %vm384_vm0 = vcmask 261120  }
   0xd   : > { %p244_p3 = scmp.lt.s32.totalorder %s6108_s7, 255  ;;  %v6252_v6 = vld [vmem:[%s11362_s1 + $0x18] sm:$0xf0]  ;;  %v6243_v7 = vor.u32 %v6451_v4, %v6242_v2  ;;  %v6450_v9 = vld [vmem:[%s11362_s1 + $0x4] sm:$0xf]  ;;  %v6938_v34 = vmov 0  }
   0xe   : > { %1125 = vmatpush.bf16.msra.mxu0 %v6251_v3  ;;  %6462 = vmatpush.bf16.msra.mxu1 %v6251_v3  ;;  %v6255_v8 = vor.u32 %v6452_v5, %v6252_v6  ;;  %v6244_v10 = vld [vmem:[%s11362_s1 + $0x8] sm:$0xf0]  ;;  %v6346_v16 = vld [vmem:[%s11363_s2 + $0x30] sm:$0xf]  ;;  %v6461_v17 = vld [vmem:[%s11363_s2 + $0x34] sm:$0xf0] }
   0xf   : > { %6463 = vmatpush.bf16.msra.mxu3 %v6251_v3  ;;  %s12047_s7 = smov (!%p244_p3, %s6108_s7), 255  ;;  %v6247_v14 = vor.u32 %v6450_v9, %v6244_v10  ;;  %v6338_v18 = vld [vmem:[%s11363_s2 + $0x20] sm:$0xf]  ;;  %v7034_v19 = vor.u32 %v6461_v17, %v6346_v16  ;;  %v6459_v20 = vld [vmem:[%s11363_s2 + $0x24] sm:$0xf0]  ;;  %vm1458_vm1 = vcmask 1047556  }
  0x10   : > { %s6109_s16 = sshll.u32 %s12047_s7, 2  ;;  %v7040_v21 = vor.u32 %v6459_v20, %v6338_v18  ;;  %v6330_v22 = vld [vmem:[%s11363_s2 + $0x10] sm:$0xf]  ;;  %v6457_v23 = vld [vmem:[%s11363_s2 + $0x14] sm:$0xf0]  ;;  %s6941_s11 = smov 64  }
  0x11   : > { %s7014_s19 = scalar_lea.vmem %s11361_s0, %s6109_s16  ;;  %3357 = vmatpush.bf16.msra.mxu2 %v7034_v19  ;;  %v7049_v24 = vor.u32 %v6457_v23, %v6330_v22  ;;  %v6322_v25 = vld [vmem:[%s11363_s2] sm:$0xf]  ;;  %v6455_v26 = vld [vmem:[%s11363_s2 + $0x4] sm:$0xf0]  ;;  %v6460_v29 = vld [vmem:[%s11363_s2 + $0x34] sm:$0xf] }
  0x12   : > { %1126 = vmatpush.bf16.msra.mxu0 %v6243_v7  ;;  %6464 = vmatpush.bf16.msra.mxu1 %v6243_v7  ;;  %v6418_v11 = vld [vmem:[%s7014_s19] sm:$0xff]  ;;  %v6448_v12 = vld [vmem:[%s7014_s19 + $0xf0] sm:$0xff]  ;;  %v6449_v13 = vld [vmem:[%s7014_s19 + $0xf8] sm:$0xff]  ;;  %v7058_v27 = vor.u32 %v6455_v26, %v6322_v25  ;;  %v6939_v54 = vmov 1983009808   ;;  %vm3349_vm5 = vcmask 523264  }
  0x13   : > { %6465 = vmatpush.bf16.msra.mxu3 %v6243_v7  ;;  %v6419_v15 = vld [vmem:[%s7014_s19 + $0x8] sm:$0xff]  ;;  %v6420_v28 = vld [vmem:[%s7014_s19 + $0x10] sm:$0xff]  ;;  %v6348_v30 = vld [vmem:[%s11363_s2 + $0x38] sm:$0xf0]  ;;  %v1463_v55 = vunpack.c.l.s4 %v6939_v54  ;;  %vm5749_vm6 = vcmask 1041409   ;;  %vm5751_vm7 = vcmask 1042434  }
  0x14   : > { %v7070_v31 = vor.u32 %v6460_v29, %v6348_v30  ;;  %v6458_v32 = vld [vmem:[%s11363_s2 + $0x24] sm:$0xf]  ;;  %v6340_v33 = vld [vmem:[%s11363_s2 + $0x28] sm:$0xf0]  ;;  %v6456_v36 = vld [vmem:[%s11363_s2 + $0x14] sm:$0xf] }
  0x15   : > { %6256 = vmatmul.msk.bf16.vlgmr.msra.gmra.mxu0 %vm384_vm0, %v6418_v11  ;;  %6286 = vmatmul.msk.bf16.vlgmr.msra.gmra.mxu1 %vm384_vm0, %v6448_v12  ;;  %v7080_v35 = vor.u32 %v6458_v32, %v6340_v33  ;;  %v6332_v37 = vld [vmem:[%s11363_s2 + $0x18] sm:$0xf0]  ;;  %v6454_v39 = vld [vmem:[%s11363_s2 + $0x4] sm:$0xf]  ;;  %v6324_v40 = vld [vmem:[%s11363_s2 + $0x8] sm:$0xf0]  ;;  %v7145_v62 = vunpack.c.0.s8 %v1463_v55 }
  0x16   : > { %1294 = vmatpush.bf16.msrb.mxu1 %v6255_v8  ;;  %6287 = vmatmul.msk.bf16.vlgmr.msra.gmra.mxu3 %vm384_vm0, %v6449_v13  ;;  %v7090_v38 = vor.u32 %v6456_v36, %v6332_v37  ;;  %v7100_v41 = vor.u32 %v6454_v39, %v6324_v40  ;;  %v6421_v42 = vld [vmem:[%s7014_s19 + $0x18] sm:$0xff]  ;;  %v6422_v43 = vld [vmem:[%s7014_s19 + $0x20] sm:$0xff]  ;;  %v6423_v44 = vld [vmem:[%s7014_s19 + $0x28] sm:$0xff]  ;;  %vm5753_vm8 = vcmask 1043459   ;;  %vm5755_vm9 = vcmask 1044484   ;;  %s6110_s16 = sshll.u32 %s6103_s22, 3 }
  0x17   : > { %3358 = vmatpush.bf16.msra.mxu2 %v7040_v21  ;;  %3386 = vmatpush.bf16.msrb.mxu3 %v7070_v31  ;;  %v6424_v45 = vld [vmem:[%s7014_s19 + $0x30] sm:$0xff]  ;;  %v6425_v46 = vld [vmem:[%s7014_s19 + $0x38] sm:$0xff]  ;;  %v7134_v47 = vld [vmem:[%s11364_s3] sm:$0x3]  ;;  %vm5757_vm10 = vcmask 1045509   ;;  %vm5759_vm11 = vcmask 1046534  }
  0x18   : > { %v6426_v48 = vld [vmem:[%s7014_s19 + $0x40] sm:$0xff]  ;;  %v7138_v49 = vperm.slane %v7134_v47, 0  ;;  %v6427_v3 = vld [vmem:[%s7014_s19 + $0x48] sm:$0xff]  ;;  %vm5761_vm12 = vcmask 1047559   ;;  %vm5868_vm13 = vcmask 785408   ;;  %vm5934_vm14 = vcmask 64512  }
  0x19   : > { %p250_p4 = scmp.lt.s32.totalorder %s6110_s16, 31 }
  0x1a   : > { %1295 = vmatpush.bf16.msrb.mxu1 %v6247_v14 }
  0x1b   : > { %3359 = vmatpush.bf16.msra.mxu2 %v7049_v24  ;;  %3387 = vmatpush.bf16.msrb.mxu3 %v7080_v35  ;;  %s12049_s16 = smov (!%p250_p4, %s6110_s16), 31 }
  0x1c   : > { %s6111_s17 = sshll.u32 %s12049_s16, 3 }
  0x1d   : > { %s11325_s22 = scalar_lea.vmem %s11367_s6, %s6111_s17 }
  0x1f   : > { %3360 = vmatpush.bf16.msra.mxu2 %v7058_v27  ;;  %3388 = vmatpush.bf16.msrb.mxu3 %v7090_v38 }
  0x22   : > { %3361 = vmatmul.bf16.vlgmr.msra.gmra.mxu2 %v6938_v34 }
  0x23   : > { %3643 = vmatpush.bf16.msrb.mxu2 %v7034_v19  ;;  %3389 = vmatpush.bf16.msrb.mxu3 %v7100_v41 }
  0x25   : > { %6257 = vmatmul.msk.bf16.gmra.mxu0 %vm384_vm0, %v6419_v15  ;;  %6288 = vmatmul.msk.bf16.vlgmr.msrb.gmra.mxu1 %vm384_vm0, %v6418_v11 }
  0x26   : > { %3390 = vmatmul.bf16.vlgmr.msrb.gmra.mxu3 %v6938_v34 }
  0x27   : > { %3644 = vmatpush.bf16.msrb.mxu2 %v7040_v21  ;;  %3672 = vmatpush.bf16.msra.mxu3 %v7070_v31 }
  0x2b   : > { %3645 = vmatpush.bf16.msrb.mxu2 %v7049_v24  ;;  %3673 = vmatpush.bf16.msra.mxu3 %v7080_v35 }
  0x2f   : > { %3646 = vmatpush.bf16.msrb.mxu2 %v7058_v27  ;;  %3674 = vmatpush.bf16.msra.mxu3 %v7090_v38 }
  0x32   : > { %3366 = vmatmul.bf16.gmra.mxu2 %v6938_v34 }
  0x33   : > { %3937 = vmatpush.bf16.msra.mxu2 %v7034_v19  ;;  %3675 = vmatpush.bf16.msra.mxu3 %v7100_v41 }
  0x35   : > { %6258 = vmatmul.msk.bf16.gmra.mxu0 %vm384_vm0, %v6420_v28  ;;  %6289 = vmatmul.msk.bf16.gmra.mxu1 %vm384_vm0, %v6419_v15 }
  0x36   : > { %3395 = vmatmul.bf16.gmra.mxu3 %v6938_v34 }
  0x37   : > { %3938 = vmatpush.bf16.msra.mxu2 %v7040_v21  ;;  %3966 = vmatpush.bf16.msrb.mxu3 %v7070_v31 }
  0x3b   : > { %3939 = vmatpush.bf16.msra.mxu2 %v7049_v24  ;;  %3967 = vmatpush.bf16.msrb.mxu3 %v7080_v35 }
  0x3f   : > { %3940 = vmatpush.bf16.msra.mxu2 %v7058_v27  ;;  %3968 = vmatpush.bf16.msrb.mxu3 %v7090_v38 }
  0x42   : > { %3371 = vmatmul.bf16.gmra.mxu2 %v6938_v34 }
  0x43   : > { %3969 = vmatpush.bf16.msrb.mxu3 %v7100_v41 }
  0x45   : > { %6259 = vmatmul.msk.bf16.gmra.mxu0 %vm384_vm0, %v6421_v42  ;;  %6290 = vmatmul.msk.bf16.gmra.mxu1 %vm384_vm0, %v6420_v28 }
  0x46   : > { %3400 = vmatmul.bf16.gmra.mxu3 %v6938_v34 }
  0x52   : > { %3376 = vmatmul.bf16.gmra.mxu2 %v6938_v34 }
  0x55   : > { %6260 = vmatmul.msk.bf16.gmra.mxu0 %vm384_vm0, %v6422_v43  ;;  %6291 = vmatmul.msk.bf16.gmra.mxu1 %vm384_vm0, %v6421_v42 }
  0x56   : > { %3405 = vmatmul.bf16.gmra.mxu3 %v6938_v34 }
  0x65   : > { %6261 = vmatmul.msk.bf16.gmra.mxu0 %vm384_vm0, %v6423_v44  ;;  %6292 = vmatmul.msk.bf16.gmra.mxu1 %vm384_vm0, %v6422_v43 }
  0x75   : > { %6262 = vmatmul.msk.bf16.gmra.mxu0 %vm384_vm0, %v6424_v45  ;;  %6293 = vmatmul.msk.bf16.gmra.mxu1 %vm384_vm0, %v6423_v44 }
  0x85   : > { %6263 = vmatmul.msk.bf16.gmra.mxu0 %vm384_vm0, %v6425_v46  ;;  %6294 = vmatmul.msk.bf16.gmra.mxu1 %vm384_vm0, %v6424_v45 }
  0x92   : > { %v1128_v50 = vpop.f32.mrf.mxu0  ;;  %v1278_v51 = vpop.f32.mrf.mxu1 }
  0x93   : > { %v1279_v52 = vadd.f32 %v1278_v51, %v7138_v49  ;;  %v1129_v9 = vadd.f32 %v1128_v50, %v7138_v49 }
  0x95   : > { %6264 = vmatmul.msk.bf16.gmra.mxu0 %vm384_vm0, %v6426_v48  ;;  %6295 = vmatmul.msk.bf16.gmra.mxu1 %vm384_vm0, %v6425_v46  ;;  %v2268_v56 = vrot.slane %v1279_v52, 4  ;;  %v1460_v26 = vrot.slane %v1129_v9, 4 }
  0x99   : > { %v1283_v53 = vpop.f32.mrf.mxu3 }
  0x9a   : > { %v1284_v57 = vadd.f32 %v1283_v53, %v7138_v49  ;;  %v1130_v58 = vpop.f32.mrf.mxu0  ;;  %v1280_v59 = vpop.f32.mrf.mxu1  ;;  %v6428_v53 = vld [vmem:[%s7014_s19 + $0x50] sm:$0xff] }
  0x9b   : > { %v1281_v0 = vadd.f32 %v1280_v59, %v7138_v49  ;;  %v1131_v14 = vadd.f32 %v1130_v58, %v7138_v49 }
  0x9c   : > { %v2266_v60 = vrot.slane %v1284_v57, 4  ;;  %v2269_v61 = vsel %vm1458_vm1, %v1284_v57, %v2268_v56 }
  0x9d   : > { %v2277_v1 = vperm.slane %v2269_v61, %v7145_v62  ;;  %v2280_v5 = vrot.slane %v1281_v0, 4  ;;  %v1472_v28 = vrot.slane %v1131_v14, 4 }
  0x9e   : > { %v2267_v63 = vsel %vm1458_vm1, %v2266_v60, %v1279_v52  ;;  %v7187_v52 = vperm.slane %v7134_v47, 1 }
  0x9f   : > { %v2273_v4 = vperm.slane %v2267_v63, %v7145_v62  ;;  %v2328_v13 = vrot.slane %v2277_v1, 4 }
  0xa1   : > { %v1285_v2 = vpop.f32.mrf.mxu3  ;;  %v2316_v17 = vrot.slane %v2273_v4, 4 }
  0xa2   : > { %v1286_v6 = vadd.f32 %v1285_v2, %v7138_v49  ;;  %v1133_v7 = vpop.f32.mrf.mxu0  ;;  %v1297_v8 = vpop.f32.mrf.mxu1 }
  0xa3   : > { %v1134_v10 = vadd.f32 %v1133_v7, %v7138_v49  ;;  %v1298_v60 = vadd.f32 %v1297_v8, %v7187_v52 }
  0xa4   : > { %v2278_v11 = vrot.slane %v1286_v6, 4  ;;  %v2281_v12 = vsel %vm1458_vm1, %v1286_v6, %v2280_v5 }
  0xa5   : > { %v2289_v15 = vperm.slane %v2281_v12, %v7145_v62  ;;  %v1457_v16 = vrot.slane %v1134_v10, 4  ;;  %6265 = vmatmul.msk.bf16.gmra.mxu0 %vm384_vm0, %v6427_v3  ;;  %6296 = vmatmul.msk.bf16.gmra.mxu1 %vm384_vm0, %v6426_v48  ;;  %v1461_v40 = vsel %vm1458_vm1, %v1134_v10, %v1460_v26 }
  0xa6   : > { %v2279_v18 = vsel %vm1458_vm1, %v2278_v11, %v1281_v0  ;;  %v1469_v48 = vperm.slane %v1461_v40, %v7145_v62 }
  0xa7   : > { %v2285_v20 = vperm.slane %v2279_v18, %v7145_v62  ;;  %v2326_v22 = vrot.slane %v2289_v15, 4  ;;  %v1459_v23 = vsel %vm1458_vm1, %v1457_v16, %v1129_v9  ;;  %v7164_v25 = vsel %vm1458_vm1, %v2289_v15, %v2328_v13  ;;  %v7218_v16 = vld [vmem:[%s7014_s19 + $0x58] sm:$0xff] }
  0xa8   : > { %v7173_v33 = vperm.slane %v1459_v23, %v7145_v62 }
  0xa9   : > { %v2314_v29 = vrot.slane %v2285_v20, 4  ;;  %v7167_v30 = vsel %vm1458_vm1, %v2285_v20, %v2316_v17  ;;  %v7170_v32 = vsel %vm1458_vm1, %v2326_v22, %v2277_v1  ;;  %v2356_v1 = vrot.slane %v1298_v60, 4 }
  0xaa   : > { %v1135_v34 = vpop.f32.mrf.mxu0  ;;  %v1299_v36 = vpop.f32.mrf.mxu1  ;;  %v1508_v44 = vrot.slane %v7173_v33, 4 }
  0xab   : > { %v1136_v37 = vadd.f32 %v1135_v34, %v7138_v49  ;;  %v7177_v39 = vsel %vm1458_vm1, %v2314_v29, %v2273_v4  ;;  %v1300_v61 = vadd.f32 %v1299_v36, %v7187_v52  ;;  %v1520_v34 = vrot.slane %v1469_v48, 4 }
  0xad   : > { %v1470_v42 = vrot.slane %v1136_v37, 4  ;;  %v1473_v43 = vsel %vm1458_vm1, %v1136_v37, %v1472_v28  ;;  %v2368_v2 = vrot.slane %v1300_v61, 4  ;;  %v6940_v37 = vmov 1934713408  }
  0xae   : > { %v1481_v45 = vperm.slane %v1473_v43, %v7145_v62  ;;  %v1511_v40 = vunpack.c.l.s4 %v6940_v37 }
  0xaf   : > { %v1471_v46 = vsel %vm1458_vm1, %v1470_v42, %v1131_v14 }
  0xb0   : > { %v1477_v50 = vperm.slane %v1471_v46, %v7145_v62  ;;  %v1518_v51 = vrot.slane %v1481_v45, 4 }
  0xb2   : > { %v1138_v54 = vpop.f32.mrf.mxu0  ;;  %v1302_v55 = vpop.f32.mrf.mxu1  ;;  %v1509_v56 = vsel %vm1458_vm1, %v1477_v50, %v1508_v44  ;;  %v1519_v57 = vsel %vm1458_vm1, %v1518_v51, %v1469_v48  ;;  %v1506_v42 = vrot.slane %v1477_v50, 4  ;;  %v3258_v44 = vlaneseq }
  0xb3   : > { %v1303_v58 = vadd.f32 %v1302_v55, %v7187_v52  ;;  %v1139_v6 = vadd.f32 %v1138_v54, %v7138_v49 }
  0xb4   : > { %v7243_v50 = vand.u32 127, %v3258_v44 }
  0xb5   : > { %v2354_v59 = vrot.slane %v1303_v58, 4  ;;  %6266 = vmatmul.msk.bf16.gmra.mxu0 %vm384_vm0, %v6428_v53  ;;  %6297 = vmatmul.msk.bf16.gmra.mxu1 %vm384_vm0, %v6427_v3  ;;  %v2357_v3 = vsel %vm1458_vm1, %v1303_v58, %v2356_v1  ;;  %v1484_v15 = vrot.slane %v1139_v6, 4  ;;  %v1521_v58 = vsel %vm1458_vm1, %v1481_v45, %v1520_v34 }
  0xb6   : > { %v7210_v11 = vperm.slane %v2357_v3, %v7145_v62 }
  0xb7   : > { %v2355_v47 = vsel %vm1458_vm1, %v2354_v59, %v1298_v60  ;;  %v7239_v60 = vunpack.c.0.s8 %v1511_v40 }
  0xb8   : > { %v7200_v5 = vperm.slane %v2355_v47, %v7145_v62  ;;  %v2416_v34 = vrot.slane %v7210_v11, 4 }
  0xba   : > { %v1140_v63 = vpop.f32.mrf.mxu0  ;;  %v1304_v0 = vpop.f32.mrf.mxu1  ;;  %v2404_v12 = vrot.slane %v7200_v5, 4 }
  0xbb   : > { %v1305_v4 = vadd.f32 %v1304_v0, %v7187_v52  ;;  %v1141_v26 = vadd.f32 %v1140_v63, %v7138_v49  ;;  %v1529_v63 = vperm.slane %v1521_v58, %v7239_v60  ;;  %v1525_v0 = vperm.slane %v1519_v57, %v7239_v60 }
  0xbd   : > { %v2366_v7 = vrot.slane %v1305_v4, 4  ;;  %v2369_v8 = vsel %vm1458_vm1, %v1305_v4, %v2368_v2  ;;  %v1496_v46 = vrot.slane %v1141_v26, 4  ;;  %v1517_v2 = vperm.slane %v1509_v56, %v7239_v60 }
  0xbe   : > { %v7206_v9 = vperm.slane %v2369_v8, %v7145_v62  ;;  %v3271_v8 = vand.u32 63, %v7243_v50 }
  0xbf   : > { %v2367_v10 = vsel %vm1458_vm1, %v2366_v7, %v1300_v61 }
  0xc0   : > { %v7214_v13 = vperm.slane %v2367_v10, %v7145_v62  ;;  %v2414_v14 = vrot.slane %v7206_v9, 4  ;;  %vm7267_vm2 = vcmp.ge.s32.totalorder %v3271_v8, 32 }
  0xc2   : > { %v1143_v17 = vpop.f32.mrf.mxu0  ;;  %v1307_v18 = vpop.f32.mrf.mxu1  ;;  %v7222_v20 = vsel %vm1458_vm1, %v7214_v13, %v2404_v12  ;;  %v7226_v22 = vsel %vm1458_vm1, %v2414_v14, %v7210_v11  ;;  %v7257_v12 = vld [vmem:[%s7014_s19 + $0x60] sm:$0xff]  ;;  %v1568_v14 = vrot.slane %v1529_v63, 4  ;;  %v2402_v8 = vrot.slane %v7214_v13, 4 }
  0xc3   : > { %v1144_v23 = vadd.f32 %v1143_v17, %v7138_v49  ;;  %v1308_v10 = vadd.f32 %v1307_v18, %v7187_v52 }
  0xc5   : > { %v1482_v28 = vrot.slane %v1144_v23, 4  ;;  %v1485_v29 = vsel %vm1458_vm1, %v1144_v23, %v1484_v15  ;;  %6267 = vmatmul.msk.bf16.gmra.mxu0 %vm384_vm0, %v7218_v16  ;;  %6298 = vmatmul.msk.bf16.gmra.mxu1 %vm384_vm0, %v6428_v53  ;;  %v1507_v53 = vsel %vm1458_vm1, %v1506_v42, %v7173_v33  ;;  %v1564_v15 = vrot.slane %v1525_v0, 4 }
  0xc6   : > { %v1493_v43 = vperm.slane %v1485_v29, %v7145_v62  ;;  %v1560_v29 = vrot.slane %v1517_v2, 4 }
  0xc7   : > { %v1483_v36 = vsel %vm1458_vm1, %v1482_v28, %v1139_v6  ;;  %v1513_v6 = vperm.slane %v1507_v53, %v7239_v60 }
  0xc8   : > { %v1489_v51 = vperm.slane %v1483_v36, %v7145_v62  ;;  %v1544_v48 = vrot.slane %v1493_v43, 4 }
  0xc9   : > { %v1556_v18 = vrot.slane %v1513_v6, 4 }
  0xca   : > { %v1145_v54 = vpop.f32.mrf.mxu0  ;;  %v1309_v55 = vpop.f32.mrf.mxu1  ;;  %v1532_v1 = vrot.slane %v1489_v51, 4 }
  0xcb   : > { %v1146_v59 = vadd.f32 %v1145_v54, %v7138_v49  ;;  %v2380_v54 = vrot.slane %v1308_v10, 4 }
  0xcd   : > { %v1494_v61 = vrot.slane %v1146_v59, 4  ;;  %v1497_v47 = vsel %vm1458_vm1, %v1146_v59, %v1496_v46 }
  0xce   : > { %v1505_v45 = vperm.slane %v1497_v47, %v7145_v62 }
  0xcf   : > { %v1495_v4 = vsel %vm1458_vm1, %v1494_v61, %v1141_v26 }
  0xd0   : > { %v1501_v33 = vperm.slane %v1495_v4, %v7145_v62  ;;  %v1542_v3 = vrot.slane %v1505_v45, 4  ;;  %v1545_v7 = vsel %vm1458_vm1, %v1505_v45, %v1544_v48 }
  0xd1   : > { %v1553_v57 = vperm.slane %v1545_v7, %v7239_v60 }
  0xd2   : > { %v1530_v56 = vrot.slane %v1501_v33, 4  ;;  %v7260_v17 = vpop.f32.mrf.mxu0  ;;  %v1312_v23 = vpop.f32.mrf.mxu1  ;;  %v1533_v26 = vsel %vm1458_vm1, %v1501_v33, %v1532_v1  ;;  %v1543_v28 = vsel %vm1458_vm1, %v1542_v3, %v1493_v43  ;;  %v2417_v43 = vsel %vm1458_vm1, %v7206_v9, %v2416_v34 }
  0xd3   : > { %v1313_v36 = vadd.f32 %v1312_v23, %v7187_v52  ;;  %v1566_v37 = vrot.slane %v1553_v57, 4  ;;  %v1541_v44 = vperm.slane %v1533_v26, %v7239_v60  ;;  %v1549_v46 = vperm.slane %v1543_v28, %v7239_v60 }
  0xd4   : > { %v1531_v40 = vsel %vm1458_vm1, %v1530_v56, %v1489_v51  ;;  %v1310_v51 = vadd.f32 %v1309_v55, %v7187_v52  ;;  %v7296_v55 = vsel %vm1458_vm1, %v1553_v57, %v1568_v14  ;;  %v2425_v23 = vperm.slane %v2417_v43, %v7239_v60 }
  0xd5   : > { %v2378_v58 = vrot.slane %v1313_v36, 4  ;;  %6268 = vmatmul.msk.bf16.gmra.mxu0 %vm384_vm0, %v7257_v12  ;;  %6299 = vmatmul.msk.bf16.gmra.mxu1 %vm384_vm0, %v7218_v16  ;;  %v1537_v11 = vperm.slane %v1531_v40, %v7239_v60  ;;  %v7282_v59 = vsel %vm1458_vm1, %v1566_v37, %v1529_v63  ;;  %v1558_v48 = vrot.slane %v1541_v44, 4  ;;  %11591 = vst [vmem:[#allocation6_spill] sm:$0xff] %v7296_v55 }
  0xd6   : > { %11587 = vst [vmem:[#allocation2_spill] sm:$0xff] %v7282_v59  ;;  %v7285_v53 = vsel %vm1458_vm1, %v1549_v46, %v1564_v15  ;;  %v2381_v61 = vsel %vm1458_vm1, %v1313_v36, %v2380_v54  ;;  %v7292_v16 = vsel %vm1458_vm1, %v1541_v44, %v1560_v29  ;;  %v1562_v3 = vrot.slane %v1549_v46, 4  ;;  %v3362_v54 = vpop.f32.mrf.mxu2 }
  0xd7   : > { %11588 = vst [vmem:[#allocation3_spill] sm:$0xff] %v7285_v53  ;;  %v1554_v47 = vrot.slane %v1537_v11, 4  ;;  %v7289_v1 = vsel %vm1458_vm1, %v1537_v11, %v1556_v18  ;;  %v2379_v9 = vsel %vm1458_vm1, %v2378_v58, %v1308_v10  ;;  %v7303_v45 = vsel %vm1458_vm1, %v1558_v48, %v1517_v2 }
  0xd8   : > { %11589 = vst [vmem:[#allocation4_spill] sm:$0xff] %v7289_v1  ;;  %v2389_v10 = vperm.slane %v2381_v61, %v7145_v62  ;;  %v2392_v15 = vrot.slane %v1310_v51, 4  ;;  %v7329_v13 = vsel %vm1458_vm1, %v1562_v3, %v1525_v0  ;;  %v2385_v26 = vperm.slane %v2379_v9, %v7145_v62 }
  0xd9   : > { %11590 = vst [vmem:[#allocation5_spill] sm:$0xff] %v7292_v16  ;;  %v7306_v4 = vsel %vm1458_vm1, %v1554_v47, %v1513_v6  ;;  %v7342_v18 = vadd.s32 128, %v7243_v50  ;;  %v2403_v40 = vsel %vm1458_vm1, %v2402_v8, %v7200_v5  ;;  %v2464_v58 = vrot.slane %v2425_v23, 4  ;;  %v7357_v47 = vld [vmem:[%s7014_s19 + $0x68] sm:$0xff] }
  0xda   : > { %11592 = vst [vmem:[#allocation7_spill] sm:$0xff] %v7303_v45  ;;  %v1150_v2 = vpop.f32.mrf.mxu0  ;;  %v1314_v57 = vpop.f32.mrf.mxu1  ;;  %v2440_v0 = vrot.slane %v2389_v10, 4  ;;  %v3293_v46 = vsel %vm7267_vm2, %v7296_v55, %v7306_v4  ;;  %v2421_v11 = vperm.slane %v7226_v22, %v7239_v60  ;;  %v2428_v50 = vrot.slane %v2385_v26, 4 }
  0xdb   : > { %11593 = vst [vmem:[#allocation8_spill] sm:$0xff] %v7306_v4  ;;  %v1315_v56 = vadd.f32 %v1314_v57, %v7187_v52  ;;  %v2409_v5 = vperm.slane %v2403_v40, %v7239_v60  ;;  %v3278_v9 = vand.u32 63, %v7342_v18  ;;  %v2413_v3 = vperm.slane %v7222_v20, %v7239_v60 }
  0xdc   : > { %11594 = vst [vmem:[#allocation9_spill] sm:$0xff] %v7329_v13  ;;  %v3411_v57 = vadd.f32 %v3362_v54, %v3293_v46  ;;  %v2460_v40 = vrot.slane %v2421_v11, 4  ;;  %vm3264_vm4 = vcmp.lt.s32.totalorder %v7342_v18, 192 }
  0xdd   : > { %v2390_v34 = vrot.slane %v1315_v56, 4  ;;  %v2393_v36 = vsel %vm1458_vm1, %v1315_v56, %v2392_v15  ;;  %vm7380_vm3 = vcmp.ge.s32.totalorder %v3278_v9, 32 }
  0xde   : > { %v2401_v37 = vperm.slane %v2393_v36, %v7145_v62  ;;  %v1149_v36 = vadd.f32 %v7260_v17, %v7138_v49 }
  0xdf   : > { %v2391_v44 = vsel %vm1458_vm1, %v2390_v34, %v1310_v51 }
  0xe0   : > { %v2397_v43 = vperm.slane %v2391_v44, %v7145_v62  ;;  %v2438_v48 = vrot.slane %v2401_v37, 4  ;;  %v2441_v61 = vsel %vm1458_vm1, %v2401_v37, %v2440_v0  ;;  %v1151_v44 = vadd.f32 %v1150_v2, %v7138_v49 }
  0xe1   : > { %v2449_v51 = vperm.slane %v2441_v61, %v7239_v60  ;;  %v2452_v2 = vrot.slane %v2409_v5, 4  ;;  %v1572_v9 = vrot.slane %v1149_v36, 4 }
  0xe2   : > { %v2426_v8 = vrot.slane %v2397_v43, 4  ;;  %v1153_v22 = vpop.f32.mrf.mxu0  ;;  %v7364_v15 = vpop.f32.mrf.mxu1  ;;  %v2429_v56 = vsel %vm1458_vm1, %v2397_v43, %v2428_v50  ;;  %v2439_v34 = vsel %vm1458_vm1, %v2438_v48, %v2389_v10  ;;  %v3427_v50 = vmul.f32 0.5, %v3411_v57 }
  0xe3   : > { %v1154_v0 = vadd.f32 %v1153_v22, %v7138_v49  ;;  %v2462_v37 = vrot.slane %v2449_v51, 4  ;;  %v2437_v46 = vperm.slane %v2429_v56, %v7239_v60  ;;  %v2445_v54 = vperm.slane %v2439_v34, %v7239_v60  ;;  %v3391_v57 = vpop.f32.mrf.mxu3 }
  0xe4   : > { %v2427_v20 = vsel %vm1458_vm1, %v2426_v8, %v2385_v26  ;;  %v2456_v48 = vrot.slane %v2413_v3, 4  ;;  %v1584_v34 = vrot.slane %v1151_v44, 4  ;;  %6496 = vtanh.f32 %v3427_v50 }
  0xe5   : > { %v1570_v61 = vrot.slane %v1154_v0, 4  ;;  %6269 = vmatmul.msk.bf16.gmra.mxu0 %vm384_vm0, %v7357_v47  ;;  %6300 = vmatmul.msk.bf16.gmra.mxu1 %vm384_vm0, %v7257_v12  ;;  %v2433_v17 = vperm.slane %v2427_v20, %v7239_v60  ;;  %v7385_v26 = vsel %vm1458_vm1, %v2462_v37, %v2425_v23  ;;  %v2454_v43 = vrot.slane %v2437_v46, 4 }
  0xe6   : > { %11597 = vst [vmem:[#allocation10_spill] sm:$0xff] %v7385_v26  ;;  %v7392_v12 = vsel %vm1458_vm1, %v2445_v54, %v2460_v40  ;;  %v7395_v20 = vsel %vm1458_vm1, %v2449_v51, %v2464_v58  ;;  %v7408_v40 = vsel %vm1458_vm1, %v2437_v46, %v2456_v48 }
  0xe7   : > { %v1571_v8 = vsel %vm1458_vm1, %v1570_v61, %v1149_v36  ;;  %v2450_v22 = vrot.slane %v2433_v17, 4  ;;  %v7389_v56 = vsel %vm1458_vm1, %v2433_v17, %v2452_v2  ;;  %11599 = vst [vmem:[#allocation12_spill] sm:$0xff] %v7392_v12  ;;  %v7405_v61 = vsel %vm1458_vm1, %v2454_v43, %v2413_v3 }
  0xe8   : > { %11598 = vst [vmem:[#allocation11_spill] sm:$0xff] %v7389_v56  ;;  %v2458_v36 = vrot.slane %v2445_v54, 4  ;;  %v7411_v17 = vperm.slane %v1571_v8, %v7145_v62  ;;  %v1573_v8 = vsel %vm1458_vm1, %v1154_v0, %v1572_v9 }
  0xe9   : > { %11600 = vst [vmem:[#allocation13_spill] sm:$0xff] %v7395_v20  ;;  %v7402_v37 = vsel %vm1458_vm1, %v2450_v22, %v2409_v5  ;;  %v7456_v0 = vperm.slane %v1573_v8, %v7145_v62 }
  0xea   : > { %11601 = vst [vmem:[#allocation14_spill] sm:$0xff] %v7402_v37  ;;  %v1155_v58 = vpop.f32.mrf.mxu0  ;;  %v1319_v51 = vpop.f32.mrf.mxu1  ;;  %v3294_v5 = vsel %vm7380_vm3, %v7395_v20, %v7402_v37  ;;  %v7424_v2 = vsel %vm1458_vm1, %v2458_v36, %v2421_v11 }
  0xeb   : > { %11602 = vst [vmem:[#allocation15_spill] sm:$0xff] %v7405_v61  ;;  %v1156_v46 = vadd.f32 %v1155_v58, %v7138_v49  ;;  %v3412_v54 = vadd.f32 %v3391_v57, %v3294_v5  ;;  %v1620_v58 = vrot.slane %v7411_v17, 4  ;;  %v1632_v23 = vrot.slane %v7456_v0, 4 }
  0xec   : > { %11603 = vst [vmem:[#allocation16_spill] sm:$0xff] %v7408_v40 }
  0xed   : > { %11604 = vst [vmem:[#allocation17_spill] sm:$0xff] %v7424_v2  ;;  %v1582_v22 = vrot.slane %v1156_v46, 4  ;;  %v1585_v57 = vsel %vm1458_vm1, %v1156_v46, %v1584_v34  ;;  %v3428_v36 = vmul.f32 0.5, %v3412_v54  ;;  %v6497_v46 = vpop.eup %6496 }
  0xee   : > { %v7446_v5 = vperm.slane %v1585_v57, %v7145_v62  ;;  %v6432_v57 = vld [vmem:[%s7014_s19 + $0x70] sm:$0xff] }
  0xef   : > { %v1583_v6 = vsel %vm1458_vm1, %v1582_v22, %v1151_v44  ;;  %v3444_v11 = vsel %vm3264_vm4, %v3412_v54, %v3428_v36  ;;  %v1318_v22 = vadd.f32 %v7364_v15, %v7187_v52  ;;  %v1320_v36 = vadd.f32 %v1319_v51, %v7187_v52 }
  0xf0   : > { %v7459_v9 = vperm.slane %v1583_v6, %v7145_v62  ;;  %v1630_v34 = vrot.slane %v7446_v5, 4  ;;  %6498 = vtanh.f32 %v3444_v11  ;;  %v3475_v11 = vadd.f32 1.0, %v6497_v46 }
  0xf1   : > { %v2468_v28 = vrot.slane %v1318_v22, 4  ;;  %v2480_v3 = vrot.slane %v1320_v36, 4 }
  0xf2   : > { %v1158_v50 = vpop.f32.mrf.mxu0  ;;  %v1322_v7 = vpop.f32.mrf.mxu1  ;;  %v7465_v14 = vsel %vm1458_vm1, %v7459_v9, %v1620_v58  ;;  %v7469_v44 = vsel %vm1458_vm1, %v1630_v34, %v7456_v0 }
  0xf3   : > { %v1323_v54 = vadd.f32 %v1322_v7, %v7187_v52  ;;  %v7479_v7 = vmul.f32 0.5, %v3475_v11  ;;  %v1159_v46 = vadd.f32 %v1158_v50, %v7138_v49 }
  0xf5   : > { %v2466_v8 = vrot.slane %v1323_v54, 4  ;;  %6270 = vmatmul.msk.bf16.gmra.mxu0 %vm384_vm0, %v6432_v57  ;;  %6301 = vmatmul.msk.bf16.gmra.mxu1 %vm384_vm0, %v7357_v47 }
  0xf6   : > { %v6499_v6 = vpop.eup %6498 }
  0xf7   : > { %v3476_v58 = vadd.f32 1.0, %v6499_v6  ;;  %v2467_v48 = vsel %vm1458_vm1, %v2466_v8, %v1318_v22  ;;  %v2469_v8 = vsel %vm1458_vm1, %v1323_v54, %v2468_v28  ;;  %v1596_v54 = vrot.slane %v1159_v46, 4 }
  0xf8   : > { %v7487_v15 = vperm.slane %v2467_v48, %v7145_v62  ;;  %v7500_v48 = vperm.slane %v2469_v8, %v7145_v62 }
  0xf9   : > { %v3492_v34 = vmul.f32 0.5, %v3476_v58 }
  0xfa   : > { %v1160_v29 = vpop.f32.mrf.mxu0  ;;  %v1324_v43 = vpop.f32.mrf.mxu1  ;;  %v2516_v58 = vrot.slane %v7487_v15, 4  ;;  %v2528_v13 = vrot.slane %v7500_v48, 4 }
  0xfb   : > { %v1325_v33 = vadd.f32 %v1324_v43, %v7187_v52  ;;  %v7484_v47 = vsel %vm3264_vm4, %v6499_v6, %v3492_v34  ;;  %v1161_v8 = vadd.f32 %v1160_v29, %v7138_v49 }
  0xfc   : > { %v3531_v51 = vmul.f32 %v7484_v47, %v7479_v7 }
  0xfd   : > { %v2478_v11 = vrot.slane %v1325_v33, 4  ;;  %v2481_v22 = vsel %vm1458_vm1, %v1325_v33, %v2480_v3  ;;  %v6433_v33 = vld [vmem:[%s7014_s19 + $0x78] sm:$0xff]  ;;  %v1608_v20 = vrot.slane %v1161_v8, 4 }
  0xfe   : > { %v7495_v43 = vperm.slane %v2481_v22, %v7145_v62  ;;  %3547 = vrot.lane.b32.xlu0 %v3531_v51, %s6941_s11 }
  0xff   : > { %v2479_v6 = vsel %vm1458_vm1, %v2478_v11, %v1320_v36 }
 0x100   : > { %v7504_v50 = vperm.slane %v2479_v6, %v7145_v62  ;;  %v2526_v28 = vrot.slane %v7495_v43, 4 }
 0x102   : > { %v1163_v3 = vpop.f32.mrf.mxu0  ;;  %v1327_v34 = vpop.f32.mrf.mxu1  ;;  %v7510_v22 = vsel %vm1458_vm1, %v7504_v50, %v2516_v58  ;;  %v7514_v36 = vsel %vm1458_vm1, %v2526_v28, %v7500_v48  ;;  %v1618_v28 = vrot.slane %v7459_v9, 4 }
 0x103   : > { %v1164_v51 = vadd.f32 %v1163_v3, %v7138_v49 }
 0x105   : > { %v1594_v11 = vrot.slane %v1164_v51, 4  ;;  %v1597_v6 = vsel %vm1458_vm1, %v1164_v51, %v1596_v54  ;;  %6271 = vmatmul.msk.bf16.gmra.mxu0 %vm384_vm0, %v6433_v33  ;;  %6302 = vmatmul.msk.bf16.gmra.mxu1 %vm384_vm0, %v6432_v57  ;;  %v1633_v54 = vsel %vm1458_vm1, %v7446_v5, %v1632_v23  ;;  %v1629_v23 = vperm.slane %v7465_v14, %v7239_v60 }
 0x106   : > { %v1605_v63 = vperm.slane %v1597_v6, %v7145_v62  ;;  %v1641_v6 = vperm.slane %v1633_v54, %v7239_v60 }
 0x107   : > { %v1595_v58 = vsel %vm1458_vm1, %v1594_v11, %v1159_v46  ;;  %v1619_v46 = vsel %vm1458_vm1, %v1618_v28, %v7411_v17  ;;  %v1328_v28 = vadd.f32 %v1327_v34, %v7187_v52 }
 0x108   : > { %v1601_v3 = vperm.slane %v1595_v58, %v7145_v62  ;;  %v1656_v57 = vrot.slane %v1605_v63, 4 }
 0x109   : > { %v2492_v61 = vrot.slane %v1328_v28, 4 }
 0x10a   : > { %v1165_v37 = vpop.f32.mrf.mxu0  ;;  %v1329_v29 = vpop.f32.mrf.mxu1  ;;  %v1644_v11 = vrot.slane %v1601_v3, 4 }
 0x10b   : > { %v1166_v51 = vadd.f32 %v1165_v37, %v7138_v49  ;;  %v1637_v37 = vperm.slane %v7469_v44, %v7239_v60 }
 0x10d   : > { %v1606_v55 = vrot.slane %v1166_v51, 4  ;;  %v1609_v0 = vsel %vm1458_vm1, %v1166_v51, %v1608_v20  ;;  %v1625_v20 = vperm.slane %v1619_v46, %v7239_v60  ;;  %v7544_v51 = vld [vmem:[%s7014_s19 + $0x80] sm:$0xff]  ;;  %v1676_v2 = vrot.slane %v1637_v37, 4 }
 0x10e   : > { %v1617_v9 = vperm.slane %v1609_v0, %v7145_v62  ;;  %v1680_v0 = vrot.slane %v1641_v6, 4 }
 0x10f   : > { %v1607_v58 = vsel %vm1458_vm1, %v1606_v55, %v1161_v8 }
 0x110   : > { %v1613_v5 = vperm.slane %v1607_v58, %v7145_v62  ;;  %v1654_v4 = vrot.slane %v1617_v9, 4  ;;  %v1657_v17 = vsel %vm1458_vm1, %v1617_v9, %v1656_v57  ;;  %v1672_v57 = vrot.slane %v1629_v23, 4 }
 0x111   : > { %v1665_v54 = vperm.slane %v1657_v17, %v7239_v60  ;;  %v1668_v9 = vrot.slane %v1625_v20, 4 }
 0x112   : > { %v1642_v55 = vrot.slane %v1613_v5, 4  ;;  %v7547_v8 = vpop.f32.mrf.mxu0  ;;  %v1332_v14 = vpop.f32.mrf.mxu1  ;;  %v1645_v44 = vsel %vm1458_vm1, %v1613_v5, %v1644_v11  ;;  %v1655_v58 = vsel %vm1458_vm1, %v1654_v4, %v1605_v63  ;;  %v1330_v4 = vadd.f32 %v1329_v29, %v7187_v52 }
 0x113   : > { %v1333_v40 = vadd.f32 %v1332_v14, %v7187_v52  ;;  %v1678_v46 = vrot.slane %v1665_v54, 4  ;;  %v1653_v16 = vperm.slane %v1645_v44, %v7239_v60  ;;  %v1661_v17 = vperm.slane %v1655_v58, %v7239_v60 }
 0x114   : > { %v1643_v34 = vsel %vm1458_vm1, %v1642_v55, %v1601_v3  ;;  %v7576_v29 = vsel %vm1458_vm1, %v1665_v54, %v1680_v0 }
 0x115   : > { %v2490_v12 = vrot.slane %v1333_v40, 4  ;;  %6272 = vmatmul.msk.bf16.gmra.mxu0 %vm384_vm0, %v7544_v51  ;;  %6303 = vmatmul.msk.bf16.gmra.mxu1 %vm384_vm0, %v6433_v33  ;;  %v1649_v63 = vperm.slane %v1643_v34, %v7239_v60  ;;  %v7562_v3 = vsel %vm1458_vm1, %v1678_v46, %v1641_v6  ;;  %v1670_v11 = vrot.slane %v1653_v16, 4  ;;  %11609 = vst [vmem:[#allocation22_spill] sm:$0xff] %v7576_v29 }
 0x116   : > { %11605 = vst [vmem:[#allocation18_spill] sm:$0xff] %v7562_v3  ;;  %v7565_v5 = vsel %vm1458_vm1, %v1661_v17, %v1676_v2  ;;  %v2493_v48 = vsel %vm1458_vm1, %v1333_v40, %v2492_v61  ;;  %v7572_v44 = vsel %vm1458_vm1, %v1653_v16, %v1672_v57  ;;  %v2504_v46 = vrot.slane %v1330_v4, 4 }
 0x117   : > { %11606 = vst [vmem:[#allocation19_spill] sm:$0xff] %v7565_v5  ;;  %v1666_v55 = vrot.slane %v1649_v63, 4  ;;  %v7569_v14 = vsel %vm1458_vm1, %v1649_v63, %v1668_v9  ;;  %v2491_v33 = vsel %vm1458_vm1, %v2490_v12, %v1328_v28  ;;  %v7583_v6 = vsel %vm1458_vm1, %v1670_v11, %v1629_v23 }
 0x118   : > { %11607 = vst [vmem:[#allocation20_spill] sm:$0xff] %v7569_v14  ;;  %v1674_v12 = vrot.slane %v1661_v17, 4  ;;  %v2514_v28 = vrot.slane %v7504_v50, 4  ;;  %v2501_v54 = vperm.slane %v2493_v48, %v7145_v62  ;;  %v2529_v50 = vsel %vm1458_vm1, %v7495_v43, %v2528_v13 }
 0x119   : > { %11608 = vst [vmem:[#allocation21_spill] sm:$0xff] %v7572_v44  ;;  %v7586_v61 = vsel %vm1458_vm1, %v1666_v55, %v1625_v20  ;;  %v2497_v9 = vperm.slane %v2491_v33, %v7145_v62 }
 0x11a   : > { %11610 = vst [vmem:[#allocation23_spill] sm:$0xff] %v7583_v6  ;;  %v1170_v23 = vpop.f32.mrf.mxu0  ;;  %v1334_v0 = vpop.f32.mrf.mxu1  ;;  %v7608_v34 = vsel %vm1458_vm1, %v1674_v12, %v1637_v37  ;;  %v2552_v48 = vrot.slane %v2501_v54, 4  ;;  %v2515_v13 = vsel %vm1458_vm1, %v2514_v28, %v7487_v15  ;;  %v3295_v33 = vsel %vm7267_vm2, %v7576_v29, %v7586_v61 }
 0x11b   : > { %11611 = vst [vmem:[#allocation24_spill] sm:$0xff] %v7586_v61  ;;  %v1335_v57 = vadd.f32 %v1334_v0, %v7187_v52  ;;  %v3364_v12 = vpop.f32.mrf.mxu2  ;;  %v2537_v0 = vperm.slane %v2529_v50, %v7239_v60  ;;  %v2540_v58 = vrot.slane %v2497_v9, 4  ;;  %v2521_v15 = vperm.slane %v2515_v13, %v7239_v60 }
 0x11c   : > { %11612 = vst [vmem:[#allocation25_spill] sm:$0xff] %v7608_v34  ;;  %v2525_v28 = vperm.slane %v7510_v22, %v7239_v60  ;;  %v3413_v50 = vadd.f32 %v3364_v12, %v3295_v33  ;;  %v1171_v22 = vadd.f32 %v1170_v23, %v7138_v49 }
 0x11d   : > { %v2502_v11 = vrot.slane %v1335_v57, 4  ;;  %v2505_v37 = vsel %vm1458_vm1, %v1335_v57, %v2504_v46 }
 0x11e   : > { %v2513_v55 = vperm.slane %v2505_v37, %v7145_v62  ;;  %v7634_v37 = vld [vmem:[%s7014_s19 + $0x88] sm:$0xff]  ;;  %v1696_v29 = vrot.slane %v1171_v22, 4 }
 0x11f   : > { %v2503_v43 = vsel %vm1458_vm1, %v2502_v11, %v1330_v4  ;;  %v2533_v11 = vperm.slane %v7514_v36, %v7239_v60 }
 0x120   : > { %v2509_v20 = vperm.slane %v2503_v43, %v7145_v62  ;;  %v2550_v46 = vrot.slane %v2513_v55, 4  ;;  %v2553_v57 = vsel %vm1458_vm1, %v2513_v55, %v2552_v48  ;;  %v1169_v55 = vadd.f32 %v7547_v8, %v7138_v49 }
 0x121   : > { %v2561_v4 = vperm.slane %v2553_v57, %v7239_v60  ;;  %v2576_v57 = vrot.slane %v2537_v0, 4 }
 0x122   : > { %v2538_v40 = vrot.slane %v2509_v20, 4  ;;  %v1173_v63 = vpop.f32.mrf.mxu0  ;;  %v7642_v17 = vpop.f32.mrf.mxu1  ;;  %v2541_v43 = vsel %vm1458_vm1, %v2509_v20, %v2540_v58  ;;  %v2551_v48 = vsel %vm1458_vm1, %v2550_v46, %v2501_v54  ;;  %v2564_v54 = vrot.slane %v2521_v15, 4 }
 0x123   : > { %v1174_v13 = vadd.f32 %v1173_v63, %v7138_v49  ;;  %v2574_v16 = vrot.slane %v2561_v4, 4  ;;  %v2549_v33 = vperm.slane %v2541_v43, %v7239_v60  ;;  %v2557_v12 = vperm.slane %v2551_v48, %v7239_v60 }
 0x124   : > { %v2539_v36 = vsel %vm1458_vm1, %v2538_v40, %v2497_v9  ;;  %v2572_v20 = vrot.slane %v2533_v11, 4  ;;  %v3429_v58 = vmul.f32 0.5, %v3413_v50  ;;  %v2568_v9 = vrot.slane %v2525_v28, 4  ;;  %v3393_v50 = vpop.f32.mrf.mxu3 }
 0x125   : > { %v1682_v2 = vrot.slane %v1174_v13, 4  ;;  %6273 = vmatmul.msk.bf16.gmra.mxu0 %vm384_vm0, %v7634_v37  ;;  %6304 = vmatmul.msk.bf16.gmra.mxu1 %vm384_vm0, %v7544_v51  ;;  %v2545_v8 = vperm.slane %v2539_v36, %v7239_v60  ;;  %v7659_v23 = vsel %vm1458_vm1, %v2574_v16, %v2537_v0  ;;  %v2566_v40 = vrot.slane %v2549_v33, 4 }
 0x126   : > { %11613 = vst [vmem:[#allocation26_spill] sm:$0xff] %v7659_v23  ;;  %v7666_v48 = vsel %vm1458_vm1, %v2557_v12, %v2572_v20  ;;  %v1684_v51 = vrot.slane %v1169_v55, 4  ;;  %v7669_v36 = vsel %vm1458_vm1, %v2561_v4, %v2576_v57  ;;  %6500 = vtanh.f32 %v3429_v58 }
 0x127   : > { %v1683_v63 = vsel %vm1458_vm1, %v1682_v2, %v1169_v55  ;;  %v2562_v46 = vrot.slane %v2545_v8, 4  ;;  %v7663_v43 = vsel %vm1458_vm1, %v2545_v8, %v2564_v54  ;;  %11615 = vst [vmem:[#allocation28_spill] sm:$0xff] %v7666_v48  ;;  %v7679_v0 = vsel %vm1458_vm1, %v2566_v40, %v2525_v28 }
 0x128   : > { %11614 = vst [vmem:[#allocation27_spill] sm:$0xff] %v7663_v43  ;;  %v7682_v8 = vsel %vm1458_vm1, %v2549_v33, %v2568_v9  ;;  %v2570_v55 = vrot.slane %v2557_v12, 4  ;;  %v7685_v54 = vperm.slane %v1683_v63, %v7145_v62  ;;  %v1685_v63 = vsel %vm1458_vm1, %v1174_v13, %v1684_v51 }
 0x129   : > { %11616 = vst [vmem:[#allocation29_spill] sm:$0xff] %v7669_v36  ;;  %v7676_v2 = vsel %vm1458_vm1, %v2562_v46, %v2521_v15  ;;  %v7729_v13 = vperm.slane %v1685_v63, %v7145_v62 }
 0x12a   : > { %11617 = vst [vmem:[#allocation30_spill] sm:$0xff] %v7676_v2  ;;  %v1175_v4 = vpop.f32.mrf.mxu0  ;;  %v1339_v57 = vpop.f32.mrf.mxu1  ;;  %v3296_v20 = vsel %vm7380_vm3, %v7669_v36, %v7676_v2  ;;  %v7697_v12 = vsel %vm1458_vm1, %v2570_v55, %v2533_v11 }
 0x12b   : > { %11618 = vst [vmem:[#allocation31_spill] sm:$0xff] %v7679_v0  ;;  %v1176_v28 = vadd.f32 %v1175_v4, %v7138_v49  ;;  %v3414_v33 = vadd.f32 %v3393_v50, %v3296_v20  ;;  %v1732_v4 = vrot.slane %v7685_v54, 4  ;;  %v1744_v44 = vrot.slane %v7729_v13, 4 }
 0x12c   : > { %11619 = vst [vmem:[#allocation32_spill] sm:$0xff] %v7682_v8 }
 0x12d   : > { %11620 = vst [vmem:[#allocation33_spill] sm:$0xff] %v7697_v12  ;;  %v1694_v46 = vrot.slane %v1176_v28, 4  ;;  %v1697_v50 = vsel %vm1458_vm1, %v1176_v28, %v1696_v29  ;;  %v3430_v55 = vmul.f32 0.5, %v3414_v33  ;;  %v6501_v28 = vpop.eup %6500 }
 0x12e   : > { %v7719_v20 = vperm.slane %v1697_v50, %v7145_v62  ;;  %v6436_v50 = vld [vmem:[%s7014_s19 + $0x90] sm:$0xff] }
 0x12f   : > { %v1695_v9 = vsel %vm1458_vm1, %v1694_v46, %v1171_v22  ;;  %v3446_v11 = vsel %vm3264_vm4, %v3414_v33, %v3430_v55  ;;  %v1338_v46 = vadd.f32 %v7642_v17, %v7187_v52  ;;  %v1340_v55 = vadd.f32 %v1339_v57, %v7187_v52 }
 0x130   : > { %v7732_v29 = vperm.slane %v1695_v9, %v7145_v62  ;;  %v1742_v51 = vrot.slane %v7719_v20, 4  ;;  %6502 = vtanh.f32 %v3446_v11  ;;  %v3477_v11 = vadd.f32 1.0, %v6501_v28 }
 0x131   : > { %v2580_v61 = vrot.slane %v1338_v46, 4  ;;  %v2592_v8 = vrot.slane %v1340_v55, 4 }
 0x132   : > { %v1178_v40 = vpop.f32.mrf.mxu0  ;;  %v1342_v15 = vpop.f32.mrf.mxu1  ;;  %v7738_v58 = vsel %vm1458_vm1, %v7732_v29, %v1732_v4  ;;  %v7742_v22 = vsel %vm1458_vm1, %v1742_v51, %v7729_v13  ;;  %v7752_v36 = vmul.f32 0.5, %v3477_v11 }
 0x133   : > { %v1343_v33 = vadd.f32 %v1342_v15, %v7187_v52  ;;  %v1179_v28 = vadd.f32 %v1178_v40, %v7138_v49 }
 0x135   : > { %v2578_v63 = vrot.slane %v1343_v33, 4  ;;  %6274 = vmatmul.msk.bf16.gmra.mxu0 %vm384_vm0, %v6436_v50  ;;  %6305 = vmatmul.msk.bf16.gmra.mxu1 %vm384_vm0, %v7634_v37  ;;  %v1708_v40 = vrot.slane %v1179_v28, 4 }
 0x136   : > { %v6503_v9 = vpop.eup %6502 }
 0x137   : > { %v3478_v4 = vadd.f32 1.0, %v6503_v9  ;;  %v2579_v16 = vsel %vm1458_vm1, %v2578_v63, %v1338_v46  ;;  %v2581_v63 = vsel %vm1458_vm1, %v1343_v33, %v2580_v61  ;;  %v6437_v33 = vld [vmem:[%s7014_s19 + $0x98] sm:$0xff] }
 0x138   : > { %v7760_v17 = vperm.slane %v2579_v16, %v7145_v62  ;;  %v7773_v16 = vperm.slane %v2581_v63, %v7145_v62 }
 0x139   : > { %v3494_v51 = vmul.f32 0.5, %v3478_v4 }
 0x13a   : > { %v1180_v15 = vpop.f32.mrf.mxu0  ;;  %v1344_v2 = vpop.f32.mrf.mxu1  ;;  %v2628_v4 = vrot.slane %v7760_v17, 4  ;;  %v2640_v23 = vrot.slane %v7773_v16, 4 }
 0x13b   : > { %v1345_v12 = vadd.f32 %v1344_v2, %v7187_v52  ;;  %v7757_v37 = vsel %vm3264_vm4, %v6503_v9, %v3494_v51  ;;  %v1181_v63 = vadd.f32 %v1180_v15, %v7138_v49 }
 0x13c   : > { %v3532_v57 = vmul.f32 %v7757_v37, %v7752_v36 }
 0x13d   : > { %v2590_v11 = vrot.slane %v1345_v12, 4  ;;  %v2593_v46 = vsel %vm1458_vm1, %v1345_v12, %v2592_v8  ;;  %v1720_v0 = vrot.slane %v1181_v63, 4 }
 0x13e   : > { %v7768_v2 = vperm.slane %v2593_v46, %v7145_v62  ;;  %3549 = vrot.lane.b32.xlu0 %v3532_v57, %s6941_s11 }
 0x13f   : > { %v2591_v9 = vsel %vm1458_vm1, %v2590_v11, %v1340_v55 }
 0x140   : > { %v7777_v51 = vperm.slane %v2591_v9, %v7145_v62  ;;  %v2638_v61 = vrot.slane %v7768_v2, 4 }
 0x142   : > { %v1183_v8 = vpop.f32.mrf.mxu0  ;;  %v1347_v12 = vpop.f32.mrf.mxu1  ;;  %v7783_v46 = vsel %vm1458_vm1, %v7777_v51, %v2628_v4  ;;  %v7787_v55 = vsel %vm1458_vm1, %v2638_v61, %v7773_v16  ;;  %v1730_v61 = vrot.slane %v7732_v29, 4 }
 0x143   : > { %v1184_v57 = vadd.f32 %v1183_v8, %v7138_v49 }
 0x145   : > { %v1706_v11 = vrot.slane %v1184_v57, 4  ;;  %v1709_v9 = vsel %vm1458_vm1, %v1184_v57, %v1708_v40  ;;  %6275 = vmatmul.msk.bf16.gmra.mxu0 %vm384_vm0, %v6437_v33  ;;  %6306 = vmatmul.msk.bf16.gmra.mxu1 %vm384_vm0, %v6436_v50  ;;  %v1745_v40 = vsel %vm1458_vm1, %v7719_v20, %v1744_v44  ;;  %v1749_v44 = vperm.slane %v7742_v22, %v7239_v60 }
 0x146   : > { %v1717_v34 = vperm.slane %v1709_v9, %v7145_v62  ;;  %v1753_v9 = vperm.slane %v1745_v40, %v7239_v60 }
 0x147   : > { %v1707_v4 = vsel %vm1458_vm1, %v1706_v11, %v1179_v28  ;;  %v1731_v28 = vsel %vm1458_vm1, %v1730_v61, %v7685_v54  ;;  %v1348_v54 = vadd.f32 %v1347_v12, %v7187_v52  ;;  %v7817_v61 = vld [vmem:[%s7014_s19 + $0xa0] sm:$0xff]  ;;  %v1788_v53 = vrot.slane %v1749_v44, 4 }
 0x148   : > { %v1713_v8 = vperm.slane %v1707_v4, %v7145_v62  ;;  %v1768_v50 = vrot.slane %v1717_v34, 4 }
 0x149   : > { %v2604_v14 = vrot.slane %v1348_v54, 4 }
 0x14a   : > { %v1185_v48 = vpop.f32.mrf.mxu0  ;;  %v1349_v15 = vpop.f32.mrf.mxu1  ;;  %v1756_v11 = vrot.slane %v1713_v8, 4 }
 0x14b   : > { %v1186_v6 = vadd.f32 %v1185_v48, %v7138_v49  ;;  %v1741_v48 = vperm.slane %v7738_v58, %v7239_v60 }
 0x14d   : > { %v1718_v57 = vrot.slane %v1186_v6, 4  ;;  %v1721_v13 = vsel %vm1458_vm1, %v1186_v6, %v1720_v0  ;;  %v1737_v6 = vperm.slane %v1731_v28, %v7239_v60 }
 0x14e   : > { %v1729_v29 = vperm.slane %v1721_v13, %v7145_v62  ;;  %v1792_v13 = vrot.slane %v1753_v9, 4 }
 0x14f   : > { %v1719_v4 = vsel %vm1458_vm1, %v1718_v57, %v1181_v63 }
 0x150   : > { %v1725_v20 = vperm.slane %v1719_v4, %v7145_v62  ;;  %v1766_v5 = vrot.slane %v1729_v29, 4  ;;  %v1769_v0 = vsel %vm1458_vm1, %v1729_v29, %v1768_v50  ;;  %v1784_v50 = vrot.slane %v1741_v48, 4 }
 0x151   : > { %v1777_v40 = vperm.slane %v1769_v0, %v7239_v60  ;;  %v1780_v29 = vrot.slane %v1737_v6, 4 }
 0x152   : > { %v1754_v63 = vrot.slane %v1725_v20, 4  ;;  %v7820_v57 = vpop.f32.mrf.mxu0  ;;  %v1352_v58 = vpop.f32.mrf.mxu1  ;;  %v1757_v22 = vsel %vm1458_vm1, %v1725_v20, %v1756_v11  ;;  %v1767_v4 = vsel %vm1458_vm1, %v1766_v5, %v1717_v34  ;;  %v1350_v34 = vadd.f32 %v1349_v15, %v7187_v52 }
 0x153   : > { %v1353_v45 = vadd.f32 %v1352_v58, %v7187_v52  ;;  %v1790_v28 = vrot.slane %v1777_v40, 4  ;;  %v1765_v43 = vperm.slane %v1757_v22, %v7239_v60  ;;  %v1773_v0 = vperm.slane %v1767_v4, %v7239_v60 }
 0x154   : > { %v1755_v12 = vsel %vm1458_vm1, %v1754_v63, %v1713_v8  ;;  %v7849_v15 = vsel %vm1458_vm1, %v1777_v40, %v1792_v13 }
 0x155   : > { %v2602_v3 = vrot.slane %v1353_v45, 4  ;;  %6276 = vmatmul.msk.bf16.gmra.mxu0 %vm384_vm0, %v7817_v61  ;;  %6307 = vmatmul.msk.bf16.gmra.mxu1 %vm384_vm0, %v6437_v33  ;;  %v1761_v5 = vperm.slane %v1755_v12, %v7239_v60  ;;  %v7835_v8 = vsel %vm1458_vm1, %v1790_v28, %v1753_v9  ;;  %v1782_v11 = vrot.slane %v1765_v43, 4  ;;  %11625 = vst [vmem:[#allocation38_spill] sm:$0xff] %v7849_v15 }
 0x156   : > { %11621 = vst [vmem:[#allocation34_spill] sm:$0xff] %v7835_v8  ;;  %v7838_v20 = vsel %vm1458_vm1, %v1773_v0, %v1788_v53  ;;  %v2605_v16 = vsel %vm1458_vm1, %v1353_v45, %v2604_v14  ;;  %v7845_v22 = vsel %vm1458_vm1, %v1765_v43, %v1784_v50  ;;  %v2616_v28 = vrot.slane %v1350_v34, 4 }
 0x157   : > { %11622 = vst [vmem:[#allocation35_spill] sm:$0xff] %v7838_v20  ;;  %v1778_v63 = vrot.slane %v1761_v5, 4  ;;  %v7842_v58 = vsel %vm1458_vm1, %v1761_v5, %v1780_v29  ;;  %v2603_v33 = vsel %vm1458_vm1, %v2602_v3, %v1348_v54  ;;  %v7856_v9 = vsel %vm1458_vm1, %v1782_v11, %v1741_v48 }
 0x158   : > { %11623 = vst [vmem:[#allocation36_spill] sm:$0xff] %v7842_v58  ;;  %v1786_v3 = vrot.slane %v1773_v0, 4  ;;  %v2626_v54 = vrot.slane %v7777_v51, 4  ;;  %v2613_v40 = vperm.slane %v2605_v16, %v7145_v62  ;;  %v2609_v51 = vperm.slane %v2603_v33, %v7145_v62 }
 0x159   : > { %11624 = vst [vmem:[#allocation37_spill] sm:$0xff] %v7845_v22  ;;  %v7859_v45 = vsel %vm1458_vm1, %v1778_v63, %v1737_v6  ;;  %v2641_v29 = vsel %vm1458_vm1, %v7768_v2, %v2640_v23 }
 0x15a   : > { %11626 = vst [vmem:[#allocation39_spill] sm:$0xff] %v7856_v9  ;;  %v1190_v48 = vpop.f32.mrf.mxu0  ;;  %v1354_v13 = vpop.f32.mrf.mxu1  ;;  %v7881_v12 = vsel %vm1458_vm1, %v1786_v3, %v1749_v44  ;;  %v2664_v16 = vrot.slane %v2613_v40, 4  ;;  %v2627_v23 = vsel %vm1458_vm1, %v2626_v54, %v7760_v17  ;;  %v3297_v33 = vsel %vm7267_vm2, %v7849_v15, %v7859_v45 }
 0x15b   : > { %11627 = vst [vmem:[#allocation40_spill] sm:$0xff] %v7859_v45  ;;  %v1355_v50 = vadd.f32 %v1354_v13, %v7187_v52  ;;  %v3367_v3 = vpop.f32.mrf.mxu2  ;;  %v2649_v13 = vperm.slane %v2641_v29, %v7239_v60  ;;  %v2652_v4 = vrot.slane %v2609_v51, 4  ;;  %v2633_v17 = vperm.slane %v2627_v23, %v7239_v60 }
 0x15c   : > { %11628 = vst [vmem:[#allocation41_spill] sm:$0xff] %v7881_v12  ;;  %v2637_v54 = vperm.slane %v7783_v46, %v7239_v60  ;;  %v3415_v29 = vadd.f32 %v3367_v3, %v3297_v33  ;;  %v1191_v46 = vadd.f32 %v1190_v48, %v7138_v49 }
 0x15d   : > { %v2614_v11 = vrot.slane %v1355_v50, 4  ;;  %v2617_v44 = vsel %vm1458_vm1, %v1355_v50, %v2616_v28 }
 0x15e   : > { %v2625_v63 = vperm.slane %v2617_v44, %v7145_v62  ;;  %v7907_v44 = vld [vmem:[%s7014_s19 + $0xa8] sm:$0xff]  ;;  %v1808_v15 = vrot.slane %v1191_v46, 4 }
 0x15f   : > { %v2615_v2 = vsel %vm1458_vm1, %v2614_v11, %v1350_v34  ;;  %v2645_v11 = vperm.slane %v7787_v55, %v7239_v60 }
 0x160   : > { %v2621_v6 = vperm.slane %v2615_v2, %v7145_v62  ;;  %v2662_v28 = vrot.slane %v2625_v63, 4  ;;  %v2665_v50 = vsel %vm1458_vm1, %v2625_v63, %v2664_v16  ;;  %v1189_v63 = vadd.f32 %v7820_v57, %v7138_v49 }
 0x161   : > { %v2673_v34 = vperm.slane %v2665_v50, %v7239_v60  ;;  %v2688_v50 = vrot.slane %v2649_v13, 4 }
 0x162   : > { %v2650_v43 = vrot.slane %v2621_v6, 4  ;;  %v1193_v5 = vpop.f32.mrf.mxu0  ;;  %v7915_v0 = vpop.f32.mrf.mxu1  ;;  %v2653_v2 = vsel %vm1458_vm1, %v2621_v6, %v2652_v4  ;;  %v2663_v16 = vsel %vm1458_vm1, %v2662_v28, %v2613_v40  ;;  %v2676_v40 = vrot.slane %v2633_v17, 4 }
 0x163   : > { %v1194_v23 = vadd.f32 %v1193_v5, %v7138_v49  ;;  %v2686_v14 = vrot.slane %v2673_v34, 4  ;;  %v2661_v33 = vperm.slane %v2653_v2, %v7239_v60  ;;  %v2669_v3 = vperm.slane %v2663_v16, %v7239_v60 }
 0x164   : > { %v2651_v55 = vsel %vm1458_vm1, %v2650_v43, %v2609_v51  ;;  %v2684_v6 = vrot.slane %v2645_v11, 4  ;;  %v3431_v4 = vmul.f32 0.5, %v3415_v29  ;;  %v2680_v51 = vrot.slane %v2637_v54, 4  ;;  %v3396_v29 = vpop.f32.mrf.mxu3 }
 0x165   : > { %v1794_v53 = vrot.slane %v1194_v23, 4  ;;  %6277 = vmatmul.msk.bf16.gmra.mxu0 %vm384_vm0, %v7907_v44  ;;  %6308 = vmatmul.msk.bf16.gmra.mxu1 %vm384_vm0, %v7817_v61  ;;  %v2657_v57 = vperm.slane %v2651_v55, %v7239_v60  ;;  %v7932_v48 = vsel %vm1458_vm1, %v2686_v14, %v2649_v13  ;;  %v2678_v43 = vrot.slane %v2661_v33, 4 }
 0x166   : > { %11629 = vst [vmem:[#allocation42_spill] sm:$0xff] %v7932_v48  ;;  %v7939_v16 = vsel %vm1458_vm1, %v2669_v3, %v2684_v6  ;;  %v1796_v61 = vrot.slane %v1189_v63, 4  ;;  %v7942_v55 = vsel %vm1458_vm1, %v2673_v34, %v2688_v50  ;;  %6504 = vtanh.f32 %v3431_v4 }
 0x167   : > { %v1795_v5 = vsel %vm1458_vm1, %v1794_v53, %v1189_v63  ;;  %v2674_v28 = vrot.slane %v2657_v57, 4  ;;  %v7936_v2 = vsel %vm1458_vm1, %v2657_v57, %v2676_v40  ;;  %11631 = vst [vmem:[#allocation44_spill] sm:$0xff] %v7939_v16  ;;  %v7952_v13 = vsel %vm1458_vm1, %v2678_v43, %v2637_v54 }
 0x168   : > { %11630 = vst [vmem:[#allocation43_spill] sm:$0xff] %v7936_v2  ;;  %v7955_v57 = vsel %vm1458_vm1, %v2661_v33, %v2680_v51  ;;  %v2682_v63 = vrot.slane %v2669_v3, 4  ;;  %v7958_v40 = vperm.slane %v1795_v5, %v7145_v62  ;;  %v1797_v5 = vsel %vm1458_vm1, %v1194_v23, %v1796_v61 }
 0x169   : > { %11632 = vst [vmem:[#allocation45_spill] sm:$0xff] %v7942_v55  ;;  %v7949_v53 = vsel %vm1458_vm1, %v2674_v28, %v2633_v17  ;;  %v8002_v23 = vperm.slane %v1797_v5, %v7145_v62 }
 0x16a   : > { %11633 = vst [vmem:[#allocation46_spill] sm:$0xff] %v7949_v53  ;;  %v1195_v34 = vpop.f32.mrf.mxu0  ;;  %v1359_v50 = vpop.f32.mrf.mxu1  ;;  %v3298_v6 = vsel %vm7380_vm3, %v7942_v55, %v7949_v53  ;;  %v7970_v3 = vsel %vm1458_vm1, %v2682_v63, %v2645_v11 }
 0x16b   : > { %11634 = vst [vmem:[#allocation47_spill] sm:$0xff] %v7952_v13  ;;  %v1196_v54 = vadd.f32 %v1195_v34, %v7138_v49  ;;  %v3416_v33 = vadd.f32 %v3396_v29, %v3298_v6  ;;  %v1844_v34 = vrot.slane %v7958_v40, 4  ;;  %v1856_v22 = vrot.slane %v8002_v23, 4 }
 0x16c   : > { %11635 = vst [vmem:[#allocation48_spill] sm:$0xff] %v7955_v57 }
 0x16d   : > { %11636 = vst [vmem:[#allocation49_spill] sm:$0xff] %v7970_v3  ;;  %v1806_v28 = vrot.slane %v1196_v54, 4  ;;  %v1809_v29 = vsel %vm1458_vm1, %v1196_v54, %v1808_v15  ;;  %v3432_v63 = vmul.f32 0.5, %v3416_v33  ;;  %v6505_v54 = vpop.eup %6504 }
 0x16e   : > { %v7992_v6 = vperm.slane %v1809_v29, %v7145_v62  ;;  %v6440_v29 = vld [vmem:[%s7014_s19 + $0xb0] sm:$0xff] }
 0x16f   : > { %v1807_v51 = vsel %vm1458_vm1, %v1806_v28, %v1191_v46  ;;  %v3448_v11 = vsel %vm3264_vm4, %v3416_v33, %v3432_v63  ;;  %v1358_v28 = vadd.f32 %v7915_v0, %v7187_v52  ;;  %v1360_v63 = vadd.f32 %v1359_v50, %v7187_v52 }
 0x170   : > { %v8005_v15 = vperm.slane %v1807_v51, %v7145_v62  ;;  %v1854_v61 = vrot.slane %v7992_v6, 4  ;;  %6506 = vtanh.f32 %v3448_v11  ;;  %v3479_v11 = vadd.f32 1.0, %v6505_v54 }
 0x171   : > { %v2692_v45 = vrot.slane %v1358_v28, 4  ;;  %v2704_v57 = vrot.slane %v1360_v63, 4 }
 0x172   : > { %v1198_v43 = vpop.f32.mrf.mxu0  ;;  %v1362_v17 = vpop.f32.mrf.mxu1  ;;  %v8011_v4 = vsel %vm1458_vm1, %v8005_v15, %v1844_v34  ;;  %v8015_v46 = vsel %vm1458_vm1, %v1854_v61, %v8002_v23 }
 0x173   : > { %v1363_v33 = vadd.f32 %v1362_v17, %v7187_v52  ;;  %v8025_v17 = vmul.f32 0.5, %v3479_v11  ;;  %v1199_v54 = vadd.f32 %v1198_v43, %v7138_v49 }
 0x175   : > { %v2690_v5 = vrot.slane %v1363_v33, 4  ;;  %6278 = vmatmul.msk.bf16.gmra.mxu0 %vm384_vm0, %v6440_v29  ;;  %6309 = vmatmul.msk.bf16.gmra.mxu1 %vm384_vm0, %v7907_v44  ;;  %v1820_v43 = vrot.slane %v1199_v54, 4 }
 0x176   : > { %v6507_v51 = vpop.eup %6506 }
 0x177   : > { %v3480_v34 = vadd.f32 1.0, %v6507_v51  ;;  %v2691_v14 = vsel %vm1458_vm1, %v2690_v5, %v1358_v28  ;;  %v2693_v5 = vsel %vm1458_vm1, %v1363_v33, %v2692_v45  ;;  %v6441_v33 = vld [vmem:[%s7014_s19 + $0xb8] sm:$0xff] }
 0x178   : > { %v8033_v0 = vperm.slane %v2691_v14, %v7145_v62  ;;  %v8046_v14 = vperm.slane %v2693_v5, %v7145_v62 }
 0x179   : > { %v3496_v61 = vmul.f32 0.5, %v3480_v34 }
 0x17a   : > { %v1200_v55 = vpop.f32.mrf.mxu0  ;;  %v1364_v53 = vpop.f32.mrf.mxu1  ;;  %v2740_v34 = vrot.slane %v8033_v0, 4  ;;  %v2752_v8 = vrot.slane %v8046_v14, 4 }
 0x17b   : > { %v1365_v3 = vadd.f32 %v1364_v53, %v7187_v52  ;;  %v8030_v44 = vsel %vm3264_vm4, %v6507_v51, %v3496_v61  ;;  %v1201_v5 = vadd.f32 %v1200_v55, %v7138_v49 }
 0x17c   : > { %v3533_v50 = vmul.f32 %v8030_v44, %v8025_v17 }
 0x17d   : > { %v2702_v11 = vrot.slane %v1365_v3, 4  ;;  %v2705_v28 = vsel %vm1458_vm1, %v1365_v3, %v2704_v57  ;;  %v1832_v13 = vrot.slane %v1201_v5, 4 }
 0x17e   : > { %v8041_v53 = vperm.slane %v2705_v28, %v7145_v62  ;;  %3551 = vrot.lane.b32.xlu1 %v3533_v50, %s6941_s11 }
 0x17f   : > { %v2703_v51 = vsel %vm1458_vm1, %v2702_v11, %v1360_v63 }
 0x180   : > { %v8050_v61 = vperm.slane %v2703_v51, %v7145_v62  ;;  %v2750_v45 = vrot.slane %v8041_v53, 4 }
 0x182   : > { %v1203_v57 = vpop.f32.mrf.mxu0  ;;  %v1367_v3 = vpop.f32.mrf.mxu1  ;;  %v8056_v28 = vsel %vm1458_vm1, %v8050_v61, %v2740_v34  ;;  %v8060_v63 = vsel %vm1458_vm1, %v2750_v45, %v8046_v14  ;;  %v1842_v45 = vrot.slane %v8005_v15, 4 }
 0x183   : > { %v1204_v50 = vadd.f32 %v1203_v57, %v7138_v49 }
 0x185   : > { %v1818_v11 = vrot.slane %v1204_v50, 4  ;;  %v1821_v51 = vsel %vm1458_vm1, %v1204_v50, %v1820_v43  ;;  %6279 = vmatmul.msk.bf16.gmra.mxu0 %vm384_vm0, %v6441_v33  ;;  %6310 = vmatmul.msk.bf16.gmra.mxu1 %vm384_vm0, %v6440_v29  ;;  %v1857_v43 = vsel %vm1458_vm1, %v7992_v6, %v1856_v22  ;;  %v1853_v22 = vperm.slane %v8011_v4, %v7239_v60 }
 0x186   : > { %v1829_v12 = vperm.slane %v1821_v51, %v7145_v62  ;;  %v1865_v51 = vperm.slane %v1857_v43, %v7239_v60 }
 0x187   : > { %v1819_v34 = vsel %vm1458_vm1, %v1818_v11, %v1199_v54  ;;  %v1843_v54 = vsel %vm1458_vm1, %v1842_v45, %v7958_v40  ;;  %v1368_v45 = vadd.f32 %v1367_v3, %v7187_v52 }
 0x188   : > { %v1825_v57 = vperm.slane %v1819_v34, %v7145_v62  ;;  %v1880_v29 = vrot.slane %v1829_v12, 4 }
 0x189   : > { %v2716_v56 = vrot.slane %v1368_v45, 4 }
 0x18a   : > { %v1205_v16 = vpop.f32.mrf.mxu0  ;;  %v1369_v55 = vpop.f32.mrf.mxu1  ;;  %v1868_v11 = vrot.slane %v1825_v57, 4 }
 0x18b   : > { %v1206_v50 = vadd.f32 %v1205_v16, %v7138_v49  ;;  %v1861_v16 = vperm.slane %v8015_v46, %v7239_v60 }
 0x18d   : > { %v1830_v9 = vrot.slane %v1206_v50, 4  ;;  %v1833_v23 = vsel %vm1458_vm1, %v1206_v50, %v1832_v13  ;;  %v1849_v13 = vperm.slane %v1843_v54, %v7239_v60  ;;  %v8090_v50 = vld [vmem:[%s7014_s19 + $0xc0] sm:$0xff]  ;;  %v1900_v48 = vrot.slane %v1861_v16, 4 }
 0x18e   : > { %v1841_v15 = vperm.slane %v1833_v23, %v7145_v62  ;;  %v1904_v23 = vrot.slane %v1865_v51, 4 }
 0x18f   : > { %v1831_v34 = vsel %vm1458_vm1, %v1830_v9, %v1201_v5 }
 0x190   : > { %v1837_v6 = vperm.slane %v1831_v34, %v7145_v62  ;;  %v1878_v20 = vrot.slane %v1841_v15, 4  ;;  %v1881_v40 = vsel %vm1458_vm1, %v1841_v15, %v1880_v29  ;;  %v1896_v29 = vrot.slane %v1853_v22, 4 }
 0x191   : > { %v1889_v43 = vperm.slane %v1881_v40, %v7239_v60  ;;  %v1892_v15 = vrot.slane %v1849_v13, 4 }
 0x192   : > { %v1866_v9 = vrot.slane %v1837_v6, 4  ;;  %v8093_v5 = vpop.f32.mrf.mxu0  ;;  %v1372_v4 = vpop.f32.mrf.mxu1  ;;  %v1869_v46 = vsel %vm1458_vm1, %v1837_v6, %v1868_v11  ;;  %v1879_v34 = vsel %vm1458_vm1, %v1878_v20, %v1829_v12  ;;  %v1370_v12 = vadd.f32 %v1369_v55, %v7187_v52 }
 0x193   : > { %v1373_v2 = vadd.f32 %v1372_v4, %v7187_v52  ;;  %v1902_v54 = vrot.slane %v1889_v43, 4  ;;  %v1877_v58 = vperm.slane %v1869_v46, %v7239_v60  ;;  %v1885_v40 = vperm.slane %v1879_v34, %v7239_v60 }
 0x194   : > { %v1867_v3 = vsel %vm1458_vm1, %v1866_v9, %v1825_v57  ;;  %v8122_v55 = vsel %vm1458_vm1, %v1889_v43, %v1904_v23 }
 0x195   : > { %v2714_v26 = vrot.slane %v1373_v2, 4  ;;  %6280 = vmatmul.msk.bf16.gmra.mxu0 %vm384_vm0, %v8090_v50  ;;  %6311 = vmatmul.msk.bf16.gmra.mxu1 %vm384_vm0, %v6441_v33  ;;  %v1873_v20 = vperm.slane %v1867_v3, %v7239_v60  ;;  %v8108_v57 = vsel %vm1458_vm1, %v1902_v54, %v1865_v51  ;;  %v1894_v11 = vrot.slane %v1877_v58, 4  ;;  %11641 = vst [vmem:[#allocation54_spill] sm:$0xff] %v8122_v55 }
 0x196   : > { %11637 = vst [vmem:[#allocation50_spill] sm:$0xff] %v8108_v57  ;;  %v8111_v6 = vsel %vm1458_vm1, %v1885_v40, %v1900_v48  ;;  %v2717_v14 = vsel %vm1458_vm1, %v1373_v2, %v2716_v56  ;;  %v8118_v46 = vsel %vm1458_vm1, %v1877_v58, %v1896_v29  ;;  %v2728_v54 = vrot.slane %v1370_v12, 4 }
 0x197   : > { %11638 = vst [vmem:[#allocation51_spill] sm:$0xff] %v8111_v6  ;;  %v1890_v9 = vrot.slane %v1873_v20, 4  ;;  %v8115_v4 = vsel %vm1458_vm1, %v1873_v20, %v1892_v15  ;;  %v2715_v33 = vsel %vm1458_vm1, %v2714_v26, %v1368_v45  ;;  %v8129_v51 = vsel %vm1458_vm1, %v1894_v11, %v1853_v22 }
 0x198   : > { %11639 = vst [vmem:[#allocation52_spill] sm:$0xff] %v8115_v4  ;;  %v1898_v26 = vrot.slane %v1885_v40, 4  ;;  %v2738_v45 = vrot.slane %v8050_v61, 4  ;;  %v2725_v43 = vperm.slane %v2717_v14, %v7145_v62  ;;  %v2753_v61 = vsel %vm1458_vm1, %v8041_v53, %v2752_v8 }
 0x199   : > { %11640 = vst [vmem:[#allocation53_spill] sm:$0xff] %v8118_v46  ;;  %v8132_v56 = vsel %vm1458_vm1, %v1890_v9, %v1849_v13  ;;  %v2721_v15 = vperm.slane %v2715_v33, %v7145_v62 }
 0x19a   : > { %11642 = vst [vmem:[#allocation55_spill] sm:$0xff] %v8129_v51  ;;  %v1210_v22 = vpop.f32.mrf.mxu0  ;;  %v1374_v23 = vpop.f32.mrf.mxu1  ;;  %v8154_v3 = vsel %vm1458_vm1, %v1898_v26, %v1861_v16  ;;  %v2776_v14 = vrot.slane %v2725_v43, 4  ;;  %v2739_v8 = vsel %vm1458_vm1, %v2738_v45, %v8033_v0  ;;  %v3299_v33 = vsel %vm7267_vm2, %v8122_v55, %v8132_v56 }
 0x19b   : > { %11643 = vst [vmem:[#allocation56_spill] sm:$0xff] %v8132_v56  ;;  %v1375_v29 = vadd.f32 %v1374_v23, %v7187_v52  ;;  %v3369_v26 = vpop.f32.mrf.mxu2  ;;  %v2761_v23 = vperm.slane %v2753_v61, %v7239_v60  ;;  %v2764_v34 = vrot.slane %v2721_v15, 4  ;;  %v2745_v0 = vperm.slane %v2739_v8, %v7239_v60 }
 0x19c   : > { %11644 = vst [vmem:[#allocation57_spill] sm:$0xff] %v8154_v3  ;;  %v2749_v45 = vperm.slane %v8056_v28, %v7239_v60  ;;  %v3417_v61 = vadd.f32 %v3369_v26, %v3299_v33  ;;  %v1211_v28 = vadd.f32 %v1210_v22, %v7138_v49 }
 0x19d   : > { %v2726_v11 = vrot.slane %v1375_v29, 4  ;;  %v2729_v16 = vsel %vm1458_vm1, %v1375_v29, %v2728_v54 }
 0x19e   : > { %v2737_v9 = vperm.slane %v2729_v16, %v7145_v62  ;;  %v8180_v16 = vld [vmem:[%s7014_s19 + $0xc8] sm:$0xff]  ;;  %v1920_v55 = vrot.slane %v1211_v28, 4 }
 0x19f   : > { %v2727_v53 = vsel %vm1458_vm1, %v2726_v11, %v1370_v12  ;;  %v2757_v11 = vperm.slane %v8060_v63, %v7239_v60 }
 0x1a0   : > { %v2733_v13 = vperm.slane %v2727_v53, %v7145_v62  ;;  %v2774_v54 = vrot.slane %v2737_v9, 4  ;;  %v2777_v29 = vsel %vm1458_vm1, %v2737_v9, %v2776_v14  ;;  %v1209_v9 = vadd.f32 %v8093_v5, %v7138_v49 }
 0x1a1   : > { %v2785_v12 = vperm.slane %v2777_v29, %v7239_v60  ;;  %v2800_v29 = vrot.slane %v2761_v23, 4 }
 0x1a2   : > { %v2762_v2 = vrot.slane %v2733_v13, 4  ;;  %v1213_v20 = vpop.f32.mrf.mxu0  ;;  %v8188_v40 = vpop.f32.mrf.mxu1  ;;  %v2765_v53 = vsel %vm1458_vm1, %v2733_v13, %v2764_v34  ;;  %v2775_v14 = vsel %vm1458_vm1, %v2774_v54, %v2725_v43  ;;  %v2788_v43 = vrot.slane %v2745_v0, 4 }
 0x1a3   : > { %v1214_v8 = vadd.f32 %v1213_v20, %v7138_v49  ;;  %v2798_v58 = vrot.slane %v2785_v12, 4  ;;  %v2773_v33 = vperm.slane %v2765_v53, %v7239_v60  ;;  %v2781_v26 = vperm.slane %v2775_v14, %v7239_v60 }
 0x1a4   : > { %v2763_v63 = vsel %vm1458_vm1, %v2762_v2, %v2721_v15  ;;  %v2796_v13 = vrot.slane %v2757_v11, 4  ;;  %v3433_v34 = vmul.f32 0.5, %v3417_v61  ;;  %v2792_v15 = vrot.slane %v2749_v45, 4  ;;  %v3398_v61 = vpop.f32.mrf.mxu3 }
 0x1a5   : > { %v1906_v48 = vrot.slane %v1214_v8, 4  ;;  %6281 = vmatmul.msk.bf16.gmra.mxu0 %vm384_vm0, %v8180_v16  ;;  %6312 = vmatmul.msk.bf16.gmra.mxu1 %vm384_vm0, %v8090_v50  ;;  %v2769_v5 = vperm.slane %v2763_v63, %v7239_v60  ;;  %v8205_v22 = vsel %vm1458_vm1, %v2798_v58, %v2761_v23  ;;  %v2790_v2 = vrot.slane %v2773_v33, 4 }
 0x1a6   : > { %11645 = vst [vmem:[#allocation58_spill] sm:$0xff] %v8205_v22  ;;  %v8212_v14 = vsel %vm1458_vm1, %v2781_v26, %v2796_v13  ;;  %v1908_v50 = vrot.slane %v1209_v9, 4  ;;  %v8215_v63 = vsel %vm1458_vm1, %v2785_v12, %v2800_v29  ;;  %6508 = vtanh.f32 %v3433_v34 }
 0x1a7   : > { %v1907_v20 = vsel %vm1458_vm1, %v1906_v48, %v1209_v9  ;;  %v2786_v54 = vrot.slane %v2769_v5, 4  ;;  %v8209_v53 = vsel %vm1458_vm1, %v2769_v5, %v2788_v43  ;;  %11647 = vst [vmem:[#allocation60_spill] sm:$0xff] %v8212_v14  ;;  %v8225_v23 = vsel %vm1458_vm1, %v2790_v2, %v2749_v45 }
 0x1a8   : > { %11646 = vst [vmem:[#allocation59_spill] sm:$0xff] %v8209_v53  ;;  %v8228_v5 = vsel %vm1458_vm1, %v2773_v33, %v2792_v15  ;;  %v2794_v9 = vrot.slane %v2781_v26, 4  ;;  %v8231_v43 = vperm.slane %v1907_v20, %v7145_v62  ;;  %v1909_v20 = vsel %vm1458_vm1, %v1214_v8, %v1908_v50 }
 0x1a9   : > { %11648 = vst [vmem:[#allocation61_spill] sm:$0xff] %v8215_v63  ;;  %v8222_v48 = vsel %vm1458_vm1, %v2786_v54, %v2745_v0  ;;  %v8275_v8 = vperm.slane %v1909_v20, %v7145_v62 }
 0x1aa   : > { %11649 = vst [vmem:[#allocation62_spill] sm:$0xff] %v8222_v48  ;;  %v1215_v12 = vpop.f32.mrf.mxu0  ;;  %v1379_v29 = vpop.f32.mrf.mxu1  ;;  %v3300_v13 = vsel %vm7380_vm3, %v8215_v63, %v8222_v48  ;;  %v8243_v26 = vsel %vm1458_vm1, %v2794_v9, %v2757_v11 }
 0x1ab   : > { %11650 = vst [vmem:[#allocation63_spill] sm:$0xff] %v8225_v23  ;;  %v1216_v45 = vadd.f32 %v1215_v12, %v7138_v49  ;;  %v3418_v33 = vadd.f32 %v3398_v61, %v3300_v13  ;;  %v1956_v12 = vrot.slane %v8231_v43, 4  ;;  %v1968_v46 = vrot.slane %v8275_v8, 4 }
 0x1ac   : > { %11651 = vst [vmem:[#allocation64_spill] sm:$0xff] %v8228_v5 }
 0x1ad   : > { %11652 = vst [vmem:[#allocation65_spill] sm:$0xff] %v8243_v26  ;;  %v1918_v54 = vrot.slane %v1216_v45, 4  ;;  %v1921_v61 = vsel %vm1458_vm1, %v1216_v45, %v1920_v55  ;;  %v3434_v9 = vmul.f32 0.5, %v3418_v33  ;;  %v6509_v45 = vpop.eup %6508 }
 0x1ae   : > { %v8265_v13 = vperm.slane %v1921_v61, %v7145_v62  ;;  %v6444_v61 = vld [vmem:[%s7014_s19 + $0xd0] sm:$0xff] }
 0x1af   : > { %v1919_v15 = vsel %vm1458_vm1, %v1918_v54, %v1211_v28  ;;  %v3450_v11 = vsel %vm3264_vm4, %v3418_v33, %v3434_v9  ;;  %v1378_v54 = vadd.f32 %v8188_v40, %v7187_v52  ;;  %v1380_v9 = vadd.f32 %v1379_v29, %v7187_v52 }
 0x1b0   : > { %v8278_v55 = vperm.slane %v1919_v15, %v7145_v62  ;;  %v1966_v50 = vrot.slane %v8265_v13, 4  ;;  %6510 = vtanh.f32 %v3450_v11  ;;  %v3481_v11 = vadd.f32 1.0, %v6509_v45 }
 0x1b1   : > { %v2804_v56 = vrot.slane %v1378_v54, 4  ;;  %v2816_v5 = vrot.slane %v1380_v9, 4 }
 0x1b2   : > { %v1218_v2 = vpop.f32.mrf.mxu0  ;;  %v1382_v0 = vpop.f32.mrf.mxu1  ;;  %v8284_v34 = vsel %vm1458_vm1, %v8278_v55, %v1956_v12  ;;  %v8288_v28 = vsel %vm1458_vm1, %v1966_v50, %v8275_v8  ;;  %v8298_v63 = vmul.f32 0.5, %v3481_v11 }
 0x1b3   : > { %v1383_v33 = vadd.f32 %v1382_v0, %v7187_v52  ;;  %v1219_v45 = vadd.f32 %v1218_v2, %v7138_v49 }
 0x1b5   : > { %v2802_v20 = vrot.slane %v1383_v33, 4  ;;  %6282 = vmatmul.msk.bf16.gmra.mxu0 %vm384_vm0, %v6444_v61  ;;  %6313 = vmatmul.msk.bf16.gmra.mxu1 %vm384_vm0, %v8180_v16  ;;  %v1932_v2 = vrot.slane %v1219_v45, 4 }
 0x1b6   : > { %v6511_v15 = vpop.eup %6510 }
 0x1b7   : > { %v3482_v12 = vadd.f32 1.0, %v6511_v15  ;;  %v2803_v58 = vsel %vm1458_vm1, %v2802_v20, %v1378_v54  ;;  %v2805_v20 = vsel %vm1458_vm1, %v1383_v33, %v2804_v56  ;;  %v6445_v33 = vld [vmem:[%s7014_s19 + $0xd8] sm:$0xff] }
 0x1b8   : > { %v8306_v40 = vperm.slane %v2803_v58, %v7145_v62  ;;  %v8319_v58 = vperm.slane %v2805_v20, %v7145_v62 }
 0x1b9   : > { %v3498_v50 = vmul.f32 0.5, %v3482_v12 }
 0x1ba   : > { %v1220_v0 = vpop.f32.mrf.mxu0  ;;  %v1384_v48 = vpop.f32.mrf.mxu1  ;;  %v2852_v12 = vrot.slane %v8306_v40, 4  ;;  %v2864_v57 = vrot.slane %v8319_v58, 4 }
 0x1bb   : > { %v1385_v26 = vadd.f32 %v1384_v48, %v7187_v52  ;;  %v8303_v16 = vsel %vm3264_vm4, %v6511_v15, %v3498_v50  ;;  %v1221_v20 = vadd.f32 %v1220_v0, %v7138_v49 }
 0x1bc   : > { %v3534_v29 = vmul.f32 %v8303_v16, %v8298_v63 }
 0x1bd   : > { %v2814_v11 = vrot.slane %v1385_v26, 4  ;;  %v2817_v54 = vsel %vm1458_vm1, %v1385_v26, %v2816_v5  ;;  %v1944_v23 = vrot.slane %v1221_v20, 4 }
 0x1be   : > { %v8314_v48 = vperm.slane %v2817_v54, %v7145_v62  ;;  %3553 = vrot.lane.b32.xlu1 %v3534_v29, %s6941_s11 }
 0x1bf   : > { %v2815_v15 = vsel %vm1458_vm1, %v2814_v11, %v1380_v9 }
 0x1c0   : > { %v8323_v50 = vperm.slane %v2815_v15, %v7145_v62  ;;  %v2862_v56 = vrot.slane %v8314_v48, 4 }
 0x1c2   : > { %v1223_v5 = vpop.f32.mrf.mxu0  ;;  %v1387_v26 = vpop.f32.mrf.mxu1  ;;  %v8329_v54 = vsel %vm1458_vm1, %v8323_v50, %v2852_v12  ;;  %v8333_v9 = vsel %vm1458_vm1, %v2862_v56, %v8319_v58  ;;  %v1954_v56 = vrot.slane %v8278_v55, 4 }
 0x1c3   : > { %v1224_v29 = vadd.f32 %v1223_v5, %v7138_v49 }
 0x1c5   : > { %v1930_v11 = vrot.slane %v1224_v29, 4  ;;  %v1933_v15 = vsel %vm1458_vm1, %v1224_v29, %v1932_v2  ;;  %6283 = vmatmul.msk.bf16.gmra.mxu0 %vm384_vm0, %v6445_v33  ;;  %6314 = vmatmul.msk.bf16.gmra.mxu1 %vm384_vm0, %v6444_v61  ;;  %v1969_v2 = vsel %vm1458_vm1, %v8265_v13, %v1968_v46  ;;  %v1973_v46 = vperm.slane %v8288_v28, %v7239_v60 }
 0x1c6   : > { %v1941_v3 = vperm.slane %v1933_v15, %v7145_v62  ;;  %v1977_v15 = vperm.slane %v1969_v2, %v7239_v60 }
 0x1c7   : > { %v1931_v12 = vsel %vm1458_vm1, %v1930_v11, %v1219_v45  ;;  %v1955_v45 = vsel %vm1458_vm1, %v1954_v56, %v8231_v43  ;;  %v1388_v43 = vadd.f32 %v1387_v26, %v7187_v52  ;;  %v8363_v56 = vld [vmem:[%s7014_s19 + $0xe0] sm:$0xff]  ;;  %v2012_v22 = vrot.slane %v1973_v46, 4 }
 0x1c8   : > { %v1937_v5 = vperm.slane %v1931_v12, %v7145_v62  ;;  %v1992_v61 = vrot.slane %v1941_v3, 4 }
 0x1c9   : > { %v2828_v1 = vrot.slane %v1388_v43, 4 }
 0x1ca   : > { %v1225_v14 = vpop.f32.mrf.mxu0  ;;  %v1389_v0 = vpop.f32.mrf.mxu1  ;;  %v1980_v11 = vrot.slane %v1937_v5, 4 }
 0x1cb   : > { %v1226_v51 = vadd.f32 %v1225_v14, %v7138_v49  ;;  %v1965_v14 = vperm.slane %v8284_v34, %v7239_v60 }
 0x1cd   : > { %v1942_v29 = vrot.slane %v1226_v51, 4  ;;  %v1945_v8 = vsel %vm1458_vm1, %v1226_v51, %v1944_v23  ;;  %v1961_v51 = vperm.slane %v1955_v45, %v7239_v60 }
 0x1ce   : > { %v1953_v55 = vperm.slane %v1945_v8, %v7145_v62  ;;  %v2016_v8 = vrot.slane %v1977_v15, 4 }
 0x1cf   : > { %v1943_v12 = vsel %vm1458_vm1, %v1942_v29, %v1221_v20 }
 0x1d0   : > { %v1949_v13 = vperm.slane %v1943_v12, %v7145_v62  ;;  %v1990_v6 = vrot.slane %v1953_v55, 4  ;;  %v1993_v23 = vsel %vm1458_vm1, %v1953_v55, %v1992_v61  ;;  %v2008_v61 = vrot.slane %v1965_v14, 4 }
 0x1d1   : > { %v2001_v2 = vperm.slane %v1993_v23, %v7239_v60  ;;  %v2004_v55 = vrot.slane %v1961_v51, 4 }
 0x1d2   : > { %v1978_v20 = vrot.slane %v1949_v13, 4  ;;  %v8366_v29 = vpop.f32.mrf.mxu0  ;;  %v1392_v34 = vpop.f32.mrf.mxu1  ;;  %v1981_v28 = vsel %vm1458_vm1, %v1949_v13, %v1980_v11  ;;  %v1991_v12 = vsel %vm1458_vm1, %v1990_v6, %v1941_v3  ;;  %v1390_v3 = vadd.f32 %v1389_v0, %v7187_v52 }
 0x1d3   : > { %v1393_v53 = vadd.f32 %v1392_v34, %v7187_v52  ;;  %v2014_v45 = vrot.slane %v2001_v2, 4  ;;  %v1989_v4 = vperm.slane %v1981_v28, %v7239_v60  ;;  %v1997_v23 = vperm.slane %v1991_v12, %v7239_v60 }
 0x1d4   : > { %v1979_v26 = vsel %vm1458_vm1, %v1978_v20, %v1937_v5  ;;  %v8395_v0 = vsel %vm1458_vm1, %v2001_v2, %v2016_v8 }
 0x1d5   : > { %v2826_v59 = vrot.slane %v1393_v53, 4  ;;  %6284 = vmatmul.msk.bf16.gmra.mxu0 %vm384_vm0, %v8363_v56  ;;  %6315 = vmatmul.msk.bf16.gmra.mxu1 %vm384_vm0, %v6445_v33  ;;  %v1985_v6 = vperm.slane %v1979_v26, %v7239_v60  ;;  %v8381_v5 = vsel %vm1458_vm1, %v2014_v45, %v1977_v15  ;;  %v2006_v11 = vrot.slane %v1989_v4, 4  ;;  %11657 = vst [vmem:[#allocation70_spill] sm:$0xff] %v8395_v0 }
 0x1d6   : > { %11653 = vst [vmem:[#allocation66_spill] sm:$0xff] %v8381_v5  ;;  %v8384_v13 = vsel %vm1458_vm1, %v1997_v23, %v2012_v22  ;;  %v2829_v58 = vsel %vm1458_vm1, %v1393_v53, %v2828_v1  ;;  %v8391_v28 = vsel %vm1458_vm1, %v1989_v4, %v2008_v61  ;;  %v2840_v45 = vrot.slane %v1390_v3, 4 }
 0x1d7   : > { %11654 = vst [vmem:[#allocation67_spill] sm:$0xff] %v8384_v13  ;;  %v2002_v20 = vrot.slane %v1985_v6, 4  ;;  %v8388_v34 = vsel %vm1458_vm1, %v1985_v6, %v2004_v55  ;;  %v2827_v33 = vsel %vm1458_vm1, %v2826_v59, %v1388_v43  ;;  %v8402_v15 = vsel %vm1458_vm1, %v2006_v11, %v1965_v14 }
 0x1d8   : > { %11655 = vst [vmem:[#allocation68_spill] sm:$0xff] %v8388_v34  ;;  %v2010_v59 = vrot.slane %v1997_v23, 4  ;;  %v2850_v43 = vrot.slane %v8323_v50, 4  ;;  %v2837_v2 = vperm.slane %v2829_v58, %v7145_v62  ;;  %v2833_v50 = vperm.slane %v2827_v33, %v7145_v62 }
 0x1d9   : > { %11656 = vst [vmem:[#allocation69_spill] sm:$0xff] %v8391_v28  ;;  %v8405_v1 = vsel %vm1458_vm1, %v2002_v20, %v1961_v51  ;;  %v2865_v55 = vsel %vm1458_vm1, %v8314_v48, %v2864_v57 }
 0x1da   : > { %11658 = vst [vmem:[#allocation71_spill] sm:$0xff] %v8402_v15  ;;  %v1230_v14 = vpop.f32.mrf.mxu0  ;;  %v1394_v8 = vpop.f32.mrf.mxu1  ;;  %v8427_v26 = vsel %vm1458_vm1, %v2010_v59, %v1973_v46  ;;  %v2888_v58 = vrot.slane %v2837_v2, 4  ;;  %v2851_v57 = vsel %vm1458_vm1, %v2850_v43, %v8306_v40  ;;  %v3301_v33 = vsel %vm7267_vm2, %v8395_v0, %v8405_v1 }
 0x1db   : > { %11659 = vst [vmem:[#allocation72_spill] sm:$0xff] %v8405_v1  ;;  %v1395_v61 = vadd.f32 %v1394_v8, %v7187_v52  ;;  %v3372_v59 = vpop.f32.mrf.mxu2  ;;  %v2873_v8 = vperm.slane %v2865_v55, %v7239_v60  ;;  %v2876_v12 = vrot.slane %v2833_v50, 4  ;;  %v2857_v40 = vperm.slane %v2851_v57, %v7239_v60 }
 0x1dc   : > { %11660 = vst [vmem:[#allocation73_spill] sm:$0xff] %v8427_v26  ;;  %v2861_v43 = vperm.slane %v8329_v54, %v7239_v60  ;;  %v3419_v55 = vadd.f32 %v3372_v59, %v3301_v33  ;;  %v1231_v54 = vadd.f32 %v1230_v14, %v7138_v49 }
 0x1dd   : > { %v2838_v11 = vrot.slane %v1395_v61, 4  ;;  %v2841_v46 = vsel %vm1458_vm1, %v1395_v61, %v2840_v45 }
 0x1de   : > { %v2849_v20 = vperm.slane %v2841_v46, %v7145_v62  ;;  %v8453_v46 = vld [vmem:[%s7014_s19 + $0xe8] sm:$0xff]  ;;  %v2032_v0 = vrot.slane %v1231_v54, 4 }
 0x1df   : > { %v2839_v48 = vsel %vm1458_vm1, %v2838_v11, %v1390_v3  ;;  %v2869_v11 = vperm.slane %v8333_v9, %v7239_v60 }
 0x1e0   : > { %v2845_v51 = vperm.slane %v2839_v48, %v7145_v62  ;;  %v2886_v45 = vrot.slane %v2849_v20, 4  ;;  %v2889_v61 = vsel %vm1458_vm1, %v2849_v20, %v2888_v58  ;;  %v1229_v20 = vadd.f32 %v8366_v29, %v7138_v49 }
 0x1e1   : > { %v2897_v3 = vperm.slane %v2889_v61, %v7239_v60  ;;  %v2912_v61 = vrot.slane %v2873_v8, 4 }
 0x1e2   : > { %v2874_v53 = vrot.slane %v2845_v51, 4  ;;  %v1233_v6 = vpop.f32.mrf.mxu0  ;;  %v8461_v23 = vpop.f32.mrf.mxu1  ;;  %v2877_v48 = vsel %vm1458_vm1, %v2845_v51, %v2876_v12  ;;  %v2887_v58 = vsel %vm1458_vm1, %v2886_v45, %v2837_v2  ;;  %v2900_v2 = vrot.slane %v2857_v40, 4 }
 0x1e3   : > { %v1234_v57 = vadd.f32 %v1233_v6, %v7138_v49  ;;  %v2910_v4 = vrot.slane %v2897_v3, 4  ;;  %v2885_v33 = vperm.slane %v2877_v48, %v7239_v60  ;;  %v2893_v59 = vperm.slane %v2887_v58, %v7239_v60 }
 0x1e4   : > { %v2875_v9 = vsel %vm1458_vm1, %v2874_v53, %v2833_v50  ;;  %v2908_v51 = vrot.slane %v2869_v11, 4  ;;  %v3435_v12 = vmul.f32 0.5, %v3419_v55  ;;  %v2904_v50 = vrot.slane %v2861_v43, 4  ;;  %v3401_v55 = vpop.f32.mrf.mxu3 }
 0x1e5   : > { %v2018_v22 = vrot.slane %v1234_v57, 4  ;;  %6285 = vmatmul.msk.bf16.gmra.mxu0 %vm384_vm0, %v8453_v46  ;;  %6316 = vmatmul.msk.bf16.gmra.mxu1 %vm384_vm0, %v8363_v56  ;;  %v2881_v29 = vperm.slane %v2875_v9, %v7239_v60  ;;  %v8478_v14 = vsel %vm1458_vm1, %v2910_v4, %v2873_v8  ;;  %v2902_v53 = vrot.slane %v2885_v33, 4 }
 0x1e6   : > { %11661 = vst [vmem:[#allocation74_spill] sm:$0xff] %v8478_v14  ;;  %v8485_v58 = vsel %vm1458_vm1, %v2893_v59, %v2908_v51  ;;  %v2020_v56 = vrot.slane %v1229_v20, 4  ;;  %v8488_v9 = vsel %vm1458_vm1, %v2897_v3, %v2912_v61  ;;  %6512 = vtanh.f32 %v3435_v12 }
 0x1e7   : > { %v2019_v6 = vsel %vm1458_vm1, %v2018_v22, %v1229_v20  ;;  %v2898_v45 = vrot.slane %v2881_v29, 4  ;;  %v8482_v48 = vsel %vm1458_vm1, %v2881_v29, %v2900_v2  ;;  %11663 = vst [vmem:[#allocation76_spill] sm:$0xff] %v8485_v58  ;;  %v8498_v8 = vsel %vm1458_vm1, %v2902_v53, %v2861_v43 }
 0x1e8   : > { %11662 = vst [vmem:[#allocation75_spill] sm:$0xff] %v8482_v48  ;;  %v8501_v29 = vsel %vm1458_vm1, %v2885_v33, %v2904_v50  ;;  %v2906_v20 = vrot.slane %v2893_v59, 4  ;;  %v8504_v2 = vperm.slane %v2019_v6, %v7145_v62  ;;  %v2021_v6 = vsel %vm1458_vm1, %v1234_v57, %v2020_v56 }
 0x1e9   : > { %11664 = vst [vmem:[#allocation77_spill] sm:$0xff] %v8488_v9  ;;  %v8495_v22 = vsel %vm1458_vm1, %v2898_v45, %v2857_v40  ;;  %v2029_v57 = vperm.slane %v2021_v6, %v7145_v62  ;;  %v1398_v6 = vadd.f32 %v8461_v23, %v7187_v52 }
 0x1ea   : > { %11665 = vst [vmem:[#allocation78_spill] sm:$0xff] %v8495_v22  ;;  %v1235_v3 = vpop.f32.mrf.mxu0  ;;  %v1399_v61 = vpop.f32.mrf.mxu1  ;;  %v3302_v51 = vsel %vm7380_vm3, %v8488_v9, %v8495_v22  ;;  %v8516_v59 = vsel %vm1458_vm1, %v2906_v20, %v2869_v11 }
 0x1eb   : > { %11666 = vst [vmem:[#allocation79_spill] sm:$0xff] %v8498_v8  ;;  %v1236_v43 = vadd.f32 %v1235_v3, %v7138_v49  ;;  %v3420_v33 = vadd.f32 %v3401_v55, %v3302_v51  ;;  %v2068_v3 = vrot.slane %v8504_v2, 4 }
 0x1ec   : > { %11667 = vst [vmem:[#allocation80_spill] sm:$0xff] %v8501_v29 }
 0x1ed   : > { %11668 = vst [vmem:[#allocation81_spill] sm:$0xff] %v8516_v59  ;;  %v2030_v45 = vrot.slane %v1236_v43, 4  ;;  %v2033_v55 = vsel %vm1458_vm1, %v1236_v43, %v2032_v0  ;;  %v3436_v20 = vmul.f32 0.5, %v3420_v33  ;;  %v6513_v43 = vpop.eup %6512  ;;  %v2080_v59 = vrot.slane %v2029_v57, 4 }
 0x1ee   : > { %v8538_v51 = vperm.slane %v2033_v55, %v7145_v62 }
 0x1ef   : > { %v2031_v50 = vsel %vm1458_vm1, %v2030_v45, %v1231_v54  ;;  %v3452_v11 = vsel %vm3264_vm4, %v3420_v33, %v3436_v20 }
 0x1f0   : > { %v8549_v0 = vperm.slane %v2031_v50, %v7145_v62  ;;  %v2078_v56 = vrot.slane %v8538_v51, 4  ;;  %6514 = vtanh.f32 %v3452_v11  ;;  %v3483_v50 = vadd.f32 1.0, %v6513_v43 }
 0x1f1   : > { %v1400_v11 = vadd.f32 %v1399_v61, %v7187_v52 }
 0x1f2   : > { %v1238_v55 = vpop.f32.mrf.mxu0  ;;  %v1402_v53 = vpop.f32.mrf.mxu1  ;;  %v2069_v40 = vsel %vm1458_vm1, %v8549_v0, %v2068_v3  ;;  %v2079_v12 = vsel %vm1458_vm1, %v2078_v56, %v2029_v57  ;;  %v8562_v56 = vmul.f32 0.5, %v3483_v50  ;;  %v2066_v26 = vrot.slane %v8549_v0, 4 }
 0x1f3   : > { %v1403_v54 = vadd.f32 %v1402_v53, %v7187_v52  ;;  %v2916_v53 = vrot.slane %v1398_v6, 4  ;;  %v2928_v1 = vrot.slane %v1400_v11, 4  ;;  %v1239_v43 = vadd.f32 %v1238_v55, %v7138_v49 }
 0x1f5   : > { %v2914_v45 = vrot.slane %v1403_v54, 4  ;;  %6317 = vmatmul.msk.bf16.gmra.mxu1 %vm384_vm0, %v8453_v46 }
 0x1f6   : > { %v6515_v33 = vpop.eup %6514 }
 0x1f7   : > { %v3484_v20 = vadd.f32 1.0, %v6515_v33  ;;  %v2915_v4 = vsel %vm1458_vm1, %v2914_v45, %v1398_v6  ;;  %v2917_v45 = vsel %vm1458_vm1, %v1403_v54, %v2916_v53 }
 0x1f8   : > { %v8570_v23 = vperm.slane %v2915_v4, %v7145_v62  ;;  %v8583_v4 = vperm.slane %v2917_v45, %v7145_v62 }
 0x1f9   : > { %v3500_v9 = vmul.f32 0.5, %v3484_v20 }
 0x1fa   : > { %v1240_v3 = vpop.f32.mrf.mxu0  ;;  %v1404_v22 = vpop.f32.mrf.mxu1  ;;  %v2976_v14 = vrot.slane %v8583_v4, 4 }
 0x1fb   : > { %v1405_v29 = vadd.f32 %v1404_v22, %v7187_v52  ;;  %v8567_v46 = vsel %vm3264_vm4, %v6515_v33, %v3500_v9  ;;  %v2964_v22 = vrot.slane %v8570_v23, 4  ;;  %v2044_v33 = vrot.slane %v1239_v43, 4 }
 0x1fc   : > { %11669 = vst [vmem:[#allocation82_spill] sm:$0xff] %v8567_v46  ;;  %v3535_v61 = vmul.f32 %v8567_v46, %v8562_v56  ;;  %v1241_v45 = vadd.f32 %v1240_v3, %v7138_v49  ;;  %v2081_v3 = vsel %vm1458_vm1, %v8538_v51, %v2080_v59  ;;  %v2085_v59 = vperm.slane %v2079_v12, %v7239_v60  ;;  %v6929_v46 = vld [vmem:[%s7014_s19 + $0xf8] sm:$0xff] }
 0x1fd   : > { %v2926_v50 = vrot.slane %v1405_v29, 4  ;;  %v2929_v6 = vsel %vm1458_vm1, %v1405_v29, %v2928_v1 }
 0x1fe   : > { %v8578_v20 = vperm.slane %v2929_v6, %v7145_v62  ;;  %3555 = vrot.lane.b32.xlu2 %v3535_v61, %s6941_s11  ;;  %v2056_v8 = vrot.slane %v1241_v45, 4 }
 0x1ff   : > { %v2927_v9 = vsel %vm1458_vm1, %v2926_v50, %v1400_v11 }
 0x200   : > { %v8587_v55 = vperm.slane %v2927_v9, %v7145_v62  ;;  %v2974_v54 = vrot.slane %v8578_v20, 4  ;;  %v6928_v9 = vld [vmem:[%s7014_s19 + $0xf0] sm:$0xff] }
 0x202   : > { %v1243_v1 = vpop.f32.mrf.mxu0  ;;  %v1407_v29 = vpop.f32.mrf.mxu1  ;;  %v8592_v53 = vsel %vm1458_vm1, %v8587_v55, %v2964_v22  ;;  %v8596_v11 = vsel %vm1458_vm1, %v2974_v54, %v8583_v4 }
 0x203   : > { %v1244_v61 = vadd.f32 %v1243_v1, %v7138_v49 }
 0x205   : > { %v2042_v50 = vrot.slane %v1244_v61, 4  ;;  %v2045_v6 = vsel %vm1458_vm1, %v1244_v61, %v2044_v33  ;;  %6318 = vmatmul.msk.bf16.gmra.mxu1 %vm384_vm0, %v6928_v9  ;;  %v2077_v9 = vperm.slane %v2069_v40, %v7239_v60 }
 0x206   : > { %v2053_v22 = vperm.slane %v2045_v6, %v7145_v62  ;;  %v2089_v6 = vperm.slane %v2081_v3, %v7239_v60 }
 0x207   : > { %v2043_v28 = vsel %vm1458_vm1, %v2042_v50, %v1239_v43  ;;  %v2067_v43 = vsel %vm1458_vm1, %v2066_v26, %v8504_v2  ;;  %v1408_v26 = vadd.f32 %v1407_v29, %v7187_v52  ;;  %v2120_v48 = vrot.slane %v2077_v9, 4 }
 0x208   : > { %v2049_v54 = vperm.slane %v2043_v28, %v7145_v62  ;;  %v2104_v61 = vrot.slane %v2053_v22, 4  ;;  %v2073_v13 = vperm.slane %v2067_v43, %v7239_v60  ;;  %v2124_v43 = vrot.slane %v2085_v59, 4 }
 0x209   : > { %v2940_v34 = vrot.slane %v1408_v26, 4 }
 0x20a   : > { %v1245_v58 = vpop.f32.mrf.mxu0  ;;  %v1409_v1 = vpop.f32.mrf.mxu1  ;;  %v2092_v50 = vrot.slane %v2049_v54, 4  ;;  %v2116_v29 = vrot.slane %v2073_v13, 4 }
 0x20b   : > { %v1246_v33 = vadd.f32 %v1245_v58, %v7138_v49 }
 0x20d   : > { %v2054_v15 = vrot.slane %v1246_v33, 4  ;;  %v2057_v57 = vsel %vm1458_vm1, %v1246_v33, %v2056_v8 }
 0x20e   : > { %v2065_v0 = vperm.slane %v2057_v57, %v7145_v62 }
 0x20f   : > { %v2055_v28 = vsel %vm1458_vm1, %v2054_v15, %v1241_v45  ;;  %v2128_v45 = vrot.slane %v2089_v6, 4 }
 0x210   : > { %v2061_v58 = vperm.slane %v2055_v28, %v7145_v62  ;;  %v2102_v51 = vrot.slane %v2065_v0, 4  ;;  %v2105_v8 = vsel %vm1458_vm1, %v2065_v0, %v2104_v61 }
 0x211   : > { %v2113_v2 = vperm.slane %v2105_v8, %v7239_v60 }
 0x212   : > { %v2090_v33 = vrot.slane %v2061_v58, 4  ;;  %v8623_v57 = vpop.f32.mrf.mxu0  ;;  %v1412_v15 = vpop.f32.mrf.mxu1  ;;  %v2093_v40 = vsel %vm1458_vm1, %v2061_v58, %v2092_v50  ;;  %v2103_v12 = vsel %vm1458_vm1, %v2102_v51, %v2053_v22  ;;  %v1410_v50 = vadd.f32 %v1409_v1, %v7187_v52 }
 0x213   : > { %v1413_v3 = vadd.f32 %v1412_v15, %v7187_v52  ;;  %v2126_v28 = vrot.slane %v2113_v2, 4  ;;  %v2101_v0 = vperm.slane %v2093_v40, %v7239_v60  ;;  %v2109_v8 = vperm.slane %v2103_v12, %v7239_v60 }
 0x214   : > { %v2091_v61 = vsel %vm1458_vm1, %v2090_v33, %v2049_v54  ;;  %v8651_v1 = vsel %vm1458_vm1, %v2113_v2, %v2128_v45  ;;  %v2962_v2 = vrot.slane %v8587_v55, 4  ;;  %v2977_v55 = vsel %vm1458_vm1, %v8578_v20, %v2976_v14 }
 0x215   : > { %v2938_v5 = vrot.slane %v1413_v3, 4  ;;  %6319 = vmatmul.msk.bf16.gmra.mxu1 %vm384_vm0, %v6929_v46  ;;  %v2097_v22 = vperm.slane %v2091_v61, %v7239_v60  ;;  %v8637_v58 = vsel %vm1458_vm1, %v2126_v28, %v2089_v6  ;;  %v2118_v54 = vrot.slane %v2101_v0, 4  ;;  %11674 = vst [vmem:[#allocation87_spill] sm:$0xff] %v8651_v1 }
 0x216   : > { %11670 = vst [vmem:[#allocation83_spill] sm:$0xff] %v8637_v58  ;;  %v8640_v51 = vsel %vm1458_vm1, %v2109_v8, %v2124_v43  ;;  %v2941_v33 = vsel %vm1458_vm1, %v1413_v3, %v2940_v34  ;;  %v8647_v40 = vsel %vm1458_vm1, %v2101_v0, %v2120_v48  ;;  %v2952_v43 = vrot.slane %v1410_v50, 4 }
 0x217   : > { %11671 = vst [vmem:[#allocation84_spill] sm:$0xff] %v8640_v51  ;;  %v2114_v15 = vrot.slane %v2097_v22, 4  ;;  %v8644_v4 = vsel %vm1458_vm1, %v2097_v22, %v2116_v29  ;;  %v2939_v46 = vsel %vm1458_vm1, %v2938_v5, %v1408_v26  ;;  %v8658_v12 = vsel %vm1458_vm1, %v2118_v54, %v2077_v9 }
 0x218   : > { %11672 = vst [vmem:[#allocation85_spill] sm:$0xff] %v8644_v4  ;;  %v2122_v5 = vrot.slane %v2109_v8, 4  ;;  %v2949_v45 = vperm.slane %v2941_v33, %v7145_v62  ;;  %v2945_v0 = vperm.slane %v2939_v46, %v7145_v62  ;;  %v2963_v14 = vsel %vm1458_vm1, %v2962_v2, %v8570_v23 }
 0x219   : > { %11673 = vst [vmem:[#allocation86_spill] sm:$0xff] %v8647_v40  ;;  %v8661_v34 = vsel %vm1458_vm1, %v2114_v15, %v2073_v13  ;;  %v2981_v2 = vperm.slane %v8596_v11, %v7239_v60 }
 0x21a   : > { %11675 = vst [vmem:[#allocation88_spill] sm:$0xff] %v8658_v12  ;;  %v1250_v9 = vpop.f32.mrf.mxu0  ;;  %v1414_v3 = vpop.f32.mrf.mxu1  ;;  %v8683_v29 = vsel %vm1458_vm1, %v2122_v5, %v2085_v59  ;;  %v3000_v59 = vrot.slane %v2949_v45, 4  ;;  %v3303_v46 = vsel %vm7267_vm2, %v8651_v1, %v8661_v34  ;;  %v2988_v28 = vrot.slane %v2945_v0, 4 }
 0x21b   : > { %11676 = vst [vmem:[#allocation89_spill] sm:$0xff] %v8661_v34  ;;  %v1415_v61 = vadd.f32 %v1414_v3, %v7187_v52  ;;  %v3374_v5 = vpop.f32.mrf.mxu2  ;;  %v2985_v3 = vperm.slane %v2977_v55, %v7239_v60  ;;  %v3548_v1 = vpop.permute.xlu0 %3547 }
 0x21c   : > { %11677 = vst [vmem:[#allocation90_spill] sm:$0xff] %v8683_v29  ;;  %v3421_v26 = vadd.f32 %v3374_v5, %v3303_v46 }
 0x21d   : > { %v2950_v54 = vrot.slane %v1415_v61, 4  ;;  %v2953_v33 = vsel %vm1458_vm1, %v1415_v61, %v2952_v43 }
 0x21e   : > { %v2961_v15 = vperm.slane %v2953_v33, %v7145_v62  ;;  %v2969_v33 = vperm.slane %v2963_v14, %v7239_v60  ;;  %v3024_v14 = vrot.slane %v2985_v3, 4 }
 0x21f   : > { %v2951_v20 = vsel %vm1458_vm1, %v2950_v54, %v1410_v50  ;;  %v2973_v50 = vperm.slane %v8592_v53, %v7239_v60  ;;  %v1251_v53 = vadd.f32 %v1250_v9, %v7138_v49 }
 0x220   : > { %v2957_v13 = vperm.slane %v2951_v20, %v7145_v62  ;;  %v2998_v43 = vrot.slane %v2961_v15, 4  ;;  %v3001_v61 = vsel %vm1458_vm1, %v2961_v15, %v3000_v59  ;;  %v1249_v59 = vadd.f32 %v8623_v57, %v7138_v49 }
 0x221   : > { %v3009_v23 = vperm.slane %v3001_v61, %v7239_v60  ;;  %v3016_v6 = vrot.slane %v2973_v50, 4 }
 0x222   : > { %v2986_v54 = vrot.slane %v2957_v13, 4  ;;  %v1253_v22 = vpop.f32.mrf.mxu0  ;;  %v8714_v55 = vpop.f32.mrf.mxu1  ;;  %v2989_v20 = vsel %vm1458_vm1, %v2957_v13, %v2988_v28  ;;  %v2999_v8 = vsel %vm1458_vm1, %v2998_v43, %v2949_v45  ;;  %v3012_v28 = vrot.slane %v2969_v33, 4 }
 0x223   : > { %v1254_v15 = vadd.f32 %v1253_v22, %v7138_v49  ;;  %v3022_v61 = vrot.slane %v3009_v23, 4  ;;  %v2997_v46 = vperm.slane %v2989_v20, %v7239_v60  ;;  %v3005_v5 = vperm.slane %v2999_v8, %v7239_v60 }
 0x224   : > { %v2987_v11 = vsel %vm1458_vm1, %v2986_v54, %v2945_v0  ;;  %v3020_v45 = vrot.slane %v2981_v2, 4  ;;  %v3437_v43 = vmul.f32 0.5, %v3421_v26  ;;  %v2132_v54 = vrot.slane %v1249_v59, 4  ;;  %v3403_v26 = vpop.f32.mrf.mxu3 }
 0x225   : > { %v2130_v48 = vrot.slane %v1254_v15, 4  ;;  %v2993_v13 = vperm.slane %v2987_v11, %v7239_v60  ;;  %v8727_v57 = vsel %vm1458_vm1, %v3022_v61, %v2985_v3  ;;  %v3014_v22 = vrot.slane %v2997_v46, 4 }
 0x226   : > { %11678 = vst [vmem:[#allocation91_spill] sm:$0xff] %v8727_v57  ;;  %v8734_v8 = vsel %vm1458_vm1, %v3005_v5, %v3020_v45  ;;  %v2144_v20 = vrot.slane %v1251_v53, 4  ;;  %v8737_v11 = vsel %vm1458_vm1, %v3009_v23, %v3024_v14  ;;  %6516 = vtanh.f32 %v3437_v43 }
 0x227   : > { %v2131_v9 = vsel %vm1458_vm1, %v2130_v48, %v1249_v59  ;;  %v3010_v34 = vrot.slane %v2993_v13, 4  ;;  %v8731_v0 = vsel %vm1458_vm1, %v2993_v13, %v3012_v28  ;;  %11680 = vst [vmem:[#allocation93_spill] sm:$0xff] %v8734_v8  ;;  %v8747_v61 = vsel %vm1458_vm1, %v3014_v22, %v2973_v50 }
 0x228   : > { %11679 = vst [vmem:[#allocation92_spill] sm:$0xff] %v8731_v0  ;;  %v8750_v13 = vsel %vm1458_vm1, %v2997_v46, %v3016_v6  ;;  %v3018_v59 = vrot.slane %v3005_v5, 4  ;;  %v8753_v28 = vperm.slane %v2131_v9, %v7145_v62  ;;  %v2133_v22 = vsel %vm1458_vm1, %v1254_v15, %v2132_v54  ;;  %v3550_v46 = vpop.permute.xlu0 %3549 }
 0x229   : > { %11681 = vst [vmem:[#allocation94_spill] sm:$0xff] %v8737_v11  ;;  %v8744_v48 = vsel %vm1458_vm1, %v3010_v34, %v2969_v33  ;;  %v3524_v5 = vmul.f32 0.0, %v7752_v36  ;;  %v8798_v54 = vperm.slane %v2133_v22, %v7145_v62  ;;  %v3523_v22 = vmul.f32 0.0, %v7479_v7 }
 0x22a   : > { %11682 = vst [vmem:[#allocation95_spill] sm:$0xff] %v8744_v48  ;;  %v1255_v23 = vpop.f32.mrf.mxu0  ;;  %v1419_v14 = vpop.f32.mrf.mxu1  ;;  %v3304_v45 = vsel %vm7380_vm3, %v8737_v11, %v8744_v48  ;;  %v8765_v50 = vsel %vm1458_vm1, %v3018_v59, %v2981_v2 }
 0x22b   : > { %11683 = vst [vmem:[#allocation96_spill] sm:$0xff] %v8747_v61  ;;  %v1256_v6 = vadd.f32 %v1255_v23, %v7138_v49  ;;  %v3422_v33 = vadd.f32 %v3403_v26, %v3304_v45  ;;  %v2180_v23 = vrot.slane %v8753_v28, 4  ;;  %v8804_v34 = vadd.f32 %v3550_v46, %v3524_v5 }
 0x22c   : > { %11684 = vst [vmem:[#allocation97_spill] sm:$0xff] %v8750_v13  ;;  %v1418_v5 = vadd.f32 %v8714_v55, %v7187_v52 }
 0x22d   : > { %11685 = vst [vmem:[#allocation98_spill] sm:$0xff] %v8765_v50  ;;  %v2142_v9 = vrot.slane %v1256_v6, 4  ;;  %v2145_v26 = vsel %vm1458_vm1, %v1256_v6, %v2144_v20  ;;  %v3438_v59 = vmul.f32 0.5, %v3422_v33 }
 0x22e   : > { %v8787_v45 = vperm.slane %v2145_v26, %v7145_v62  ;;  %v6517_v26 = vpop.eup %6516  ;;  %11686 = vst [vmem:[#allocation99_spill] sm:$0xff] %v8804_v34 }
 0x22f   : > { %v2143_v2 = vsel %vm1458_vm1, %v2142_v9, %v1251_v53  ;;  %v3454_v15 = vsel %vm3264_vm4, %v3422_v33, %v3438_v59  ;;  %v8816_v9 = vadd.f32 %v3548_v1, %v3523_v22  ;;  %v3485_v46 = vadd.f32 1.0, %v6517_v26 }
 0x230   : > { %v8801_v20 = vperm.slane %v2143_v2, %v7145_v62  ;;  %v2190_v6 = vrot.slane %v8787_v45, 4  ;;  %6518 = vtanh.f32 %v3454_v15  ;;  %v3028_v22 = vrot.slane %v1418_v5, 4 }
 0x231   : > { %11687 = vst [vmem:[#allocation100_spill] sm:$0xff] %v8816_v9  ;;  %6520 = vtanh.f32 %v8804_v34  ;;  %v8824_v11 = vmul.f32 0.5, %v3485_v46 }
 0x232   : > { %v1258_v43 = vpop.f32.mrf.mxu0  ;;  %v1422_v36 = vpop.f32.mrf.mxu1  ;;  %v8808_v53 = vsel %vm1458_vm1, %v8801_v20, %v2180_v23  ;;  %v8812_v33 = vsel %vm1458_vm1, %v2190_v6, %v8798_v54  ;;  %v1420_v23 = vadd.f32 %v1419_v14, %v7187_v52  ;;  %6522 = vtanh.f32 %v8816_v9 }
 0x233   : > { %v1423_v2 = vadd.f32 %v1422_v36, %v7187_v52  ;;  %v2189_v12 = vperm.slane %v8808_v53, %v7239_v60 }
 0x234   : > { %v3040_v48 = vrot.slane %v1420_v23, 4 }
 0x235   : > { %v3026_v59 = vrot.slane %v1423_v2, 4  ;;  %v3029_v46 = vsel %vm1458_vm1, %v1423_v2, %v3028_v22 }
 0x236   : > { %v6519_v15 = vpop.eup %6518  ;;  %v8848_v40 = vperm.slane %v3029_v46, %v7145_v62 }
 0x237   : > { %v3486_v3 = vadd.f32 1.0, %v6519_v15  ;;  %v3027_v6 = vsel %vm1458_vm1, %v3026_v59, %v1418_v5  ;;  %v6521_v55 = vpop.eup %6520 }
 0x238   : > { %v8832_v14 = vperm.slane %v3027_v6, %v7145_v62  ;;  %v8845_v6 = vmul.f32 %v6521_v55, %v7757_v37  ;;  %v3088_v9 = vrot.slane %v8848_v40, 4 }
 0x239   : > { %v3502_v7 = vmul.f32 0.5, %v3486_v3  ;;  %v1259_v3 = vadd.f32 %v1258_v43, %v7138_v49 }
 0x23a   : > { %v1260_v1 = vpop.f32.mrf.mxu0  ;;  %v1424_v36 = vpop.f32.mrf.mxu1  ;;  %11688 = vst [vmem:[#allocation101_spill] sm:$0xff] %v8845_v6  ;;  %v3076_v43 = vrot.slane %v8832_v14, 4 }
 0x23b   : > { %v1425_v13 = vadd.f32 %v1424_v36, %v7187_v52  ;;  %v8829_v26 = vsel %vm3264_vm4, %v6519_v15, %v3502_v7  ;;  %v6523_v15 = vpop.eup %6522  ;;  %v1261_v46 = vadd.f32 %v1260_v1, %v7138_v49 }
 0x23c   : > { %v3536_v59 = vmul.f32 %v8829_v26, %v8824_v11 }
 0x23d   : > { %v3038_v50 = vrot.slane %v1425_v13, 4  ;;  %v3041_v5 = vsel %vm1458_vm1, %v1425_v13, %v3040_v48  ;;  %v2156_v13 = vrot.slane %v1259_v3, 4  ;;  %v2168_v61 = vrot.slane %v1261_v46, 4 }
 0x23e   : > { %v8840_v36 = vperm.slane %v3041_v5, %v7145_v62  ;;  %3557 = vrot.lane.b32.xlu2 %v3536_v59, %s6941_s11  ;;  %v8856_v59 = vmul.f32 %v6523_v15, %v7484_v47  ;;  %v2192_v47 = vrot.slane %v8798_v54, 4 }
 0x23f   : > { %v3039_v7 = vsel %vm1458_vm1, %v3038_v50, %v1420_v23 }
 0x240   : > { %v8852_v2 = vperm.slane %v3039_v7, %v7145_v62  ;;  %v3086_v48 = vrot.slane %v8840_v36, 4  ;;  %11689 = vst [vmem:[#allocation102_spill] sm:$0xff] %v8856_v59  ;;  %v3611_v55 = vpack.c.bf16 %v8845_v6, %v8856_v59  ;;  %v2193_v1 = vsel %vm1458_vm1, %v8787_v45, %v2192_v47 }
 0x242   : > { %v1263_v22 = vpop.f32.mrf.mxu0  ;;  %v1427_v5 = vpop.f32.mrf.mxu1  ;;  %v8860_v37 = vsel %vm1458_vm1, %v8852_v2, %v3076_v43  ;;  %v8864_v50 = vsel %vm1458_vm1, %v3086_v48, %v8848_v40  ;;  %v2178_v48 = vrot.slane %v8801_v20, 4 }
 0x243   : > { %v1264_v23 = vadd.f32 %v1263_v22, %v7138_v49 }
 0x245   : > { %v2154_v7 = vrot.slane %v1264_v23, 4  ;;  %v2157_v29 = vsel %vm1458_vm1, %v1264_v23, %v2156_v13 }
 0x246   : > { %3619 = vrot.lane.b32.xlu2 %v3611_v55, %s6941_s11  ;;  %v2165_v43 = vperm.slane %v2157_v29, %v7145_v62 }
 0x247   : > { %v2155_v15 = vsel %vm1458_vm1, %v2154_v7, %v1259_v3  ;;  %v2179_v3 = vsel %vm1458_vm1, %v2178_v48, %v8753_v28  ;;  %v2201_v7 = vperm.slane %v2193_v1, %v7239_v60  ;;  %v1428_v48 = vadd.f32 %v1427_v5, %v7187_v52 }
 0x248   : > { %v2161_v22 = vperm.slane %v2155_v15, %v7145_v62  ;;  %v2216_v23 = vrot.slane %v2165_v43, 4 }
 0x249   : > { %v3052_v34 = vrot.slane %v1428_v48, 4 }
 0x24a   : > { %v1265_v8 = vpop.f32.mrf.mxu0  ;;  %v1429_v6 = vpop.f32.mrf.mxu1  ;;  %v2204_v29 = vrot.slane %v2161_v22, 4 }
 0x24b   : > { %v1266_v13 = vadd.f32 %v1265_v8, %v7138_v49  ;;  %v2197_v8 = vperm.slane %v8812_v33, %v7239_v60 }
 0x24d   : > { %v2166_v55 = vrot.slane %v1266_v13, 4  ;;  %v2169_v54 = vsel %vm1458_vm1, %v1266_v13, %v2168_v61  ;;  %v2185_v61 = vperm.slane %v2179_v3, %v7239_v60 }
 0x24e   : > { %v2177_v20 = vperm.slane %v2169_v54, %v7145_v62  ;;  %v2240_v54 = vrot.slane %v2201_v7, 4 }
 0x24f   : > { %v2167_v15 = vsel %vm1458_vm1, %v2166_v55, %v1261_v46  ;;  %v8897_v46 = vperm.slane %v7164_v25, %v7239_v60 }
 0x250   : > { %v2173_v45 = vperm.slane %v2167_v15, %v7145_v62  ;;  %v2214_v47 = vrot.slane %v2177_v20, 4  ;;  %v2217_v28 = vsel %vm1458_vm1, %v2177_v20, %v2216_v23  ;;  %v2236_v23 = vrot.slane %v2197_v8, 4 }
 0x251   : > { %v2225_v13 = vperm.slane %v2217_v28, %v7239_v60  ;;  %v2232_v20 = vrot.slane %v2189_v12, 4  ;;  %v2228_v28 = vrot.slane %v2185_v61, 4 }
 0x252   : > { %v2202_v1 = vrot.slane %v2173_v45, 4  ;;  %v1268_v53 = vpop.f32.mrf.mxu0  ;;  %v1432_v55 = vpop.f32.mrf.mxu1  ;;  %v2205_v33 = vsel %vm1458_vm1, %v2173_v45, %v2204_v29  ;;  %v2215_v15 = vsel %vm1458_vm1, %v2214_v47, %v2165_v43  ;;  %v1430_v43 = vadd.f32 %v1429_v6, %v7187_v52 }
 0x253   : > { %v1433_v3 = vadd.f32 %v1432_v55, %v7187_v52  ;;  %v2238_v51 = vrot.slane %v2225_v13, 4  ;;  %v2213_v59 = vperm.slane %v2205_v33, %v7239_v60  ;;  %v2221_v25 = vperm.slane %v2215_v15, %v7239_v60 }
 0x254   : > { %v2203_v5 = vsel %vm1458_vm1, %v2202_v1, %v2161_v22  ;;  %v3074_v15 = vrot.slane %v8852_v2, 4  ;;  %v3089_v6 = vsel %vm1458_vm1, %v8840_v36, %v3088_v9 }
 0x255   : > { %v3050_v0 = vrot.slane %v1433_v3, 4  ;;  %v2209_v29 = vperm.slane %v2203_v5, %v7239_v60  ;;  %v8909_v45 = vsel %vm1458_vm1, %v2238_v51, %v2201_v7  ;;  %v2230_v47 = vrot.slane %v2213_v59, 4 }
 0x256   : > { %11690 = vst [vmem:[#allocation103_spill] sm:$0xff] %v8909_v45  ;;  %v8912_v55 = vsel %vm1458_vm1, %v2221_v25, %v2236_v23  ;;  %v3053_v22 = vsel %vm1458_vm1, %v1433_v3, %v3052_v34  ;;  %v8919_v40 = vsel %vm1458_vm1, %v2213_v59, %v2232_v20  ;;  %v2234_v59 = vrot.slane %v2221_v25, 4 }
 0x257   : > { %11691 = vst [vmem:[#allocation104_spill] sm:$0xff] %v8912_v55  ;;  %v2226_v1 = vrot.slane %v2209_v29, 4  ;;  %v8916_v33 = vsel %vm1458_vm1, %v2209_v29, %v2228_v28  ;;  %v8929_v7 = vsel %vm1458_vm1, %v2230_v47, %v2189_v12  ;;  %v3051_v34 = vsel %vm1458_vm1, %v3050_v0, %v1428_v48 }
 0x258   : > { %11692 = vst [vmem:[#allocation105_spill] sm:$0xff] %v8916_v33  ;;  %v3061_v9 = vperm.slane %v3053_v22, %v7145_v62  ;;  %v8950_v20 = vsel %vm1458_vm1, %v2225_v13, %v2240_v54  ;;  %v3057_v28 = vperm.slane %v3051_v34, %v7145_v62  ;;  %v3097_v25 = vperm.slane %v3089_v6, %v7239_v60 }
 0x259   : > { %11693 = vst [vmem:[#allocation106_spill] sm:$0xff] %v8919_v40  ;;  %v8933_v3 = vsel %vm1458_vm1, %v2226_v1, %v2185_v61  ;;  %v3064_v61 = vrot.slane %v1430_v43, 4  ;;  %v8956_v29 = vsel %vm1458_vm1, %v2234_v59, %v2197_v8  ;;  %v1269_v22 = vadd.f32 %v1268_v53, %v7138_v49 }
 0x25a   : > { %11694 = vst [vmem:[#allocation107_spill] sm:$0xff] %v8929_v7  ;;  %v1270_v36 = vpop.f32.mrf.mxu0  ;;  %v1434_v23 = vpop.f32.mrf.mxu1  ;;  %v3075_v54 = vsel %vm1458_vm1, %v3074_v15, %v8832_v14  ;;  %v3305_v14 = vsel %vm7267_vm2, %v8950_v20, %v8933_v3  ;;  %v3085_v59 = vperm.slane %v8860_v37, %v7239_v60  ;;  %v3136_v6 = vrot.slane %v3097_v25, 4 }
 0x25b   : > { %11695 = vst [vmem:[#allocation108_spill] sm:$0xff] %v8933_v3  ;;  %v1435_v48 = vadd.f32 %v1434_v23, %v7187_v52  ;;  %v3112_v23 = vrot.slane %v3061_v9, 4  ;;  %v3377_v15 = vpop.f32.mrf.mxu2  ;;  %v2244_v12 = vrot.slane %v1269_v22, 4 }
 0x25c   : > { %11696 = vst [vmem:[#allocation109_spill] sm:$0xff] %v8950_v20  ;;  %v3423_v2 = vadd.f32 %v3377_v15, %v3305_v14 }
 0x25d   : > { %11697 = vst [vmem:[#allocation110_spill] sm:$0xff] %v8956_v29  ;;  %v3062_v1 = vrot.slane %v1435_v48, 4  ;;  %v3065_v13 = vsel %vm1458_vm1, %v1435_v48, %v3064_v61  ;;  %v3093_v61 = vperm.slane %v8864_v50, %v7239_v60  ;;  %v3100_v48 = vrot.slane %v3057_v28, 4 }
 0x25e   : > { %v3073_v34 = vperm.slane %v3065_v13, %v7145_v62 }
 0x25f   : > { %v3063_v53 = vsel %vm1458_vm1, %v3062_v1, %v1430_v43  ;;  %v3081_v43 = vperm.slane %v3075_v54, %v7239_v60  ;;  %v3132_v3 = vrot.slane %v3093_v61, 4 }
 0x260   : > { %v3069_v13 = vperm.slane %v3063_v53, %v7145_v62  ;;  %v3110_v47 = vrot.slane %v3073_v34, 4  ;;  %v3113_v0 = vsel %vm1458_vm1, %v3073_v34, %v3112_v23  ;;  %v3128_v23 = vrot.slane %v3085_v59, 4 }
 0x261   : > { %v3121_v1 = vperm.slane %v3113_v0, %v7239_v60  ;;  %v1271_v34 = vadd.f32 %v1270_v36, %v7138_v49 }
 0x262   : > { %v3098_v8 = vrot.slane %v3069_v13, 4  ;;  %v1273_v51 = vpop.f32.mrf.mxu0  ;;  %v8988_v5 = vpop.f32.mrf.mxu1  ;;  %v3101_v37 = vsel %vm1458_vm1, %v3069_v13, %v3100_v48  ;;  %v3111_v50 = vsel %vm1458_vm1, %v3110_v47, %v3061_v9  ;;  %v3124_v13 = vrot.slane %v3081_v43, 4 }
 0x263   : > { %v1274_v53 = vadd.f32 %v1273_v51, %v7138_v49  ;;  %v3134_v20 = vrot.slane %v3121_v1, 4  ;;  %v3109_v0 = vperm.slane %v3101_v37, %v7239_v60  ;;  %v3117_v14 = vperm.slane %v3111_v50, %v7239_v60  ;;  %v3552_v9 = vpop.permute.xlu1 %3551 }
 0x264   : > { %v3099_v54 = vsel %vm1458_vm1, %v3098_v8, %v3057_v28  ;;  %v3439_v47 = vmul.f32 0.5, %v3423_v2  ;;  %v3406_v2 = vpop.f32.mrf.mxu3 }
 0x265   : > { %v2242_v15 = vrot.slane %v1274_v53, 4  ;;  %v2245_v40 = vsel %vm1458_vm1, %v1274_v53, %v2244_v12  ;;  %v3105_v48 = vperm.slane %v3099_v54, %v7239_v60  ;;  %v9001_v29 = vsel %vm1458_vm1, %v3134_v20, %v3097_v25 }
 0x266   : > { %v2253_v51 = vperm.slane %v2245_v40, %v7145_v62  ;;  %11698 = vst [vmem:[#allocation111_spill] sm:$0xff] %v9001_v29  ;;  %v3126_v36 = vrot.slane %v3109_v0, 4  ;;  %v9008_v50 = vsel %vm1458_vm1, %v3117_v14, %v3132_v3  ;;  %v2256_v12 = vrot.slane %v1271_v34, 4 }
 0x267   : > { %v2243_v28 = vsel %vm1458_vm1, %v2242_v15, %v1269_v22  ;;  %v3122_v8 = vrot.slane %v3105_v48, 4  ;;  %v9005_v37 = vsel %vm1458_vm1, %v3105_v48, %v3124_v13  ;;  %11700 = vst [vmem:[#allocation113_spill] sm:$0xff] %v9008_v50  ;;  %v9011_v53 = vsel %vm1458_vm1, %v3121_v1, %v3136_v6 }
 0x268   : > { %11699 = vst [vmem:[#allocation112_spill] sm:$0xff] %v9005_v37  ;;  %v9019_v20 = vperm.slane %v7167_v30, %v7239_v60  ;;  %v9025_v3 = vsel %vm1458_vm1, %v3126_v36, %v3085_v59  ;;  %v9028_v22 = vsel %vm1458_vm1, %v3109_v0, %v3128_v23  ;;  %v3130_v6 = vrot.slane %v3117_v14, 4 }
 0x269   : > { %11701 = vst [vmem:[#allocation114_spill] sm:$0xff] %v9011_v53  ;;  %v9022_v25 = vsel %vm1458_vm1, %v3122_v8, %v3081_v43  ;;  %6524 = vtanh.f32 %v3439_v47  ;;  %v2249_v1 = vperm.slane %v2243_v28, %v7145_v62  ;;  %v2304_v43 = vrot.slane %v2253_v51, 4 }
 0x26a   : > { %11702 = vst [vmem:[#allocation115_spill] sm:$0xff] %v9022_v25  ;;  %v1275_v54 = vpop.f32.mrf.mxu0  ;;  %v1439_v15 = vpop.f32.mrf.mxu1  ;;  %v3306_v30 = vsel %vm7380_vm3, %v9011_v53, %v9022_v25  ;;  %v9041_v14 = vsel %vm1458_vm1, %v3130_v6, %v3093_v61  ;;  %v2333_v8 = vperm.slane %v7170_v32, %v7239_v60 }
 0x26b   : > { %11703 = vst [vmem:[#allocation116_spill] sm:$0xff] %v9025_v3  ;;  %v1276_v23 = vadd.f32 %v1275_v54, %v7138_v49  ;;  %v3424_v0 = vadd.f32 %v3406_v2, %v3306_v30  ;;  %v3554_v2 = vpop.permute.xlu1 %3553  ;;  %v2292_v6 = vrot.slane %v2249_v1, 4  ;;  %v2321_v30 = vperm.slane %v7177_v39, %v7239_v60 }
 0x26c   : > { %11704 = vst [vmem:[#allocation117_spill] sm:$0xff] %v9028_v22  ;;  %v3525_v49 = vmul.f32 0.0, %v8025_v17 }
 0x26d   : > { %11705 = vst [vmem:[#allocation118_spill] sm:$0xff] %v9041_v14  ;;  %v2254_v61 = vrot.slane %v1276_v23, 4  ;;  %v2257_v36 = vsel %vm1458_vm1, %v1276_v23, %v2256_v12  ;;  %v3440_v28 = vmul.f32 0.5, %v3424_v0  ;;  %v3526_v12 = vmul.f32 0.0, %v8298_v63 }
 0x26e   : > { %v2265_v54 = vperm.slane %v2257_v36, %v7145_v62  ;;  %v9076_v59 = vadd.f32 %v3552_v9, %v3525_v49  ;;  %v2342_v63 = vrot.slane %v9019_v20, 4 }
 0x26f   : > { %v2255_v23 = vsel %vm1458_vm1, %v2254_v61, %v1271_v34  ;;  %v3456_v32 = vsel %vm3264_vm4, %v3424_v0, %v3440_v28  ;;  %v6525_v13 = vpop.eup %6524  ;;  %v9078_v40 = vadd.f32 %v3554_v2, %v3526_v12  ;;  %v1438_v34 = vadd.f32 %v8988_v5, %v7187_v52 }
 0x270   : > { %v2261_v36 = vperm.slane %v2255_v23, %v7145_v62  ;;  %v2302_v48 = vrot.slane %v2265_v54, 4  ;;  %v2305_v39 = vsel %vm1458_vm1, %v2265_v54, %v2304_v43  ;;  %6526 = vtanh.f32 %v3456_v32 }
 0x271   : > { %v2313_v17 = vperm.slane %v2305_v39, %v7239_v60  ;;  %v3487_v47 = vadd.f32 1.0, %v6525_v13  ;;  %v1440_v43 = vadd.f32 %v1439_v15, %v7187_v52  ;;  %v2338_v54 = vrot.slane %v2321_v30, 4 }
 0x272   : > { %v2290_v61 = vrot.slane %v2261_v36, 4  ;;  %v1442_v0 = vpop.f32.mrf.mxu1  ;;  %v2293_v28 = vsel %vm1458_vm1, %v2261_v36, %v2292_v6  ;;  %v2303_v23 = vsel %vm1458_vm1, %v2302_v48, %v2253_v51  ;;  %v2346_v32 = vrot.slane %v2333_v8, 4 }
 0x273   : > { %v1443_v9 = vadd.f32 %v1442_v0, %v7187_v52  ;;  %v2301_v49 = vperm.slane %v2293_v28, %v7239_v60  ;;  %v2309_v12 = vperm.slane %v2303_v23, %v7239_v60  ;;  %6528 = vtanh.f32 %v9076_v59 }
 0x274   : > { %v2291_v2 = vsel %vm1458_vm1, %v2290_v61, %v2249_v1  ;;  %v2352_v36 = vrot.slane %v2313_v17, 4  ;;  %6530 = vtanh.f32 %v9078_v40  ;;  %v3140_v15 = vrot.slane %v1438_v34, 4 }
 0x275   : > { %v3138_v5 = vrot.slane %v1443_v9, 4  ;;  %v2297_v6 = vperm.slane %v2291_v2, %v7239_v60  ;;  %v2348_v48 = vrot.slane %v2309_v12, 4  ;;  %v2344_v13 = vrot.slane %v2301_v49, 4 }
 0x276   : > { %v6527_v51 = vpop.eup %6526  ;;  %v9094_v39 = vmul.f32 0.5, %v3487_v47  ;;  %v3152_v0 = vrot.slane %v1440_v43, 4  ;;  %v11706_v23 = vrot.slane %v8897_v46, 4  ;;  %v9103_v2 = vsel %vm1458_vm1, %v2342_v63, %v2301_v49 }
 0x277   : > { %v3488_v1 = vadd.f32 1.0, %v6527_v51  ;;  %v2340_v61 = vrot.slane %v2297_v6, 4  ;;  %v3139_v28 = vsel %vm1458_vm1, %v3138_v5, %v1438_v34  ;;  %11708 = vst [vmem:[#allocation120_spill] sm:$0xff] %v9103_v2  ;;  %v9106_v25 = vsel %vm1458_vm1, %v2333_v8, %v2348_v48 }
 0x278   : > { %v9100_v53 = vsel %vm1458_vm1, %v11706_v23, %v2313_v17  ;;  %11709 = vst [vmem:[#allocation121_spill] sm:$0xff] %v9106_v25  ;;  %v9110_v47 = vsel %vm1458_vm1, %v8897_v46, %v2352_v36  ;;  %v9120_v34 = vsel %vm1458_vm1, %v2338_v54, %v2297_v6  ;;  %v9128_v46 = vsel %vm1458_vm1, %v9019_v20, %v2344_v13 }
 0x279   : > { %11707 = vst [vmem:[#allocation119_spill] sm:$0xff] %v9100_v53  ;;  %v3504_v22 = vmul.f32 0.5, %v3488_v1  ;;  %v9113_v14 = vsel %vm1458_vm1, %v2321_v30, %v2340_v61  ;;  %v9131_v30 = vsel %vm1458_vm1, %v2346_v32, %v2309_v12  ;;  %v6529_v49 = vpop.eup %6528  ;;  %v3145_v5 = vperm.slane %v3139_v28, %v7145_v62 }
 0x27a   : > { %11710 = vst [vmem:[#allocation122_spill] sm:$0xff] %v9110_v47  ;;  %v1444_v63 = vpop.f32.mrf.mxu1  ;;  %v6531_v48 = vpop.eup %6530 }
 0x27b   : > { %11711 = vst [vmem:[#allocation123_spill] sm:$0xff] %v9113_v14  ;;  %v1445_v36 = vadd.f32 %v1444_v63, %v7187_v52  ;;  %v9137_v54 = vsel %vm3264_vm4, %v6527_v51, %v3504_v22  ;;  %v3141_v51 = vsel %vm1458_vm1, %v1443_v9, %v3140_v15  ;;  %v9167_v63 = vmul.f32 %v6531_v48, %v8303_v16  ;;  %v9179_v48 = vpop.permute.xlu2 %3555 }
 0x27c   : > { %11712 = vst [vmem:[#allocation124_spill] sm:$0xff] %v9120_v34  ;;  %v3537_v20 = vmul.f32 %v9137_v54, %v9094_v39  ;;  %v3149_v32 = vperm.slane %v3141_v51, %v7145_v62  ;;  %v3188_v9 = vrot.slane %v3145_v5, 4  ;;  %v9172_v22 = vmul.f32 %v6529_v49, %v8030_v44 }
 0x27d   : > { %11713 = vst [vmem:[#allocation125_spill] sm:$0xff] %v9128_v46  ;;  %v3150_v13 = vrot.slane %v1445_v36, 4  ;;  %v3153_v1 = vsel %vm1458_vm1, %v1445_v36, %v3152_v0 }
 0x27e   : > { %11714 = vst [vmem:[#allocation126_spill] sm:$0xff] %v9131_v30  ;;  %v3161_v28 = vperm.slane %v3153_v1, %v7145_v62  ;;  %3559 = vrot.lane.b32.xlu0 %v3537_v20, %s6941_s11  ;;  %v3200_v6 = vrot.slane %v3149_v32, 4 }
 0x27f   : > { %v3151_v23 = vsel %vm1458_vm1, %v3150_v13, %v1440_v43  ;;  %v3612_v43 = vpack.c.bf16 %v9167_v63, %v9172_v22 }
 0x280   : > { %v3157_v15 = vperm.slane %v3151_v23, %v7145_v62  ;;  %v3198_v0 = vrot.slane %v3161_v28, 4 }
 0x282   : > { %v1447_v36 = vpop.f32.mrf.mxu1  ;;  %v3189_v61 = vsel %vm1458_vm1, %v3157_v15, %v3188_v9  ;;  %v3199_v1 = vsel %vm1458_vm1, %v3198_v0, %v3149_v32  ;;  %v3186_v0 = vrot.slane %v3157_v15, 4  ;;  %v3307_v15 = vsel %vm7267_vm2, %v9110_v47, %v9120_v34  ;;  %v11734_v47 = vld [vmem:[#allocation27_spill] sm:$0xff] }
 0x283   : > { %v1448_v20 = vadd.f32 %v1447_v36, %v7187_v52  ;;  %v3201_v36 = vsel %vm1458_vm1, %v3161_v28, %v3200_v6  ;;  %v3379_v28 = vpop.f32.mrf.mxu2 }
 0x284   : > { %v3187_v30 = vsel %vm1458_vm1, %v3186_v0, %v3145_v5  ;;  %v3197_v5 = vperm.slane %v3189_v61, %v7239_v60 }
 0x285   : > { %v3164_v23 = vrot.slane %v1448_v20, 4 }
 0x286   : > { %3621 = vrot.lane.b32.xlu0 %v3612_v43, %s6941_s11 }
 0x28a   : > { %v1449_v16 = vpop.f32.mrf.mxu1 }
 0x28b   : > { %v1450_v49 = vadd.f32 %v1449_v16, %v7187_v52 }
 0x28d   : > { %v3176_v46 = vrot.slane %v1450_v49, 4 }
 0x292   : > { %v1452_v51 = vpop.f32.mrf.mxu1 }
 0x293   : > { %v1453_v13 = vadd.f32 %v1452_v51, %v7187_v52 }
 0x295   : > { %v3162_v44 = vrot.slane %v1453_v13, 4  ;;  %v3165_v9 = vsel %vm1458_vm1, %v1453_v13, %v3164_v23  ;;  %v3209_v13 = vperm.slane %v3201_v36, %v7239_v60 }
 0x296   : > { %v3173_v17 = vperm.slane %v3165_v9, %v7145_v62 }
 0x297   : > { %v3163_v43 = vsel %vm1458_vm1, %v3162_v44, %v1448_v20  ;;  %v3205_v44 = vperm.slane %v3199_v1, %v7239_v60 }
 0x298   : > { %v9185_v12 = vpop.permute.xlu2 %3557  ;;  %v3169_v16 = vperm.slane %v3163_v43, %v7145_v62  ;;  %v3224_v23 = vrot.slane %v3173_v17, 4 }
 0x29a   : > { %v1454_v8 = vpop.f32.mrf.mxu1  ;;  %v3212_v9 = vrot.slane %v3169_v16, 4 }
 0x29b   : > { %v1455_v51 = vadd.f32 %v1454_v8, %v7187_v52  ;;  %v3193_v52 = vperm.slane %v3187_v30, %v7239_v60  ;;  %v3425_v30 = vadd.f32 %v3379_v28, %v3307_v15  ;;  %v3240_v15 = vrot.slane %v3197_v5, 4 }
 0x29d   : > { %v3174_v32 = vrot.slane %v1455_v51, 4  ;;  %v3177_v20 = vsel %vm1458_vm1, %v1455_v51, %v3176_v46 }
 0x29e   : > { %v3185_v6 = vperm.slane %v3177_v20, %v7145_v62 }
 0x29f   : > { %v3175_v8 = vsel %vm1458_vm1, %v3174_v32, %v1450_v49 }
 0x2a0   : > { %v3181_v0 = vperm.slane %v3175_v8, %v7145_v62  ;;  %v3222_v43 = vrot.slane %v3185_v6, 4  ;;  %v3225_v46 = vsel %vm1458_vm1, %v3185_v6, %v3224_v23  ;;  %v3620_v36 = vpop.permute.xlu2 %3619  ;;  %v3244_v23 = vrot.slane %v3205_v44, 4 }
 0x2a1   : > { %v3233_v51 = vperm.slane %v3225_v46, %v7239_v60  ;;  %6352 = vmatmul.msk.bf16.vlgmr.msrb.gmra.mxu2 %vm3349_vm5, %v3620_v36  ;;  %6356 = vmatmul.msk.bf16.vlgmr.msra.gmra.mxu3 %vm3349_vm5, %v3620_v36  ;;  %v3248_v6 = vrot.slane %v3209_v13, 4  ;;  %v3236_v46 = vrot.slane %v3193_v52, 4 }
 0x2a2   : > { %v3210_v20 = vrot.slane %v3181_v0, 4  ;;  %v3213_v49 = vsel %vm1458_vm1, %v3181_v0, %v3212_v9  ;;  %v3223_v61 = vsel %vm1458_vm1, %v3222_v43, %v3173_v17  ;;  %4231 = vmatpush.bf16.msrb.mxu2 %v7034_v19  ;;  %4260 = vmatpush.bf16.msra.mxu3 %v7070_v31  ;;  %v3441_v43 = vmul.f32 0.5, %v3425_v30  ;;  %v11730_v30 = vld [vmem:[#allocation18_spill] sm:$0xff] }
 0x2a3   : > { %v3246_v62 = vrot.slane %v3233_v51, 4  ;;  %v3221_v1 = vperm.slane %v3213_v49, %v7239_v60  ;;  %v3229_v32 = vperm.slane %v3223_v61, %v7239_v60  ;;  %v9229_v49 = vsel %vm1458_vm1, %v3233_v51, %v3248_v6 }
 0x2a4   : > { %v3211_v8 = vsel %vm1458_vm1, %v3210_v20, %v3169_v16  ;;  %11718 = vst [vmem:[#allocation130_spill] sm:$0xff] %v9229_v49  ;;  %6532 = vtanh.f32 %v3441_v43 }
 0x2a5   : > { %v3217_v28 = vperm.slane %v3211_v8, %v7239_v60  ;;  %v9218_v9 = vsel %vm1458_vm1, %v3246_v62, %v3209_v13  ;;  %v3238_v17 = vrot.slane %v3221_v1, 4  ;;  %v9221_v0 = vsel %vm1458_vm1, %v3229_v32, %v3244_v23  ;;  %v3408_v23 = vpop.f32.mrf.mxu3 }
 0x2a6   : > { %11715 = vst [vmem:[#allocation127_spill] sm:$0xff] %v9218_v9  ;;  %4232 = vmatpush.bf16.msrb.mxu2 %v7040_v21  ;;  %4261 = vmatpush.bf16.msra.mxu3 %v7080_v35  ;;  %v9226_v36 = vsel %vm1458_vm1, %v3221_v1, %v3240_v15  ;;  %v3242_v16 = vrot.slane %v3229_v32, 4 }
 0x2a7   : > { %11716 = vst [vmem:[#allocation128_spill] sm:$0xff] %v9221_v0  ;;  %v3234_v20 = vrot.slane %v3217_v28, 4  ;;  %v9232_v60 = vsel %vm1458_vm1, %v3217_v28, %v3236_v46  ;;  %v9235_v13 = vsel %vm1458_vm1, %v3238_v17, %v3197_v5  ;;  %v3528_v28 = vmul.f32 0.0, %v8824_v11 }
 0x2a8   : > { %11717 = vst [vmem:[#allocation129_spill] sm:$0xff] %v9226_v36  ;;  %v9246_v62 = vsel %vm1458_vm1, %v3242_v16, %v3205_v44  ;;  %v3527_v16 = vmul.f32 0.0, %v8562_v56 }
 0x2a9   : > { %11719 = vst [vmem:[#allocation131_spill] sm:$0xff] %v9232_v60  ;;  %v9253_v5 = vsel %vm1458_vm1, %v3234_v20, %v3193_v52  ;;  %v9284_v20 = vadd.f32 %v9185_v12, %v3528_v28  ;;  %v11723_v28 = vld [vmem:[#allocation82_spill] sm:$0xff] }
 0x2aa   : > { %11720 = vst [vmem:[#allocation132_spill] sm:$0xff] %v9235_v13  ;;  %v3308_v52 = vsel %vm7380_vm3, %v9229_v49, %v9253_v5  ;;  %4233 = vmatpush.bf16.msrb.mxu2 %v7049_v24  ;;  %4262 = vmatpush.bf16.msra.mxu3 %v7090_v38  ;;  %v6533_v17 = vpop.eup %6532  ;;  %v11731_v49 = vld [vmem:[#allocation20_spill] sm:$0xff] }
 0x2ab   : > { %11721 = vst [vmem:[#allocation133_spill] sm:$0xff] %v9246_v62  ;;  %v3426_v8 = vadd.f32 %v3408_v23, %v3308_v52  ;;  %v9287_v23 = vadd.f32 %v9179_v48, %v3527_v16  ;;  %v3489_v52 = vadd.f32 1.0, %v6533_v17 }
 0x2ac   : > { %11722 = vst [vmem:[#allocation134_spill] sm:$0xff] %v9253_v5  ;;  %v11733_v5 = vld [vmem:[#allocation26_spill] sm:$0xff] }
 0x2ad   : > { %v3442_v46 = vmul.f32 0.5, %v3426_v8 }
 0x2ae   : > { %4234 = vmatpush.bf16.msrb.mxu2 %v7058_v27  ;;  %4263 = vmatpush.bf16.msra.mxu3 %v7100_v41 }
 0x2af   : > { %v3458_v15 = vsel %vm3264_vm4, %v3426_v8, %v3442_v46  ;;  %v3505_v46 = vmul.f32 0.5, %v3489_v52 }
 0x2b0   : > { %6534 = vtanh.f32 %v3458_v15 }
 0x2b1   : > { %6536 = vtanh.f32 %v9284_v20 }
 0x2b2   : > { %6538 = vtanh.f32 %v9287_v23 }
 0x2b6   : > { %v6535_v43 = vpop.eup %6534 }
 0x2b7   : > { %v3490_v6 = vadd.f32 1.0, %v6535_v43  ;;  %v6537_v56 = vpop.eup %6536 }
 0x2b8   : > { %v6539_v12 = vpop.eup %6538  ;;  %v9295_v48 = vmul.f32 %v6537_v56, %v8829_v26  ;;  %v11724_v56 = vld [vmem:[#allocation2_spill] sm:$0xff] }
 0x2b9   : > { %v3506_v8 = vmul.f32 0.5, %v3490_v6  ;;  %v9298_v17 = vmul.f32 %v6539_v12, %v11723_v28  ;;  %v3529_v6 = vmul.f32 0.0, %v9094_v39  ;;  %v11725_v12 = vld [vmem:[#allocation4_spill] sm:$0xff]  ;;  %v11728_v39 = vld [vmem:[#allocation11_spill] sm:$0xff] }
 0x2ba   : > { %v11726_v28 = vsel %vm7267_vm2, %v11724_v56, %v11725_v12  ;;  %v11744_v12 = vld [vmem:[#allocation50_spill] sm:$0xff] }
 0x2bb   : > { %v3522_v11 = vsel %vm3264_vm4, %v6535_v43, %v3506_v8  ;;  %v3613_v16 = vpack.c.bf16 %v9295_v48, %v9298_v17 }
 0x2bc   : > { %v3538_v15 = vmul.f32 %v3522_v11, %v3505_v46 }
 0x2be   : > { %3561 = vrot.lane.b32.xlu1 %v3538_v15, %s6941_s11 }
 0x2c6   : > { %3623 = vrot.lane.b32.xlu1 %v3613_v16, %s6941_s11  ;;  %v11727_v16 = vld [vmem:[#allocation10_spill] sm:$0xff] }
 0x2c7   : > { %v11729_v51 = vsel %vm7380_vm3, %v11727_v16, %v11728_v39  ;;  %v3530_v16 = vmul.f32 0.0, %v3505_v46 }
 0x2f0   : > { %v3560_v52 = vpop.permute.xlu0 %3559 }
 0x2f1   : > { %v9304_v43 = vadd.f32 %v3560_v52, %v3529_v6 }
 0x2f8   : > { %v3622_v8 = vpop.permute.xlu0 %3621 }
 0x2f9   : > { %6353 = vmatmul.msk.bf16.gmra.mxu2 %vm3349_vm5, %v3622_v8  ;;  %6357 = vmatmul.msk.bf16.gmra.mxu3 %vm3349_vm5, %v3622_v8 }
 0x324   : > { %v3648_v26 = vpop.f32.mrf.mxu2  ;;  %v3677_v15 = vpop.f32.mrf.mxu3 }
 0x325   : > { %v3697_v44 = vadd.f32 %v3648_v26, %v11726_v28  ;;  %v3698_v6 = vadd.f32 %v3677_v15, %v11729_v51  ;;  %v11732_v26 = vsel %vm7267_vm2, %v11730_v30, %v11731_v49  ;;  %v11735_v51 = vsel %vm7380_vm3, %v11733_v5, %v11734_v47 }
 0x327   : > { %v3713_v52 = vmul.f32 0.5, %v3697_v44  ;;  %v3714_v32 = vmul.f32 0.5, %v3698_v6 }
 0x329   : > { %6540 = vtanh.f32 %v3713_v52  ;;  %v3730_v8 = vsel %vm3264_vm4, %v3698_v6, %v3714_v32 }
 0x32a   : > { %6542 = vtanh.f32 %v3730_v8 }
 0x32b   : > { %6544 = vtanh.f32 %v9304_v43 }
 0x32c   : > { %v3650_v1 = vpop.f32.mrf.mxu2  ;;  %v3679_v61 = vpop.f32.mrf.mxu3 }
 0x32d   : > { %v3699_v28 = vadd.f32 %v3650_v1, %v11732_v26  ;;  %v3700_v44 = vadd.f32 %v3679_v61, %v11735_v51 }
 0x32f   : > { %v6541_v15 = vpop.eup %6540  ;;  %v3715_v52 = vmul.f32 0.5, %v3699_v28  ;;  %v3716_v34 = vmul.f32 0.5, %v3700_v44 }
 0x330   : > { %v6543_v32 = vpop.eup %6542  ;;  %v3761_v6 = vadd.f32 1.0, %v6541_v15  ;;  %v3562_v8 = vpop.permute.xlu1 %3561 }
 0x331   : > { %6546 = vtanh.f32 %v3715_v52  ;;  %v3732_v30 = vsel %vm3264_vm4, %v3700_v44, %v3716_v34  ;;  %v9333_v1 = vadd.f32 %v3562_v8, %v3530_v16  ;;  %v3762_v26 = vadd.f32 1.0, %v6543_v32  ;;  %v6545_v28 = vpop.eup %6544 }
 0x332   : > { %6548 = vtanh.f32 %v3732_v30  ;;  %v9336_v51 = vmul.f32 0.5, %v3761_v6  ;;  %v9348_v6 = vmul.f32 %v6545_v28, %v9137_v54  ;;  %v11738_v28 = vld [vmem:[#allocation34_spill] sm:$0xff] }
 0x333   : > { %6550 = vtanh.f32 %v9333_v1  ;;  %v3778_v61 = vmul.f32 0.5, %v3762_v26 }
 0x334   : > { %11736 = vst [vmem:[#allocation82_spill] sm:$0xff] %v9348_v6 }
 0x335   : > { %v9340_v46 = vsel %vm3264_vm4, %v6543_v32, %v3778_v61 }
 0x336   : > { %v3817_v15 = vmul.f32 %v9340_v46, %v9336_v51 }
 0x337   : > { %v6547_v52 = vpop.eup %6546 }
 0x338   : > { %v6549_v5 = vpop.eup %6548  ;;  %v3763_v34 = vadd.f32 1.0, %v6547_v52  ;;  %v3624_v16 = vpop.permute.xlu1 %3623  ;;  %3833 = vrot.lane.b32.xlu0 %v3817_v15, %s6941_s11 }
 0x339   : > { %v6551_v30 = vpop.eup %6550  ;;  %6354 = vmatmul.msk.bf16.gmra.mxu2 %vm3349_vm5, %v3624_v16  ;;  %6358 = vmatmul.msk.bf16.gmra.mxu3 %vm3349_vm5, %v3624_v16  ;;  %v3764_v44 = vadd.f32 1.0, %v6549_v5 }
 0x33a   : > { %v9350_v32 = vmul.f32 %v6551_v30, %v3522_v11  ;;  %v9352_v26 = vmul.f32 0.5, %v3763_v34  ;;  %v11739_v34 = vld [vmem:[#allocation36_spill] sm:$0xff] }
 0x33b   : > { %v3780_v8 = vmul.f32 0.5, %v3764_v44  ;;  %v11740_v16 = vsel %vm7267_vm2, %v11738_v28, %v11739_v34  ;;  %v11741_v44 = vld [vmem:[#allocation42_spill] sm:$0xff]  ;;  %v11745_v28 = vld [vmem:[#allocation52_spill] sm:$0xff] }
 0x33c   : > { %11737 = vst [vmem:[#allocation135_spill] sm:$0xff] %v9350_v32  ;;  %v3614_v61 = vpack.c.bf16 %v9350_v32, %v9348_v6  ;;  %v11747_v34 = vld [vmem:[#allocation58_spill] sm:$0xff] }
 0x33d   : > { %v9358_v15 = vsel %vm3264_vm4, %v6549_v5, %v3780_v8  ;;  %v11742_v5 = vld [vmem:[#allocation43_spill] sm:$0xff] }
 0x33e   : > { %3625 = vrot.lane.b32.xlu2 %v3614_v61, %s6941_s11  ;;  %v3818_v52 = vmul.f32 %v9358_v15, %v9352_v26  ;;  %v11743_v8 = vsel %vm7380_vm3, %v11741_v44, %v11742_v5  ;;  %v11748_v44 = vld [vmem:[#allocation59_spill] sm:$0xff] }
 0x340   : > { %3835 = vrot.lane.b32.xlu1 %v3818_v52, %s6941_s11 }
 0x37c   : > { %v3653_v54 = vpop.f32.mrf.mxu2  ;;  %v3682_v11 = vpop.f32.mrf.mxu3 }
 0x37d   : > { %v3701_v30 = vadd.f32 %v3653_v54, %v11740_v16  ;;  %v3702_v47 = vadd.f32 %v3682_v11, %v11743_v8  ;;  %v11746_v54 = vsel %vm7267_vm2, %v11744_v12, %v11745_v28  ;;  %v11749_v11 = vsel %vm7380_vm3, %v11747_v34, %v11748_v44 }
 0x37f   : > { %v3717_v61 = vmul.f32 0.5, %v3701_v30  ;;  %v3718_v49 = vmul.f32 0.5, %v3702_v47 }
 0x381   : > { %6552 = vtanh.f32 %v3717_v61  ;;  %v3734_v52 = vsel %vm3264_vm4, %v3702_v47, %v3718_v49 }
 0x382   : > { %6554 = vtanh.f32 %v3734_v52 }
 0x384   : > { %v3655_v39 = vpop.f32.mrf.mxu2  ;;  %v3684_v56 = vpop.f32.mrf.mxu3 }
 0x385   : > { %v3703_v16 = vadd.f32 %v3655_v39, %v11746_v54  ;;  %v3704_v30 = vadd.f32 %v3684_v56, %v11749_v11 }
 0x387   : > { %v6553_v8 = vpop.eup %6552  ;;  %v3719_v61 = vmul.f32 0.5, %v3703_v16  ;;  %v3720_v5 = vmul.f32 0.5, %v3704_v30 }
 0x388   : > { %v6555_v36 = vpop.eup %6554  ;;  %v3765_v47 = vadd.f32 1.0, %v6553_v8 }
 0x389   : > { %6556 = vtanh.f32 %v3719_v61  ;;  %v3736_v49 = vsel %vm3264_vm4, %v3704_v30, %v3720_v5  ;;  %v3766_v52 = vadd.f32 1.0, %v6555_v36 }
 0x38a   : > { %6558 = vtanh.f32 %v3736_v49  ;;  %v9388_v12 = vmul.f32 0.5, %v3765_v47 }
 0x38b   : > { %v3782_v62 = vmul.f32 0.5, %v3766_v52  ;;  %v11750_v52 = vld [vmem:[#allocation66_spill] sm:$0xff] }
 0x38d   : > { %v9392_v39 = vsel %vm3264_vm4, %v6555_v36, %v3782_v62 }
 0x38e   : > { %v3819_v56 = vmul.f32 %v9392_v39, %v9388_v12 }
 0x38f   : > { %v6557_v54 = vpop.eup %6556 }
 0x390   : > { %v6559_v16 = vpop.eup %6558  ;;  %v3767_v11 = vadd.f32 1.0, %v6557_v54  ;;  %3837 = vrot.lane.b32.xlu2 %v3819_v56, %s6941_s11  ;;  %v11751_v56 = vld [vmem:[#allocation68_spill] sm:$0xff] }
 0x391   : > { %v3768_v8 = vadd.f32 1.0, %v6559_v16  ;;  %v11752_v54 = vsel %vm7267_vm2, %v11750_v52, %v11751_v56 }
 0x392   : > { %v9397_v5 = vmul.f32 0.5, %v3767_v11 }
 0x393   : > { %v3784_v61 = vmul.f32 0.5, %v3768_v8  ;;  %v11754_v8 = vld [vmem:[#allocation75_spill] sm:$0xff] }
 0x395   : > { %v9401_v30 = vsel %vm3264_vm4, %v6559_v16, %v3784_v61  ;;  %v11753_v16 = vld [vmem:[#allocation74_spill] sm:$0xff] }
 0x396   : > { %v3820_v36 = vmul.f32 %v9401_v30, %v9397_v5  ;;  %v11755_v61 = vsel %vm7380_vm3, %v11753_v16, %v11754_v8  ;;  %v11757_v16 = vld [vmem:[#allocation92_spill] sm:$0xff] }
 0x398   : > { %3839 = vrot.lane.b32.xlu0 %v3820_v36, %s6941_s11  ;;  %v3626_v62 = vpop.permute.xlu2 %3625 }
 0x399   : > { %6355 = vmatmul.msk.bf16.gmra.mxu2 %vm3349_vm5, %v3626_v62  ;;  %6359 = vmatmul.msk.bf16.gmra.mxu3 %vm3349_vm5, %v3626_v62 }
 0x3b2   : > { %v3836_v56 = vpop.permute.xlu1 %3835 }
 0x3bc   : > { %v3658_v47 = vpop.f32.mrf.mxu2  ;;  %v3687_v49 = vpop.f32.mrf.mxu3 }
 0x3bd   : > { %v3705_v11 = vadd.f32 %v3658_v47, %v11752_v54  ;;  %v3706_v34 = vadd.f32 %v3687_v49, %v11755_v61  ;;  %v11756_v47 = vsel %vm7267_vm2, %v8637_v58, %v8644_v4  ;;  %v11758_v49 = vsel %vm7380_vm3, %v8727_v57, %v11757_v16  ;;  %v11759_v58 = vld [vmem:[#allocation99_spill] sm:$0xff]  ;;  %v3834_v4 = vpop.permute.xlu0 %3833 }
 0x3bf   : > { %v3721_v36 = vmul.f32 0.5, %v3705_v11  ;;  %v3722_v44 = vmul.f32 0.5, %v3706_v34 }
 0x3c1   : > { %6560 = vtanh.f32 %v3721_v36  ;;  %v3738_v62 = vsel %vm3264_vm4, %v3706_v34, %v3722_v44 }
 0x3c2   : > { %6562 = vtanh.f32 %v3738_v62 }
 0x3c4   : > { %v3660_v28 = vpop.f32.mrf.mxu2  ;;  %v3689_v32 = vpop.f32.mrf.mxu3 }
 0x3c5   : > { %v3707_v54 = vadd.f32 %v3660_v28, %v11756_v47  ;;  %v3708_v11 = vadd.f32 %v3689_v32, %v11758_v49  ;;  %v3810_v28 = vmul.f32 %v9352_v26, %v11759_v58  ;;  %v11760_v32 = vld [vmem:[#allocation100_spill] sm:$0xff] }
 0x3c7   : > { %v6561_v61 = vpop.eup %6560  ;;  %v3723_v36 = vmul.f32 0.5, %v3707_v54  ;;  %v3724_v8 = vmul.f32 0.5, %v3708_v11  ;;  %v3809_v54 = vmul.f32 %v9336_v51, %v11760_v32  ;;  %v9438_v49 = vadd.f32 %v3836_v56, %v3810_v28 }
 0x3c8   : > { %v6563_v52 = vpop.eup %6562  ;;  %v3769_v34 = vadd.f32 1.0, %v6561_v61 }
 0x3c9   : > { %6564 = vtanh.f32 %v3723_v36  ;;  %v3740_v44 = vsel %vm3264_vm4, %v3708_v11, %v3724_v8  ;;  %v3770_v62 = vadd.f32 1.0, %v6563_v52  ;;  %v9446_v36 = vadd.f32 %v3834_v4, %v3809_v54 }
 0x3ca   : > { %6566 = vtanh.f32 %v3740_v44  ;;  %v9434_v6 = vmul.f32 0.5, %v3769_v34 }
 0x3cb   : > { %v3786_v47 = vmul.f32 0.5, %v3770_v62  ;;  %6568 = vtanh.f32 %v9438_v49 }
 0x3cc   : > { %6570 = vtanh.f32 %v9446_v36 }
 0x3cd   : > { %v9442_v61 = vsel %vm3264_vm4, %v6563_v52, %v3786_v47 }
 0x3ce   : > { %v3821_v8 = vmul.f32 %v9442_v61, %v9434_v6 }
 0x3cf   : > { %v6565_v11 = vpop.eup %6564 }
 0x3d0   : > { %v6567_v58 = vpop.eup %6566  ;;  %v3771_v26 = vadd.f32 1.0, %v6565_v11  ;;  %3841 = vrot.lane.b32.xlu1 %v3821_v8, %s6941_s11  ;;  %v11761_v11 = vsel %vm7267_vm2, %v8909_v45, %v8916_v33 }
 0x3d1   : > { %v3772_v34 = vadd.f32 1.0, %v6567_v58  ;;  %v6569_v44 = vpop.eup %6568 }
 0x3d2   : > { %v9451_v56 = vmul.f32 0.5, %v3771_v26  ;;  %v6571_v62 = vpop.eup %6570  ;;  %v9461_v28 = vmul.f32 %v6569_v44, %v9358_v15  ;;  %v11762_v15 = vsel %vm7380_vm3, %v9001_v29, %v9005_v37  ;;  %v3812_v44 = vmul.f32 %v9397_v5, %v9078_v40 }
 0x3d3   : > { %v3788_v51 = vmul.f32 0.5, %v3772_v34  ;;  %v9464_v47 = vmul.f32 %v6571_v62, %v9340_v46  ;;  %v3811_v29 = vmul.f32 %v9388_v12, %v9076_v59  ;;  %v11764_v40 = vsel %vm7380_vm3, %v9218_v9, %v9232_v60 }
 0x3d5   : > { %v9455_v52 = vsel %vm3264_vm4, %v6567_v58, %v3788_v51  ;;  %v3905_v32 = vpack.c.bf16 %v9461_v28, %v9464_v47 }
 0x3d6   : > { %v3822_v4 = vmul.f32 %v9455_v52, %v9451_v56 }
 0x3d8   : > { %3843 = vrot.lane.b32.xlu2 %v3822_v4, %s6941_s11 }
 0x3e0   : > { %3913 = vrot.lane.b32.xlu2 %v3905_v32, %s6941_s11 }
 0x3ea   : > { %v3838_v62 = vpop.permute.xlu2 %3837 }
 0x40a   : > { %v3840_v51 = vpop.permute.xlu0 %3839 }
 0x40b   : > { %v9483_v32 = vadd.f32 %v3840_v51, %v3812_v44 }
 0x41c   : > { %v3663_v54 = vpop.f32.mrf.mxu2  ;;  %v3692_v8 = vpop.f32.mrf.mxu3 }
 0x41d   : > { %v3709_v58 = vadd.f32 %v3663_v54, %v11761_v11  ;;  %v3710_v46 = vadd.f32 %v3692_v8, %v11762_v15  ;;  %v11763_v8 = vsel %vm7267_vm2, %v9100_v53, %v9113_v14 }
 0x41f   : > { %v3725_v26 = vmul.f32 0.5, %v3709_v58  ;;  %v3726_v34 = vmul.f32 0.5, %v3710_v46 }
 0x421   : > { %6572 = vtanh.f32 %v3725_v26  ;;  %v3742_v4 = vsel %vm3264_vm4, %v3710_v46, %v3726_v34  ;;  %v9497_v46 = vadd.f32 %v3838_v62, %v3811_v29 }
 0x422   : > { %6574 = vtanh.f32 %v3742_v4 }
 0x423   : > { %6576 = vtanh.f32 %v9483_v32 }
 0x424   : > { %v3665_v54 = vpop.f32.mrf.mxu2  ;;  %v3694_v11 = vpop.f32.mrf.mxu3 }
 0x425   : > { %v3711_v58 = vadd.f32 %v3665_v54, %v11763_v8  ;;  %v3712_v5 = vadd.f32 %v3694_v11, %v11764_v40 }
 0x427   : > { %v6573_v15 = vpop.eup %6572  ;;  %v3727_v26 = vmul.f32 0.5, %v3711_v58  ;;  %v3728_v34 = vmul.f32 0.5, %v3712_v5 }
 0x428   : > { %v6575_v51 = vpop.eup %6574  ;;  %v3773_v59 = vadd.f32 1.0, %v6573_v15 }
 0x429   : > { %6578 = vtanh.f32 %v3727_v26  ;;  %v3744_v12 = vsel %vm3264_vm4, %v3712_v5, %v3728_v34  ;;  %v3774_v4 = vadd.f32 1.0, %v6575_v51  ;;  %v6577_v62 = vpop.eup %6576 }
 0x42a   : > { %6580 = vtanh.f32 %v3744_v12  ;;  %v3789_v54 = vmul.f32 0.5, %v3773_v59  ;;  %v9507_v5 = vmul.f32 %v6577_v62, %v9401_v30  ;;  %v3813_v62 = vmul.f32 %v9434_v6, %v9287_v23 }
 0x42b   : > { %6582 = vtanh.f32 %v9497_v46  ;;  %v3790_v44 = vmul.f32 0.5, %v3774_v4 }
 0x42d   : > { %v3806_v29 = vsel %vm3264_vm4, %v6575_v51, %v3790_v44 }
 0x42e   : > { %v3823_v11 = vmul.f32 %v3806_v29, %v3789_v54 }
 0x42f   : > { %v6579_v8 = vpop.eup %6578 }
 0x430   : > { %v6581_v58 = vpop.eup %6580  ;;  %v3775_v40 = vadd.f32 1.0, %v6579_v8  ;;  %3845 = vrot.lane.b32.xlu0 %v3823_v11, %s6941_s11 }
 0x431   : > { %v6583_v15 = vpop.eup %6582  ;;  %v3776_v26 = vadd.f32 1.0, %v6581_v58 }
 0x432   : > { %v3844_v9 = vpop.permute.xlu2 %3843  ;;  %v3791_v12 = vmul.f32 0.5, %v3775_v40  ;;  %v9510_v59 = vmul.f32 %v6583_v15, %v9392_v39  ;;  %v3814_v39 = vmul.f32 %v9451_v56, %v9284_v20  ;;  %v3815_v15 = vmul.f32 %v3789_v54, %v9304_v43 }
 0x433   : > { %v3792_v34 = vmul.f32 0.5, %v3776_v26 }
 0x434   : > { %v3906_v44 = vpack.c.bf16 %v9507_v5, %v9510_v59  ;;  %v9524_v30 = vadd.f32 %v3844_v9, %v3814_v39 }
 0x435   : > { %v3808_v51 = vsel %vm3264_vm4, %v6581_v58, %v3792_v34  ;;  %v3816_v34 = vmul.f32 %v3791_v12, %v9333_v1 }
 0x436   : > { %v3824_v4 = vmul.f32 %v3808_v51, %v3791_v12  ;;  %6584 = vtanh.f32 %v9524_v30 }
 0x438   : > { %3847 = vrot.lane.b32.xlu1 %v3824_v4, %s6941_s11  ;;  %3915 = vrot.lane.b32.xlu0 %v3906_v44, %s6941_s11 }
 0x43a   : > { %v3914_v11 = vpop.permute.xlu2 %3913 }
 0x43b   : > { %6360 = vmatmul.msk.bf16.vlgmr.msra.gmra.mxu2 %vm3349_vm5, %v3914_v11  ;;  %6364 = vmatmul.msk.bf16.vlgmr.msrb.gmra.mxu3 %vm3349_vm5, %v3914_v11 }
 0x43c   : > { %4525 = vmatpush.bf16.msra.mxu2 %v7034_v19  ;;  %4554 = vmatpush.bf16.msrb.mxu3 %v7070_v31  ;;  %v6585_v9 = vpop.eup %6584 }
 0x43d   : > { %v9542_v23 = vmul.f32 %v6585_v9, %v9455_v52 }
 0x440   : > { %4526 = vmatpush.bf16.msra.mxu2 %v7040_v21  ;;  %4555 = vmatpush.bf16.msrb.mxu3 %v7080_v35 }
 0x442   : > { %v3842_v8 = vpop.permute.xlu1 %3841 }
 0x443   : > { %v9531_v58 = vadd.f32 %v3842_v8, %v3813_v62  ;;  %v11765_v62 = vld [vmem:[#allocation3_spill] sm:$0xff] }
 0x444   : > { %4527 = vmatpush.bf16.msra.mxu2 %v7049_v24  ;;  %4556 = vmatpush.bf16.msrb.mxu3 %v7090_v38  ;;  %v11766_v8 = vld [vmem:[#allocation7_spill] sm:$0xff] }
 0x445   : > { %6586 = vtanh.f32 %v9531_v58  ;;  %v11767_v9 = vsel %vm7267_vm2, %v11765_v62, %v11766_v8 }
 0x448   : > { %4528 = vmatpush.bf16.msra.mxu2 %v7058_v27  ;;  %4557 = vmatpush.bf16.msrb.mxu3 %v7100_v41 }
 0x44b   : > { %v6587_v20 = vpop.eup %6586 }
 0x44c   : > { %v9539_v56 = vmul.f32 %v6587_v20, %v9442_v61 }
 0x44e   : > { %v3907_v6 = vpack.c.bf16 %v9542_v23, %v9539_v56 }
 0x450   : > { %3917 = vrot.lane.b32.xlu1 %v3907_v6, %s6941_s11  ;;  %v11768_v6 = vld [vmem:[#allocation12_spill] sm:$0xff] }
 0x4a2   : > { %v3846_v40 = vpop.permute.xlu0 %3845 }
 0x4a3   : > { %v9548_v26 = vadd.f32 %v3846_v40, %v3815_v15 }
 0x4a5   : > { %6588 = vtanh.f32 %v9548_v26 }
 0x4aa   : > { %v3848_v4 = vpop.permute.xlu1 %3847  ;;  %v3916_v44 = vpop.permute.xlu0 %3915 }
 0x4ab   : > { %v9552_v61 = vadd.f32 %v3848_v4, %v3816_v34  ;;  %6361 = vmatmul.msk.bf16.gmra.mxu2 %vm3349_vm5, %v3916_v44  ;;  %6365 = vmatmul.msk.bf16.gmra.mxu3 %vm3349_vm5, %v3916_v44  ;;  %v6589_v52 = vpop.eup %6588 }
 0x4ac   : > { %v9557_v39 = vmul.f32 %v6589_v52, %v3806_v29  ;;  %v11769_v29 = vld [vmem:[#allocation15_spill] sm:$0xff] }
 0x4ad   : > { %6590 = vtanh.f32 %v9552_v61  ;;  %v11770_v40 = vsel %vm7380_vm3, %v11768_v6, %v11769_v29 }
 0x4b3   : > { %v6591_v11 = vpop.eup %6590 }
 0x4b4   : > { %v9559_v43 = vmul.f32 %v6591_v11, %v3808_v51 }
 0x4b6   : > { %v3908_v1 = vpack.c.bf16 %v9559_v43, %v9557_v39 }
 0x4b8   : > { %3919 = vrot.lane.b32.xlu2 %v3908_v1, %s6941_s11  ;;  %v11771_v1 = vld [vmem:[#allocation19_spill] sm:$0xff] }
 0x4be   : > { %v3942_v54 = vpop.f32.mrf.mxu2  ;;  %v3971_v12 = vpop.f32.mrf.mxu3 }
 0x4bf   : > { %v3991_v20 = vadd.f32 %v3942_v54, %v11767_v9  ;;  %v3992_v51 = vadd.f32 %v3971_v12, %v11770_v40  ;;  %v11772_v54 = vld [vmem:[#allocation23_spill] sm:$0xff] }
 0x4c0   : > { %v11773_v9 = vsel %vm7267_vm2, %v11771_v1, %v11772_v54  ;;  %v11775_v40 = vld [vmem:[#allocation31_spill] sm:$0xff] }
 0x4c1   : > { %v4007_v15 = vmul.f32 0.5, %v3991_v20  ;;  %v4008_v34 = vmul.f32 0.5, %v3992_v51  ;;  %v11774_v20 = vld [vmem:[#allocation28_spill] sm:$0xff]  ;;  %v11783_v1 = vld [vmem:[#allocation51_spill] sm:$0xff] }
 0x4c2   : > { %v3918_v4 = vpop.permute.xlu1 %3917 }
 0x4c3   : > { %6592 = vtanh.f32 %v4007_v15  ;;  %v4024_v44 = vsel %vm3264_vm4, %v3992_v51, %v4008_v34  ;;  %6362 = vmatmul.msk.bf16.gmra.mxu2 %vm3349_vm5, %v3918_v4  ;;  %6366 = vmatmul.msk.bf16.gmra.mxu3 %vm3349_vm5, %v3918_v4  ;;  %v11776_v15 = vsel %vm7380_vm3, %v11774_v20, %v11775_v40 }
 0x4c4   : > { %6594 = vtanh.f32 %v4024_v44 }
 0x4c6   : > { %v3944_v52 = vpop.f32.mrf.mxu2  ;;  %v3973_v11 = vpop.f32.mrf.mxu3 }
 0x4c7   : > { %v3993_v12 = vadd.f32 %v3944_v52, %v11773_v9  ;;  %v3994_v60 = vadd.f32 %v3973_v11, %v11776_v15 }
 0x4c9   : > { %v6593_v51 = vpop.eup %6592  ;;  %v4009_v34 = vmul.f32 0.5, %v3993_v12  ;;  %v4010_v53 = vmul.f32 0.5, %v3994_v60 }
 0x4ca   : > { %v6595_v14 = vpop.eup %6594  ;;  %v4055_v4 = vadd.f32 1.0, %v6593_v51 }
 0x4cb   : > { %6596 = vtanh.f32 %v4009_v34  ;;  %v4026_v44 = vsel %vm3264_vm4, %v3994_v60, %v4010_v53  ;;  %v4056_v37 = vadd.f32 1.0, %v6595_v14 }
 0x4cc   : > { %6598 = vtanh.f32 %v4026_v44  ;;  %v4071_v33 = vmul.f32 0.5, %v4055_v4  ;;  %v11777_v4 = vld [vmem:[#allocation35_spill] sm:$0xff] }
 0x4cd   : > { %v4072_v45 = vmul.f32 0.5, %v4056_v37  ;;  %v11778_v44 = vld [vmem:[#allocation39_spill] sm:$0xff] }
 0x4cf   : > { %v9592_v52 = vsel %vm3264_vm4, %v6595_v14, %v4072_v45 }
 0x4d0   : > { %v4111_v9 = vmul.f32 %v9592_v52, %v4071_v33 }
 0x4d1   : > { %v6597_v11 = vpop.eup %6596 }
 0x4d2   : > { %v6599_v15 = vpop.eup %6598  ;;  %v4057_v12 = vadd.f32 1.0, %v6597_v11  ;;  %4127 = vrot.lane.b32.xlu0 %v4111_v9, %s6941_s11  ;;  %v11779_v9 = vsel %vm7267_vm2, %v11777_v4, %v11778_v44  ;;  %v11784_v4 = vld [vmem:[#allocation55_spill] sm:$0xff]  ;;  %v11786_v44 = vld [vmem:[#allocation60_spill] sm:$0xff] }
 0x4d3   : > { %v4058_v51 = vadd.f32 1.0, %v6599_v15 }
 0x4d4   : > { %v4073_v57 = vmul.f32 0.5, %v4057_v12  ;;  %v11781_v12 = vld [vmem:[#allocation47_spill] sm:$0xff] }
 0x4d5   : > { %v4074_v34 = vmul.f32 0.5, %v4058_v51 }
 0x4d7   : > { %v9598_v53 = vsel %vm3264_vm4, %v6599_v15, %v4074_v34  ;;  %v11780_v15 = vld [vmem:[#allocation44_spill] sm:$0xff] }
 0x4d8   : > { %v4112_v37 = vmul.f32 %v9598_v53, %v4073_v57  ;;  %v11782_v51 = vsel %vm7380_vm3, %v11780_v15, %v11781_v12  ;;  %v11787_v15 = vld [vmem:[#allocation63_spill] sm:$0xff] }
 0x4da   : > { %4129 = vrot.lane.b32.xlu1 %v4112_v37, %s6941_s11 }
 0x512   : > { %v3920_v45 = vpop.permute.xlu2 %3919 }
 0x513   : > { %6363 = vmatmul.msk.bf16.gmra.mxu2 %vm3349_vm5, %v3920_v45  ;;  %6367 = vmatmul.msk.bf16.gmra.mxu3 %vm3349_vm5, %v3920_v45 }
 0x52e   : > { %v3947_v14 = vpop.f32.mrf.mxu2  ;;  %v3976_v60 = vpop.f32.mrf.mxu3 }
 0x52f   : > { %v3995_v11 = vadd.f32 %v3947_v14, %v11779_v9  ;;  %v3996_v34 = vadd.f32 %v3976_v60, %v11782_v51  ;;  %v11785_v14 = vsel %vm7267_vm2, %v11783_v1, %v11784_v4  ;;  %v11788_v60 = vsel %vm7380_vm3, %v11786_v44, %v11787_v15  ;;  %v11790_v44 = vld [vmem:[#allocation71_spill] sm:$0xff] }
 0x531   : > { %v4011_v37 = vmul.f32 0.5, %v3995_v11  ;;  %v4012_v16 = vmul.f32 0.5, %v3996_v34 }
 0x533   : > { %6600 = vtanh.f32 %v4011_v37  ;;  %v4028_v45 = vsel %vm3264_vm4, %v3996_v34, %v4012_v16 }
 0x534   : > { %6602 = vtanh.f32 %v4028_v45 }
 0x536   : > { %v3949_v20 = vpop.f32.mrf.mxu2  ;;  %v3978_v40 = vpop.f32.mrf.mxu3 }
 0x537   : > { %v3997_v9 = vadd.f32 %v3949_v20, %v11785_v14  ;;  %v3998_v11 = vadd.f32 %v3978_v40, %v11788_v60 }
 0x539   : > { %v6601_v51 = vpop.eup %6600  ;;  %v4013_v37 = vmul.f32 0.5, %v3997_v9  ;;  %v4014_v12 = vmul.f32 0.5, %v3998_v11 }
 0x53a   : > { %v6603_v54 = vpop.eup %6602  ;;  %v4059_v16 = vadd.f32 1.0, %v6601_v51  ;;  %v4103_v51 = vmul.f32 %v4071_v33, %v9446_v36  ;;  %v11792_v33 = vld [vmem:[#allocation76_spill] sm:$0xff]  ;;  %v11793_v36 = vld [vmem:[#allocation79_spill] sm:$0xff] }
 0x53b   : > { %6604 = vtanh.f32 %v4013_v37  ;;  %v4030_v34 = vsel %vm3264_vm4, %v3998_v11, %v4014_v12  ;;  %v4060_v45 = vadd.f32 1.0, %v6603_v54 }
 0x53c   : > { %6606 = vtanh.f32 %v4030_v34  ;;  %v9628_v1 = vmul.f32 0.5, %v4059_v16 }
 0x53d   : > { %v4076_v6 = vmul.f32 0.5, %v4060_v45 }
 0x53f   : > { %v9632_v20 = vsel %vm3264_vm4, %v6603_v54, %v4076_v6  ;;  %v11789_v54 = vld [vmem:[#allocation67_spill] sm:$0xff] }
 0x540   : > { %v4113_v40 = vmul.f32 %v9632_v20, %v9628_v1 }
 0x541   : > { %v6605_v14 = vpop.eup %6604 }
 0x542   : > { %v6607_v9 = vpop.eup %6606  ;;  %v4061_v60 = vadd.f32 1.0, %v6605_v14  ;;  %4131 = vrot.lane.b32.xlu2 %v4113_v40, %s6941_s11  ;;  %v11791_v14 = vsel %vm7267_vm2, %v11789_v54, %v11790_v44  ;;  %v11794_v40 = vsel %vm7380_vm3, %v11792_v33, %v11793_v36 }
 0x543   : > { %v4062_v12 = vadd.f32 1.0, %v6607_v9 }
 0x544   : > { %v4128_v11 = vpop.permute.xlu0 %4127  ;;  %v9640_v34 = vmul.f32 0.5, %v4061_v60 }
 0x545   : > { %v9638_v37 = vadd.f32 %v4128_v11, %v4103_v51  ;;  %v4078_v16 = vmul.f32 0.5, %v4062_v12 }
 0x546   : > { %v3952_v45 = vpop.f32.mrf.mxu2  ;;  %v3981_v6 = vpop.f32.mrf.mxu3 }
 0x547   : > { %6608 = vtanh.f32 %v9638_v37  ;;  %v3999_v15 = vadd.f32 %v3952_v45, %v11791_v14  ;;  %v4000_v51 = vadd.f32 %v3981_v6, %v11794_v40  ;;  %v9655_v60 = vsel %vm3264_vm4, %v6607_v9, %v4078_v16  ;;  %v11795_v9 = vld [vmem:[#allocation102_spill] sm:$0xff] }
 0x548   : > { %v4114_v12 = vmul.f32 %v9655_v60, %v9640_v34  ;;  %v4104_v14 = vmul.f32 %v4073_v57, %v9438_v49  ;;  %v3881_v16 = vmax.f32 %v11795_v9, %v9464_v47  ;;  %v11799_v49 = vld [vmem:[#allocation93_spill] sm:$0xff] }
 0x549   : > { %v4015_v11 = vmul.f32 0.5, %v3999_v15  ;;  %v4016_v4 = vmul.f32 0.5, %v4000_v51 }
 0x54a   : > { %4133 = vrot.lane.b32.xlu0 %v4114_v12, %s6941_s11  ;;  %v11796_v12 = vld [vmem:[#allocation84_spill] sm:$0xff] }
 0x54b   : > { %6610 = vtanh.f32 %v4015_v11  ;;  %v4032_v45 = vsel %vm3264_vm4, %v4000_v51, %v4016_v4  ;;  %v11797_v4 = vld [vmem:[#allocation88_spill] sm:$0xff] }
 0x54c   : > { %6612 = vtanh.f32 %v4032_v45  ;;  %v4130_v33 = vpop.permute.xlu1 %4129  ;;  %v11798_v51 = vsel %vm7267_vm2, %v11796_v12, %v11797_v4  ;;  %v11803_v12 = vld [vmem:[#allocation101_spill] sm:$0xff] }
 0x54d   : > { %v6609_v6 = vpop.eup %6608  ;;  %v9663_v40 = vadd.f32 %v4130_v33, %v4104_v14  ;;  %v11800_v33 = vld [vmem:[#allocation96_spill] sm:$0xff]  ;;  %v3882_v4 = vmax.f32 %v11803_v12, %v9461_v28 }
 0x54e   : > { %v3954_v36 = vpop.f32.mrf.mxu2  ;;  %v3983_v54 = vpop.f32.mrf.mxu3  ;;  %v4167_v15 = vmul.f32 %v6609_v6, %v9592_v52  ;;  %v11801_v11 = vsel %vm7380_vm3, %v11799_v49, %v11800_v33 }
 0x54f   : > { %6614 = vtanh.f32 %v9663_v40  ;;  %v4001_v57 = vadd.f32 %v3954_v36, %v11798_v51  ;;  %v4002_v45 = vadd.f32 %v3983_v54, %v11801_v11 }
 0x550   : > { %v9679_v14 = vmax.f32 %v3881_v16, %v4167_v15 }
 0x551   : > { %v6611_v47 = vpop.eup %6610  ;;  %v4017_v9 = vmul.f32 0.5, %v4001_v57  ;;  %v4018_v44 = vmul.f32 0.5, %v4002_v45 }
 0x552   : > { %11802 = vst [vmem:[#allocation99_spill] sm:$0xff] %v9679_v14  ;;  %v6613_v52 = vpop.eup %6612  ;;  %v4063_v6 = vadd.f32 1.0, %v6611_v47  ;;  %v11856_v14 = vld [vmem:[#allocation126_spill] sm:$0xff] }
 0x553   : > { %6616 = vtanh.f32 %v4017_v9  ;;  %v4034_v29 = vsel %vm3264_vm4, %v4002_v45, %v4018_v44  ;;  %v4064_v62 = vadd.f32 1.0, %v6613_v52 }
 0x554   : > { %6618 = vtanh.f32 %v4034_v29  ;;  %v9685_v49 = vmul.f32 0.5, %v4063_v6  ;;  %v11805_v6 = vsel %vm7267_vm2, %v8912_v55, %v8929_v7 }
 0x555   : > { %v6615_v36 = vpop.eup %6614  ;;  %v4080_v51 = vmul.f32 0.5, %v4064_v62 }
 0x556   : > { %v4168_v54 = vmul.f32 %v6615_v36, %v9598_v53 }
 0x557   : > { %v9690_v16 = vsel %vm3264_vm4, %v6613_v52, %v4080_v51  ;;  %v11806_v51 = vsel %vm7380_vm3, %v9008_v50, %v9025_v3 }
 0x558   : > { %v4115_v57 = vmul.f32 %v9690_v16, %v9685_v49  ;;  %v9694_v11 = vmax.f32 %v3882_v4, %v4168_v54  ;;  %v4199_v9 = vpack.c.bf16 %v4168_v54, %v4167_v15  ;;  %v4105_v54 = vmul.f32 %v9628_v1, %v9497_v46 }
 0x559   : > { %v6617_v44 = vpop.eup %6616 }
 0x55a   : > { %11804 = vst [vmem:[#allocation100_spill] sm:$0xff] %v9694_v11  ;;  %v6619_v29 = vpop.eup %6618  ;;  %v4065_v45 = vadd.f32 1.0, %v6617_v44  ;;  %4135 = vrot.lane.b32.xlu1 %v4115_v57, %s6941_s11 }
 0x55b   : > { %v4066_v62 = vadd.f32 1.0, %v6619_v29 }
 0x55c   : > { %v4081_v12 = vmul.f32 0.5, %v4065_v45 }
 0x55d   : > { %v4082_v28 = vmul.f32 0.5, %v4066_v62 }
 0x55f   : > { %v9699_v53 = vsel %vm3264_vm4, %v6619_v29, %v4082_v28 }
 0x560   : > { %v4116_v47 = vmul.f32 %v9699_v53, %v4081_v12 }
 0x562   : > { %4137 = vrot.lane.b32.xlu2 %v4116_v47, %s6941_s11 }
 0x56a   : > { %4207 = vrot.lane.b32.xlu2 %v4199_v9, %s6941_s11  ;;  %v11807_v9 = vsel %vm7267_vm2, %v9106_v25, %v9103_v2  ;;  %v11832_v25 = vld [vmem:[#allocation65_spill] sm:$0xff]  ;;  %v11833_v2 = vld [vmem:[#allocation64_spill] sm:$0xff] }
 0x596   : > { %v3957_v4 = vpop.f32.mrf.mxu2  ;;  %v3986_v52 = vpop.f32.mrf.mxu3 }
 0x597   : > { %v4003_v36 = vadd.f32 %v3957_v4, %v11805_v6  ;;  %v4004_v57 = vadd.f32 %v3986_v52, %v11806_v51  ;;  %v11808_v52 = vsel %vm7380_vm3, %v9221_v0, %v9235_v13  ;;  %v11830_v13 = vld [vmem:[#allocation53_spill] sm:$0xff] }
 0x599   : > { %v4019_v44 = vmul.f32 0.5, %v4003_v36  ;;  %v4020_v29 = vmul.f32 0.5, %v4004_v57 }
 0x59b   : > { %6620 = vtanh.f32 %v4019_v44  ;;  %v4036_v15 = vsel %vm3264_vm4, %v4004_v57, %v4020_v29 }
 0x59c   : > { %6622 = vtanh.f32 %v4036_v15  ;;  %v4132_v45 = vpop.permute.xlu2 %4131 }
 0x59d   : > { %v9718_v62 = vadd.f32 %v4132_v45, %v4105_v54  ;;  %v3883_v45 = vmax.f32 %v9172_v22, %v9510_v59 }
 0x59e   : > { %v3959_v28 = vpop.f32.mrf.mxu2  ;;  %v3988_v47 = vpop.f32.mrf.mxu3 }
 0x59f   : > { %6624 = vtanh.f32 %v9718_v62  ;;  %v4005_v4 = vadd.f32 %v3959_v28, %v11807_v9  ;;  %v4006_v46 = vadd.f32 %v3988_v47, %v11808_v52 }
 0x5a1   : > { %v6621_v1 = vpop.eup %6620  ;;  %v4021_v6 = vmul.f32 0.5, %v4005_v4  ;;  %v4022_v36 = vmul.f32 0.5, %v4006_v46 }
 0x5a2   : > { %v6623_v51 = vpop.eup %6622  ;;  %v4067_v57 = vadd.f32 1.0, %v6621_v1 }
 0x5a3   : > { %6626 = vtanh.f32 %v4021_v6  ;;  %v4038_v44 = vsel %vm3264_vm4, %v4006_v46, %v4022_v36  ;;  %v4068_v29 = vadd.f32 1.0, %v6623_v51 }
 0x5a4   : > { %6628 = vtanh.f32 %v4038_v44  ;;  %v4083_v28 = vmul.f32 0.5, %v4067_v57 }
 0x5a5   : > { %v6625_v15 = vpop.eup %6624  ;;  %v4084_v54 = vmul.f32 0.5, %v4068_v29 }
 0x5a6   : > { %v4169_v9 = vmul.f32 %v6625_v15, %v9632_v20  ;;  %v4106_v20 = vmul.f32 %v9640_v34, %v9483_v32  ;;  %v3884_v32 = vmax.f32 %v9167_v63, %v9507_v5  ;;  %v3886_v34 = vmax.f32 %v9295_v48, %v9542_v23 }
 0x5a7   : > { %v4100_v47 = vsel %vm3264_vm4, %v6623_v51, %v4084_v54  ;;  %v4108_v51 = vmul.f32 %v4081_v12, %v9524_v30  ;;  %v4107_v63 = vmul.f32 %v9685_v49, %v9531_v58  ;;  %v3885_v23 = vmax.f32 %v9298_v17, %v9539_v56  ;;  %v11809_v17 = vld [vmem:[#allocation82_spill] sm:$0xff] }
 0x5a8   : > { %v4117_v4 = vmul.f32 %v4100_v47, %v4083_v28  ;;  %v9738_v52 = vmax.f32 %v3883_v45, %v4169_v9  ;;  %v3887_v56 = vmax.f32 %v11809_v17, %v9557_v39 }
 0x5a9   : > { %v6627_v1 = vpop.eup %6626 }
 0x5aa   : > { %v6629_v6 = vpop.eup %6628  ;;  %v4069_v0 = vadd.f32 1.0, %v6627_v1  ;;  %4139 = vrot.lane.b32.xlu0 %v4117_v4, %s6941_s11 }
 0x5ab   : > { %v4070_v46 = vadd.f32 1.0, %v6629_v6 }
 0x5ac   : > { %v4085_v44 = vmul.f32 0.5, %v4069_v0 }
 0x5ad   : > { %v4086_v36 = vmul.f32 0.5, %v4070_v46 }
 0x5af   : > { %v4102_v22 = vsel %vm3264_vm4, %v6629_v6, %v4086_v36 }
 0x5b0   : > { %v4118_v59 = vmul.f32 %v4102_v22, %v4085_v44 }
 0x5b2   : > { %4141 = vrot.lane.b32.xlu1 %v4118_v59, %s6941_s11 }
 0x5bc   : > { %v4134_v57 = vpop.permute.xlu0 %4133  ;;  %v4138_v29 = vpop.permute.xlu2 %4137 }
 0x5bd   : > { %v9747_v15 = vadd.f32 %v4134_v57, %v4106_v20  ;;  %v9749_v54 = vadd.f32 %v4138_v29, %v4108_v51  ;;  %v4110_v20 = vmul.f32 %v4085_v44, %v9552_v61  ;;  %v11811_v44 = vld [vmem:[#allocation9_spill] sm:$0xff] }
 0x5bf   : > { %6630 = vtanh.f32 %v9747_v15 }
 0x5c0   : > { %6632 = vtanh.f32 %v9749_v54 }
 0x5c4   : > { %v4208_v0 = vpop.permute.xlu2 %4207 }
 0x5c5   : > { %v6631_v45 = vpop.eup %6630  ;;  %6368 = vmatmul.msk.bf16.vlgmr.msrb.gmra.mxu2 %vm3349_vm5, %v4208_v0  ;;  %6372 = vmatmul.msk.bf16.vlgmr.msra.gmra.mxu3 %vm3349_vm5, %v4208_v0 }
 0x5c6   : > { %v6633_v4 = vpop.eup %6632  ;;  %v4170_v30 = vmul.f32 %v6631_v45, %v9655_v60  ;;  %4819 = vmatpush.bf16.msrb.mxu2 %v7034_v19  ;;  %4848 = vmatpush.bf16.msra.mxu3 %v7070_v31 }
 0x5c7   : > { %v4172_v12 = vmul.f32 %v6633_v4, %v9699_v53 }
 0x5c8   : > { %v9763_v1 = vmax.f32 %v3884_v32, %v4170_v30  ;;  %v4200_v6 = vpack.c.bf16 %v4170_v30, %v4169_v9  ;;  %v4109_v9 = vmul.f32 %v4083_v28, %v9548_v26  ;;  %v11810_v28 = vld [vmem:[#allocation135_spill] sm:$0xff] }
 0x5c9   : > { %v9765_v46 = vmax.f32 %v3886_v34, %v4172_v12  ;;  %v3888_v45 = vmax.f32 %v11810_v28, %v9559_v43  ;;  %v11812_v34 = vld [vmem:[#allocation5_spill] sm:$0xff] }
 0x5ca   : > { %4209 = vrot.lane.b32.xlu0 %v4200_v6, %s6941_s11  ;;  %4820 = vmatpush.bf16.msrb.mxu2 %v7040_v21  ;;  %v11814_v43 = vld [vmem:[#allocation17_spill] sm:$0xff] }
 0x5cb   : > { %4849 = vmatpush.bf16.msra.mxu3 %v7080_v35 }
 0x5cc   : > { %v4136_v5 = vpop.permute.xlu1 %4135 }
 0x5cd   : > { %v9772_v60 = vadd.f32 %v4136_v5, %v4107_v63 }
 0x5ce   : > { %4821 = vmatpush.bf16.msrb.mxu2 %v7049_v24 }
 0x5cf   : > { %6634 = vtanh.f32 %v9772_v60  ;;  %4850 = vmatpush.bf16.msra.mxu3 %v7090_v38 }
 0x5d2   : > { %4822 = vmatpush.bf16.msrb.mxu2 %v7058_v27 }
 0x5d3   : > { %4851 = vmatpush.bf16.msra.mxu3 %v7100_v41 }
 0x5d5   : > { %v6635_v48 = vpop.eup %6634 }
 0x5d6   : > { %v4171_v58 = vmul.f32 %v6635_v48, %v9690_v16 }
 0x5d8   : > { %v9782_v49 = vmax.f32 %v3885_v23, %v4171_v58  ;;  %v4201_v53 = vpack.c.bf16 %v4172_v12, %v4171_v58  ;;  %v11813_v12 = vsel %vm7267_vm2, %v11811_v44, %v11812_v34 }
 0x5da   : > { %4211 = vrot.lane.b32.xlu1 %v4201_v53, %s6941_s11 }
 0x61c   : > { %v4140_v36 = vpop.permute.xlu0 %4139 }
 0x61d   : > { %v9786_v59 = vadd.f32 %v4140_v36, %v4109_v9 }
 0x61f   : > { %6636 = vtanh.f32 %v9786_v59 }
 0x624   : > { %v4142_v51 = vpop.permute.xlu1 %4141 }
 0x625   : > { %v6637_v57 = vpop.eup %6636  ;;  %v9790_v29 = vadd.f32 %v4142_v51, %v4110_v20  ;;  %v11817_v20 = vld [vmem:[#allocation25_spill] sm:$0xff] }
 0x626   : > { %v4173_v16 = vmul.f32 %v6637_v57, %v4100_v47  ;;  %v11818_v51 = vld [vmem:[#allocation21_spill] sm:$0xff] }
 0x627   : > { %6638 = vtanh.f32 %v9790_v29  ;;  %v11819_v57 = vsel %vm7267_vm2, %v11817_v20, %v11818_v51 }
 0x628   : > { %v9795_v0 = vmax.f32 %v3887_v56, %v4173_v16  ;;  %v11820_v56 = vld [vmem:[#allocation33_spill] sm:$0xff] }
 0x62d   : > { %v6639_v26 = vpop.eup %6638 }
 0x62e   : > { %v4174_v4 = vmul.f32 %v6639_v26, %v4102_v22  ;;  %v11815_v22 = vld [vmem:[#allocation16_spill] sm:$0xff] }
 0x62f   : > { %v11816_v63 = vsel %vm7380_vm3, %v11814_v43, %v11815_v22 }
 0x630   : > { %v4202_v32 = vpack.c.bf16 %v4174_v4, %v4173_v16  ;;  %v9799_v30 = vmax.f32 %v3888_v45, %v4174_v4  ;;  %v11821_v16 = vld [vmem:[#allocation32_spill] sm:$0xff] }
 0x631   : > { %v11822_v26 = vsel %vm7380_vm3, %v11820_v56, %v11821_v16 }
 0x632   : > { %4213 = vrot.lane.b32.xlu2 %v4202_v32, %s6941_s11 }
 0x63c   : > { %v4210_v61 = vpop.permute.xlu0 %4209 }
 0x63d   : > { %6369 = vmatmul.msk.bf16.gmra.mxu2 %vm3349_vm5, %v4210_v61  ;;  %6373 = vmatmul.msk.bf16.gmra.mxu3 %vm3349_vm5, %v4210_v61 }
 0x648   : > { %v4236_v39 = vpop.f32.mrf.mxu2  ;;  %v4265_v47 = vpop.f32.mrf.mxu3 }
 0x649   : > { %v4285_v6 = vadd.f32 %v4236_v39, %v11813_v12  ;;  %v4286_v5 = vadd.f32 %v4265_v47, %v11816_v63 }
 0x64b   : > { %v4301_v48 = vmul.f32 0.5, %v4285_v6  ;;  %v4302_v23 = vmul.f32 0.5, %v4286_v5 }
 0x64c   : > { %v4212_v58 = vpop.permute.xlu1 %4211 }
 0x64d   : > { %6640 = vtanh.f32 %v4301_v48  ;;  %v4318_v53 = vsel %vm3264_vm4, %v4286_v5, %v4302_v23  ;;  %6370 = vmatmul.msk.bf16.gmra.mxu2 %vm3349_vm5, %v4212_v58  ;;  %6374 = vmatmul.msk.bf16.gmra.mxu3 %vm3349_vm5, %v4212_v58 }
 0x64e   : > { %6642 = vtanh.f32 %v4318_v53 }
 0x650   : > { %v4238_v9 = vpop.f32.mrf.mxu2  ;;  %v4267_v36 = vpop.f32.mrf.mxu3 }
 0x651   : > { %v4287_v17 = vadd.f32 %v4238_v9, %v11819_v57  ;;  %v4288_v28 = vadd.f32 %v4267_v36, %v11822_v26 }
 0x653   : > { %v6641_v45 = vpop.eup %6640  ;;  %v4303_v4 = vmul.f32 0.5, %v4287_v17  ;;  %v4304_v32 = vmul.f32 0.5, %v4288_v28 }
 0x654   : > { %v6643_v61 = vpop.eup %6642  ;;  %v4349_v39 = vadd.f32 1.0, %v6641_v45 }
 0x655   : > { %6644 = vtanh.f32 %v4303_v4  ;;  %v4320_v47 = vsel %vm3264_vm4, %v4288_v28, %v4304_v32  ;;  %v4350_v12 = vadd.f32 1.0, %v6643_v61  ;;  %v11823_v32 = vld [vmem:[#allocation41_spill] sm:$0xff] }
 0x656   : > { %6646 = vtanh.f32 %v4320_v47  ;;  %v4365_v63 = vmul.f32 0.5, %v4349_v39 }
 0x657   : > { %v4366_v6 = vmul.f32 0.5, %v4350_v12  ;;  %v11826_v12 = vld [vmem:[#allocation49_spill] sm:$0xff] }
 0x659   : > { %v9832_v5 = vsel %vm3264_vm4, %v6643_v61, %v4366_v6  ;;  %v11824_v61 = vld [vmem:[#allocation37_spill] sm:$0xff]  ;;  %v11827_v6 = vld [vmem:[#allocation48_spill] sm:$0xff] }
 0x65a   : > { %v4405_v48 = vmul.f32 %v9832_v5, %v4365_v63  ;;  %v11825_v39 = vsel %vm7267_vm2, %v11823_v32, %v11824_v61 }
 0x65b   : > { %v6645_v23 = vpop.eup %6644 }
 0x65c   : > { %v6647_v58 = vpop.eup %6646  ;;  %v4351_v53 = vadd.f32 1.0, %v6645_v23  ;;  %4421 = vrot.lane.b32.xlu0 %v4405_v48, %s6941_s11  ;;  %v11828_v48 = vsel %vm7380_vm3, %v11826_v12, %v11827_v6 }
 0x65d   : > { %v4352_v9 = vadd.f32 1.0, %v6647_v58 }
 0x65e   : > { %v4367_v57 = vmul.f32 0.5, %v4351_v53 }
 0x65f   : > { %v4368_v36 = vmul.f32 0.5, %v4352_v9 }
 0x661   : > { %v9838_v17 = vsel %vm3264_vm4, %v6647_v58, %v4368_v36 }
 0x662   : > { %v4406_v26 = vmul.f32 %v9838_v17, %v4367_v57 }
 0x664   : > { %4423 = vrot.lane.b32.xlu1 %v4406_v26, %s6941_s11 }
 0x68c   : > { %v4214_v28 = vpop.permute.xlu2 %4213 }
 0x68d   : > { %6371 = vmatmul.msk.bf16.gmra.mxu2 %vm3349_vm5, %v4214_v28  ;;  %6375 = vmatmul.msk.bf16.gmra.mxu3 %vm3349_vm5, %v4214_v28  ;;  %v11829_v28 = vld [vmem:[#allocation57_spill] sm:$0xff] }
 0x6c0   : > { %v4241_v45 = vpop.f32.mrf.mxu2  ;;  %v4270_v4 = vpop.f32.mrf.mxu3 }
 0x6c1   : > { %v4289_v47 = vadd.f32 %v4241_v45, %v11825_v39  ;;  %v4290_v23 = vadd.f32 %v4270_v4, %v11828_v48  ;;  %v11831_v45 = vsel %vm7267_vm2, %v11829_v28, %v11830_v13  ;;  %v11834_v4 = vsel %vm7380_vm3, %v11832_v25, %v11833_v2 }
 0x6c3   : > { %v4305_v58 = vmul.f32 0.5, %v4289_v47  ;;  %v4306_v53 = vmul.f32 0.5, %v4290_v23 }
 0x6c5   : > { %6648 = vtanh.f32 %v4305_v58  ;;  %v4322_v9 = vsel %vm3264_vm4, %v4290_v23, %v4306_v53 }
 0x6c6   : > { %6650 = vtanh.f32 %v4322_v9  ;;  %v4397_v9 = vmul.f32 %v4365_v63, %v9638_v37  ;;  %v11838_v37 = vld [vmem:[#allocation81_spill] sm:$0xff]  ;;  %v11839_v63 = vld [vmem:[#allocation80_spill] sm:$0xff] }
 0x6c8   : > { %v4243_v36 = vpop.f32.mrf.mxu2  ;;  %v4272_v26 = vpop.f32.mrf.mxu3 }
 0x6c9   : > { %v4291_v39 = vadd.f32 %v4243_v36, %v11831_v45  ;;  %v4292_v47 = vadd.f32 %v4272_v26, %v11834_v4 }
 0x6cb   : > { %v6649_v48 = vpop.eup %6648  ;;  %v4307_v58 = vmul.f32 0.5, %v4291_v39  ;;  %v4308_v50 = vmul.f32 0.5, %v4292_v47  ;;  %v11835_v39 = vld [vmem:[#allocation73_spill] sm:$0xff] }
 0x6cc   : > { %v6651_v3 = vpop.eup %6650  ;;  %v4353_v23 = vadd.f32 1.0, %v6649_v48  ;;  %v11836_v48 = vld [vmem:[#allocation69_spill] sm:$0xff] }
 0x6cd   : > { %6652 = vtanh.f32 %v4307_v58  ;;  %v4324_v53 = vsel %vm3264_vm4, %v4292_v47, %v4308_v50  ;;  %v4354_v55 = vadd.f32 1.0, %v6651_v3  ;;  %v11837_v58 = vsel %vm7267_vm2, %v11835_v39, %v11836_v48 }
 0x6ce   : > { %6654 = vtanh.f32 %v4324_v53  ;;  %v4422_v36 = vpop.permute.xlu0 %4421  ;;  %v9871_v33 = vmul.f32 0.5, %v4353_v23  ;;  %v11840_v47 = vsel %vm7380_vm3, %v11838_v37, %v11839_v63 }
 0x6cf   : > { %v9869_v45 = vadd.f32 %v4422_v36, %v4397_v9  ;;  %v4370_v7 = vmul.f32 0.5, %v4354_v55 }
 0x6d0   : > { %v4246_v26 = vpop.f32.mrf.mxu2  ;;  %v4275_v4 = vpop.f32.mrf.mxu3 }
 0x6d1   : > { %6656 = vtanh.f32 %v9869_v45  ;;  %v4293_v50 = vadd.f32 %v4246_v26, %v11837_v58  ;;  %v4294_v53 = vadd.f32 %v4275_v4, %v11840_v47  ;;  %v9886_v55 = vsel %vm3264_vm4, %v6651_v3, %v4370_v7 }
 0x6d2   : > { %v4407_v23 = vmul.f32 %v9886_v55, %v9871_v33  ;;  %v4398_v4 = vmul.f32 %v4367_v57, %v9663_v40  ;;  %v11844_v40 = vld [vmem:[#allocation86_spill] sm:$0xff] }
 0x6d3   : > { %v6653_v9 = vpop.eup %6652  ;;  %v4309_v36 = vmul.f32 0.5, %v4293_v50  ;;  %v4310_v8 = vmul.f32 0.5, %v4294_v53 }
 0x6d4   : > { %v6655_v25 = vpop.eup %6654  ;;  %v4355_v2 = vadd.f32 1.0, %v6653_v9  ;;  %4425 = vrot.lane.b32.xlu2 %v4407_v23, %s6941_s11  ;;  %v11846_v23 = vld [vmem:[#allocation98_spill] sm:$0xff] }
 0x6d5   : > { %6658 = vtanh.f32 %v4309_v36  ;;  %v4326_v26 = vsel %vm3264_vm4, %v4294_v53, %v4310_v8  ;;  %v4356_v58 = vadd.f32 1.0, %v6655_v25  ;;  %v11843_v8 = vld [vmem:[#allocation90_spill] sm:$0xff]  ;;  %v11847_v36 = vld [vmem:[#allocation97_spill] sm:$0xff] }
 0x6d6   : > { %6660 = vtanh.f32 %v4326_v26  ;;  %v4424_v7 = vpop.permute.xlu1 %4423  ;;  %v9896_v63 = vmul.f32 0.5, %v4355_v2  ;;  %v11845_v57 = vsel %vm7267_vm2, %v11843_v8, %v11844_v40  ;;  %v11848_v26 = vsel %vm7380_vm3, %v11846_v23, %v11847_v36 }
 0x6d7   : > { %v6657_v3 = vpop.eup %6656  ;;  %v9894_v47 = vadd.f32 %v4424_v7, %v4398_v4  ;;  %v4372_v37 = vmul.f32 0.5, %v4356_v58 }
 0x6d8   : > { %v4248_v50 = vpop.f32.mrf.mxu2  ;;  %v4277_v39 = vpop.f32.mrf.mxu3  ;;  %v9899_v9 = vmul.f32 %v6657_v3, %v9832_v5 }
 0x6d9   : > { %11841 = vst [vmem:[#allocation102_spill] sm:$0xff] %v9894_v47  ;;  %6662 = vtanh.f32 %v9894_v47  ;;  %v4295_v53 = vadd.f32 %v4248_v50, %v11845_v57  ;;  %v4296_v2 = vadd.f32 %v4277_v39, %v11848_v26  ;;  %v9914_v4 = vsel %vm3264_vm4, %v6655_v25, %v4372_v37 }
 0x6da   : > { %11842 = vst [vmem:[#allocation101_spill] sm:$0xff] %v9899_v9  ;;  %v4408_v5 = vmul.f32 %v9914_v4, %v9896_v63 }
 0x6db   : > { %v6659_v7 = vpop.eup %6658  ;;  %v4311_v3 = vmul.f32 0.5, %v4295_v53  ;;  %v4312_v8 = vmul.f32 0.5, %v4296_v2 }
 0x6dc   : > { %v6661_v50 = vpop.eup %6660  ;;  %v4357_v57 = vadd.f32 1.0, %v6659_v7  ;;  %4427 = vrot.lane.b32.xlu0 %v4408_v5, %s6941_s11 }
 0x6dd   : > { %6664 = vtanh.f32 %v4311_v3  ;;  %v4328_v39 = vsel %vm3264_vm4, %v4296_v2, %v4312_v8  ;;  %v4358_v26 = vadd.f32 1.0, %v6661_v50 }
 0x6de   : > { %6666 = vtanh.f32 %v4328_v39  ;;  %v9923_v23 = vmul.f32 0.5, %v4357_v57 }
 0x6df   : > { %v6663_v25 = vpop.eup %6662  ;;  %v4374_v37 = vmul.f32 0.5, %v4358_v26 }
 0x6e0   : > { %v9926_v36 = vmul.f32 %v6663_v25, %v9838_v17 }
 0x6e1   : > { %v9930_v53 = vsel %vm3264_vm4, %v6661_v50, %v4374_v37 }
 0x6e2   : > { %11849 = vst [vmem:[#allocation82_spill] sm:$0xff] %v9926_v36  ;;  %v4409_v5 = vmul.f32 %v9930_v53, %v9923_v23  ;;  %v4493_v50 = vpack.c.bf16 %v9926_v36, %v9899_v9 }
 0x6e3   : > { %v6665_v8 = vpop.eup %6664 }
 0x6e4   : > { %v6667_v2 = vpop.eup %6666  ;;  %v4359_v3 = vadd.f32 1.0, %v6665_v8  ;;  %4429 = vrot.lane.b32.xlu1 %v4409_v5, %s6941_s11  ;;  %v11850_v8 = vld [vmem:[#allocation110_spill] sm:$0xff] }
 0x6e5   : > { %v4360_v57 = vadd.f32 1.0, %v6667_v2  ;;  %v11851_v5 = vld [vmem:[#allocation106_spill] sm:$0xff] }
 0x6e6   : > { %v4375_v26 = vmul.f32 0.5, %v4359_v3  ;;  %v11852_v58 = vsel %vm7267_vm2, %v11850_v8, %v11851_v5  ;;  %v11853_v3 = vld [vmem:[#allocation118_spill] sm:$0xff]  ;;  %v11857_v8 = vld [vmem:[#allocation125_spill] sm:$0xff] }
 0x6e7   : > { %v4376_v39 = vmul.f32 0.5, %v4360_v57  ;;  %v11859_v5 = vld [vmem:[#allocation133_spill] sm:$0xff] }
 0x6e9   : > { %v4392_v17 = vsel %vm3264_vm4, %v6667_v2, %v4376_v39  ;;  %v11854_v2 = vld [vmem:[#allocation117_spill] sm:$0xff] }
 0x6ea   : > { %v4410_v25 = vmul.f32 %v4392_v17, %v4375_v26  ;;  %v11855_v39 = vsel %vm7380_vm3, %v11853_v3, %v11854_v2  ;;  %v11860_v3 = vld [vmem:[#allocation129_spill] sm:$0xff] }
 0x6ec   : > { %4431 = vrot.lane.b32.xlu2 %v4410_v25, %s6941_s11 }
 0x6f4   : > { %4501 = vrot.lane.b32.xlu2 %v4493_v50, %s6941_s11 }
 0x710   : > { %v4251_v37 = vpop.f32.mrf.mxu2  ;;  %v4280_v7 = vpop.f32.mrf.mxu3 }
 0x711   : > { %v4297_v57 = vadd.f32 %v4251_v37, %v11852_v58  ;;  %v4298_v11 = vadd.f32 %v4280_v7, %v11855_v39  ;;  %v11858_v58 = vsel %vm7267_vm2, %v11856_v14, %v11857_v8  ;;  %v11861_v7 = vsel %vm7380_vm3, %v11859_v5, %v11860_v3 }
 0x713   : > { %v4313_v25 = vmul.f32 0.5, %v4297_v57  ;;  %v4314_v40 = vmul.f32 0.5, %v4298_v11 }
 0x715   : > { %6668 = vtanh.f32 %v4313_v25  ;;  %v4330_v50 = vsel %vm3264_vm4, %v4298_v11, %v4314_v40 }
 0x716   : > { %6670 = vtanh.f32 %v4330_v50 }
 0x718   : > { %v4253_v36 = vpop.f32.mrf.mxu2  ;;  %v4282_v9 = vpop.f32.mrf.mxu3 }
 0x719   : > { %v4299_v37 = vadd.f32 %v4253_v36, %v11858_v58  ;;  %v4300_v57 = vadd.f32 %v4282_v9, %v11861_v7 }
 0x71b   : > { %v6669_v39 = vpop.eup %6668  ;;  %v4315_v25 = vmul.f32 0.5, %v4299_v37  ;;  %v4316_v2 = vmul.f32 0.5, %v4300_v57 }
 0x71c   : > { %v6671_v48 = vpop.eup %6670  ;;  %v4361_v11 = vadd.f32 1.0, %v6669_v39 }
 0x71d   : > { %6672 = vtanh.f32 %v4315_v25  ;;  %v4332_v40 = vsel %vm3264_vm4, %v4300_v57, %v4316_v2  ;;  %v4362_v50 = vadd.f32 1.0, %v6671_v48 }
 0x71e   : > { %6674 = vtanh.f32 %v4332_v40  ;;  %v4377_v14 = vmul.f32 0.5, %v4361_v11 }
 0x71f   : > { %v4378_v47 = vmul.f32 0.5, %v4362_v50 }
 0x721   : > { %v9969_v36 = vsel %vm3264_vm4, %v6671_v48, %v4378_v47  ;;  %v4399_v48 = vmul.f32 %v9871_v33, %v9718_v62  ;;  %v4400_v33 = vmul.f32 %v9896_v63, %v9747_v15 }
 0x722   : > { %v4411_v58 = vmul.f32 %v9969_v36, %v4377_v14 }
 0x723   : > { %v6673_v9 = vpop.eup %6672 }
 0x724   : > { %v6675_v7 = vpop.eup %6674  ;;  %v4363_v37 = vadd.f32 1.0, %v6673_v9  ;;  %4433 = vrot.lane.b32.xlu0 %v4411_v58, %s6941_s11  ;;  %v4402_v9 = vmul.f32 %v4375_v26, %v9749_v54  ;;  %v4401_v54 = vmul.f32 %v9923_v23, %v9772_v60 }
 0x725   : > { %v4364_v39 = vadd.f32 1.0, %v6675_v7 }
 0x726   : > { %v4379_v5 = vmul.f32 0.5, %v4363_v37 }
 0x727   : > { %v4380_v25 = vmul.f32 0.5, %v4364_v39 }
 0x729   : > { %v4396_v2 = vsel %vm3264_vm4, %v6675_v7, %v4380_v25 }
 0x72a   : > { %v4412_v57 = vmul.f32 %v4396_v2, %v4379_v5 }
 0x72c   : > { %4435 = vrot.lane.b32.xlu1 %v4412_v57, %s6941_s11 }
 0x72e   : > { %v4426_v47 = vpop.permute.xlu2 %4425 }
 0x72f   : > { %v9978_v11 = vadd.f32 %v4426_v47, %v4399_v48 }
 0x731   : > { %6676 = vtanh.f32 %v9978_v11 }
 0x737   : > { %v6677_v40 = vpop.eup %6676 }
 0x738   : > { %v9982_v50 = vmul.f32 %v6677_v40, %v9886_v55 }
 0x73a   : > { %v4471_v58 = vmax.f32 %v9738_v52, %v9982_v50 }
 0x746   : > { %v4432_v7 = vpop.permute.xlu2 %4431 }
 0x747   : > { %v9987_v37 = vadd.f32 %v4432_v7, %v4402_v9  ;;  %v4403_v7 = vmul.f32 %v4377_v14, %v9786_v59 }
 0x749   : > { %6678 = vtanh.f32 %v9987_v37 }
 0x74e   : > { %v4428_v62 = vpop.permute.xlu0 %4427  ;;  %v4502_v39 = vpop.permute.xlu2 %4501 }
 0x74f   : > { %v6679_v25 = vpop.eup %6678  ;;  %v9992_v57 = vadd.f32 %v4428_v62, %v4400_v33  ;;  %6376 = vmatmul.msk.bf16.vlgmr.msra.gmra.mxu2 %vm3349_vm5, %v4502_v39  ;;  %6380 = vmatmul.msk.bf16.vlgmr.msrb.gmra.mxu3 %vm3349_vm5, %v4502_v39  ;;  %v4404_v39 = vmul.f32 %v4379_v5, %v9790_v29 }
 0x750   : > { %v9996_v55 = vmul.f32 %v6679_v25, %v4392_v17  ;;  %5113 = vmatpush.bf16.msra.mxu2 %v7034_v19  ;;  %5142 = vmatpush.bf16.msrb.mxu3 %v7070_v31 }
 0x751   : > { %6680 = vtanh.f32 %v9992_v57 }
 0x752   : > { %v4474_v15 = vmax.f32 %v9765_v46, %v9996_v55 }
 0x754   : > { %5114 = vmatpush.bf16.msra.mxu2 %v7040_v21  ;;  %5143 = vmatpush.bf16.msrb.mxu3 %v7080_v35 }
 0x756   : > { %v4430_v63 = vpop.permute.xlu1 %4429 }
 0x757   : > { %v6681_v26 = vpop.eup %6680  ;;  %v10007_v17 = vadd.f32 %v4430_v63, %v4401_v54 }
 0x758   : > { %v10010_v48 = vmul.f32 %v6681_v26, %v9914_v4  ;;  %5115 = vmatpush.bf16.msra.mxu2 %v7049_v24  ;;  %5144 = vmatpush.bf16.msrb.mxu3 %v7090_v38 }
 0x759   : > { %6682 = vtanh.f32 %v10007_v17 }
 0x75a   : > { %v4472_v47 = vmax.f32 %v9763_v1, %v10010_v48  ;;  %v4494_v40 = vpack.c.bf16 %v10010_v48, %v9982_v50 }
 0x75c   : > { %4503 = vrot.lane.b32.xlu0 %v4494_v40, %s6941_s11  ;;  %5116 = vmatpush.bf16.msra.mxu2 %v7058_v27 }
 0x75d   : > { %5145 = vmatpush.bf16.msrb.mxu3 %v7100_v41 }
 0x75f   : > { %v6683_v60 = vpop.eup %6682 }
 0x760   : > { %v10023_v23 = vmul.f32 %v6683_v60, %v9930_v53 }
 0x762   : > { %v4473_v4 = vmax.f32 %v9782_v49, %v10023_v23  ;;  %v4495_v9 = vpack.c.bf16 %v9996_v55, %v10023_v23 }
 0x764   : > { %4505 = vrot.lane.b32.xlu1 %v4495_v9, %s6941_s11 }
 0x796   : > { %v4434_v33 = vpop.permute.xlu0 %4433 }
 0x797   : > { %v10031_v62 = vadd.f32 %v4434_v33, %v4403_v7  ;;  %v11863_v7 = vsel %vm7380_vm3, %v11815_v22, %v11814_v43  ;;  %v11865_v43 = vsel %vm7380_vm3, %v11821_v16, %v11820_v56 }
 0x799   : > { %6684 = vtanh.f32 %v10031_v62 }
 0x79e   : > { %v4436_v25 = vpop.permute.xlu1 %4435 }
 0x79f   : > { %v6685_v53 = vpop.eup %6684  ;;  %v10035_v54 = vadd.f32 %v4436_v25, %v4404_v39 }
 0x7a0   : > { %v10038_v63 = vmul.f32 %v6685_v53, %v9969_v36 }
 0x7a1   : > { %6686 = vtanh.f32 %v10035_v54 }
 0x7a2   : > { %v4475_v26 = vmax.f32 %v9795_v0, %v10038_v63  ;;  %v11902_v0 = vld [vmem:[#allocation7_spill] sm:$0xff] }
 0x7a7   : > { %v6687_v14 = vpop.eup %6686 }
 0x7a8   : > { %v10043_v59 = vmul.f32 %v6687_v14, %v4396_v2  ;;  %v11862_v2 = vsel %vm7267_vm2, %v11812_v34, %v11811_v44  ;;  %v11864_v44 = vsel %vm7267_vm2, %v11818_v51, %v11817_v20 }
 0x7aa   : > { %v4496_v40 = vpack.c.bf16 %v10043_v59, %v10038_v63  ;;  %v11903_v63 = vld [vmem:[#allocation3_spill] sm:$0xff] }
 0x7ac   : > { %4507 = vrot.lane.b32.xlu2 %v4496_v40, %s6941_s11 }
 0x7ce   : > { %v4504_v5 = vpop.permute.xlu0 %4503 }
 0x7cf   : > { %6377 = vmatmul.msk.bf16.gmra.mxu2 %vm3349_vm5, %v4504_v5  ;;  %6381 = vmatmul.msk.bf16.gmra.mxu3 %vm3349_vm5, %v4504_v5 }
 0x7d2   : > { %v4530_v36 = vpop.f32.mrf.mxu2  ;;  %v4559_v60 = vpop.f32.mrf.mxu3 }
 0x7d3   : > { %v4579_v9 = vadd.f32 %v4530_v36, %v11862_v2  ;;  %v4580_v33 = vadd.f32 %v4559_v60, %v11863_v7 }
 0x7d5   : > { %v4595_v39 = vmul.f32 0.5, %v4579_v9  ;;  %v4596_v25 = vmul.f32 0.5, %v4580_v33 }
 0x7d6   : > { %v4506_v7 = vpop.permute.xlu1 %4505 }
 0x7d7   : > { %6688 = vtanh.f32 %v4595_v39  ;;  %v4612_v53 = vsel %vm3264_vm4, %v4580_v33, %v4596_v25 }
 0x7d8   : > { %6690 = vtanh.f32 %v4612_v53 }
 0x7da   : > { %v4532_v14 = vpop.f32.mrf.mxu2  ;;  %v4561_v40 = vpop.f32.mrf.mxu3 }
 0x7db   : > { %v4581_v34 = vadd.f32 %v4532_v14, %v11864_v44  ;;  %v4582_v22 = vadd.f32 %v4561_v40, %v11865_v43 }
 0x7dd   : > { %v6689_v5 = vpop.eup %6688  ;;  %v4597_v36 = vmul.f32 0.5, %v4581_v34  ;;  %v4598_v60 = vmul.f32 0.5, %v4582_v22 }
 0x7de   : > { %v6691_v2 = vpop.eup %6690  ;;  %v4643_v9 = vadd.f32 1.0, %v6689_v5 }
 0x7df   : > { %6692 = vtanh.f32 %v4597_v36  ;;  %v4614_v33 = vsel %vm3264_vm4, %v4582_v22, %v4598_v60  ;;  %6378 = vmatmul.msk.bf16.gmra.mxu2 %vm3349_vm5, %v4506_v7  ;;  %6382 = vmatmul.msk.bf16.gmra.mxu3 %vm3349_vm5, %v4506_v7  ;;  %v4644_v20 = vadd.f32 1.0, %v6691_v2  ;;  %v11867_v7 = vsel %vm7380_vm3, %v11827_v6, %v11826_v12 }
 0x7e0   : > { %6694 = vtanh.f32 %v4614_v33  ;;  %v4659_v39 = vmul.f32 0.5, %v4643_v9  ;;  %v11868_v12 = vsel %vm7267_vm2, %v11830_v13, %v11829_v28 }
 0x7e1   : > { %v4660_v51 = vmul.f32 0.5, %v4644_v20 }
 0x7e3   : > { %v4676_v56 = vsel %vm3264_vm4, %v6691_v2, %v4660_v51  ;;  %v11866_v2 = vsel %vm7267_vm2, %v11824_v61, %v11823_v32 }
 0x7e4   : > { %v4699_v16 = vmul.f32 %v4676_v56, %v4659_v39 }
 0x7e5   : > { %v6693_v25 = vpop.eup %6692 }
 0x7e6   : > { %v6695_v53 = vpop.eup %6694  ;;  %v4645_v14 = vadd.f32 1.0, %v6693_v25  ;;  %4715 = vrot.lane.b32.xlu0 %v4699_v16, %s6941_s11  ;;  %v4691_v25 = vmul.f32 %v4659_v39, %v9869_v45 }
 0x7e7   : > { %v4646_v40 = vadd.f32 1.0, %v6695_v53 }
 0x7e8   : > { %v4661_v34 = vmul.f32 0.5, %v4645_v14 }
 0x7e9   : > { %v4662_v44 = vmul.f32 0.5, %v4646_v40  ;;  %v11869_v40 = vld [vmem:[#allocation64_spill] sm:$0xff] }
 0x7eb   : > { %v4678_v43 = vsel %vm3264_vm4, %v6695_v53, %v4662_v44  ;;  %v11870_v44 = vld [vmem:[#allocation65_spill] sm:$0xff] }
 0x7ec   : > { %v4700_v22 = vmul.f32 %v4678_v43, %v4661_v34 }
 0x7ee   : > { %4717 = vrot.lane.b32.xlu1 %v4700_v22, %s6941_s11  ;;  %v11871_v22 = vsel %vm7380_vm3, %v11869_v40, %v11870_v44  ;;  %v11876_v44 = vld [vmem:[#allocation80_spill] sm:$0xff] }
 0x806   : > { %v4508_v5 = vpop.permute.xlu2 %4507 }
 0x807   : > { %6379 = vmatmul.msk.bf16.gmra.mxu2 %vm3349_vm5, %v4508_v5  ;;  %6383 = vmatmul.msk.bf16.gmra.mxu3 %vm3349_vm5, %v4508_v5 }
 0x852   : > { %v4535_v36 = vpop.f32.mrf.mxu2  ;;  %v4564_v60 = vpop.f32.mrf.mxu3 }
 0x853   : > { %v4583_v9 = vadd.f32 %v4535_v36, %v11866_v2  ;;  %v4584_v33 = vadd.f32 %v4564_v60, %v11867_v7  ;;  %v11872_v7 = vld [vmem:[#allocation102_spill] sm:$0xff] }
 0x855   : > { %v4599_v20 = vmul.f32 0.5, %v4583_v9  ;;  %v4600_v51 = vmul.f32 0.5, %v4584_v33 }
 0x857   : > { %6696 = vtanh.f32 %v4599_v20  ;;  %v4616_v16 = vsel %vm3264_vm4, %v4584_v33, %v4600_v51  ;;  %v4692_v33 = vmul.f32 %v4661_v34, %v11872_v7 }
 0x858   : > { %6698 = vtanh.f32 %v4616_v16  ;;  %v4716_v53 = vpop.permute.xlu0 %4715 }
 0x859   : > { %v10099_v14 = vadd.f32 %v4716_v53, %v4691_v25 }
 0x85a   : > { %v4537_v32 = vpop.f32.mrf.mxu2  ;;  %v4566_v61 = vpop.f32.mrf.mxu3 }
 0x85b   : > { %6700 = vtanh.f32 %v10099_v14  ;;  %v4585_v6 = vadd.f32 %v4537_v32, %v11868_v12  ;;  %v4586_v45 = vadd.f32 %v4566_v61, %v11871_v22  ;;  %v11873_v12 = vld [vmem:[#allocation69_spill] sm:$0xff] }
 0x85c   : > { %v11877_v22 = vld [vmem:[#allocation81_spill] sm:$0xff] }
 0x85d   : > { %v6697_v39 = vpop.eup %6696  ;;  %v4601_v5 = vmul.f32 0.5, %v4585_v6  ;;  %v4602_v36 = vmul.f32 0.5, %v4586_v45  ;;  %v11874_v6 = vld [vmem:[#allocation73_spill] sm:$0xff] }
 0x85e   : > { %v6699_v60 = vpop.eup %6698  ;;  %v4647_v2 = vadd.f32 1.0, %v6697_v39  ;;  %v11875_v40 = vsel %vm7267_vm2, %v11873_v12, %v11874_v6 }
 0x85f   : > { %6702 = vtanh.f32 %v4601_v5  ;;  %v4618_v9 = vsel %vm3264_vm4, %v4586_v45, %v4602_v36  ;;  %v4648_v20 = vadd.f32 1.0, %v6699_v60  ;;  %v11878_v45 = vsel %vm7380_vm3, %v11876_v44, %v11877_v22  ;;  %v11879_v36 = vld [vmem:[#allocation99_spill] sm:$0xff] }
 0x860   : > { %6704 = vtanh.f32 %v4618_v9  ;;  %v4718_v13 = vpop.permute.xlu1 %4717  ;;  %v10117_v25 = vmul.f32 0.5, %v4647_v2  ;;  %v11880_v2 = vld [vmem:[#allocation101_spill] sm:$0xff] }
 0x861   : > { %v6701_v28 = vpop.eup %6700  ;;  %v10115_v51 = vadd.f32 %v4718_v13, %v4692_v33  ;;  %v4664_v16 = vmul.f32 0.5, %v4648_v20  ;;  %v11881_v9 = vmax.f32 %v11879_v36, %v11880_v2 }
 0x862   : > { %v4540_v53 = vpop.f32.mrf.mxu2  ;;  %v4569_v32 = vpop.f32.mrf.mxu3  ;;  %v4755_v61 = vmul.f32 %v6701_v28, %v4676_v56 }
 0x863   : > { %6706 = vtanh.f32 %v10115_v51  ;;  %v4587_v34 = vadd.f32 %v4540_v53, %v11875_v40  ;;  %v4588_v39 = vadd.f32 %v4569_v32, %v11878_v45  ;;  %v10132_v5 = vsel %vm3264_vm4, %v6699_v60, %v4664_v16  ;;  %v11883_v45 = vld [vmem:[#allocation90_spill] sm:$0xff] }
 0x864   : > { %v4701_v56 = vmul.f32 %v10132_v5, %v10117_v25  ;;  %v10139_v7 = vmax.f32 %v11881_v9, %v4755_v61  ;;  %v11886_v9 = vld [vmem:[#allocation98_spill] sm:$0xff] }
 0x865   : > { %v6703_v33 = vpop.eup %6702  ;;  %v4603_v20 = vmul.f32 0.5, %v4587_v34  ;;  %v4604_v13 = vmul.f32 0.5, %v4588_v39  ;;  %v11882_v34 = vld [vmem:[#allocation86_spill] sm:$0xff] }
 0x866   : > { %v6705_v28 = vpop.eup %6704  ;;  %v4649_v53 = vadd.f32 1.0, %v6703_v33  ;;  %4719 = vrot.lane.b32.xlu2 %v4701_v56, %s6941_s11  ;;  %v11884_v36 = vsel %vm7267_vm2, %v11882_v34, %v11883_v45  ;;  %v11885_v56 = vld [vmem:[#allocation97_spill] sm:$0xff] }
 0x867   : > { %6708 = vtanh.f32 %v4603_v20  ;;  %v4620_v60 = vsel %vm3264_vm4, %v4588_v39, %v4604_v13  ;;  %v4650_v16 = vadd.f32 1.0, %v6705_v28  ;;  %v11887_v39 = vsel %vm7380_vm3, %v11885_v56, %v11886_v9 }
 0x868   : > { %6710 = vtanh.f32 %v4620_v60  ;;  %v10144_v6 = vmul.f32 0.5, %v4649_v53  ;;  %v11889_v53 = vld [vmem:[#allocation82_spill] sm:$0xff] }
 0x869   : > { %v6707_v32 = vpop.eup %6706  ;;  %v4666_v12 = vmul.f32 0.5, %v4650_v16 }
 0x86a   : > { %v4542_v40 = vpop.f32.mrf.mxu2  ;;  %v4571_v44 = vpop.f32.mrf.mxu3  ;;  %v4756_v22 = vmul.f32 %v6707_v32, %v4678_v43  ;;  %v11888_v43 = vld [vmem:[#allocation100_spill] sm:$0xff] }
 0x86b   : > { %v4589_v2 = vadd.f32 %v4542_v40, %v11884_v36  ;;  %v4590_v33 = vadd.f32 %v4571_v44, %v11887_v39  ;;  %v10158_v20 = vsel %vm3264_vm4, %v6705_v28, %v4666_v12  ;;  %v11890_v60 = vmax.f32 %v11888_v43, %v11889_v53 }
 0x86c   : > { %v4702_v13 = vmul.f32 %v10158_v20, %v10144_v6 }
 0x86d   : > { %v10165_v16 = vmax.f32 %v11890_v60, %v4756_v22  ;;  %v6709_v32 = vpop.eup %6708  ;;  %v4605_v40 = vmul.f32 0.5, %v4589_v2  ;;  %v4606_v34 = vmul.f32 0.5, %v4590_v33 }
 0x86e   : > { %v6711_v45 = vpop.eup %6710  ;;  %v4651_v36 = vadd.f32 1.0, %v6709_v32  ;;  %4721 = vrot.lane.b32.xlu0 %v4702_v13, %s6941_s11 }
 0x86f   : > { %6712 = vtanh.f32 %v4605_v40  ;;  %v4622_v28 = vsel %vm3264_vm4, %v4590_v33, %v4606_v34  ;;  %v4652_v12 = vadd.f32 1.0, %v6711_v45  ;;  %v4787_v34 = vpack.c.bf16 %v4756_v22, %v4755_v61 }
 0x870   : > { %6714 = vtanh.f32 %v4622_v28  ;;  %v10170_v56 = vmul.f32 0.5, %v4651_v36  ;;  %v11891_v28 = vld [vmem:[#allocation106_spill] sm:$0xff] }
 0x871   : > { %v4668_v44 = vmul.f32 0.5, %v4652_v12  ;;  %v11892_v12 = vld [vmem:[#allocation110_spill] sm:$0xff] }
 0x873   : > { %v10174_v9 = vsel %vm3264_vm4, %v6711_v45, %v4668_v44  ;;  %v11893_v44 = vsel %vm7267_vm2, %v11891_v28, %v11892_v12  ;;  %v11899_v12 = vld [vmem:[#allocation133_spill] sm:$0xff] }
 0x874   : > { %v4703_v2 = vmul.f32 %v10174_v9, %v10170_v56 }
 0x875   : > { %v6713_v39 = vpop.eup %6712 }
 0x876   : > { %v6715_v43 = vpop.eup %6714  ;;  %v4653_v53 = vadd.f32 1.0, %v6713_v39  ;;  %4723 = vrot.lane.b32.xlu1 %v4703_v2, %s6941_s11  ;;  %v11894_v39 = vld [vmem:[#allocation117_spill] sm:$0xff] }
 0x877   : > { %v4654_v13 = vadd.f32 1.0, %v6715_v43 }
 0x878   : > { %v4669_v33 = vmul.f32 0.5, %v4653_v53  ;;  %v11895_v53 = vld [vmem:[#allocation118_spill] sm:$0xff] }
 0x879   : > { %v4670_v60 = vmul.f32 0.5, %v4654_v13  ;;  %v11896_v13 = vsel %vm7380_vm3, %v11894_v39, %v11895_v53 }
 0x87b   : > { %v4686_v32 = vsel %vm3264_vm4, %v6715_v43, %v4670_v60 }
 0x87c   : > { %v4704_v40 = vmul.f32 %v4686_v32, %v4669_v33 }
 0x87e   : > { %4725 = vrot.lane.b32.xlu2 %v4704_v40, %s6941_s11 }
 0x886   : > { %4795 = vrot.lane.b32.xlu2 %v4787_v34, %s6941_s11  ;;  %v11897_v34 = vld [vmem:[#allocation126_spill] sm:$0xff] }
 0x88a   : > { %v4545_v45 = vpop.f32.mrf.mxu2  ;;  %v4574_v36 = vpop.f32.mrf.mxu3 }
 0x88b   : > { %v4591_v2 = vadd.f32 %v4545_v45, %v11893_v44  ;;  %v4592_v43 = vadd.f32 %v4574_v36, %v11896_v13  ;;  %v11898_v45 = vsel %vm7267_vm2, %v11857_v8, %v11897_v34  ;;  %v11900_v36 = vsel %vm7380_vm3, %v11860_v3, %v11899_v12 }
 0x88d   : > { %v4607_v60 = vmul.f32 0.5, %v4591_v2  ;;  %v4608_v29 = vmul.f32 0.5, %v4592_v43 }
 0x88f   : > { %6716 = vtanh.f32 %v4607_v60  ;;  %v4624_v61 = vsel %vm3264_vm4, %v4592_v43, %v4608_v29 }
 0x890   : > { %6718 = vtanh.f32 %v4624_v61 }
 0x892   : > { %v4547_v22 = vpop.f32.mrf.mxu2  ;;  %v4576_v40 = vpop.f32.mrf.mxu3 }
 0x893   : > { %v4593_v28 = vadd.f32 %v4547_v22, %v11898_v45  ;;  %v4594_v44 = vadd.f32 %v4576_v40, %v11900_v36 }
 0x895   : > { %v6717_v2 = vpop.eup %6716  ;;  %v4609_v39 = vmul.f32 0.5, %v4593_v28  ;;  %v4610_v53 = vmul.f32 0.5, %v4594_v44 }
 0x896   : > { %v6719_v13 = vpop.eup %6718  ;;  %v4655_v29 = vadd.f32 1.0, %v6717_v2 }
 0x897   : > { %6720 = vtanh.f32 %v4609_v39  ;;  %v4626_v43 = vsel %vm3264_vm4, %v4594_v44, %v4610_v53  ;;  %v4656_v60 = vadd.f32 1.0, %v6719_v13  ;;  %v4693_v39 = vmul.f32 %v10117_v25, %v9978_v11 }
 0x898   : > { %6722 = vtanh.f32 %v4626_v43  ;;  %v4671_v8 = vmul.f32 0.5, %v4655_v29  ;;  %v4694_v11 = vmul.f32 %v10144_v6, %v9992_v57  ;;  %v11901_v6 = vmax.f32 %v9799_v30, %v10043_v59  ;;  %v11905_v30 = vld [vmem:[#allocation15_spill] sm:$0xff]  ;;  %v11906_v59 = vld [vmem:[#allocation12_spill] sm:$0xff] }
 0x899   : > { %v4672_v61 = vmul.f32 0.5, %v4656_v60 }
 0x89a   : > { %v4697_v1 = vmul.f32 %v4671_v8, %v10031_v62 }
 0x89b   : > { %v10209_v22 = vsel %vm3264_vm4, %v6719_v13, %v4672_v61  ;;  %v4696_v61 = vmul.f32 %v4669_v33, %v9987_v37 }
 0x89c   : > { %v4705_v3 = vmul.f32 %v10209_v22, %v4671_v8 }
 0x89d   : > { %v6721_v40 = vpop.eup %6720 }
 0x89e   : > { %v6723_v34 = vpop.eup %6722  ;;  %v4657_v45 = vadd.f32 1.0, %v6721_v40  ;;  %4727 = vrot.lane.b32.xlu0 %v4705_v3, %s6941_s11 }
 0x89f   : > { %v4658_v28 = vadd.f32 1.0, %v6723_v34 }
 0x8a0   : > { %v4673_v36 = vmul.f32 0.5, %v4657_v45 }
 0x8a1   : > { %v4674_v12 = vmul.f32 0.5, %v4658_v28 }
 0x8a3   : > { %v4690_v44 = vsel %vm3264_vm4, %v6723_v34, %v4674_v12 }
 0x8a4   : > { %v4706_v2 = vmul.f32 %v4690_v44, %v4673_v36 }
 0x8a6   : > { %4729 = vrot.lane.b32.xlu1 %v4706_v2, %s6941_s11 }
 0x8c0   : > { %v4720_v53 = vpop.permute.xlu2 %4719 }
 0x8c1   : > { %v10218_v13 = vadd.f32 %v4720_v53, %v4693_v39  ;;  %v11908_v39 = vld [vmem:[#allocation23_spill] sm:$0xff] }
 0x8c2   : > { %v11909_v53 = vld [vmem:[#allocation19_spill] sm:$0xff] }
 0x8c3   : > { %6724 = vtanh.f32 %v10218_v13 }
 0x8c9   : > { %v6725_v29 = vpop.eup %6724 }
 0x8ca   : > { %v4757_v43 = vmul.f32 %v6725_v29, %v10132_v5  ;;  %v11910_v29 = vsel %vm7267_vm2, %v11908_v39, %v11909_v53 }
 0x8cc   : > { %v10225_v60 = vmax.f32 %v4471_v58, %v4757_v43  ;;  %v4695_v58 = vmul.f32 %v10170_v56, %v10007_v17 }
 0x8d8   : > { %v4726_v3 = vpop.permute.xlu2 %4725 }
 0x8d9   : > { %v10228_v40 = vadd.f32 %v4726_v3, %v4696_v61  ;;  %v11911_v61 = vld [vmem:[#allocation31_spill] sm:$0xff]  ;;  %v11912_v3 = vld [vmem:[#allocation28_spill] sm:$0xff] }
 0x8db   : > { %6726 = vtanh.f32 %v10228_v40 }
 0x8e0   : > { %v4722_v25 = vpop.permute.xlu0 %4721  ;;  %v4796_v34 = vpop.permute.xlu2 %4795 }
 0x8e1   : > { %v6727_v45 = vpop.eup %6726  ;;  %v10233_v28 = vadd.f32 %v4722_v25, %v4694_v11  ;;  %6384 = vmatmul.msk.bf16.vlgmr.msrb.gmra.mxu2 %vm3349_vm5, %v4796_v34  ;;  %6388 = vmatmul.msk.bf16.vlgmr.msra.gmra.mxu3 %vm3349_vm5, %v4796_v34  ;;  %v11913_v11 = vsel %vm7380_vm3, %v11911_v61, %v11912_v3 }
 0x8e2   : > { %v4760_v52 = vmul.f32 %v6727_v45, %v4686_v32  ;;  %5407 = vmatpush.bf16.msrb.mxu2 %v7034_v19  ;;  %5436 = vmatpush.bf16.msra.mxu3 %v7070_v31  ;;  %v11907_v32 = vsel %vm7380_vm3, %v11905_v30, %v11906_v59  ;;  %v11918_v30 = vld [vmem:[#allocation44_spill] sm:$0xff] }
 0x8e3   : > { %6728 = vtanh.f32 %v10233_v28 }
 0x8e4   : > { %v10243_v50 = vmax.f32 %v4474_v15, %v4760_v52 }
 0x8e6   : > { %5408 = vmatpush.bf16.msrb.mxu2 %v7040_v21  ;;  %5437 = vmatpush.bf16.msra.mxu3 %v7080_v35 }
 0x8e8   : > { %v4724_v37 = vpop.permute.xlu1 %4723 }
 0x8e9   : > { %v6729_v57 = vpop.eup %6728  ;;  %v10249_v5 = vadd.f32 %v4724_v37, %v4695_v58 }
 0x8ea   : > { %v4758_v19 = vmul.f32 %v6729_v57, %v10158_v20  ;;  %5409 = vmatpush.bf16.msrb.mxu2 %v7049_v24  ;;  %5438 = vmatpush.bf16.msra.mxu3 %v7090_v38 }
 0x8eb   : > { %6730 = vtanh.f32 %v10249_v5 }
 0x8ec   : > { %v10258_v21 = vmax.f32 %v4472_v47, %v4758_v19  ;;  %v4788_v31 = vpack.c.bf16 %v4758_v19, %v4757_v43 }
 0x8ee   : > { %4797 = vrot.lane.b32.xlu0 %v4788_v31, %s6941_s11  ;;  %5410 = vmatpush.bf16.msrb.mxu2 %v7058_v27  ;;  %v4698_v27 = vmul.f32 %v4673_v36, %v10035_v54 }
 0x8ef   : > { %5439 = vmatpush.bf16.msra.mxu3 %v7100_v41 }
 0x8f1   : > { %v6731_v35 = vpop.eup %6730 }
 0x8f2   : > { %v4759_v46 = vmul.f32 %v6731_v35, %v10174_v9 }
 0x8f4   : > { %v10267_v24 = vmax.f32 %v4473_v4, %v4759_v46  ;;  %v4789_v38 = vpack.c.bf16 %v4760_v52, %v4759_v46 }
 0x8f6   : > { %4799 = vrot.lane.b32.xlu1 %v4789_v38, %s6941_s11 }
 0x910   : > { %v4728_v55 = vpop.permute.xlu0 %4727 }
 0x911   : > { %v10271_v15 = vadd.f32 %v4728_v55, %v4697_v1 }
 0x913   : > { %6732 = vtanh.f32 %v10271_v15 }
 0x918   : > { %v4730_v41 = vpop.permute.xlu1 %4729 }
 0x919   : > { %v6733_v17 = vpop.eup %6732  ;;  %v10275_v48 = vadd.f32 %v4730_v41, %v4698_v27 }
 0x91a   : > { %v4761_v49 = vmul.f32 %v6733_v17, %v10209_v22 }
 0x91b   : > { %6734 = vtanh.f32 %v10275_v48 }
 0x91c   : > { %v10282_v47 = vmax.f32 %v4475_v26, %v4761_v49  ;;  %v11904_v26 = vsel %vm7267_vm2, %v11902_v0, %v11903_v63  ;;  %v11915_v0 = vld [vmem:[#allocation35_spill] sm:$0xff] }
 0x921   : > { %v6735_v23 = vpop.eup %6734 }
 0x922   : > { %v4762_v4 = vmul.f32 %v6735_v23, %v4690_v44 }
 0x924   : > { %v4790_v62 = vpack.c.bf16 %v4762_v4, %v4761_v49  ;;  %v10287_v54 = vmax.f32 %v11901_v6, %v4762_v4 }
 0x926   : > { %4801 = vrot.lane.b32.xlu2 %v4790_v62, %s6941_s11 }
 0x960   : > { %v4798_v20 = vpop.permute.xlu0 %4797 }
 0x961   : > { %6385 = vmatmul.msk.bf16.gmra.mxu2 %vm3349_vm5, %v4798_v20  ;;  %6389 = vmatmul.msk.bf16.gmra.mxu3 %vm3349_vm5, %v4798_v20 }
 0x964   : > { %v4824_v56 = vpop.f32.mrf.mxu2  ;;  %v4853_v9 = vpop.f32.mrf.mxu3 }
 0x965   : > { %v4873_v33 = vadd.f32 %v4824_v56, %v11904_v26  ;;  %v4874_v8 = vadd.f32 %v4853_v9, %v11907_v32  ;;  %v11914_v9 = vld [vmem:[#allocation39_spill] sm:$0xff] }
 0x966   : > { %v11916_v63 = vsel %vm7267_vm2, %v11914_v9, %v11915_v0  ;;  %v11930_v9 = vld [vmem:[#allocation76_spill] sm:$0xff] }
 0x967   : > { %v4889_v22 = vmul.f32 0.5, %v4873_v33  ;;  %v4890_v12 = vmul.f32 0.5, %v4874_v8  ;;  %v11917_v33 = vld [vmem:[#allocation47_spill] sm:$0xff] }
 0x968   : > { %v4800_v57 = vpop.permute.xlu1 %4799  ;;  %v11919_v59 = vsel %vm7380_vm3, %v11917_v33, %v11918_v30 }
 0x969   : > { %6736 = vtanh.f32 %v4889_v22  ;;  %v4906_v36 = vsel %vm3264_vm4, %v4874_v8, %v4890_v12 }
 0x96a   : > { %6738 = vtanh.f32 %v4906_v36 }
 0x96c   : > { %v4826_v44 = vpop.f32.mrf.mxu2  ;;  %v4855_v2 = vpop.f32.mrf.mxu3 }
 0x96d   : > { %v4875_v43 = vadd.f32 %v4826_v44, %v11910_v29  ;;  %v4876_v25 = vadd.f32 %v4855_v2, %v11913_v11  ;;  %v11920_v29 = vld [vmem:[#allocation55_spill] sm:$0xff] }
 0x96e   : > { %v11923_v11 = vld [vmem:[#allocation63_spill] sm:$0xff] }
 0x96f   : > { %v6737_v34 = vpop.eup %6736  ;;  %v4891_v45 = vmul.f32 0.5, %v4875_v43  ;;  %v4892_v52 = vmul.f32 0.5, %v4876_v25  ;;  %v11921_v43 = vld [vmem:[#allocation51_spill] sm:$0xff] }
 0x970   : > { %v6739_v58 = vpop.eup %6738  ;;  %v4937_v37 = vadd.f32 1.0, %v6737_v34  ;;  %v11922_v61 = vsel %vm7267_vm2, %v11920_v29, %v11921_v43 }
 0x971   : > { %6740 = vtanh.f32 %v4891_v45  ;;  %v4908_v19 = vsel %vm3264_vm4, %v4876_v25, %v4892_v52  ;;  %6386 = vmatmul.msk.bf16.gmra.mxu2 %vm3349_vm5, %v4800_v57  ;;  %6390 = vmatmul.msk.bf16.gmra.mxu3 %vm3349_vm5, %v4800_v57  ;;  %v4938_v31 = vadd.f32 1.0, %v6739_v58  ;;  %v11924_v25 = vld [vmem:[#allocation60_spill] sm:$0xff] }
 0x972   : > { %6742 = vtanh.f32 %v4908_v19  ;;  %v4953_v46 = vmul.f32 0.5, %v4937_v37  ;;  %v11925_v34 = vsel %vm7380_vm3, %v11923_v11, %v11924_v25  ;;  %v11933_v11 = vld [vmem:[#allocation84_spill] sm:$0xff] }
 0x973   : > { %v4954_v35 = vmul.f32 0.5, %v4938_v31 }
 0x974   : > { %v4985_v36 = vmul.f32 %v4953_v46, %v10099_v14 }
 0x975   : > { %v4970_v38 = vsel %vm3264_vm4, %v6739_v58, %v4954_v35 }
 0x976   : > { %v4993_v1 = vmul.f32 %v4970_v38, %v4953_v46 }
 0x977   : > { %v6741_v55 = vpop.eup %6740 }
 0x978   : > { %v6743_v27 = vpop.eup %6742  ;;  %v4939_v41 = vadd.f32 1.0, %v6741_v55  ;;  %5009 = vrot.lane.b32.xlu0 %v4993_v1, %s6941_s11 }
 0x979   : > { %v4940_v17 = vadd.f32 1.0, %v6743_v27 }
 0x97a   : > { %v4955_v23 = vmul.f32 0.5, %v4939_v41 }
 0x97b   : > { %v4956_v49 = vmul.f32 0.5, %v4940_v17 }
 0x97c   : > { %v4986_v31 = vmul.f32 %v4955_v23, %v10115_v51 }
 0x97d   : > { %v4972_v4 = vsel %vm3264_vm4, %v6743_v27, %v4956_v49 }
 0x97e   : > { %v4994_v62 = vmul.f32 %v4972_v4, %v4955_v23 }
 0x980   : > { %5011 = vrot.lane.b32.xlu1 %v4994_v62, %s6941_s11  ;;  %v4802_v6 = vpop.permute.xlu2 %4801 }
 0x981   : > { %6387 = vmatmul.msk.bf16.gmra.mxu2 %vm3349_vm5, %v4802_v6  ;;  %6391 = vmatmul.msk.bf16.gmra.mxu3 %vm3349_vm5, %v4802_v6  ;;  %v11926_v6 = vld [vmem:[#allocation71_spill] sm:$0xff] }
 0x9e4   : > { %v4829_v20 = vpop.f32.mrf.mxu2  ;;  %v4858_v56 = vpop.f32.mrf.mxu3 }
 0x9e5   : > { %v4877_v26 = vadd.f32 %v4829_v20, %v11916_v63  ;;  %v4878_v32 = vadd.f32 %v4858_v56, %v11919_v59  ;;  %v11927_v20 = vld [vmem:[#allocation67_spill] sm:$0xff] }
 0x9e6   : > { %v11928_v51 = vsel %vm7267_vm2, %v11926_v6, %v11927_v20  ;;  %v11929_v56 = vld [vmem:[#allocation79_spill] sm:$0xff] }
 0x9e7   : > { %v4893_v8 = vmul.f32 0.5, %v4877_v26  ;;  %v4894_v22 = vmul.f32 0.5, %v4878_v32  ;;  %v11931_v0 = vsel %vm7380_vm3, %v11929_v56, %v11930_v9  ;;  %v11939_v56 = vld [vmem:[#allocation104_spill] sm:$0xff] }
 0x9e9   : > { %6744 = vtanh.f32 %v4893_v8  ;;  %v4910_v12 = vsel %vm3264_vm4, %v4878_v32, %v4894_v22 }
 0x9ea   : > { %6746 = vtanh.f32 %v4910_v12  ;;  %v5010_v44 = vpop.permute.xlu0 %5009 }
 0x9eb   : > { %v10339_v2 = vadd.f32 %v5010_v44, %v4985_v36 }
 0x9ec   : > { %v4831_v39 = vpop.f32.mrf.mxu2  ;;  %v4860_v53 = vpop.f32.mrf.mxu3 }
 0x9ed   : > { %6748 = vtanh.f32 %v10339_v2  ;;  %v4879_v3 = vadd.f32 %v4831_v39, %v11922_v61  ;;  %v4880_v14 = vadd.f32 %v4860_v53, %v11925_v34 }
 0x9ef   : > { %v6745_v45 = vpop.eup %6744  ;;  %v4895_v52 = vmul.f32 0.5, %v4879_v3  ;;  %v4896_v58 = vmul.f32 0.5, %v4880_v14  ;;  %v11932_v3 = vld [vmem:[#allocation88_spill] sm:$0xff] }
 0x9f0   : > { %v6747_v37 = vpop.eup %6746  ;;  %v4941_v57 = vadd.f32 1.0, %v6745_v45  ;;  %v11934_v25 = vsel %vm7267_vm2, %v11932_v3, %v11933_v11  ;;  %v11936_v45 = vld [vmem:[#allocation93_spill] sm:$0xff] }
 0x9f1   : > { %6750 = vtanh.f32 %v4895_v52  ;;  %v4912_v19 = vsel %vm3264_vm4, %v4880_v14, %v4896_v58  ;;  %v4942_v35 = vadd.f32 1.0, %v6747_v37  ;;  %v11935_v14 = vld [vmem:[#allocation96_spill] sm:$0xff] }
 0x9f2   : > { %6752 = vtanh.f32 %v4912_v19  ;;  %v5012_v46 = vpop.permute.xlu1 %5011  ;;  %v10357_v41 = vmul.f32 0.5, %v4941_v57  ;;  %v11937_v52 = vsel %vm7380_vm3, %v11935_v14, %v11936_v45  ;;  %v11944_v14 = vld [vmem:[#allocation120_spill] sm:$0xff]  ;;  %v11945_v45 = vld [vmem:[#allocation121_spill] sm:$0xff] }
 0x9f3   : > { %v6749_v1 = vpop.eup %6748  ;;  %v10355_v55 = vadd.f32 %v5012_v46, %v4986_v31  ;;  %v4958_v27 = vmul.f32 0.5, %v4942_v35 }
 0x9f4   : > { %v4834_v17 = vpop.f32.mrf.mxu2  ;;  %v4863_v49 = vpop.f32.mrf.mxu3  ;;  %v10359_v62 = vmul.f32 %v6749_v1, %v4970_v38 }
 0x9f5   : > { %6754 = vtanh.f32 %v10355_v55  ;;  %v4881_v23 = vadd.f32 %v4834_v17, %v11928_v51  ;;  %v4882_v63 = vadd.f32 %v4863_v49, %v11931_v0  ;;  %v10374_v26 = vsel %vm3264_vm4, %v6747_v37, %v4958_v27 }
 0x9f6   : > { %v4995_v38 = vmul.f32 %v10374_v26, %v10357_v41  ;;  %v5057_v33 = vmax.f32 %v10139_v7, %v10359_v62 }
 0x9f7   : > { %v6751_v30 = vpop.eup %6750  ;;  %v4897_v59 = vmul.f32 0.5, %v4881_v23  ;;  %v4898_v32 = vmul.f32 0.5, %v4882_v63  ;;  %v11938_v23 = vld [vmem:[#allocation107_spill] sm:$0xff] }
 0x9f8   : > { %v6753_v8 = vpop.eup %6752  ;;  %v4943_v22 = vadd.f32 1.0, %v6751_v30  ;;  %5013 = vrot.lane.b32.xlu2 %v4995_v38, %s6941_s11  ;;  %v11940_v9 = vsel %vm7267_vm2, %v11938_v23, %v11939_v56  ;;  %v11942_v38 = vld [vmem:[#allocation113_spill] sm:$0xff] }
 0x9f9   : > { %6756 = vtanh.f32 %v4897_v59  ;;  %v4914_v12 = vsel %vm3264_vm4, %v4882_v63, %v4898_v32  ;;  %v4944_v36 = vadd.f32 1.0, %v6753_v8  ;;  %v11941_v63 = vld [vmem:[#allocation116_spill] sm:$0xff] }
 0x9fa   : > { %6758 = vtanh.f32 %v4914_v12  ;;  %v10383_v53 = vmul.f32 0.5, %v4943_v22  ;;  %v11943_v30 = vsel %vm7380_vm3, %v11941_v63, %v11942_v38 }
 0x9fb   : > { %v6755_v44 = vpop.eup %6754  ;;  %v4960_v39 = vmul.f32 0.5, %v4944_v36 }
 0x9fc   : > { %v4836_v29 = vpop.f32.mrf.mxu2  ;;  %v4865_v43 = vpop.f32.mrf.mxu3  ;;  %v10385_v61 = vmul.f32 %v6755_v44, %v4972_v4 }
 0x9fd   : > { %v4883_v34 = vadd.f32 %v4836_v29, %v11934_v25  ;;  %v4884_v58 = vadd.f32 %v4865_v43, %v11937_v52  ;;  %v10399_v37 = vsel %vm3264_vm4, %v6753_v8, %v4960_v39  ;;  %v11946_v52 = vsel %vm7267_vm2, %v11944_v14, %v11945_v45 }
 0x9fe   : > { %v4996_v4 = vmul.f32 %v10399_v37, %v10383_v53  ;;  %v5058_v57 = vmax.f32 %v10165_v16, %v10385_v61  ;;  %v5081_v38 = vpack.c.bf16 %v10385_v61, %v10359_v62  ;;  %v11986_v61 = vld [vmem:[#allocation105_spill] sm:$0xff] }
 0x9ff   : > { %v6757_v19 = vpop.eup %6756  ;;  %v4899_v31 = vmul.f32 0.5, %v4883_v34  ;;  %v4900_v35 = vmul.f32 0.5, %v4884_v58 }
 0xa00   : > { %v6759_v46 = vpop.eup %6758  ;;  %v4945_v1 = vadd.f32 1.0, %v6757_v19  ;;  %5015 = vrot.lane.b32.xlu0 %v4996_v4, %s6941_s11  ;;  %v11947_v4 = vld [vmem:[#allocation132_spill] sm:$0xff] }
 0xa01   : > { %6760 = vtanh.f32 %v4899_v31  ;;  %v4916_v27 = vsel %vm3264_vm4, %v4884_v58, %v4900_v35  ;;  %v4946_v17 = vadd.f32 1.0, %v6759_v46  ;;  %v11948_v19 = vld [vmem:[#allocation128_spill] sm:$0xff] }
 0xa02   : > { %6762 = vtanh.f32 %v4916_v27  ;;  %v10408_v6 = vmul.f32 0.5, %v4945_v1  ;;  %v11949_v31 = vsel %vm7380_vm3, %v11947_v4, %v11948_v19  ;;  %v4988_v4 = vmul.f32 %v10383_v53, %v10233_v28 }
 0xa03   : > { %v4962_v49 = vmul.f32 0.5, %v4946_v17 }
 0xa04   : > { %v4839_v20 = vpop.f32.mrf.mxu2  ;;  %v4868_v51 = vpop.f32.mrf.mxu3 }
 0xa05   : > { %v4885_v0 = vadd.f32 %v4839_v20, %v11940_v9  ;;  %v4886_v59 = vadd.f32 %v4868_v51, %v11943_v30  ;;  %v10422_v32 = vsel %vm3264_vm4, %v6759_v46, %v4962_v49 }
 0xa06   : > { %v4997_v8 = vmul.f32 %v10422_v32, %v10408_v6 }
 0xa07   : > { %v6761_v22 = vpop.eup %6760  ;;  %v4901_v12 = vmul.f32 0.5, %v4885_v0  ;;  %v4902_v36 = vmul.f32 0.5, %v4886_v59 }
 0xa08   : > { %v6763_v44 = vpop.eup %6762  ;;  %v4947_v39 = vadd.f32 1.0, %v6761_v22  ;;  %5017 = vrot.lane.b32.xlu1 %v4997_v8, %s6941_s11 }
 0xa09   : > { %6764 = vtanh.f32 %v4901_v12  ;;  %v4918_v29 = vsel %vm3264_vm4, %v4886_v59, %v4902_v36  ;;  %v4948_v43 = vadd.f32 1.0, %v6763_v44 }
 0xa0a   : > { %6766 = vtanh.f32 %v4918_v29  ;;  %v4963_v11 = vmul.f32 0.5, %v4947_v39 }
 0xa0b   : > { %v4964_v3 = vmul.f32 0.5, %v4948_v43  ;;  %v4987_v43 = vmul.f32 %v10357_v41, %v10218_v13 }
 0xa0c   : > { %v4841_v25 = vpop.f32.mrf.mxu2  ;;  %v4870_v34 = vpop.f32.mrf.mxu3 }
 0xa0d   : > { %v4887_v58 = vadd.f32 %v4841_v25, %v11946_v52  ;;  %v4888_v35 = vadd.f32 %v4870_v34, %v11949_v31  ;;  %v4980_v46 = vsel %vm3264_vm4, %v6763_v44, %v4964_v3 }
 0xa0e   : > { %v4998_v1 = vmul.f32 %v4980_v46, %v4963_v11 }
 0xa0f   : > { %v6765_v27 = vpop.eup %6764  ;;  %v4903_v17 = vmul.f32 0.5, %v4887_v58  ;;  %v4904_v49 = vmul.f32 0.5, %v4888_v35  ;;  %v4990_v58 = vmul.f32 %v4963_v11, %v10228_v40  ;;  %v4989_v40 = vmul.f32 %v10408_v6, %v10249_v5 }
 0xa10   : > { %v6767_v20 = vpop.eup %6766  ;;  %v4949_v51 = vadd.f32 1.0, %v6765_v27  ;;  %5019 = vrot.lane.b32.xlu2 %v4998_v1, %s6941_s11 }
 0xa11   : > { %6768 = vtanh.f32 %v4903_v17  ;;  %v4920_v23 = vsel %vm3264_vm4, %v4888_v35, %v4904_v49  ;;  %v4950_v56 = vadd.f32 1.0, %v6767_v20 }
 0xa12   : > { %6770 = vtanh.f32 %v4920_v23  ;;  %v4965_v0 = vmul.f32 0.5, %v4949_v51 }
 0xa13   : > { %v4966_v9 = vmul.f32 0.5, %v4950_v56 }
 0xa15   : > { %v4982_v63 = vsel %vm3264_vm4, %v6767_v20, %v4966_v9 }
 0xa16   : > { %v4999_v30 = vmul.f32 %v4982_v63, %v4965_v0 }
 0xa17   : > { %v6769_v59 = vpop.eup %6768 }
 0xa18   : > { %v6771_v8 = vpop.eup %6770  ;;  %v4951_v22 = vadd.f32 1.0, %v6769_v59  ;;  %5089 = vrot.lane.b32.xlu2 %v5081_v38, %s6941_s11  ;;  %5021 = vrot.lane.b32.xlu0 %v4999_v30, %s6941_s11 }
 0xa19   : > { %v4952_v12 = vadd.f32 1.0, %v6771_v8 }
 0xa1a   : > { %v4967_v44 = vmul.f32 0.5, %v4951_v22 }
 0xa1b   : > { %v4968_v36 = vmul.f32 0.5, %v4952_v12 }
 0xa1c   : > { %v4992_v23 = vmul.f32 %v4967_v44, %v10275_v48 }
 0xa1d   : > { %v4984_v39 = vsel %vm3264_vm4, %v6771_v8, %v4968_v36  ;;  %v11950_v36 = vld [vmem:[#allocation4_spill] sm:$0xff] }
 0xa1e   : > { %v5000_v29 = vmul.f32 %v4984_v39, %v4967_v44  ;;  %v11951_v44 = vld [vmem:[#allocation2_spill] sm:$0xff] }
 0xa20   : > { %5023 = vrot.lane.b32.xlu1 %v5000_v29, %s6941_s11 }
 0xa52   : > { %v5014_v3 = vpop.permute.xlu2 %5013 }
 0xa53   : > { %v10455_v25 = vadd.f32 %v5014_v3, %v4987_v43  ;;  %v11953_v43 = vld [vmem:[#allocation11_spill] sm:$0xff]  ;;  %v11954_v3 = vld [vmem:[#allocation10_spill] sm:$0xff] }
 0xa55   : > { %6772 = vtanh.f32 %v10455_v25 }
 0xa5b   : > { %v6773_v34 = vpop.eup %6772 }
 0xa5c   : > { %v10459_v14 = vmul.f32 %v6773_v34, %v10374_v26  ;;  %v11955_v34 = vsel %vm7380_vm3, %v11953_v43, %v11954_v3 }
 0xa5e   : > { %v5059_v45 = vmax.f32 %v10225_v60, %v10459_v14  ;;  %v5863_v60 = vld [vmem:[%s11365_s4 + $0x58] sm:$0xff] }
 0xa5f   : > { %5897 = vmatpush.msrb.mxu0 %v5863_v60 }
 0xa6a   : > { %v5020_v52 = vpop.permute.xlu2 %5019 }
 0xa6b   : > { %v10466_v19 = vadd.f32 %v5020_v52, %v4990_v58 }
 0xa72   : > { %v5016_v13 = vpop.permute.xlu0 %5015  ;;  %v5090_v41 = vpop.permute.xlu2 %5089 }
 0xa73   : > { %v10468_v31 = vadd.f32 %v5016_v13, %v4988_v4  ;;  %6392 = vmatmul.msk.bf16.vlgmr.msra.gmra.mxu2 %vm3349_vm5, %v5090_v41  ;;  %6396 = vmatmul.msk.bf16.vlgmr.msrb.gmra.mxu3 %vm3349_vm5, %v5090_v41 }
 0xa74   : > { %6466 = vmatpush.msra.mxu2 %v5863_v60  ;;  %v12007_v60 = vld [vmem:[#allocation30_spill] sm:$0xff] }
 0xa75   : > { %6774 = vtanh.f32 %v10468_v31 }
 0xa76   : > { %6776 = vtanh.f32 %v10466_v19 }
 0xa7a   : > { %v5018_v26 = vpop.permute.xlu1 %5017 }
 0xa7b   : > { %v6775_v11 = vpop.eup %6774  ;;  %v10476_v28 = vadd.f32 %v5018_v26, %v4989_v40  ;;  %v11956_v26 = vld [vmem:[#allocation20_spill] sm:$0xff] }
 0xa7c   : > { %v6777_v53 = vpop.eup %6776  ;;  %v10479_v35 = vmul.f32 %v6775_v11, %v10399_v37  ;;  %v11957_v11 = vld [vmem:[#allocation18_spill] sm:$0xff] }
 0xa7d   : > { %6778 = vtanh.f32 %v10476_v28  ;;  %v10484_v27 = vmul.f32 %v6777_v53, %v4980_v46  ;;  %v4991_v46 = vmul.f32 %v4965_v0, %v10271_v15  ;;  %v11958_v53 = vsel %vm7267_vm2, %v11956_v26, %v11957_v11 }
 0xa7e   : > { %v5082_v1 = vpack.c.bf16 %v10479_v35, %v10459_v14  ;;  %v5060_v49 = vmax.f32 %v10258_v21, %v10479_v35 }
 0xa7f   : > { %v5062_v5 = vmax.f32 %v10243_v50, %v10484_v27 }
 0xa80   : > { %5091 = vrot.lane.b32.xlu0 %v5082_v1, %s6941_s11 }
 0xa83   : > { %v6779_v17 = vpop.eup %6778 }
 0xa84   : > { %v10490_v6 = vmul.f32 %v6779_v17, %v10422_v32  ;;  %v11959_v17 = vld [vmem:[#allocation27_spill] sm:$0xff] }
 0xa86   : > { %v5083_v37 = vpack.c.bf16 %v10484_v27, %v10490_v6  ;;  %v5061_v9 = vmax.f32 %v10267_v24, %v10490_v6  ;;  %v5860_v6 = vld [vmem:[%s11365_s4 + $0x40] sm:$0xff] }
 0xa88   : > { %5093 = vrot.lane.b32.xlu1 %v5083_v37, %s6941_s11  ;;  %v11960_v37 = vld [vmem:[#allocation26_spill] sm:$0xff] }
 0xa8a   : > { %v5022_v20 = vpop.permute.xlu0 %5021 }
 0xa8b   : > { %v10498_v51 = vadd.f32 %v5022_v20, %v4991_v46  ;;  %v11961_v20 = vsel %vm7380_vm3, %v11959_v17, %v11960_v37 }
 0xa8d   : > { %6780 = vtanh.f32 %v10498_v51 }
 0xa92   : > { %v5024_v56 = vpop.permute.xlu1 %5023 }
 0xa93   : > { %v10502_v32 = vadd.f32 %v5024_v56, %v4992_v23  ;;  %v6781_v38 = vpop.eup %6780 }
 0xa94   : > { %v10507_v59 = vmul.f32 %v6781_v38, %v4982_v63 }
 0xa95   : > { %6782 = vtanh.f32 %v10502_v32 }
 0xa96   : > { %v5063_v48 = vmax.f32 %v10282_v47, %v10507_v59  ;;  %v5859_v47 = vld [vmem:[%s11365_s4 + $0x38] sm:$0xff] }
 0xa9b   : > { %v6783_v30 = vpop.eup %6782 }
 0xa9c   : > { %v10509_v8 = vmul.f32 %v6783_v30, %v4984_v39  ;;  %v11952_v39 = vsel %vm7267_vm2, %v11950_v36, %v11951_v44 }
 0xa9e   : > { %v5084_v15 = vpack.c.bf16 %v10509_v8, %v10507_v59  ;;  %v5064_v0 = vmax.f32 %v10287_v54, %v10509_v8  ;;  %v5858_v54 = vld [vmem:[%s11365_s4 + $0x30] sm:$0xff] }
 0xaa0   : > { %5095 = vrot.lane.b32.xlu2 %v5084_v15, %s6941_s11 }
 0xaf2   : > { %v5092_v22 = vpop.permute.xlu0 %5091 }
 0xaf3   : > { %6393 = vmatmul.msk.bf16.gmra.mxu2 %vm3349_vm5, %v5092_v22  ;;  %6397 = vmatmul.msk.bf16.gmra.mxu3 %vm3349_vm5, %v5092_v22 }
 0xaf6   : > { %v5118_v63 = vpop.f32.mrf.mxu2  ;;  %v5147_v12 = vpop.f32.mrf.mxu3 }
 0xaf7   : > { %v5167_v29 = vadd.f32 %v5118_v63, %v11952_v39  ;;  %v5168_v52 = vadd.f32 %v5147_v12, %v11955_v34 }
 0xaf9   : > { %v5183_v58 = vmul.f32 0.5, %v5167_v29  ;;  %v5184_v4 = vmul.f32 0.5, %v5168_v52 }
 0xafa   : > { %v5094_v22 = vpop.permute.xlu1 %5093 }
 0xafb   : > { %6784 = vtanh.f32 %v5183_v58  ;;  %v5200_v13 = vsel %vm3264_vm4, %v5168_v52, %v5184_v4 }
 0xafc   : > { %6786 = vtanh.f32 %v5200_v13 }
 0xafe   : > { %v5120_v41 = vpop.f32.mrf.mxu2  ;;  %v5149_v40 = vpop.f32.mrf.mxu3 }
 0xaff   : > { %v5169_v1 = vadd.f32 %v5120_v41, %v11958_v53  ;;  %v5170_v46 = vadd.f32 %v5149_v40, %v11961_v20  ;;  %v5096_v40 = vpop.permute.xlu2 %5095  ;;  %v11962_v53 = vld [vmem:[#allocation36_spill] sm:$0xff]  ;;  %v11965_v20 = vld [vmem:[#allocation43_spill] sm:$0xff] }
 0xb01   : > { %v6785_v23 = vpop.eup %6784  ;;  %v5185_v56 = vmul.f32 0.5, %v5169_v1  ;;  %v5186_v38 = vmul.f32 0.5, %v5170_v46  ;;  %v11963_v1 = vld [vmem:[#allocation34_spill] sm:$0xff] }
 0xb02   : > { %v6787_v30 = vpop.eup %6786  ;;  %v5231_v15 = vadd.f32 1.0, %v6785_v23  ;;  %v11964_v17 = vsel %vm7267_vm2, %v11962_v53, %v11963_v1 }
 0xb03   : > { %6788 = vtanh.f32 %v5185_v56  ;;  %v5202_v63 = vsel %vm3264_vm4, %v5170_v46, %v5186_v38  ;;  %6394 = vmatmul.msk.bf16.gmra.mxu2 %vm3349_vm5, %v5094_v22  ;;  %6398 = vmatmul.msk.bf16.gmra.mxu3 %vm3349_vm5, %v5094_v22  ;;  %v5232_v12 = vadd.f32 1.0, %v6787_v30  ;;  %v11966_v46 = vld [vmem:[#allocation42_spill] sm:$0xff] }
 0xb04   : > { %6790 = vtanh.f32 %v5202_v63  ;;  %v5247_v44 = vmul.f32 0.5, %v5231_v15  ;;  %v11967_v23 = vsel %vm7380_vm3, %v11965_v20, %v11966_v46 }
 0xb05   : > { %v5248_v36 = vmul.f32 0.5, %v5232_v12 }
 0xb06   : > { %v5279_v22 = vmul.f32 %v5247_v44, %v10339_v2 }
 0xb07   : > { %v5264_v39 = vsel %vm3264_vm4, %v6787_v30, %v5248_v36 }
 0xb08   : > { %v5287_v29 = vmul.f32 %v5264_v39, %v5247_v44 }
 0xb09   : > { %v6789_v43 = vpop.eup %6788 }
 0xb0a   : > { %v6791_v3 = vpop.eup %6790  ;;  %v5233_v34 = vadd.f32 1.0, %v6789_v43  ;;  %5303 = vrot.lane.b32.xlu0 %v5287_v29, %s6941_s11  ;;  %v11968_v43 = vld [vmem:[#allocation52_spill] sm:$0xff] }
 0xb0b   : > { %v5234_v52 = vadd.f32 1.0, %v6791_v3 }
 0xb0c   : > { %v5249_v4 = vmul.f32 0.5, %v5233_v34 }
 0xb0d   : > { %v5250_v58 = vmul.f32 0.5, %v5234_v52 }
 0xb0f   : > { %v5266_v13 = vsel %vm3264_vm4, %v6791_v3, %v5250_v58  ;;  %v11969_v3 = vld [vmem:[#allocation50_spill] sm:$0xff]  ;;  %v11971_v58 = vld [vmem:[#allocation59_spill] sm:$0xff] }
 0xb10   : > { %v5288_v41 = vmul.f32 %v5266_v13, %v5249_v4  ;;  %v11970_v34 = vsel %vm7267_vm2, %v11968_v43, %v11969_v3  ;;  %v11977_v43 = vld [vmem:[#allocation75_spill] sm:$0xff]  ;;  %v11978_v3 = vld [vmem:[#allocation74_spill] sm:$0xff] }
 0xb12   : > { %5305 = vrot.lane.b32.xlu1 %v5288_v41, %s6941_s11  ;;  %v11972_v41 = vld [vmem:[#allocation58_spill] sm:$0xff] }
 0xb13   : > { %6395 = vmatmul.msk.bf16.gmra.mxu2 %vm3349_vm5, %v5096_v40  ;;  %6399 = vmatmul.msk.bf16.gmra.mxu3 %vm3349_vm5, %v5096_v40  ;;  %v11973_v40 = vsel %vm7380_vm3, %v11971_v58, %v11972_v41 }
 0xb76   : > { %v5123_v26 = vpop.f32.mrf.mxu2  ;;  %v5152_v11 = vpop.f32.mrf.mxu3 }
 0xb77   : > { %v5171_v37 = vadd.f32 %v5123_v26, %v11964_v17  ;;  %v5172_v56 = vadd.f32 %v5152_v11, %v11967_v23 }
 0xb79   : > { %v5187_v38 = vmul.f32 0.5, %v5171_v37  ;;  %v5188_v30 = vmul.f32 0.5, %v5172_v56  ;;  %v5280_v37 = vmul.f32 %v5249_v4, %v10355_v55 }
 0xb7b   : > { %6792 = vtanh.f32 %v5187_v38  ;;  %v5204_v15 = vsel %vm3264_vm4, %v5172_v56, %v5188_v30 }
 0xb7c   : > { %6794 = vtanh.f32 %v5204_v15  ;;  %v5304_v63 = vpop.permute.xlu0 %5303 }
 0xb7d   : > { %v10567_v12 = vadd.f32 %v5304_v63, %v5279_v22 }
 0xb7e   : > { %v5125_v36 = vpop.f32.mrf.mxu2  ;;  %v5154_v29 = vpop.f32.mrf.mxu3 }
 0xb7f   : > { %6796 = vtanh.f32 %v10567_v12  ;;  %v5173_v52 = vadd.f32 %v5125_v36, %v11970_v34  ;;  %v5174_v2 = vadd.f32 %v5154_v29, %v11973_v40  ;;  %v11974_v36 = vld [vmem:[#allocation68_spill] sm:$0xff]  ;;  %v11975_v29 = vld [vmem:[#allocation66_spill] sm:$0xff]  ;;  %v11979_v34 = vsel %vm7380_vm3, %v11977_v43, %v11978_v3 }
 0xb80   : > { %v11976_v55 = vsel %vm7267_vm2, %v11974_v36, %v11975_v29  ;;  %v11984_v36 = vld [vmem:[#allocation91_spill] sm:$0xff] }
 0xb81   : > { %v6793_v44 = vpop.eup %6792  ;;  %v5189_v26 = vmul.f32 0.5, %v5173_v52  ;;  %v5190_v11 = vmul.f32 0.5, %v5174_v2 }
 0xb82   : > { %v6795_v53 = vpop.eup %6794  ;;  %v5235_v1 = vadd.f32 1.0, %v6793_v44 }
 0xb83   : > { %6798 = vtanh.f32 %v5189_v26  ;;  %v5206_v17 = vsel %vm3264_vm4, %v5174_v2, %v5190_v11  ;;  %v5236_v20 = vadd.f32 1.0, %v6795_v53 }
 0xb84   : > { %6800 = vtanh.f32 %v5206_v17  ;;  %v5306_v46 = vpop.permute.xlu1 %5305  ;;  %v10585_v30 = vmul.f32 0.5, %v5235_v1 }
 0xb85   : > { %v6797_v23 = vpop.eup %6796  ;;  %v10583_v56 = vadd.f32 %v5306_v46, %v5280_v37  ;;  %v5252_v38 = vmul.f32 0.5, %v5236_v20  ;;  %v11980_v46 = vld [vmem:[#allocation85_spill] sm:$0xff] }
 0xb86   : > { %v5128_v15 = vpop.f32.mrf.mxu2  ;;  %v5157_v22 = vpop.f32.mrf.mxu3  ;;  %v10587_v63 = vmul.f32 %v6797_v23, %v5264_v39  ;;  %v11981_v23 = vld [vmem:[#allocation83_spill] sm:$0xff] }
 0xb87   : > { %6802 = vtanh.f32 %v10583_v56  ;;  %v5175_v4 = vadd.f32 %v5128_v15, %v11976_v55  ;;  %v5176_v52 = vadd.f32 %v5157_v22, %v11979_v34  ;;  %v10602_v58 = vsel %vm3264_vm4, %v6795_v53, %v5252_v38  ;;  %v11983_v22 = vld [vmem:[#allocation92_spill] sm:$0xff] }
 0xb88   : > { %v5289_v39 = vmul.f32 %v10602_v58, %v10585_v30  ;;  %v10610_v41 = vmax.f32 %v5057_v33, %v10587_v63  ;;  %v11982_v38 = vsel %vm7267_vm2, %v11980_v46, %v11981_v23  ;;  %v11985_v29 = vsel %vm7380_vm3, %v11983_v22, %v11984_v36 }
 0xb89   : > { %v6799_v40 = vpop.eup %6798  ;;  %v5191_v2 = vmul.f32 0.5, %v5175_v4  ;;  %v5192_v44 = vmul.f32 0.5, %v5176_v52 }
 0xb8a   : > { %v6801_v26 = vpop.eup %6800  ;;  %v5237_v11 = vadd.f32 1.0, %v6799_v40  ;;  %5307 = vrot.lane.b32.xlu2 %v5289_v39, %s6941_s11 }
 0xb8b   : > { %6804 = vtanh.f32 %v5191_v2  ;;  %v5208_v53 = vsel %vm3264_vm4, %v5176_v52, %v5192_v44  ;;  %v5238_v1 = vadd.f32 1.0, %v6801_v26 }
 0xb8c   : > { %6806 = vtanh.f32 %v5208_v53  ;;  %v10615_v20 = vmul.f32 0.5, %v5237_v11 }
 0xb8d   : > { %v6803_v17 = vpop.eup %6802  ;;  %v5254_v37 = vmul.f32 0.5, %v5238_v1 }
 0xb8e   : > { %v5130_v7 = vpop.f32.mrf.mxu2  ;;  %v5159_v62 = vpop.f32.mrf.mxu3  ;;  %v5344_v33 = vmul.f32 %v6803_v17, %v5266_v13 }
 0xb8f   : > { %v5177_v15 = vadd.f32 %v5130_v7, %v11982_v38  ;;  %v5178_v55 = vadd.f32 %v5159_v62, %v11985_v29  ;;  %v10629_v4 = vsel %vm3264_vm4, %v6801_v26, %v5254_v37  ;;  %v11989_v37 = vld [vmem:[#allocation112_spill] sm:$0xff]  ;;  %v11990_v7 = vld [vmem:[#allocation111_spill] sm:$0xff] }
 0xb90   : > { %v5290_v43 = vmul.f32 %v10629_v4, %v10615_v20  ;;  %v10636_v13 = vmax.f32 %v5058_v57, %v5344_v33  ;;  %v11987_v57 = vld [vmem:[#allocation103_spill] sm:$0xff]  ;;  %v11991_v62 = vsel %vm7380_vm3, %v11989_v37, %v11990_v7 }
 0xb91   : > { %v6805_v3 = vpop.eup %6804  ;;  %v5193_v34 = vmul.f32 0.5, %v5177_v15  ;;  %v5194_v52 = vmul.f32 0.5, %v5178_v55  ;;  %v11988_v1 = vsel %vm7267_vm2, %v11986_v61, %v11987_v57  ;;  %v11996_v61 = vld [vmem:[#allocation127_spill] sm:$0xff] }
 0xb92   : > { %v6807_v39 = vpop.eup %6806  ;;  %v5239_v40 = vadd.f32 1.0, %v6805_v3  ;;  %5309 = vrot.lane.b32.xlu0 %v5290_v43, %s6941_s11 }
 0xb93   : > { %6808 = vtanh.f32 %v5193_v34  ;;  %v5210_v2 = vsel %vm3264_vm4, %v5178_v55, %v5194_v52  ;;  %v5240_v44 = vadd.f32 1.0, %v6807_v39 }
 0xb94   : > { %6810 = vtanh.f32 %v5210_v2  ;;  %v10641_v11 = vmul.f32 0.5, %v5239_v40  ;;  %v11992_v2 = vld [vmem:[#allocation123_spill] sm:$0xff] }
 0xb95   : > { %v5256_v26 = vmul.f32 0.5, %v5240_v44  ;;  %v11993_v44 = vld [vmem:[#allocation119_spill] sm:$0xff] }
 0xb96   : > { %v5133_v53 = vpop.f32.mrf.mxu2  ;;  %v5162_v16 = vpop.f32.mrf.mxu3  ;;  %v5283_v14 = vmul.f32 %v10641_v11, %v10476_v28  ;;  %v5861_v28 = vld [vmem:[%s11365_s4 + $0x48] sm:$0xff] }
 0xb97   : > { %v5179_v17 = vadd.f32 %v5133_v53, %v11988_v1  ;;  %v5180_v46 = vadd.f32 %v5162_v16, %v11991_v62  ;;  %v10655_v23 = vsel %vm3264_vm4, %v6807_v39, %v5256_v26  ;;  %v11994_v26 = vsel %vm7267_vm2, %v11992_v2, %v11993_v44  ;;  %v11995_v16 = vld [vmem:[#allocation131_spill] sm:$0xff] }
 0xb98   : > { %v5291_v38 = vmul.f32 %v10655_v23, %v10641_v11  ;;  %v11997_v57 = vsel %vm7380_vm3, %v11995_v16, %v11996_v61 }
 0xb99   : > { %v6809_v15 = vpop.eup %6808  ;;  %v5195_v22 = vmul.f32 0.5, %v5179_v17  ;;  %v5196_v36 = vmul.f32 0.5, %v5180_v46 }
 0xb9a   : > { %v6811_v29 = vpop.eup %6810  ;;  %v5241_v55 = vadd.f32 1.0, %v6809_v15  ;;  %5311 = vrot.lane.b32.xlu1 %v5291_v38, %s6941_s11 }
 0xb9b   : > { %6812 = vtanh.f32 %v5195_v22  ;;  %v5212_v43 = vsel %vm3264_vm4, %v5180_v46, %v5196_v36  ;;  %v5242_v3 = vadd.f32 1.0, %v6811_v29 }
 0xb9c   : > { %6814 = vtanh.f32 %v5212_v43  ;;  %v5257_v52 = vmul.f32 0.5, %v5241_v55 }
 0xb9d   : > { %v5258_v34 = vmul.f32 0.5, %v5242_v3 }
 0xb9e   : > { %v5135_v39 = vpop.f32.mrf.mxu2  ;;  %v5164_v40 = vpop.f32.mrf.mxu3 }
 0xb9f   : > { %v5181_v53 = vadd.f32 %v5135_v39, %v11994_v26  ;;  %v5182_v1 = vadd.f32 %v5164_v40, %v11997_v57  ;;  %v5274_v17 = vsel %vm3264_vm4, %v6811_v29, %v5258_v34  ;;  %v5375_v29 = vpack.c.bf16 %v5344_v33, %v10587_v63 }
 0xba0   : > { %v5292_v37 = vmul.f32 %v5274_v17, %v5257_v52  ;;  %v5281_v63 = vmul.f32 %v10585_v30, %v10455_v25 }
 0xba1   : > { %v6813_v7 = vpop.eup %6812  ;;  %v5197_v62 = vmul.f32 0.5, %v5181_v53  ;;  %v5198_v46 = vmul.f32 0.5, %v5182_v1 }
 0xba2   : > { %v6815_v38 = vpop.eup %6814  ;;  %v5243_v15 = vadd.f32 1.0, %v6813_v7  ;;  %5313 = vrot.lane.b32.xlu2 %v5292_v37, %s6941_s11 }
 0xba3   : > { %6816 = vtanh.f32 %v5197_v62  ;;  %v5214_v22 = vsel %vm3264_vm4, %v5182_v1, %v5198_v46  ;;  %v5244_v36 = vadd.f32 1.0, %v6815_v38  ;;  %v5284_v46 = vmul.f32 %v5257_v52, %v10466_v19 }
 0xba4   : > { %6818 = vtanh.f32 %v5214_v22  ;;  %v5259_v43 = vmul.f32 0.5, %v5243_v15 }
 0xba5   : > { %v5260_v55 = vmul.f32 0.5, %v5244_v36 }
 0xba7   : > { %v10679_v3 = vsel %vm3264_vm4, %v6815_v38, %v5260_v55  ;;  %v5282_v38 = vmul.f32 %v10615_v20, %v10468_v31  ;;  %v5862_v55 = vld [vmem:[%s11365_s4 + $0x50] sm:$0xff] }
 0xba8   : > { %v5293_v34 = vmul.f32 %v10679_v3, %v5259_v43  ;;  %5898 = vmatpush.msrb.mxu0 %v5862_v55  ;;  %6467 = vmatpush.msra.mxu2 %v5862_v55 }
 0xba9   : > { %v6817_v39 = vpop.eup %6816 }
 0xbaa   : > { %v6819_v40 = vpop.eup %6818  ;;  %v5245_v2 = vadd.f32 1.0, %v6817_v39  ;;  %5383 = vrot.lane.b32.xlu2 %v5375_v29, %s6941_s11  ;;  %5315 = vrot.lane.b32.xlu0 %v5293_v34, %s6941_s11 }
 0xbab   : > { %v5246_v44 = vadd.f32 1.0, %v6819_v40  ;;  %5899 = vmatpush.msrb.mxu0 %v5861_v28  ;;  %6468 = vmatpush.msra.mxu2 %v5861_v28 }
 0xbac   : > { %v5261_v53 = vmul.f32 0.5, %v5245_v2 }
 0xbad   : > { %v5262_v26 = vmul.f32 0.5, %v5246_v44  ;;  %5900 = vmatpush.msrb.mxu0 %v5860_v6  ;;  %6469 = vmatpush.msra.mxu2 %v5860_v6 }
 0xbae   : > { %v5286_v50 = vmul.f32 %v5261_v53, %v10502_v32 }
 0xbaf   : > { %v5278_v16 = vsel %vm3264_vm4, %v6819_v40, %v5262_v26  ;;  %v5285_v40 = vmul.f32 %v5259_v43, %v10498_v51  ;;  %5901 = vmatpush.msrb.mxu0 %v5859_v47  ;;  %6470 = vmatpush.msra.mxu2 %v5859_v47  ;;  %v12001_v26 = vld [vmem:[#allocation14_spill] sm:$0xff] }
 0xbb0   : > { %v5294_v61 = vmul.f32 %v5278_v16, %v5261_v53  ;;  %v12002_v53 = vld [vmem:[#allocation13_spill] sm:$0xff] }
 0xbb1   : > { %5902 = vmatpush.msrb.mxu0 %v5858_v54  ;;  %6471 = vmatpush.msra.mxu2 %v5858_v54  ;;  %v5857_v54 = vld [vmem:[%s11365_s4 + $0x28] sm:$0xff] }
 0xbb2   : > { %5317 = vrot.lane.b32.xlu1 %v5294_v61, %s6941_s11 }
 0xbb3   : > { %5903 = vmatpush.msrb.mxu0 %v5857_v54  ;;  %6472 = vmatpush.msra.mxu2 %v5857_v54  ;;  %v12022_v54 = vld [vmem:[#allocation72_spill] sm:$0xff] }
 0xbe4   : > { %v5308_v33 = vpop.permute.xlu2 %5307 }
 0xbe5   : > { %v10690_v57 = vadd.f32 %v5308_v33, %v5281_v63 }
 0xbe7   : > { %6820 = vtanh.f32 %v10690_v57 }
 0xbed   : > { %v6821_v1 = vpop.eup %6820 }
 0xbee   : > { %v5345_v37 = vmul.f32 %v6821_v1, %v10602_v58 }
 0xbf0   : > { %v10697_v7 = vmax.f32 %v5059_v45, %v5345_v37 }
 0xbfc   : > { %v5314_v62 = vpop.permute.xlu2 %5313 }
 0xbfd   : > { %v10702_v25 = vadd.f32 %v5314_v62, %v5284_v46  ;;  %v12004_v46 = vld [vmem:[#allocation24_spill] sm:$0xff] }
 0xc04   : > { %v5310_v30 = vpop.permute.xlu0 %5309  ;;  %v5384_v15 = vpop.permute.xlu2 %5383 }
 0xc05   : > { %v10704_v22 = vadd.f32 %v5310_v30, %v5282_v38  ;;  %6400 = vmatmul.msk.bf16.vlgmr.msrb.gmra.mxu2 %vm3349_vm5, %v5384_v15  ;;  %6404 = vmatmul.msk.bf16.vlgmr.msra.gmra.mxu3 %vm3349_vm5, %v5384_v15  ;;  %v12005_v38 = vld [vmem:[#allocation22_spill] sm:$0xff] }
 0xc06   : > { %v12006_v30 = vsel %vm7267_vm2, %v12004_v46, %v12005_v38 }
 0xc07   : > { %6822 = vtanh.f32 %v10704_v22 }
 0xc08   : > { %6824 = vtanh.f32 %v10702_v25 }
 0xc0c   : > { %v5312_v45 = vpop.permute.xlu1 %5311 }
 0xc0d   : > { %v6823_v19 = vpop.eup %6822  ;;  %v10715_v31 = vadd.f32 %v5312_v45, %v5283_v14  ;;  %v12008_v14 = vld [vmem:[#allocation29_spill] sm:$0xff] }
 0xc0e   : > { %v6825_v58 = vpop.eup %6824  ;;  %v5346_v20 = vmul.f32 %v6823_v19, %v10629_v4  ;;  %v12009_v45 = vsel %vm7380_vm3, %v12007_v60, %v12008_v14  ;;  %v12017_v60 = vld [vmem:[#allocation54_spill] sm:$0xff] }
 0xc0f   : > { %6826 = vtanh.f32 %v10715_v31  ;;  %v5348_v36 = vmul.f32 %v6825_v58, %v5274_v17 }
 0xc10   : > { %v5376_v52 = vpack.c.bf16 %v5346_v20, %v5345_v37  ;;  %v10736_v34 = vmax.f32 %v5060_v49, %v5346_v20 }
 0xc11   : > { %v10729_v4 = vmax.f32 %v5062_v5, %v5348_v36 }
 0xc12   : > { %5385 = vrot.lane.b32.xlu0 %v5376_v52, %s6941_s11 }
 0xc15   : > { %v6827_v11 = vpop.eup %6826 }
 0xc16   : > { %v5347_v17 = vmul.f32 %v6827_v11, %v10655_v23 }
 0xc18   : > { %v5377_v29 = vpack.c.bf16 %v5348_v36, %v5347_v17  ;;  %v10748_v23 = vmax.f32 %v5061_v9, %v5347_v17 }
 0xc1a   : > { %5387 = vrot.lane.b32.xlu1 %v5377_v29, %s6941_s11 }
 0xc1c   : > { %v5316_v39 = vpop.permute.xlu0 %5315 }
 0xc1d   : > { %v10739_v2 = vadd.f32 %v5316_v39, %v5285_v40 }
 0xc1f   : > { %6828 = vtanh.f32 %v10739_v2 }
 0xc24   : > { %v5318_v27 = vpop.permute.xlu1 %5317 }
 0xc25   : > { %v10743_v5 = vadd.f32 %v5318_v27, %v5286_v50  ;;  %v6829_v21 = vpop.eup %6828 }
 0xc26   : > { %v5349_v49 = vmul.f32 %v6829_v21, %v10679_v3 }
 0xc27   : > { %6830 = vtanh.f32 %v10743_v5 }
 0xc28   : > { %v10756_v32 = vmax.f32 %v5063_v48, %v5349_v49  ;;  %v11998_v48 = vld [vmem:[#allocation8_spill] sm:$0xff] }
 0xc2d   : > { %v6831_v35 = vpop.eup %6830 }
 0xc2e   : > { %v5350_v51 = vmul.f32 %v6831_v35, %v5278_v16  ;;  %v12003_v16 = vsel %vm7380_vm3, %v12001_v26, %v12002_v53  ;;  %v12013_v26 = vld [vmem:[#allocation46_spill] sm:$0xff]  ;;  %v12014_v53 = vld [vmem:[#allocation45_spill] sm:$0xff] }
 0xc30   : > { %v5378_v43 = vpack.c.bf16 %v5350_v51, %v5349_v49  ;;  %v10761_v24 = vmax.f32 %v5064_v0, %v5350_v51  ;;  %v11999_v0 = vld [vmem:[#allocation6_spill] sm:$0xff] }
 0xc31   : > { %v12000_v3 = vsel %vm7267_vm2, %v11998_v48, %v11999_v0  ;;  %v12010_v48 = vld [vmem:[#allocation40_spill] sm:$0xff]  ;;  %v12011_v0 = vld [vmem:[#allocation38_spill] sm:$0xff] }
 0xc32   : > { %5389 = vrot.lane.b32.xlu2 %v5378_v43, %s6941_s11 }
 0xc84   : > { %v5386_v9 = vpop.permute.xlu0 %5385 }
 0xc85   : > { %6401 = vmatmul.msk.bf16.gmra.mxu2 %vm3349_vm5, %v5386_v9  ;;  %6405 = vmatmul.msk.bf16.gmra.mxu3 %vm3349_vm5, %v5386_v9 }
 0xc88   : > { %v5412_v59 = vpop.f32.mrf.mxu2  ;;  %v5441_v8 = vpop.f32.mrf.mxu3 }
 0xc89   : > { %v5461_v44 = vadd.f32 %v5412_v59, %v12000_v3  ;;  %v5462_v61 = vadd.f32 %v5441_v8, %v12003_v16  ;;  %v12012_v3 = vsel %vm7267_vm2, %v12010_v48, %v12011_v0  ;;  %v12015_v16 = vsel %vm7380_vm3, %v12013_v26, %v12014_v53  ;;  %v12026_v48 = vld [vmem:[#allocation77_spill] sm:$0xff] }
 0xc8b   : > { %v5477_v63 = vmul.f32 0.5, %v5461_v44  ;;  %v5478_v33 = vmul.f32 0.5, %v5462_v61 }
 0xc8c   : > { %v5388_v28 = vpop.permute.xlu1 %5387  ;;  %v5390_v47 = vpop.permute.xlu2 %5389 }
 0xc8d   : > { %6832 = vtanh.f32 %v5477_v63  ;;  %v5494_v1 = vsel %vm3264_vm4, %v5462_v61, %v5478_v33 }
 0xc8e   : > { %6834 = vtanh.f32 %v5494_v1 }
 0xc90   : > { %v5414_v37 = vpop.f32.mrf.mxu2  ;;  %v5443_v62 = vpop.f32.mrf.mxu3 }
 0xc91   : > { %v5463_v15 = vadd.f32 %v5414_v37, %v12006_v30  ;;  %v5464_v19 = vadd.f32 %v5443_v62, %v12009_v45 }
 0xc93   : > { %v6833_v58 = vpop.eup %6832  ;;  %v5479_v20 = vmul.f32 0.5, %v5463_v15  ;;  %v5480_v52 = vmul.f32 0.5, %v5464_v19  ;;  %v12016_v15 = vld [vmem:[#allocation56_spill] sm:$0xff] }
 0xc94   : > { %v6835_v36 = vpop.eup %6834  ;;  %v5525_v55 = vadd.f32 1.0, %v6833_v58  ;;  %v12018_v14 = vsel %vm7267_vm2, %v12016_v15, %v12017_v60  ;;  %v12020_v58 = vld [vmem:[#allocation61_spill] sm:$0xff] }
 0xc95   : > { %6836 = vtanh.f32 %v5479_v20  ;;  %v5496_v11 = vsel %vm3264_vm4, %v5464_v19, %v5480_v52  ;;  %6402 = vmatmul.msk.bf16.gmra.mxu2 %vm3349_vm5, %v5388_v28  ;;  %6406 = vmatmul.msk.bf16.gmra.mxu3 %vm3349_vm5, %v5388_v28  ;;  %v5526_v17 = vadd.f32 1.0, %v6835_v36  ;;  %v12019_v19 = vld [vmem:[#allocation62_spill] sm:$0xff] }
 0xc96   : > { %6838 = vtanh.f32 %v5496_v11  ;;  %v5541_v39 = vmul.f32 0.5, %v5525_v55  ;;  %v12021_v20 = vsel %vm7380_vm3, %v12019_v19, %v12020_v58 }
 0xc97   : > { %v5542_v29 = vmul.f32 0.5, %v5526_v17 }
 0xc98   : > { %v5573_v37 = vmul.f32 %v5541_v39, %v10567_v12 }
 0xc99   : > { %v5558_v40 = vsel %vm3264_vm4, %v6835_v36, %v5542_v29 }
 0xc9a   : > { %v5581_v50 = vmul.f32 %v5558_v40, %v5541_v39 }
 0xc9b   : > { %v6837_v27 = vpop.eup %6836 }
 0xc9c   : > { %v6839_v21 = vpop.eup %6838  ;;  %v5527_v35 = vadd.f32 1.0, %v6837_v27  ;;  %5597 = vrot.lane.b32.xlu0 %v5581_v50, %s6941_s11 }
 0xc9d   : > { %v5528_v49 = vadd.f32 1.0, %v6839_v21 }
 0xc9e   : > { %v5543_v43 = vmul.f32 0.5, %v5527_v35 }
 0xc9f   : > { %v5544_v51 = vmul.f32 0.5, %v5528_v49 }
 0xca0   : > { %v5574_v29 = vmul.f32 %v5543_v43, %v10583_v56 }
 0xca1   : > { %v10805_v6 = vsel %vm3264_vm4, %v6839_v21, %v5544_v51 }
 0xca2   : > { %v5582_v9 = vmul.f32 %v10805_v6, %v5543_v43 }
 0xca4   : > { %5599 = vrot.lane.b32.xlu1 %v5582_v9, %s6941_s11 }
 0xca5   : > { %6403 = vmatmul.msk.bf16.gmra.mxu2 %vm3349_vm5, %v5390_v47  ;;  %6407 = vmatmul.msk.bf16.gmra.mxu3 %vm3349_vm5, %v5390_v47 }
 0xd08   : > { %v5417_v59 = vpop.f32.mrf.mxu2  ;;  %v5446_v8 = vpop.f32.mrf.mxu3 }
 0xd09   : > { %v5465_v44 = vadd.f32 %v5417_v59, %v12012_v3  ;;  %v5466_v61 = vadd.f32 %v5446_v8, %v12015_v16  ;;  %v12023_v59 = vld [vmem:[#allocation70_spill] sm:$0xff] }
 0xd0a   : > { %v12024_v56 = vsel %vm7267_vm2, %v12022_v54, %v12023_v59  ;;  %v12025_v8 = vld [vmem:[#allocation78_spill] sm:$0xff]  ;;  %v12031_v54 = vld [vmem:[#allocation95_spill] sm:$0xff] }
 0xd0b   : > { %v5481_v63 = vmul.f32 0.5, %v5465_v44  ;;  %v5482_v33 = vmul.f32 0.5, %v5466_v61  ;;  %v12027_v0 = vsel %vm7380_vm3, %v12025_v8, %v12026_v48  ;;  %v12032_v59 = vld [vmem:[#allocation94_spill] sm:$0xff] }
 0xd0d   : > { %6840 = vtanh.f32 %v5481_v63  ;;  %v5498_v1 = vsel %vm3264_vm4, %v5466_v61, %v5482_v33  ;;  %v256_v63 = vld [vmem:[%s7014_s19] sm:$0xff]  }
 0xd0e   : > { %6842 = vtanh.f32 %v5498_v1  ;;  %v5598_v62 = vpop.permute.xlu0 %5597 }
 0xd0f   : > { %v5621_v46 = vadd.f32 %v5598_v62, %v5573_v37  ;;  %v258_v37 = vld [vmem:[%s7014_s19 + $0x8] sm:$0xff]   ;;  %v320_v62 = vunpack.c.l.bf16 %v256_v63 }
 0xd10   : > { %v5419_v38 = vpop.f32.mrf.mxu2  ;;  %v5448_v30 = vpop.f32.mrf.mxu3  ;;  %v322_v15 = vunpack.c.l.bf16 %v258_v37  ;;  %v323_v19 = vunpack.c.h.bf16 %v258_v37 }
 0xd11   : > { %6844 = vtanh.f32 %v5621_v46  ;;  %v5467_v45 = vadd.f32 %v5419_v38, %v12018_v14  ;;  %v5468_v52 = vadd.f32 %v5448_v30, %v12021_v20  ;;  %v321_v46 = vunpack.c.h.bf16 %v256_v63  ;;  %v5856_v14 = vld [vmem:[%s11365_s4 + $0x20] sm:$0xff] }
 0xd12   : > { %v385_v58 = vsel %vm384_vm0, %v320_v62, -inf  ;;  %5904 = vmatpush.msrb.mxu0 %v5856_v14  ;;  %6473 = vmatpush.msra.mxu2 %v5856_v14 }
 0xd13   : > { %v6841_v36 = vpop.eup %6840  ;;  %v5483_v12 = vmul.f32 0.5, %v5467_v45  ;;  %v5484_v55 = vmul.f32 0.5, %v5468_v52  ;;  %v260_v45 = vld [vmem:[%s7014_s19 + $0x10] sm:$0xff]  }
 0xd14   : > { %v6843_v28 = vpop.eup %6842  ;;  %v5529_v11 = vadd.f32 1.0, %v6841_v36  ;;  %v324_v36 = vunpack.c.l.bf16 %v260_v45 }
 0xd15   : > { %6846 = vtanh.f32 %v5483_v12  ;;  %v5500_v17 = vsel %vm3264_vm4, %v5468_v52, %v5484_v55  ;;  %v5530_v39 = vadd.f32 1.0, %v6843_v28  ;;  %v386_v12 = vrot.slane %v385_v58, 4 }
 0xd16   : > { %6848 = vtanh.f32 %v5500_v17  ;;  %v5600_v50 = vpop.permute.xlu1 %5599  ;;  %v10840_v49 = vmul.f32 0.5, %v5529_v11  ;;  %v392_v55 = vsel %vm384_vm0, %v321_v46, -inf  ;;  %v406_v46 = vsel %vm384_vm0, %v323_v19, -inf }
 0xd17   : > { %v6845_v27 = vpop.eup %6844  ;;  %v5622_v21 = vadd.f32 %v5600_v50, %v5574_v29  ;;  %v5546_v35 = vmul.f32 0.5, %v5530_v39  ;;  %v10879_v29 = vld [vmem:[%s7014_s19 + $0x18] sm:$0xff]   ;;  %v325_v39 = vunpack.c.h.bf16 %v260_v45  ;;  %v393_v50 = vrot.slane %v392_v55, 4 }
 0xd18   : > { %v5422_v51 = vpop.f32.mrf.mxu2  ;;  %v5451_v9 = vpop.f32.mrf.mxu3  ;;  %v10842_v47 = vmul.f32 %v6845_v27, %v5558_v40  ;;  %v399_v27 = vsel %vm384_vm0, %v322_v15, -inf  ;;  %v326_v8 = vunpack.c.l.bf16 %v10879_v29 }
 0xd19   : > { %6850 = vtanh.f32 %v5622_v21  ;;  %v5469_v43 = vadd.f32 %v5422_v51, %v12024_v56  ;;  %v5470_v3 = vadd.f32 %v5451_v9, %v12027_v0  ;;  %v10856_v44 = vsel %vm3264_vm4, %v6843_v28, %v5546_v35  ;;  %v12028_v21 = vld [vmem:[#allocation89_spill] sm:$0xff]  ;;  %v12029_v35 = vld [vmem:[#allocation87_spill] sm:$0xff] }
 0xd1a   : > { %v5583_v40 = vmul.f32 %v10856_v44, %v10840_v49  ;;  %v5645_v26 = vmax.f32 %v10610_v41, %v10842_v47  ;;  %v12030_v51 = vsel %vm7267_vm2, %v12028_v21, %v12029_v35  ;;  %v12033_v56 = vsel %vm7380_vm3, %v12031_v54, %v12032_v59 }
 0xd1b   : > { %v6847_v53 = vpop.eup %6846  ;;  %v5485_v16 = vmul.f32 0.5, %v5469_v43  ;;  %v5486_v61 = vmul.f32 0.5, %v5470_v3  ;;  %v394_v63 = vmax.f32 %v392_v55, %v393_v50  ;;  %v407_v55 = vrot.slane %v406_v46, 4 }
 0xd1c   : > { %v6849_v33 = vpop.eup %6848  ;;  %v5531_v1 = vadd.f32 1.0, %v6847_v53  ;;  %5601 = vrot.lane.b32.xlu2 %v5583_v40, %s6941_s11  ;;  %v387_v40 = vmax.f32 %v385_v58, %v386_v12  ;;  %v427_v35 = vsel %vm384_vm0, %v326_v8, -inf }
 0xd1d   : > { %6852 = vtanh.f32 %v5485_v16  ;;  %v5502_v38 = vsel %vm3264_vm4, %v5470_v3, %v5486_v61  ;;  %v5532_v30 = vadd.f32 1.0, %v6849_v33  ;;  %v327_v3 = vunpack.c.h.bf16 %v10879_v29 }
 0xd1e   : > { %v10867_v60 = vmul.f32 0.5, %v5531_v1  ;;  %6854 = vtanh.f32 %v5502_v38  ;;  %v400_v1 = vrot.slane %v399_v27, 4  ;;  %v413_v38 = vsel %vm384_vm0, %v324_v36, -inf }
 0xd1f   : > { %v6851_v20 = vpop.eup %6850  ;;  %v5548_v52 = vmul.f32 0.5, %v5532_v30  ;;  %v395_v14 = vrot.slane %v394_v63, 2  ;;  %v420_v36 = vsel %vm384_vm0, %v325_v39, -inf }
 0xd20   : > { %v5424_v28 = vpop.f32.mrf.mxu2  ;;  %v5453_v11 = vpop.f32.mrf.mxu3  ;;  %v10876_v17 = vmul.f32 %v6851_v20, %v10805_v6  ;;  %v401_v20 = vmax.f32 %v399_v27, %v400_v1  ;;  %v12037_v27 = vld [vmem:[#allocation115_spill] sm:$0xff] }
 0xd21   : > { %v5471_v9 = vadd.f32 %v5424_v28, %v12030_v51  ;;  %v5472_v43 = vadd.f32 %v5453_v11, %v12033_v56  ;;  %v10894_v6 = vsel %vm3264_vm4, %v6849_v33, %v5548_v52  ;;  %v388_v33 = vrot.slane %v387_v40, 2  ;;  %v12034_v51 = vld [vmem:[#allocation108_spill] sm:$0xff]  ;;  %v12038_v56 = vld [vmem:[#allocation114_spill] sm:$0xff] }
 0xd22   : > { %v5584_v48 = vmul.f32 %v10894_v6, %v10867_v60  ;;  %v5646_v0 = vmax.f32 %v10636_v13, %v10876_v17  ;;  %v396_v12 = vmax.f32 %v394_v63, %v395_v14  ;;  %v414_v28 = vrot.slane %v413_v38, 4 }
 0xd23   : > { %v6853_v53 = vpop.eup %6852  ;;  %v5487_v16 = vmul.f32 0.5, %v5471_v9  ;;  %v5488_v61 = vmul.f32 0.5, %v5472_v43  ;;  %v389_v58 = vmax.f32 %v387_v40, %v388_v33  ;;  %v402_v21 = vrot.slane %v401_v20, 2  ;;  %v12035_v9 = vld [vmem:[#allocation109_spill] sm:$0xff] }
 0xd24   : > { %v6855_v37 = vpop.eup %6854  ;;  %v5533_v62 = vadd.f32 1.0, %v6853_v53  ;;  %5603 = vrot.lane.b32.xlu0 %v5584_v48, %s6941_s11  ;;  %v12036_v54 = vsel %vm7267_vm2, %v12034_v51, %v12035_v9  ;;  %v397_v53 = vrot.slane %v396_v12, 1 }
 0xd25   : > { %6856 = vtanh.f32 %v5487_v16  ;;  %v5504_v30 = vsel %vm3264_vm4, %v5472_v43, %v5488_v61  ;;  %v5534_v15 = vadd.f32 1.0, %v6855_v37  ;;  %v390_v19 = vrot.slane %v389_v58, 1 }
 0xd26   : > { %v10907_v45 = vmul.f32 0.5, %v5533_v62  ;;  %6858 = vtanh.f32 %v5504_v30  ;;  %v12039_v43 = vsel %vm7380_vm3, %v12037_v27, %v12038_v56  ;;  %v403_v16 = vmax.f32 %v401_v20, %v402_v21  ;;  %v12040_v27 = vld [vmem:[#allocation124_spill] sm:$0xff]  ;;  %v12041_v56 = vld [vmem:[#allocation122_spill] sm:$0xff] }
 0xd27   : > { %v5550_v52 = vmul.f32 0.5, %v5534_v15  ;;  %v391_v8 = vmax.f32 %v389_v58, %v390_v19  ;;  %v408_v61 = vmax.f32 %v406_v46, %v407_v55  ;;  %v398_v33 = vmax.f32 %v396_v12, %v397_v53  ;;  %v12043_v53 = vld [vmem:[#allocation134_spill] sm:$0xff] }
 0xd28   : > { %v5427_v11 = vpop.f32.mrf.mxu2  ;;  %v5456_v50 = vpop.f32.mrf.mxu3  ;;  %v415_v30 = vmax.f32 %v413_v38, %v414_v28  ;;  %v428_v19 = vrot.slane %v427_v35, 4 }
 0xd29   : > { %v5473_v59 = vadd.f32 %v5427_v11, %v12036_v54  ;;  %v5474_v48 = vadd.f32 %v5456_v50, %v12039_v43  ;;  %v10923_v40 = vsel %vm3264_vm4, %v6855_v37, %v5550_v52  ;;  %v404_v11 = vrot.slane %v403_v16, 1 }
 0xd2a   : > { %v5585_v39 = vmul.f32 %v10923_v40, %v10907_v45  ;;  %v409_v50 = vrot.slane %v408_v61, 2  ;;  %v421_v37 = vrot.slane %v420_v36, 4  ;;  %v416_v58 = vrot.slane %v415_v30, 2 }
 0xd2b   : > { %v6857_v63 = vpop.eup %6856  ;;  %v5489_v1 = vmul.f32 0.5, %v5473_v59  ;;  %v5490_v62 = vmul.f32 0.5, %v5474_v48  ;;  %v405_v46 = vmax.f32 %v403_v16, %v404_v11  ;;  %v434_v59 = vsel %vm384_vm0, %v327_v3, -inf }
 0xd2c   : > { %v6859_v15 = vpop.eup %6858  ;;  %v5535_v14 = vadd.f32 1.0, %v6857_v63  ;;  %5605 = vrot.lane.b32.xlu1 %v5585_v39, %s6941_s11  ;;  %v410_v55 = vmax.f32 %v408_v61, %v409_v50  ;;  %v417_v38 = vmax.f32 %v415_v30, %v416_v58  ;;  %v422_v28 = vmax.f32 %v420_v36, %v421_v37  ;;  %v12044_v36 = vld [vmem:[#allocation130_spill] sm:$0xff]  ;;  %v5855_v58 = vld [vmem:[%s11365_s4 + $0x18] sm:$0xff] }
 0xd2d   : > { %6860 = vtanh.f32 %v5489_v1  ;;  %v5506_v52 = vsel %vm3264_vm4, %v5474_v48, %v5490_v62  ;;  %v5536_v51 = vadd.f32 1.0, %v6859_v15  ;;  %v12042_v43 = vsel %vm7267_vm2, %v12040_v27, %v12041_v56  ;;  %5905 = vmatpush.msrb.mxu0 %v5855_v58  ;;  %6474 = vmatpush.msra.mxu2 %v5855_v58 }
 0xd2e   : > { %v10930_v20 = vmul.f32 0.5, %v5535_v14  ;;  %6862 = vtanh.f32 %v5506_v52  ;;  %v411_v54 = vrot.slane %v410_v55, 1  ;;  %v12045_v39 = vsel %vm7380_vm3, %v12043_v53, %v12044_v36  ;;  %v266_v53 = vld [vmem:[%s7014_s19 + $0x28] sm:$0xff]  }
 0xd2f   : > { %v5552_v12 = vmul.f32 0.5, %v5536_v51  ;;  %v418_v29 = vrot.slane %v417_v38, 1  ;;  %v423_v42 = vrot.slane %v422_v28, 2  ;;  %v429_v1 = vmax.f32 %v427_v35, %v428_v19 }
 0xd30   : > { %v5429_v21 = vpop.f32.mrf.mxu2  ;;  %v5458_v9 = vpop.f32.mrf.mxu3  ;;  %v412_v63 = vmax.f32 %v410_v55, %v411_v54  ;;  %v435_v10 = vrot.slane %v434_v59, 4 }
 0xd31   : > { %v5475_v48 = vadd.f32 %v5429_v21, %v12042_v43  ;;  %v5476_v16 = vadd.f32 %v5458_v9, %v12045_v39  ;;  %v10947_v61 = vsel %vm3264_vm4, %v6859_v15, %v5552_v12  ;;  %v419_v11 = vmax.f32 %v417_v38, %v418_v29 }
 0xd32   : > { %v5586_v3 = vmul.f32 %v10947_v61, %v10930_v20  ;;  %v424_v52 = vmax.f32 %v422_v28, %v423_v42  ;;  %v430_v51 = vrot.slane %v429_v1, 2  ;;  %v5750_v15 = vsel %vm5749_vm6, %v398_v33, %v391_v8 }
 0xd33   : > { %v6861_v62 = vpop.eup %6860  ;;  %v5491_v30 = vmul.f32 0.5, %v5475_v48  ;;  %v5492_v14 = vmul.f32 0.5, %v5476_v16  ;;  %v436_v12 = vmax.f32 %v434_v59, %v435_v10  ;;  %v5752_v21 = vsel %vm5751_vm7, %v405_v46, %v5750_v15  ;;  %v264_v59 = vld [vmem:[%s7014_s19 + $0x20] sm:$0xff]  }
 0xd34   : > { %v6863_v50 = vpop.eup %6862  ;;  %v5537_v37 = vadd.f32 1.0, %v6861_v62  ;;  %5607 = vrot.lane.b32.xlu2 %v5586_v3, %s6941_s11  ;;  %v425_v28 = vrot.slane %v424_v52, 1  ;;  %v431_v19 = vmax.f32 %v429_v1, %v430_v51  ;;  %v5754_v27 = vsel %vm5753_vm8, %v412_v63, %v5752_v21  ;;  %v270_v63 = vld [vmem:[%s7014_s19 + $0x38] sm:$0xff]  }
 0xd35   : > { %6864 = vtanh.f32 %v5491_v30  ;;  %v5508_v35 = vsel %vm3264_vm4, %v5476_v16, %v5492_v14  ;;  %v5538_v55 = vadd.f32 1.0, %v6863_v50  ;;  %v437_v33 = vrot.slane %v436_v12, 2  ;;  %v268_v16 = vld [vmem:[%s7014_s19 + $0x30] sm:$0xff]  }
 0xd36   : > { %v10958_v38 = vmul.f32 0.5, %v5537_v37  ;;  %6866 = vtanh.f32 %v5508_v35  ;;  %v426_v9 = vmax.f32 %v424_v52, %v425_v28  ;;  %v432_v54 = vrot.slane %v431_v19, 1 }
 0xd37   : > { %v5554_v8 = vmul.f32 0.5, %v5538_v55  ;;  %v438_v43 = vmax.f32 %v436_v12, %v437_v33  ;;  %v5756_v48 = vsel %vm5755_vm9, %v419_v11, %v5754_v27  ;;  %v328_v42 = vunpack.c.l.bf16 %v264_v59 }
 0xd38   : > { %v433_v36 = vmax.f32 %v431_v19, %v432_v54  ;;  %v5758_v39 = vsel %vm5757_vm10, %v426_v9, %v5756_v48  ;;  %v329_v1 = vunpack.c.h.bf16 %v264_v59  ;;  %v330_v11 = vunpack.c.l.bf16 %v266_v53 }
 0xd39   : > { %v10965_v56 = vsel %vm3264_vm4, %v6863_v50, %v5554_v8  ;;  %v439_v3 = vrot.slane %v438_v43, 1  ;;  %v331_v10 = vunpack.c.h.bf16 %v266_v53  ;;  %v332_v52 = vunpack.c.l.bf16 %v268_v16 }
 0xd3a   : > { %v5587_v46 = vmul.f32 %v10965_v56, %v10958_v38  ;;  %v5760_v14 = vsel %vm5759_vm11, %v433_v36, %v5758_v39  ;;  %v333_v51 = vunpack.c.h.bf16 %v268_v16  ;;  %v334_v58 = vunpack.c.l.bf16 %v270_v63 }
 0xd3b   : > { %v6865_v29 = vpop.eup %6864  ;;  %v440_v37 = vmax.f32 %v438_v43, %v439_v3  ;;  %v335_v35 = vunpack.c.h.bf16 %v270_v63  ;;  %v441_v55 = vsel %vm384_vm0, %v328_v42, -inf  ;;  %v455_v19 = vsel %vm384_vm0, %v330_v11, -inf }
 0xd3c   : > { %v6867_v62 = vpop.eup %6866  ;;  %v5539_v30 = vadd.f32 1.0, %v6865_v29  ;;  %5661 = vrot.lane.b32.xlu2 %v5645_v26, %s6941_s11  ;;  %5609 = vrot.lane.b32.xlu1 %v5587_v46, %s6941_s11  ;;  %v442_v47 = vrot.slane %v441_v55, 4  ;;  %v448_v26 = vsel %vm384_vm0, %v329_v1, -inf  ;;  %v462_v8 = vsel %vm384_vm0, %v331_v10, -inf }
 0xd3d   : > { %v5540_v50 = vadd.f32 1.0, %v6867_v62  ;;  %v5762_v41 = vsel %vm5761_vm12, %v440_v37, %v5760_v14  ;;  %v449_v28 = vrot.slane %v448_v26, 4  ;;  %v469_v33 = vsel %vm384_vm0, %v332_v52, -inf }
 0xd3e   : > { %v10980_v15 = vmul.f32 0.5, %v5539_v30  ;;  %v443_v9 = vmax.f32 %v441_v55, %v442_v47  ;;  %v456_v54 = vrot.slane %v455_v19, 4  ;;  %v463_v27 = vrot.slane %v462_v8, 4 }
 0xd3f   : > { %v5556_v12 = vmul.f32 0.5, %v5540_v50  ;;  %v450_v43 = vmax.f32 %v448_v26, %v449_v28  ;;  %v470_v48 = vrot.slane %v469_v33, 4  ;;  %v476_v53 = vsel %vm384_vm0, %v333_v51, -inf }
 0xd40   : > { %v444_v46 = vrot.slane %v443_v9, 2  ;;  %v457_v36 = vmax.f32 %v455_v19, %v456_v54  ;;  %v464_v39 = vmax.f32 %v462_v8, %v463_v27  ;;  %v477_v16 = vrot.slane %v476_v53, 4 }
 0xd41   : > { %v10990_v21 = vsel %vm3264_vm4, %v6867_v62, %v5556_v12  ;;  %v451_v18 = vrot.slane %v450_v43, 2  ;;  %v471_v29 = vmax.f32 %v469_v33, %v470_v48  ;;  %v483_v3 = vsel %vm384_vm0, %v334_v58, -inf }
 0xd42   : > { %v5588_v59 = vmul.f32 %v10990_v21, %v10980_v15  ;;  %v490_v63 = vsel %vm384_vm0, %v335_v35, -inf  ;;  %v445_v42 = vmax.f32 %v443_v9, %v444_v46  ;;  %v458_v1 = vrot.slane %v457_v36, 2 }
 0xd43   : > { %v465_v62 = vrot.slane %v464_v39, 2  ;;  %v478_v30 = vmax.f32 %v476_v53, %v477_v16  ;;  %v452_v14 = vmax.f32 %v450_v43, %v451_v18  ;;  %v472_v11 = vrot.slane %v471_v29, 2 }
 0xd44   : > { %5663 = vrot.lane.b32.xlu1 %v5646_v0, %s6941_s11  ;;  %5611 = vrot.lane.b32.xlu0 %v5588_v59, %s6941_s11  ;;  %v484_v10 = vrot.slane %v483_v3, 4  ;;  %v491_v50 = vrot.slane %v490_v63, 4  ;;  %v446_v37 = vrot.slane %v445_v42, 1  ;;  %v459_v52 = vmax.f32 %v457_v36, %v458_v1 }
 0xd45   : > { %v466_v13 = vmax.f32 %v464_v39, %v465_v62  ;;  %v479_v17 = vrot.slane %v478_v30, 2  ;;  %v453_v0 = vrot.slane %v452_v14, 1  ;;  %v473_v51 = vmax.f32 %v471_v29, %v472_v11  ;;  %v272_v62 = vld [vmem:[%s7014_s19 + $0x40] sm:$0xff]  }
 0xd46   : > { %v485_v55 = vmax.f32 %v483_v3, %v484_v10  ;;  %v492_v12 = vmax.f32 %v490_v63, %v491_v50  ;;  %v447_v47 = vmax.f32 %v445_v42, %v446_v37  ;;  %v460_v58 = vrot.slane %v459_v52, 1  ;;  %v276_v50 = vld [vmem:[%s7014_s19 + $0x50] sm:$0xff]  }
 0xd47   : > { %v467_v26 = vrot.slane %v466_v13, 1  ;;  %v480_v35 = vmax.f32 %v478_v30, %v479_v17  ;;  %v454_v28 = vmax.f32 %v452_v14, %v453_v0  ;;  %v474_v19 = vrot.slane %v473_v51, 1  ;;  %v274_v30 = vld [vmem:[%s7014_s19 + $0x48] sm:$0xff]  }
 0xd48   : > { %v486_v8 = vrot.slane %v485_v55, 2  ;;  %v493_v33 = vrot.slane %v492_v12, 2  ;;  %v461_v9 = vmax.f32 %v459_v52, %v460_v58  ;;  %v336_v14 = vunpack.c.l.bf16 %v272_v62 }
 0xd49   : > { %v468_v54 = vmax.f32 %v466_v13, %v467_v26  ;;  %v481_v27 = vrot.slane %v480_v35, 1  ;;  %v475_v59 = vmax.f32 %v473_v51, %v474_v19  ;;  %v5763_v53 = vsel %vm5749_vm6, %v454_v28, %v447_v47 }
 0xd4a   : > { %v487_v43 = vmax.f32 %v485_v55, %v486_v8  ;;  %v494_v48 = vmax.f32 %v492_v12, %v493_v33  ;;  %v5764_v36 = vsel %vm5751_vm7, %v461_v9, %v5763_v53  ;;  %v337_v11 = vunpack.c.h.bf16 %v272_v62  ;;  %v278_v12 = vld [vmem:[%s7014_s19 + $0x58] sm:$0xff]  }
 0xd4b   : > { %v482_v46 = vmax.f32 %v480_v35, %v481_v27  ;;  %v5765_v18 = vsel %vm5753_vm8, %v468_v54, %v5764_v36  ;;  %v338_v10 = vunpack.c.l.bf16 %v274_v30  ;;  %v339_v37 = vunpack.c.h.bf16 %v274_v30 }
 0xd4c   : > { %5812 = vrot.lane.b32.xlu0 %v5762_v41, %s6941_s11  ;;  %v488_v39 = vrot.slane %v487_v43, 1  ;;  %v495_v16 = vrot.slane %v494_v48, 1  ;;  %v5766_v29 = vsel %vm5755_vm9, %v475_v59, %v5765_v18  ;;  %v497_v52 = vsel %vm384_vm0, %v336_v14, -inf }
 0xd4d   : > { %v5767_v41 = vsel %vm5757_vm10, %v482_v46, %v5766_v29  ;;  %v504_v13 = vsel %vm384_vm0, %v337_v11, -inf  ;;  %v340_v17 = vunpack.c.l.bf16 %v276_v50  ;;  %v498_v0 = vrot.slane %v497_v52, 4 }
 0xd4e   : > { %v489_v3 = vmax.f32 %v487_v43, %v488_v39  ;;  %v496_v63 = vmax.f32 %v494_v48, %v495_v16  ;;  %v505_v51 = vrot.slane %v504_v13, 4  ;;  %v511_v55 = vsel %vm384_vm0, %v338_v10, -inf }
 0xd4f   : > { %v341_v47 = vunpack.c.h.bf16 %v276_v50  ;;  %v512_v58 = vrot.slane %v511_v55, 4  ;;  %v518_v26 = vsel %vm384_vm0, %v339_v37, -inf  ;;  %v342_v35 = vunpack.c.l.bf16 %v278_v12 }
 0xd50   : > { %v5768_v42 = vsel %vm5759_vm11, %v489_v3, %v5767_v41  ;;  %v343_v28 = vunpack.c.h.bf16 %v278_v12  ;;  %v499_v19 = vmax.f32 %v497_v52, %v498_v0  ;;  %v506_v8 = vmax.f32 %v504_v13, %v505_v51 }
 0xd51   : > { %v5769_v1 = vsel %vm5761_vm12, %v496_v63, %v5768_v42  ;;  %v513_v33 = vmax.f32 %v511_v55, %v512_v58  ;;  %v519_v9 = vrot.slane %v518_v26, 4  ;;  %v525_v54 = vsel %vm384_vm0, %v340_v17, -inf  ;;  %v280_v17 = vld [vmem:[%s7014_s19 + $0x60] sm:$0xff]  }
 0xd52   : > { %5814 = vrot.lane.b32.xlu2 %v5769_v1, %s6941_s11  ;;  %v532_v27 = vsel %vm384_vm0, %v341_v47, -inf  ;;  %v500_v59 = vrot.slane %v499_v19, 2  ;;  %v507_v43 = vrot.slane %v506_v8, 2  ;;  %v526_v48 = vrot.slane %v525_v54, 4 }
 0xd53   : > { %v533_v53 = vrot.slane %v532_v27, 4  ;;  %v514_v46 = vrot.slane %v513_v33, 2  ;;  %v520_v36 = vmax.f32 %v518_v26, %v519_v9  ;;  %v539_v39 = vsel %vm384_vm0, %v342_v35, -inf }
 0xd54   : > { %v546_v16 = vsel %vm384_vm0, %v343_v28, -inf  ;;  %v501_v18 = vmax.f32 %v499_v19, %v500_v59  ;;  %v508_v29 = vmax.f32 %v506_v8, %v507_v43  ;;  %v527_v3 = vmax.f32 %v525_v54, %v526_v48  ;;  %v282_v28 = vld [vmem:[%s7014_s19 + $0x68] sm:$0xff]   ;;  %v284_v48 = vld [vmem:[%s7014_s19 + $0x70] sm:$0xff]  }
 0xd55   : > { %v534_v63 = vmax.f32 %v532_v27, %v533_v53  ;;  %v515_v41 = vmax.f32 %v513_v33, %v514_v46  ;;  %v521_v42 = vrot.slane %v520_v36, 2  ;;  %v540_v1 = vrot.slane %v539_v39, 4  ;;  %v286_v53 = vld [vmem:[%s7014_s19 + $0x78] sm:$0xff]  }
 0xd56   : > { %v547_v62 = vrot.slane %v546_v16, 4  ;;  %v502_v30 = vrot.slane %v501_v18, 1  ;;  %v509_v14 = vrot.slane %v508_v29, 1  ;;  %v528_v11 = vrot.slane %v527_v3, 2 }
 0xd57   : > { %v535_v10 = vrot.slane %v534_v63, 2  ;;  %v516_v50 = vrot.slane %v515_v41, 1  ;;  %v522_v37 = vmax.f32 %v520_v36, %v521_v42  ;;  %v541_v52 = vmax.f32 %v539_v39, %v540_v1 }
 0xd58   : > { %v548_v13 = vmax.f32 %v546_v16, %v547_v62  ;;  %v503_v0 = vmax.f32 %v501_v18, %v502_v30  ;;  %v510_v51 = vmax.f32 %v508_v29, %v509_v14  ;;  %v529_v55 = vmax.f32 %v527_v3, %v528_v11 }
 0xd59   : > { %v536_v12 = vmax.f32 %v534_v63, %v535_v10  ;;  %v517_v47 = vmax.f32 %v515_v41, %v516_v50  ;;  %v523_v58 = vrot.slane %v522_v37, 1  ;;  %v542_v26 = vrot.slane %v541_v52, 2 }
 0xd5a   : > { %v549_v35 = vrot.slane %v548_v13, 2  ;;  %v530_v19 = vrot.slane %v529_v55, 1  ;;  %v5770_v33 = vsel %vm5749_vm6, %v510_v51, %v503_v0  ;;  %v344_v9 = vunpack.c.l.bf16 %v280_v17 }
 0xd5b   : > { %v537_v8 = vrot.slane %v536_v12, 1  ;;  %v524_v54 = vmax.f32 %v522_v37, %v523_v58  ;;  %v543_v27 = vmax.f32 %v541_v52, %v542_v26  ;;  %v5771_v43 = vsel %vm5751_vm7, %v517_v47, %v5770_v33 }
 0xd5c   : > { %v550_v59 = vmax.f32 %v548_v13, %v549_v35  ;;  %v531_v46 = vmax.f32 %v529_v55, %v530_v19  ;;  %v345_v39 = vunpack.c.h.bf16 %v280_v17  ;;  %v346_v16 = vunpack.c.l.bf16 %v282_v28 }
 0xd5d   : > { %v538_v36 = vmax.f32 %v536_v12, %v537_v8  ;;  %v544_v18 = vrot.slane %v543_v27, 1  ;;  %v5772_v3 = vsel %vm5753_vm8, %v524_v54, %v5771_v43  ;;  %v347_v63 = vunpack.c.h.bf16 %v282_v28 }
 0xd5e   : > { %v551_v29 = vrot.slane %v550_v59, 1  ;;  %v5773_v41 = vsel %vm5755_vm9, %v531_v46, %v5772_v3  ;;  %v348_v42 = vunpack.c.l.bf16 %v284_v48  ;;  %v349_v1 = vunpack.c.h.bf16 %v284_v48 }
 0xd5f   : > { %v350_v62 = vunpack.c.l.bf16 %v286_v53  ;;  %v545_v30 = vmax.f32 %v543_v27, %v544_v18  ;;  %v5774_v11 = vsel %vm5757_vm10, %v538_v36, %v5773_v41  ;;  %v351_v10 = vunpack.c.h.bf16 %v286_v53 }
 0xd60   : > { %v552_v14 = vmax.f32 %v550_v59, %v551_v29  ;;  %v553_v50 = vsel %vm384_vm0, %v344_v9, -inf  ;;  %v560_v37 = vsel %vm384_vm0, %v345_v39, -inf  ;;  %v567_v52 = vsel %vm384_vm0, %v346_v16, -inf }
 0xd61   : > { %v574_v13 = vsel %vm384_vm0, %v347_v63, -inf  ;;  %v5775_v17 = vsel %vm5759_vm11, %v545_v30, %v5774_v11  ;;  %v554_v0 = vrot.slane %v553_v50, 4  ;;  %v561_v51 = vrot.slane %v560_v37, 4 }
 0xd62   : > { %v568_v55 = vrot.slane %v567_v52, 4  ;;  %v5776_v12 = vsel %vm5761_vm12, %v552_v14, %v5775_v17  ;;  %v575_v47 = vrot.slane %v574_v13, 4  ;;  %v581_v58 = vsel %vm384_vm0, %v348_v42, -inf  ;;  %v5854_v42 = vld [vmem:[%s11365_s4 + $0x10] sm:$0xff] }
 0xd63   : > { %v588_v26 = vsel %vm384_vm0, %v349_v1, -inf  ;;  %5816 = vrot.lane.b32.xlu1 %v5776_v12, %s6941_s11  ;;  %v555_v35 = vmax.f32 %v553_v50, %v554_v0  ;;  %v562_v28 = vmax.f32 %v560_v37, %v561_v51  ;;  %v582_v8 = vrot.slane %v581_v58, 4  ;;  %5906 = vmatpush.msrb.mxu0 %v5854_v42 }
 0xd64   : > { %v569_v19 = vmax.f32 %v567_v52, %v568_v55  ;;  %v576_v33 = vmax.f32 %v574_v13, %v575_v47  ;;  %v589_v9 = vrot.slane %v588_v26, 4  ;;  %v595_v54 = vsel %vm384_vm0, %v350_v62, -inf  ;;  %6475 = vmatpush.msra.mxu2 %v5854_v42  ;;  %v296_v42 = vld [vmem:[%s7014_s19 + $0xa0] sm:$0xff]  }
 0xd65   : > { %v602_v27 = vsel %vm384_vm0, %v351_v10, -inf  ;;  %v556_v59 = vrot.slane %v555_v35, 2  ;;  %v563_v43 = vrot.slane %v562_v28, 2  ;;  %v583_v53 = vmax.f32 %v581_v58, %v582_v8 }
 0xd66   : > { %v570_v48 = vrot.slane %v569_v19, 2  ;;  %v577_v46 = vrot.slane %v576_v33, 2  ;;  %v590_v36 = vmax.f32 %v588_v26, %v589_v9  ;;  %v596_v39 = vrot.slane %v595_v54, 4 }
 0xd67   : > { %v557_v16 = vmax.f32 %v555_v35, %v556_v59  ;;  %v564_v18 = vmax.f32 %v562_v28, %v563_v43  ;;  %v584_v3 = vrot.slane %v583_v53, 2  ;;  %v603_v41 = vrot.slane %v602_v27, 4 }
 0xd68   : > { %v571_v29 = vmax.f32 %v569_v19, %v570_v48  ;;  %v578_v63 = vmax.f32 %v576_v33, %v577_v46  ;;  %v597_v14 = vmax.f32 %v595_v54, %v596_v39  ;;  %v591_v11 = vrot.slane %v590_v36, 2 }
 0xd69   : > { %v558_v1 = vrot.slane %v557_v16, 1  ;;  %v565_v62 = vrot.slane %v564_v18, 1  ;;  %v585_v37 = vmax.f32 %v583_v53, %v584_v3  ;;  %v5575_v52 = vmul.f32 %v10840_v49, %v10690_v57 }
 0xd6a   : > { %v572_v30 = vrot.slane %v571_v29, 1  ;;  %v579_v13 = vrot.slane %v578_v63, 1  ;;  %v604_v17 = vmax.f32 %v602_v27, %v603_v41  ;;  %v598_v55 = vrot.slane %v597_v14, 2 }
 0xd6b   : > { %v559_v10 = vmax.f32 %v557_v16, %v558_v1  ;;  %v566_v50 = vmax.f32 %v564_v18, %v565_v62  ;;  %v592_v47 = vmax.f32 %v590_v36, %v591_v11  ;;  %v586_v26 = vrot.slane %v585_v37, 1  ;;  %v298_v1 = vld [vmem:[%s7014_s19 + $0xa8] sm:$0xff]   ;;  %v300_v62 = vld [vmem:[%s7014_s19 + $0xb0] sm:$0xff]  }
 0xd6c   : > { %v573_v51 = vmax.f32 %v571_v29, %v572_v30  ;;  %v580_v35 = vmax.f32 %v578_v63, %v579_v13  ;;  %v605_v28 = vrot.slane %v604_v17, 2  ;;  %v599_v19 = vmax.f32 %v597_v14, %v598_v55  ;;  %v302_v30 = vld [vmem:[%s7014_s19 + $0xb8] sm:$0xff]   ;;  %v11072_v14 = vld [vmem:[%s7014_s19 + $0xe0] sm:$0xff]   ;;  %v11075_v11 = vld [vmem:[%s7014_s19 + $0xe8] sm:$0xff]  }
 0xd6d   : > { %v5777_v58 = vsel %vm5749_vm6, %v566_v50, %v559_v10  ;;  %v593_v33 = vrot.slane %v592_v47, 1  ;;  %v587_v9 = vmax.f32 %v585_v37, %v586_v26  ;;  %v5578_v29 = vmul.f32 %v10930_v20, %v10702_v25 }
 0xd6e   : > { %v5778_v8 = vsel %vm5751_vm7, %v573_v51, %v5777_v58  ;;  %v606_v54 = vmax.f32 %v604_v17, %v605_v28  ;;  %v600_v49 = vrot.slane %v599_v19, 1  ;;  %v5576_v63 = vmul.f32 %v10867_v60, %v10704_v22  ;;  %v11082_v22 = vld [vmem:[%s7014_s19 + $0xf0] sm:$0xff]  }
 0xd6f   : > { %v5779_v57 = vsel %vm5753_vm8, %v580_v35, %v5778_v8  ;;  %v594_v59 = vmax.f32 %v592_v47, %v593_v33  ;;  %v11065_v41 = vmul.f32 %v10907_v45, %v10715_v31  ;;  %v360_v25 = vunpack.c.l.bf16 %v296_v42  ;;  %v11085_v31 = vld [vmem:[%s7014_s19 + $0xf8] sm:$0xff]  }
 0xd70   : > { %v5780_v48 = vsel %vm5755_vm9, %v587_v9, %v5779_v57  ;;  %v607_v53 = vrot.slane %v606_v54, 1  ;;  %v601_v36 = vmax.f32 %v599_v19, %v600_v49  ;;  %v361_v20 = vunpack.c.h.bf16 %v296_v42 }
 0xd71   : > { %v5781_v39 = vsel %vm5757_vm10, %v594_v59, %v5780_v48  ;;  %v362_v10 = vunpack.c.l.bf16 %v298_v1  ;;  %v363_v50 = vunpack.c.h.bf16 %v298_v1  ;;  %v11079_v37 = vmul.f32 %v10958_v38, %v10739_v2 }
 0xd72   : > { %v608_v16 = vmax.f32 %v606_v54, %v607_v53  ;;  %v5782_v18 = vsel %vm5759_vm11, %v601_v36, %v5781_v39  ;;  %v364_v60 = vunpack.c.l.bf16 %v300_v62  ;;  %v365_v45 = vunpack.c.h.bf16 %v300_v62 }
 0xd73   : > { %v367_v13 = vunpack.c.h.bf16 %v302_v30  ;;  %v376_v17 = vunpack.c.l.bf16 %v11072_v14  ;;  %v378_v51 = vunpack.c.l.bf16 %v11075_v11  ;;  %v379_v55 = vunpack.c.h.bf16 %v11075_v11 }
 0xd74   : > { %v381_v2 = vunpack.c.h.bf16 %v11082_v22  ;;  %v382_v38 = vunpack.c.l.bf16 %v11085_v31  ;;  %v665_v58 = vsel %vm384_vm0, %v360_v25, -inf  ;;  %v672_v26 = vsel %vm384_vm0, %v361_v20, -inf }
 0xd75   : > { %v679_v35 = vsel %vm384_vm0, %v362_v10, -inf  ;;  %v686_v28 = vsel %vm384_vm0, %v363_v50, -inf  ;;  %v666_v33 = vrot.slane %v665_v58, 4  ;;  %v673_v9 = vrot.slane %v672_v26, 4 }
 0xd76   : > { %v5602_v0 = vpop.permute.xlu2 %5601  ;;  %v680_v54 = vrot.slane %v679_v35, 4  ;;  %v687_v49 = vrot.slane %v686_v28, 4  ;;  %v700_v59 = vsel %vm384_vm0, %v365_v45, -inf  ;;  %v714_v25 = vsel %vm384_vm0, %v367_v13, -inf }
 0xd77   : > { %v5623_v12 = vadd.f32 %v5602_v0, %v5575_v52  ;;  %v366_v52 = vunpack.c.l.bf16 %v302_v30  ;;  %v377_v0 = vunpack.c.h.bf16 %v11072_v14  ;;  %v674_v48 = vmax.f32 %v672_v26, %v673_v9 }
 0xd78   : > { %v681_v53 = vmax.f32 %v679_v35, %v680_v54  ;;  %v688_v36 = vmax.f32 %v686_v28, %v687_v49  ;;  %v5853_v54 = vld [vmem:[%s11365_s4 + $0x8] sm:$0xff]  ;;  %v798_v14 = vsel %vm384_vm0, %v379_v55, -inf }
 0xd79   : > { %6868 = vtanh.f32 %v5623_v12  ;;  %v380_v12 = vunpack.c.l.bf16 %v11082_v22  ;;  %5907 = vmatpush.msrb.mxu0 %v5853_v54  ;;  %6476 = vmatpush.msra.mxu2 %v5853_v54 }
 0xd7f   : > { %v6869_v27 = vpop.eup %6868 }
 0xd80   : > { %v5639_v43 = vmul.f32 %v6869_v27, %v10856_v44  ;;  %v5783_v44 = vsel %vm5761_vm12, %v608_v16, %v5782_v18  ;;  %v693_v27 = vsel %vm384_vm0, %v364_v60, -inf  ;;  %v701_v16 = vrot.slane %v700_v59, 4 }
 0xd81   : > { %v694_v39 = vrot.slane %v693_v27, 4 }
 0xd82   : > { %v5647_v46 = vmax.f32 %v10697_v7, %v5639_v43  ;;  %v667_v43 = vmax.f32 %v665_v58, %v666_v33  ;;  %v383_v33 = vunpack.c.h.bf16 %v11085_v31 }
 0xd84   : > { %5665 = vrot.lane.b32.xlu0 %v5647_v46, %s6941_s11  ;;  %v668_v18 = vrot.slane %v667_v43, 2 }
 0xd86   : > { %v669_v1 = vmax.f32 %v667_v43, %v668_v18  ;;  %v777_v43 = vsel %vm384_vm0, %v376_v17, -inf  ;;  %v791_v18 = vsel %vm384_vm0, %v378_v51, -inf }
 0xd8c   : > { %5818 = vrot.lane.b32.xlu0 %v5783_v44, %s6941_s11  ;;  %v675_v44 = vrot.slane %v674_v48, 2 }
 0xd8e   : > { %v5608_v7 = vpop.permute.xlu2 %5607  ;;  %v676_v62 = vmax.f32 %v674_v48, %v675_v44  ;;  %v784_v48 = vsel %vm384_vm0, %v377_v0, -inf  ;;  %v792_v44 = vrot.slane %v791_v18, 4 }
 0xd8f   : > { %v5626_v3 = vadd.f32 %v5608_v7, %v5578_v29  ;;  %v682_v29 = vrot.slane %v681_v53, 2  ;;  %v707_v7 = vsel %vm384_vm0, %v366_v52, -inf  ;;  %v670_v52 = vrot.slane %v669_v1, 1 }
 0xd90   : > { %v708_v42 = vrot.slane %v707_v7, 4  ;;  %v677_v58 = vrot.slane %v676_v62, 1  ;;  %v793_v55 = vmax.f32 %v791_v18, %v792_v44 }
 0xd91   : > { %6870 = vtanh.f32 %v5626_v3  ;;  %v695_v3 = vmax.f32 %v693_v27, %v694_v39  ;;  %v683_v30 = vmax.f32 %v681_v53, %v682_v29  ;;  %v11108_v13 = vmax.f32 %v669_v1, %v670_v52 }
 0xd92   : > { %v709_v60 = vmax.f32 %v707_v7, %v708_v42  ;;  %v11110_v9 = vmax.f32 %v676_v62, %v677_v58  ;;  %v799_v29 = vrot.slane %v798_v14, 4  ;;  %v812_v42 = vsel %vm384_vm0, %v381_v2, -inf }
 0xd93   : > { %v696_v10 = vrot.slane %v695_v3, 2  ;;  %v684_v26 = vrot.slane %v683_v30, 1  ;;  %v813_v22 = vrot.slane %v812_v42, 4  ;;  %v819_v58 = vsel %vm384_vm0, %v382_v38, -inf }
 0xd94   : > { %v710_v27 = vrot.slane %v709_v60, 2  ;;  %v5791_v38 = vsel %vm5749_vm6, %v11110_v9, %v11108_v13 }
 0xd96   : > { %v5604_v47 = vpop.permute.xlu0 %5603  ;;  %v711_v39 = vmax.f32 %v709_v60, %v710_v27  ;;  %v794_v60 = vrot.slane %v793_v55, 2 }
 0xd97   : > { %v6871_v19 = vpop.eup %6870  ;;  %v5624_v8 = vadd.f32 %v5604_v47, %v5576_v63  ;;  %v702_v63 = vmax.f32 %v700_v59, %v701_v16  ;;  %v715_v59 = vrot.slane %v714_v25, 4 }
 0xd98   : > { %v5642_v57 = vmul.f32 %v6871_v19, %v10947_v61  ;;  %v689_v61 = vrot.slane %v688_v36, 2  ;;  %v697_v19 = vmax.f32 %v695_v3, %v696_v10  ;;  %v712_v62 = vrot.slane %v711_v39, 1 }
 0xd99   : > { %6872 = vtanh.f32 %v5624_v8  ;;  %v703_v50 = vrot.slane %v702_v63, 2  ;;  %v716_v16 = vmax.f32 %v714_v25, %v715_v59  ;;  %v800_v25 = vmax.f32 %v798_v14, %v799_v29 }
 0xd9a   : > { %v5650_v46 = vmax.f32 %v10729_v4, %v5642_v57  ;;  %v690_v20 = vmax.f32 %v688_v36, %v689_v61  ;;  %v11116_v57 = vmax.f32 %v683_v30, %v684_v26  ;;  %v698_v49 = vrot.slane %v697_v19, 1 }
 0xd9b   : > { %v704_v8 = vmax.f32 %v702_v63, %v703_v50  ;;  %v785_v36 = vrot.slane %v784_v48, 4  ;;  %v717_v3 = vrot.slane %v716_v16, 2  ;;  %v805_v63 = vsel %vm384_vm0, %v380_v12, -inf }
 0xd9c   : > { %5671 = vrot.lane.b32.xlu0 %v5650_v46, %s6941_s11  ;;  %v691_v28 = vrot.slane %v690_v20, 1  ;;  %v778_v46 = vrot.slane %v777_v43, 4  ;;  %v801_v12 = vrot.slane %v800_v25, 2  ;;  %v795_v52 = vmax.f32 %v793_v55, %v794_v60 }
 0xd9d   : > { %v786_v0 = vmax.f32 %v784_v48, %v785_v36  ;;  %v718_v30 = vmax.f32 %v716_v16, %v717_v3  ;;  %v713_v26 = vmax.f32 %v711_v39, %v712_v62  ;;  %v826_v36 = vsel %vm384_vm0, %v383_v33, -inf }
 0xd9e   : > { %v5606_v4 = vpop.permute.xlu1 %5605  ;;  %v11125_v53 = vmax.f32 %v690_v20, %v691_v28  ;;  %v779_v17 = vmax.f32 %v777_v43, %v778_v46  ;;  %v5792_v44 = vsel %vm5751_vm7, %v11116_v57, %v5791_v38 }
 0xd9f   : > { %v6873_v45 = vpop.eup %6872  ;;  %v5625_v47 = vadd.f32 %v5606_v4, %v11065_v41  ;;  %v787_v1 = vrot.slane %v786_v0, 2  ;;  %v806_v4 = vrot.slane %v805_v63, 4 }
 0xda0   : > { %v5640_v35 = vmul.f32 %v6873_v45, %v10894_v6  ;;  %v705_v6 = vrot.slane %v704_v8, 1  ;;  %v780_v11 = vrot.slane %v779_v17, 2  ;;  %v719_v45 = vrot.slane %v718_v30, 1 }
 0xda1   : > { %6874 = vtanh.f32 %v5625_v47  ;;  %v788_v50 = vmax.f32 %v786_v0, %v787_v1  ;;  %v807_v47 = vmax.f32 %v805_v63, %v806_v4  ;;  %v827_v0 = vrot.slane %v826_v36, 4  ;;  %v290_v1 = vld [vmem:[%s7014_s19 + $0x88] sm:$0xff]  }
 0xda2   : > { %v5648_v41 = vmax.f32 %v10736_v34, %v5640_v35  ;;  %v11127_v34 = vmax.f32 %v697_v19, %v698_v49  ;;  %v706_v61 = vmax.f32 %v704_v8, %v705_v6  ;;  %v781_v10 = vmax.f32 %v779_v17, %v780_v11 }
 0xda3   : > { %v802_v35 = vmax.f32 %v800_v25, %v801_v12  ;;  %v808_v28 = vrot.slane %v807_v47, 2  ;;  %v820_v49 = vrot.slane %v819_v58, 4  ;;  %v720_v6 = vmax.f32 %v718_v30, %v719_v45 }
 0xda4   : > { %5667 = vrot.lane.b32.xlu2 %v5648_v41, %s6941_s11  ;;  %v782_v2 = vrot.slane %v781_v10, 1  ;;  %v796_v41 = vrot.slane %v795_v52, 1  ;;  %v828_v9 = vmax.f32 %v826_v36, %v827_v0 }
 0xda5   : > { %v803_v27 = vrot.slane %v802_v35, 1  ;;  %v809_v59 = vmax.f32 %v807_v47, %v808_v28  ;;  %v821_v46 = vmax.f32 %v819_v58, %v820_v49  ;;  %v354_v47 = vunpack.c.l.bf16 %v290_v1 }
 0xda6   : > { %v783_v8 = vmax.f32 %v781_v10, %v782_v2  ;;  %v797_v48 = vmax.f32 %v795_v52, %v796_v41  ;;  %v829_v62 = vrot.slane %v828_v9, 2  ;;  %v294_v10 = vld [vmem:[%s7014_s19 + $0x98] sm:$0xff]  }
 0xda7   : > { %v6875_v7 = vpop.eup %6874  ;;  %v804_v16 = vmax.f32 %v802_v35, %v803_v27  ;;  %v810_v18 = vrot.slane %v809_v59, 1  ;;  %v822_v17 = vrot.slane %v821_v46, 2  ;;  %v358_v52 = vunpack.c.l.bf16 %v294_v10 }
 0xda8   : > { %v5641_v51 = vmul.f32 %v6875_v7, %v10923_v40  ;;  %v789_v40 = vrot.slane %v788_v50, 1  ;;  %v5793_v7 = vsel %vm5753_vm8, %v11125_v53, %v5792_v44  ;;  %v5580_v53 = vmul.f32 %v10980_v15, %v10743_v5 }
 0xda9   : > { %v811_v29 = vmax.f32 %v809_v59, %v810_v18  ;;  %v5794_v3 = vsel %vm5755_vm9, %v11127_v34, %v5793_v7  ;;  %v292_v34 = vld [vmem:[%s7014_s19 + $0x90] sm:$0xff]   ;;  %v830_v45 = vmax.f32 %v828_v9, %v829_v62  ;;  %v355_v5 = vunpack.c.h.bf16 %v290_v1  ;;  %v5852_v9 = vld [vmem:[%s11365_s4] sm:$0xff] }
 0xdaa   : > { %v5649_v20 = vmax.f32 %v10748_v23, %v5641_v51  ;;  %v814_v23 = vmax.f32 %v812_v42, %v813_v22  ;;  %v790_v54 = vmax.f32 %v788_v50, %v789_v40  ;;  %v288_v42 = vld [vmem:[%s7014_s19 + $0x80] sm:$0xff]   ;;  %v5795_v51 = vsel %vm5757_vm10, %v706_v61, %v5794_v3  ;;  %5908 = vmatpush.msrb.mxu0 %v5852_v9 }
 0xdab   : > { %v5796_v30 = vsel %vm5759_vm11, %v713_v26, %v5795_v51  ;;  %v352_v50 = vunpack.c.l.bf16 %v288_v42  ;;  %v353_v60 = vunpack.c.h.bf16 %v288_v42  ;;  %v356_v15 = vunpack.c.l.bf16 %v292_v34  ;;  %6477 = vmatpush.msra.mxu2 %v5852_v9 }
 0xdac   : > { %5669 = vrot.lane.b32.xlu1 %v5649_v20, %s6941_s11  ;;  %v815_v43 = vrot.slane %v814_v23, 2  ;;  %v5805_v31 = vsel %vm5749_vm6, %v790_v54, %v783_v8  ;;  %v5797_v12 = vsel %vm5761_vm12, %v720_v6, %v5796_v30  ;;  %v357_v22 = vunpack.c.h.bf16 %v292_v34 }
 0xdad   : > { %v5806_v13 = vsel %vm5751_vm7, %v797_v48, %v5805_v31  ;;  %v831_v2 = vrot.slane %v830_v45, 1  ;;  %v359_v58 = vunpack.c.h.bf16 %v294_v10  ;;  %v609_v26 = vsel %vm384_vm0, %v352_v50, -inf  ;;  %v304_v50 = vld [vmem:[%s7014_s19 + $0xc0] sm:$0xff]  }
 0xdae   : > { %v5610_v19 = vpop.permute.xlu1 %5609  ;;  %v816_v14 = vmax.f32 %v814_v23, %v815_v43  ;;  %v5807_v63 = vsel %vm5753_vm8, %v804_v16, %v5806_v13  ;;  %v616_v35 = vsel %vm384_vm0, %v353_v60, -inf  ;;  %v623_v28 = vsel %vm384_vm0, %v354_v47, -inf }
 0xdaf   : > { %v5627_v39 = vadd.f32 %v5610_v19, %v11079_v37  ;;  %v823_v37 = vmax.f32 %v821_v46, %v822_v17  ;;  %v5808_v11 = vsel %vm5755_vm9, %v811_v29, %v5807_v63  ;;  %v630_v23 = vsel %vm384_vm0, %v355_v5, -inf }
 0xdb0   : > { %v817_v33 = vrot.slane %v816_v14, 1  ;;  %v832_v8 = vmax.f32 %v830_v45, %v831_v2  ;;  %v610_v54 = vrot.slane %v609_v26, 4  ;;  %v617_v41 = vrot.slane %v616_v35, 4  ;;  %v306_v2 = vld [vmem:[%s7014_s19 + $0xc8] sm:$0xff]  }
 0xdb1   : > { %6876 = vtanh.f32 %v5627_v39  ;;  %v824_v55 = vrot.slane %v823_v37, 1  ;;  %v624_v49 = vrot.slane %v623_v28, 4  ;;  %v631_v6 = vrot.slane %v630_v23, 4 }
 0xdb2   : > { %v818_v57 = vmax.f32 %v816_v14, %v817_v33  ;;  %v637_v27 = vsel %vm384_vm0, %v356_v15, -inf  ;;  %v644_v59 = vsel %vm384_vm0, %v357_v22, -inf  ;;  %v651_v43 = vsel %vm384_vm0, %v358_v52, -inf }
 0xdb3   : > { %v825_v61 = vmax.f32 %v823_v37, %v824_v55  ;;  %v611_v46 = vmax.f32 %v609_v26, %v610_v54  ;;  %v618_v36 = vmax.f32 %v616_v35, %v617_v41  ;;  %v625_v38 = vmax.f32 %v623_v28, %v624_v49  ;;  %v310_v41 = vld [vmem:[%s7014_s19 + $0xd8] sm:$0xff]  }
 0xdb4   : > { %v5809_v4 = vsel %vm5757_vm10, %v818_v57, %v5808_v11  ;;  %v632_v18 = vmax.f32 %v630_v23, %v631_v6  ;;  %v638_v14 = vrot.slane %v637_v27, 4  ;;  %v645_v17 = vrot.slane %v644_v59, 4 }
 0xdb5   : > { %v5810_v40 = vsel %vm5759_vm11, %v825_v61, %v5809_v4  ;;  %v612_v0 = vrot.slane %v611_v46, 2  ;;  %v619_v44 = vrot.slane %v618_v36, 2  ;;  %v626_v31 = vrot.slane %v625_v38, 2 }
 0xdb6   : > { %v5612_v25 = vpop.permute.xlu0 %5611  ;;  %v5811_v48 = vsel %vm5761_vm12, %v832_v8, %v5810_v40  ;;  %v652_v29 = vrot.slane %v651_v43, 4  ;;  %v633_v33 = vrot.slane %v632_v18, 2  ;;  %v639_v7 = vmax.f32 %v637_v27, %v638_v14 }
 0xdb7   : > { %v5628_v20 = vadd.f32 %v5612_v25, %v5580_v53  ;;  %v11179_v19 = vpop.eup %6876  ;;  %v6490_v16 = vpack.i.bf16 %v5811_v48, %v5797_v12  ;;  %v646_v13 = vmax.f32 %v644_v59, %v645_v17  ;;  %v658_v37 = vsel %vm384_vm0, %v359_v58, -inf  ;;  %v308_v58 = vld [vmem:[%s7014_s19 + $0xd0] sm:$0xff]  }
 0xdb8   : > { %v613_v3 = vmax.f32 %v611_v46, %v612_v0  ;;  %v620_v63 = vmax.f32 %v618_v36, %v619_v44  ;;  %v627_v42 = vmax.f32 %v625_v38, %v626_v31  ;;  %v653_v57 = vmax.f32 %v651_v43, %v652_v29 }
 0xdb9   : > { %6878 = vtanh.f32 %v5628_v20  ;;  %6491 = vrot.lane.b32.xlu1 %v6490_v16, %s6941_s11  ;;  %v634_v51 = vmax.f32 %v632_v18, %v633_v33  ;;  %v640_v11 = vrot.slane %v639_v7, 2  ;;  %v647_v53 = vrot.slane %v646_v13, 2 }
 0xdba   : > { %v659_v1 = vrot.slane %v658_v37, 4  ;;  %v614_v55 = vrot.slane %v613_v3, 1  ;;  %v621_v62 = vrot.slane %v620_v63, 1  ;;  %v628_v30 = vrot.slane %v627_v42, 1 }
 0xdbb   : > { %v654_v25 = vrot.slane %v653_v57, 2  ;;  %v635_v34 = vrot.slane %v634_v51, 1  ;;  %v641_v4 = vmax.f32 %v639_v7, %v640_v11  ;;  %v648_v20 = vmax.f32 %v646_v13, %v647_v53 }
 0xdbc   : > { %v660_v10 = vmax.f32 %v658_v37, %v659_v1  ;;  %v615_v60 = vmax.f32 %v613_v3, %v614_v55  ;;  %v622_v61 = vmax.f32 %v620_v63, %v621_v62  ;;  %v629_v45 = vmax.f32 %v627_v42, %v628_v30 }
 0xdbd   : > { %v655_v12 = vmax.f32 %v653_v57, %v654_v25  ;;  %v636_v47 = vmax.f32 %v634_v51, %v635_v34  ;;  %v642_v5 = vrot.slane %v641_v4, 1  ;;  %v649_v15 = vrot.slane %v648_v20, 1 }
 0xdbe   : > { %v661_v22 = vrot.slane %v660_v10, 2  ;;  %v5784_v52 = vsel %vm5749_vm6, %v622_v61, %v615_v60  ;;  %v368_v26 = vunpack.c.l.bf16 %v304_v50  ;;  %v369_v35 = vunpack.c.h.bf16 %v304_v50 }
 0xdbf   : > { %v11185_v39 = vpop.eup %6878  ;;  %v656_v40 = vrot.slane %v655_v12, 1  ;;  %v643_v28 = vmax.f32 %v641_v4, %v642_v5  ;;  %v650_v23 = vmax.f32 %v648_v20, %v649_v15  ;;  %v5785_v54 = vsel %vm5751_vm7, %v629_v45, %v5784_v52 }
 0xdc0   : > { %v662_v8 = vmax.f32 %v660_v10, %v661_v22  ;;  %v5786_v6 = vsel %vm5753_vm8, %v636_v47, %v5785_v54  ;;  %v370_v27 = vunpack.c.l.bf16 %v306_v2  ;;  %v371_v59 = vunpack.c.h.bf16 %v306_v2 }
 0xdc1   : > { %v657_v49 = vmax.f32 %v655_v12, %v656_v40  ;;  %v5787_v48 = vsel %vm5755_vm9, %v643_v28, %v5786_v6  ;;  %v372_v46 = vunpack.c.l.bf16 %v308_v58  ;;  %v373_v36 = vunpack.c.h.bf16 %v308_v58  ;;  %v5662_v40 = vpop.permute.xlu2 %5661 }
 0xdc2   : > { %v663_v43 = vrot.slane %v662_v8, 1  ;;  %v5788_v38 = vsel %vm5757_vm10, %v650_v23, %v5787_v48  ;;  %v374_v16 = vunpack.c.l.bf16 %v310_v41  ;;  %v375_v18 = vunpack.c.h.bf16 %v310_v41 }
 0xdc3   : > { %v721_v14 = vsel %vm384_vm0, %v368_v26, -inf  ;;  %v5789_v0 = vsel %vm5759_vm11, %v657_v49, %v5788_v38  ;;  %v728_v31 = vsel %vm384_vm0, %v369_v35, -inf  ;;  %v735_v33 = vsel %vm384_vm0, %v370_v27, -inf }
 0xdc4   : > { %v664_v17 = vmax.f32 %v662_v8, %v663_v43  ;;  %v722_v44 = vrot.slane %v721_v14, 4  ;;  %v729_v29 = vrot.slane %v728_v31, 4  ;;  %v742_v7 = vsel %vm384_vm0, %v371_v59, -inf  ;;  %v5813_v59 = vpop.permute.xlu0 %5812 }
 0xdc5   : > { %v749_v13 = vsel %vm384_vm0, %v372_v46, -inf  ;;  %v736_v3 = vrot.slane %v735_v33, 4  ;;  %v743_v63 = vrot.slane %v742_v7, 4  ;;  %v756_v51 = vsel %vm384_vm0, %v373_v36, -inf }
 0xdc6   : > { %v5790_v37 = vsel %vm5761_vm12, %v664_v17, %v5789_v0  ;;  %v723_v9 = vmax.f32 %v721_v14, %v722_v44  ;;  %v730_v42 = vmax.f32 %v728_v31, %v729_v29  ;;  %v750_v57 = vrot.slane %v749_v13, 4 }
 0xdc7   : > { %5820 = vrot.lane.b32.xlu2 %v5790_v37, %s6941_s11  ;;  %v763_v11 = vsel %vm384_vm0, %v374_v16, -inf  ;;  %v737_v1 = vmax.f32 %v735_v33, %v736_v3  ;;  %v744_v55 = vmax.f32 %v742_v7, %v743_v63  ;;  %v757_v62 = vrot.slane %v756_v51, 4 }
 0xdc8   : > { %v724_v53 = vrot.slane %v723_v9, 2  ;;  %v731_v30 = vrot.slane %v730_v42, 2  ;;  %v751_v25 = vmax.f32 %v749_v13, %v750_v57  ;;  %v764_v34 = vrot.slane %v763_v11, 4 }
 0xdc9   : > { %v770_v4 = vsel %vm384_vm0, %v375_v18, -inf  ;;  %v738_v10 = vrot.slane %v737_v1, 2  ;;  %v745_v50 = vrot.slane %v744_v55, 2  ;;  %v758_v60 = vmax.f32 %v756_v51, %v757_v62  ;;  %v5815_v37 = vpop.permute.xlu2 %5814 }
 0xdca   : > { %v725_v20 = vmax.f32 %v723_v9, %v724_v53  ;;  %v732_v61 = vmax.f32 %v730_v42, %v731_v30  ;;  %v752_v45 = vrot.slane %v751_v25, 2  ;;  %v765_v12 = vmax.f32 %v763_v11, %v764_v34 }
 0xdcb   : > { %v771_v47 = vrot.slane %v770_v4, 4  ;;  %v739_v15 = vmax.f32 %v737_v1, %v738_v10  ;;  %v746_v22 = vmax.f32 %v744_v55, %v745_v50  ;;  %v759_v2 = vrot.slane %v758_v60, 2 }
 0xdcc   : > { %v726_v5 = vrot.slane %v725_v20, 1  ;;  %v733_v52 = vrot.slane %v732_v61, 1  ;;  %v753_v58 = vmax.f32 %v751_v25, %v752_v45  ;;  %v766_v26 = vrot.slane %v765_v12, 2 }
 0xdcd   : > { %v772_v35 = vmax.f32 %v770_v4, %v771_v47  ;;  %v740_v23 = vrot.slane %v739_v15, 1  ;;  %v747_v8 = vrot.slane %v746_v22, 1  ;;  %v760_v54 = vmax.f32 %v758_v60, %v759_v2 }
 0xdce   : > { %v727_v28 = vmax.f32 %v725_v20, %v726_v5  ;;  %v734_v41 = vmax.f32 %v732_v61, %v733_v52  ;;  %v754_v49 = vrot.slane %v753_v58, 1  ;;  %v767_v6 = vmax.f32 %v765_v12, %v766_v26 }
 0xdcf   : > { %v773_v27 = vrot.slane %v772_v35, 2  ;;  %v741_v43 = vmax.f32 %v739_v15, %v740_v23  ;;  %v748_v48 = vmax.f32 %v746_v22, %v747_v8  ;;  %v761_v46 = vrot.slane %v760_v54, 1 }
 0xdd0   : > { %v5643_v36 = vmul.f32 %v11179_v19, %v10965_v56  ;;  %v755_v38 = vmax.f32 %v753_v58, %v754_v49  ;;  %v768_v16 = vrot.slane %v767_v6, 1  ;;  %v5798_v14 = vsel %vm5749_vm6, %v734_v41, %v727_v28  ;;  %v5664_v19 = vpop.permute.xlu1 %5663  ;;  %v6495_v58 = vld [vmem:[%s11366_s5] ss:$0 sm:$0xff] }
 0xdd1   : > { %v774_v18 = vmax.f32 %v772_v35, %v773_v27  ;;  %v762_v17 = vmax.f32 %v760_v54, %v761_v46  ;;  %v5799_v0 = vsel %vm5751_vm7, %v741_v43, %v5798_v14  ;;  %v5836_v31 = vsel %vm3349_vm5, %v5662_v40, %v5813_v59 }
 0xdd2   : > { %v5651_v44 = vmax.f32 %v10756_v32, %v5643_v36  ;;  %v769_v29 = vmax.f32 %v767_v6, %v768_v16  ;;  %v5800_v7 = vsel %vm5753_vm8, %v748_v48, %v5799_v0  ;;  %6880 = vtanh.f32 %v5836_v31 }
 0xdd3   : > { %v775_v33 = vrot.slane %v774_v18, 1  ;;  %v5801_v13 = vsel %vm5755_vm9, %v755_v38, %v5800_v7  ;;  %v5644_v56 = vmul.f32 %v11185_v39, %v10990_v21  ;;  %v5837_v57 = vsel %vm3349_vm5, %v5664_v19, %v5815_v37 }
 0xdd4   : > { %5673 = vrot.lane.b32.xlu0 %v5651_v44, %s6941_s11  ;;  %v5802_v3 = vsel %vm5757_vm10, %v762_v17, %v5801_v13  ;;  %6882 = vtanh.f32 %v5837_v57 }
 0xdd5   : > { %v776_v9 = vmax.f32 %v774_v18, %v775_v33  ;;  %v5803_v32 = vsel %vm5759_vm11, %v769_v29, %v5802_v3  ;;  %v5652_v63 = vmax.f32 %v10761_v24, %v5644_v56 }
 0xdd7   : > { %v5804_v42 = vsel %vm5761_vm12, %v776_v9, %v5803_v32  ;;  %5675 = vrot.lane.b32.xlu2 %v5652_v63, %s6941_s11 }
 0xdd8   : > { %5824 = vrot.lane.b32.xlu1 %v5804_v42, %s6941_s11  ;;  %v6881_v51 = vpop.eup %6880  ;;  %v5817_v39 = vpop.permute.xlu1 %5816 }
 0xdd9   : > { %6408 = vmatmul.msk.f32.vlgmr.msrb.gmra.mxu0 %vm5868_vm13, %v6881_v51 }
 0xdda   : > { %v6883_v21 = vpop.eup %6882 }
 0xde1   : > { %6409 = vmatmul.msk.f32.gmra.mxu0 %vm5868_vm13, %v6883_v21 }
 0xdf6   : > { %v5666_v11 = vpop.permute.xlu0 %5665 }
 0xdf7   : > { %v5838_v24 = vsel %vm3349_vm5, %v5666_v11, %v5817_v39 }
 0xdf8   : > { %6884 = vtanh.f32 %v5838_v24 }
 0xdfe   : > { %v6885_v53 = vpop.eup %6884  ;;  %v5668_v1 = vpop.permute.xlu2 %5667 }
 0xdff   : > { %v5819_v55 = vpop.permute.xlu0 %5818  ;;  %6410 = vmatmul.msk.f32.gmra.mxu0 %vm5868_vm13, %v6885_v53 }
 0xe00   : > { %v5839_v62 = vsel %vm3349_vm5, %v5668_v1, %v5819_v55 }
 0xe01   : > { %6886 = vtanh.f32 %v5839_v62 }
 0xe07   : > { %v6887_v30 = vpop.eup %6886 }
 0xe08   : > { %6411 = vmatmul.msk.f32.gmra.mxu0 %vm5868_vm13, %v6887_v30 }
 0xe0e   : > { %v5672_v60 = vpop.permute.xlu0 %5671 }
 0xe1e   : > { %v5670_v25 = vpop.permute.xlu1 %5669 }
 0xe21   : > { %v5821_v34 = vpop.permute.xlu2 %5820 }
 0xe22   : > { %v5840_v4 = vsel %vm3349_vm5, %v5670_v25, %v5821_v34 }
 0xe23   : > { %6888 = vtanh.f32 %v5840_v4 }
 0xe29   : > { %v6889_v20 = vpop.eup %6888 }
 0xe2a   : > { %6412 = vmatmul.msk.f32.gmra.mxu0 %vm5868_vm13, %v6889_v20 }
 0xe2b   : > { %v6492_v10 = vpop.permute.xlu1 %6491 }
 0xe2c   : > { %v6493_v50 = vunpack.i.l.bf16 %v6492_v10  ;;  %v6494_v45 = vunpack.i.h.bf16 %v6492_v10 }
 0xe2e   : > { %v5841_v61 = vsel %vm3349_vm5, %v5672_v60, %v6493_v50 }
 0xe2f   : > { %6890 = vtanh.f32 %v5841_v61 }
 0xe31   : > { %v5676_v12 = vpop.permute.xlu2 %5675 }
 0xe32   : > { %v5843_v47 = vsel %vm3349_vm5, %v5676_v12, %v6494_v45 }
 0xe33   : > { %6892 = vtanh.f32 %v5843_v47 }
 0xe35   : > { %v6891_v5 = vpop.eup %6890 }
 0xe36   : > { %6413 = vmatmul.msk.f32.gmra.mxu0 %vm5868_vm13, %v6891_v5 }
 0xe39   : > { %v6893_v15 = vpop.eup %6892 }
 0xe3a   : > { %6415 = vmatmul.msk.f32.vlgmr.msra.gmra.mxu2 %vm5868_vm13, %v6893_v15 }
 0xe46   : > { %v5674_v22 = vpop.permute.xlu0 %5673 }
 0xe4a   : > { %v5825_v2 = vpop.permute.xlu1 %5824 }
 0xe4b   : > { %v5842_v40 = vsel %vm3349_vm5, %v5674_v22, %v5825_v2 }
 0xe4c   : > { %6894 = vtanh.f32 %v5842_v40 }
 0xe52   : > { %v6895_v52 = vpop.eup %6894 }
 0xe53   : > { %6414 = vmatmul.msk.f32.gmra.mxu0 %vm5868_vm13, %v6895_v52 }
 0xe56   : > { %v5910_v26 = vpop.f32.mrf.mxu0 }
 0xe57   : > { %v11247_v35 = vadd.f32 %v6495_v58, %v5910_v26 }
 0xe59   : > { %v5935_v28 = vsel %vm5934_vm14, %v11247_v35, -inf }
 0xe5a   : > { %5936 = vmax.xlane.f32.xlu2 %v5935_v28 }
 0xe5e   : > { %v5913_v23 = vpop.f32.mrf.mxu0 }
 0xe5f   : > { %v11251_v8 = vadd.f32 %v6495_v58, %v5913_v23 }
 0xe61   : > { %v5938_v54 = vsel %vm5934_vm14, %v11251_v8, -inf }
 0xe62   : > { %5939 = vmax.xlane.f32.xlu0 %v5938_v54 }
 0xe7c   : > { %v5916_v41 = vpop.f32.mrf.mxu0 }
 0xe7d   : > { %v11255_v49 = vadd.f32 %v6495_v58, %v5916_v41 }
 0xe7f   : > { %v5941_v6 = vsel %vm5934_vm14, %v11255_v49, -inf }
 0xe80   : > { %5942 = vmax.xlane.f32.xlu1 %v5941_v6 }
 0xe85   : > { %v5919_v27 = vpop.f32.mrf.mxu0 }
 0xe86   : > { %v11259_v59 = vadd.f32 %v6495_v58, %v5919_v27 }
 0xe88   : > { %v5944_v43 = vsel %vm5934_vm14, %v11259_v59, -inf }
 0xe89   : > { %5945 = vmax.xlane.f32.xlu2 %v5944_v43 }
 0xea7   : > { %v5922_v48 = vpop.f32.mrf.mxu0 }
 0xea8   : > { %v11263_v46 = vadd.f32 %v6495_v58, %v5922_v48 }
 0xeaa   : > { %v5947_v36 = vsel %vm5934_vm14, %v11263_v46, -inf }
 0xeab   : > { %5948 = vmax.xlane.f32.xlu2 %v5947_v36 }
 0xeb3   : > { %v5925_v38 = vpop.f32.mrf.mxu0 }
 0xeb4   : > { %v11267_v16 = vadd.f32 %v6495_v58, %v5925_v38 }
 0xeb6   : > { %v5950_v18 = vsel %vm5934_vm14, %v11267_v16, -inf }
 0xeb7   : > { %5951 = vmax.xlane.f32.xlu0 %v5950_v18 }
 0xebd   : > { %v5931_v14 = vpop.f32.mrf.mxu2 }
 0xebe   : > { %v11271_v17 = vadd.f32 %v6495_v58, %v5931_v14 }
 0xec0   : > { %v5956_v0 = vsel %vm5934_vm14, %v11271_v17, -inf }
 0xec1   : > { %5957 = vmax.xlane.f32.xlu2 %v5956_v0 }
 0xecd   : > { %v11275_v44 = vpop.xlane.xlu2 %5936 }
 0xece   : > { %v5959_v31 = vsub.f32 %v11247_v35, %v11275_v44 }
 0xed0   : > { %v5928_v29 = vpop.f32.mrf.mxu0  ;;  %v5967_v7 = vmul.f32 1.442695, %v5959_v31 }
 0xed1   : > { %v11279_v33 = vadd.f32 %v6495_v58, %v5928_v29 }
 0xed2   : > { %6896 = vpow2.f32 %v5967_v7 }
 0xed3   : > { %v5953_v13 = vsel %vm5934_vm14, %v11279_v33, -inf }
 0xed4   : > { %5954 = vmax.xlane.f32.xlu1 %v5953_v13 }
 0xed5   : > { %v11283_v56 = vpop.xlane.xlu0 %5939 }
 0xed6   : > { %v5960_v19 = vsub.f32 %v11251_v8, %v11283_v56 }
 0xed8   : > { %v6897_v37 = vpop.eup %6896  ;;  %v5969_v9 = vmul.f32 1.442695, %v5960_v19 }
 0xed9   : > { %v5983_v3 = vsel %vm5934_vm14, %v6897_v37, 0.0 }
 0xeda   : > { %6898 = vpow2.f32 %v5969_v9  ;;  %5984 = vadd.xlane.f32.xlu0 %v5983_v3 }
 0xee0   : > { %v6899_v32 = vpop.eup %6898 }
 0xee1   : > { %v5986_v63 = vsel %vm5934_vm14, %v6899_v32, 0.0 }
 0xee2   : > { %5987 = vadd.xlane.f32.xlu1 %v5986_v63 }
 0xef3   : > { %v11289_v42 = vpop.xlane.xlu1 %5942 }
 0xef4   : > { %v5961_v57 = vsub.f32 %v11255_v49, %v11289_v42 }
 0xef6   : > { %v5971_v51 = vmul.f32 1.442695, %v5961_v57 }
 0xef8   : > { %6900 = vpow2.f32 %v5971_v51 }
 0xefc   : > { %v11293_v21 = vpop.xlane.xlu2 %5945 }
 0xefd   : > { %v5962_v39 = vsub.f32 %v11259_v59, %v11293_v21 }
 0xefe   : > { %v6901_v11 = vpop.eup %6900 }
 0xeff   : > { %v5973_v24 = vmul.f32 1.442695, %v5962_v39  ;;  %v5989_v53 = vsel %vm5934_vm14, %v6901_v11, 0.0 }
 0xf00   : > { %5990 = vadd.xlane.f32.xlu2 %v5989_v53 }
 0xf01   : > { %6902 = vpow2.f32 %v5973_v24 }
 0xf07   : > { %v6903_v1 = vpop.eup %6902 }
 0xf08   : > { %v5992_v55 = vsel %vm5934_vm14, %v6903_v1, 0.0 }
 0xf09   : > { %5993 = vadd.xlane.f32.xlu0 %v5992_v55 }
 0xf1e   : > { %v11299_v62 = vpop.xlane.xlu2 %5948 }
 0xf1f   : > { %v5963_v30 = vsub.f32 %v11263_v46, %v11299_v62 }
 0xf21   : > { %v5975_v25 = vmul.f32 1.442695, %v5963_v30 }
 0xf23   : > { %6904 = vpow2.f32 %v5975_v25 }
 0xf29   : > { %v6905_v34 = vpop.eup %6904 }
 0xf2a   : > { %v11303_v4 = vpop.xlane.xlu0 %5951  ;;  %v5995_v10 = vsel %vm5934_vm14, %v6905_v34, 0.0 }
 0xf2b   : > { %v5964_v20 = vsub.f32 %v11267_v16, %v11303_v4  ;;  %5996 = vadd.xlane.f32.xlu1 %v5995_v10 }
 0xf2d   : > { %v5977_v50 = vmul.f32 1.442695, %v5964_v20 }
 0xf2f   : > { %6906 = vpow2.f32 %v5977_v50 }
 0xf34   : > { %v11308_v61 = vpop.xlane.xlu2 %5957 }
 0xf35   : > { %v6907_v60 = vpop.eup %6906  ;;  %v5966_v12 = vsub.f32 %v11271_v17, %v11308_v61 }
 0xf36   : > { %v5998_v45 = vsel %vm5934_vm14, %v6907_v60, 0.0 }
 0xf37   : > { %5999 = vadd.xlane.f32.xlu2 %v5998_v45  ;;  %v5981_v47 = vmul.f32 1.442695, %v5966_v12 }
 0xf39   : > { %6908 = vpow2.f32 %v5981_v47 }
 0xf3f   : > { %v6909_v5 = vpop.eup %6908 }
 0xf40   : > { %v6004_v15 = vsel %vm5934_vm14, %v6909_v5, 0.0 }
 0xf41   : > { %6005 = vadd.xlane.f32.xlu1 %v6004_v15 }
 0xf47   : > { %v11314_v22 = vpop.xlane.xlu1 %5954 }
 0xf48   : > { %v5965_v2 = vsub.f32 %v11279_v33, %v11314_v22 }
 0xf4a   : > { %v5979_v40 = vmul.f32 1.442695, %v5965_v2 }
 0xf4c   : > { %6910 = vpow2.f32 %v5979_v40 }
 0xf4d   : > { %v5985_v52 = vpop.xlane.xlu0 %5984 }
 0xf4e   : > { %6912 = vlog2.f32 %v5985_v52 }
 0xf52   : > { %v6911_v58 = vpop.eup %6910 }
 0xf53   : > { %v6001_v26 = vsel %vm5934_vm14, %v6911_v58, 0.0 }
 0xf54   : > { %6002 = vadd.xlane.f32.xlu0 %v6001_v26  ;;  %v6913_v28 = vpop.eup %6912 }
 0xf55   : > { %v6008_v23 = vmul.f32 0.6931472, %v6913_v28  ;;  %v5988_v54 = vpop.xlane.xlu1 %5987 }
 0xf56   : > { %6914 = vlog2.f32 %v5988_v54 }
 0xf57   : > { %v6023_v41 = vadd.f32 %v6008_v23, %v11275_v44 }
 0xf59   : > { %v6031_v6 = vsub.f32 %v11247_v35, %v6023_v41 }
 0xf5b   : > { %6039 = vst.msk [vmem:[%s11325_s22] sm:$0xff] %vm5934_vm14, %v6031_v6 }
 0xf5c   : > { %v6915_v27 = vpop.eup %6914 }
 0xf5d   : > { %v6010_v43 = vmul.f32 0.6931472, %v6915_v27 }
 0xf5f   : > { %v6024_v48 = vadd.f32 %v6010_v43, %v11283_v56 }
 0xf61   : > { %v6032_v36 = vsub.f32 %v11251_v8, %v6024_v48 }
 0xf63   : > { %6040 = vst.msk [vmem:[%s11325_s22 + $0x8] sm:$0xff] %vm5934_vm14, %v6032_v36 }
 0xf73   : > { %v5991_v38 = vpop.xlane.xlu2 %5990 }
 0xf74   : > { %6916 = vlog2.f32 %v5991_v38 }
 0xf7a   : > { %v6917_v18 = vpop.eup %6916 }
 0xf7b   : > { %v6012_v14 = vmul.f32 0.6931472, %v6917_v18 }
 0xf7c   : > { %v5994_v0 = vpop.xlane.xlu0 %5993 }
 0xf7d   : > { %6918 = vlog2.f32 %v5994_v0  ;;  %v6025_v44 = vadd.f32 %v6012_v14, %v11289_v42 }
 0xf7f   : > { %v6033_v35 = vsub.f32 %v11255_v49, %v6025_v44 }
 0xf81   : > { %6041 = vst.msk [vmem:[%s11325_s22 + $0x10] sm:$0xff] %vm5934_vm14, %v6033_v35 }
 0xf83   : > { %v6919_v31 = vpop.eup %6918 }
 0xf84   : > { %v6014_v29 = vmul.f32 0.6931472, %v6919_v31 }
 0xf86   : > { %v6026_v7 = vadd.f32 %v6014_v29, %v11293_v21 }
 0xf88   : > { %v6034_v8 = vsub.f32 %v11259_v59, %v6026_v7 }
 0xf8a   : > { %6042 = vst.msk [vmem:[%s11325_s22 + $0x18] sm:$0xff] %vm5934_vm14, %v6034_v8 }
 0xf9e   : > { %v5997_v13 = vpop.xlane.xlu1 %5996 }
 0xf9f   : > { %6920 = vlog2.f32 %v5997_v13 }
 0xfa5   : > { %v6921_v56 = vpop.eup %6920 }
 0xfa6   : > { %v6016_v19 = vmul.f32 0.6931472, %v6921_v56 }
 0xfa8   : > { %v6027_v37 = vadd.f32 %v6016_v19, %v11299_v62 }
 0xfaa   : > { %v6000_v9 = vpop.xlane.xlu2 %5999  ;;  %v6035_v49 = vsub.f32 %v11263_v46, %v6027_v37 }
 0xfab   : > { %6922 = vlog2.f32 %v6000_v9 }
 0xfac   : > { %6043 = vst.msk [vmem:[%s11325_s22 + $0x20] sm:$0xff] %vm5934_vm14, %v6035_v49 }
 0xfb1   : > { %v6923_v3 = vpop.eup %6922 }
 0xfb2   : > { %v6018_v32 = vmul.f32 0.6931472, %v6923_v3 }
 0xfb4   : > { %v6028_v59 = vadd.f32 %v6018_v32, %v11303_v4  ;;  %v6006_v42 = vpop.xlane.xlu1 %6005 }
 0xfb5   : > { %6924 = vlog2.f32 %v6006_v42 }
 0xfb6   : > { %v6036_v63 = vsub.f32 %v11267_v16, %v6028_v59 }
 0xfb8   : > { %6044 = vst.msk [vmem:[%s11325_s22 + $0x28] sm:$0xff] %vm5934_vm14, %v6036_v63 }
 0xfbb   : > { %v6925_v57 = vpop.eup %6924 }
 0xfbc   : > { %v6022_v51 = vmul.f32 0.6931472, %v6925_v57 }
 0xfbe   : > { %v6030_v21 = vadd.f32 %v6022_v51, %v11308_v61 }
 0xfc0   : > { %v6038_v46 = vsub.f32 %v11271_v17, %v6030_v21 }
 0xfc2   : > { %6046 = vst.msk [vmem:[%s11325_s22 + $0x38] sm:$0xff] %vm5934_vm14, %v6038_v46 }
 0xfc7   : > { %v6003_v39 = vpop.xlane.xlu0 %6002 }
 0xfc8   : > { %6926 = vlog2.f32 %v6003_v39 }
 0xfce   : > { %v6927_v11 = vpop.eup %6926 }
 0xfcf   : > { %v6020_v24 = vmul.f32 0.6931472, %v6927_v11 }
 0xfd1   : > { %v6029_v53 = vadd.f32 %v6020_v24, %v11314_v22 }
 0xfd3   : > { %v6037_v16 = vsub.f32 %v11279_v33, %v6029_v53 }
 0xfd5   : > { %6045 = vst.msk [vmem:[%s11325_s22 + $0x30] sm:$0xff] %vm5934_vm14, %v6037_v16 }
 0xfd6 PF: > { %s16_s21 = sadd.s32 1, %s6936_s21  }
 0xfd7   : > { %p13_p5 = scmp.ge.s32.totalorder %s16_s21, 6  }
 0xfd9   :  { %15 = sbr.rel (!%p13_p5) target bundleno = 1 (0x1), region = 74 }

</bundles_post_ra>
